<compile_context>
chip_gen: v7x
topology: tpu7x:2x2x1
jax: 0.10.0
libtpu: 0.0.40
codegen_flags: <defaults>
</compile_context>

<pallas_src>
import functools
import math

import jax
import jax.numpy as jnp
from jax.experimental import pallas as pl
from jax.experimental.pallas import tpu as pltpu

F32 = jnp.float32
BF16 = jnp.bfloat16


# ----------------------------------------------------------------------------
# Helpers traced inside the kernel bodies
# ----------------------------------------------------------------------------
def _w_spec(a):
    """Broadcast (weight) input: full array, same block every grid step."""
    nd = a.ndim
    return pl.BlockSpec(a.shape, lambda b, nd=nd: (0,) * nd)


def _mm(a, w, b=None):
    """MXU matmul: activations cast to bf16, weights pre-cast to bf16, f32 acc."""
    acc = jnp.dot(a.astype(BF16), w, preferred_element_type=F32)
    if b is not None:
        acc = acc + b
    return acc


def _layernorm(x, g, b, eps):
    mu = jnp.mean(x, axis=-1, keepdims=True)
    xc = x - mu
    var = jnp.mean(xc * xc, axis=-1, keepdims=True)
    return xc * jax.lax.rsqrt(var + eps) * g + b


def _softmax_rows(s):
    s = s - jnp.max(s, axis=-1, keepdims=True)
    p = jnp.exp(s)
    return p * pl.reciprocal(jnp.sum(p, axis=-1, keepdims=True), approx=True)


def _mha(q, k, v, nheads):
    """Multi-head attention core; heads are a batch dim of two einsums."""
    L, D = q.shape
    Lk = k.shape[0]
    dh = D // nheads
    scale = 1.0 / math.sqrt(dh)
    qh = jnp.transpose(q.reshape(L, nheads, dh), (1, 0, 2)).astype(BF16)   # [H,L,dh]
    kh = jnp.transpose(k.reshape(Lk, nheads, dh), (1, 0, 2)).astype(BF16)  # [H,Lk,dh]
    vh = jnp.transpose(v.reshape(Lk, nheads, dh), (1, 0, 2)).astype(BF16)  # [H,Lk,dh]
    s = jnp.einsum("hqd,hkd->hqk", qh, kh, preferred_element_type=F32) * scale
    p = _softmax_rows(s)
    o = jnp.einsum("hqk,hkd->hqd", p.astype(BF16), vh, preferred_element_type=F32)
    return jnp.transpose(o, (1, 0, 2)).reshape(L, D)                        # [L, D]


# ----------------------------------------------------------------------------
# Kernel 1: backbone im2col matmul + bias + position-encoding add (tiled over M)
# ----------------------------------------------------------------------------
def _backbone_kernel(cols_ref, w_ref, b_ref, pos_ref, o_ref):
    o_ref[...] = (jnp.dot(cols_ref[...], w_ref[...], preferred_element_type=F32)
                  + b_ref[...] + pos_ref[...])


def backbone_conv_tokens(imgs_nchw, w, b, pos_nd):
    """3x3 stride-2 conv (pad=1) as im2col + tiled Pallas matmul, fused with the
    position-encoding add.  Returns tokens [B*OH*OW, D] (f32)."""
    x = jnp.transpose(imgs_nchw, (0, 2, 3, 1))            # NCHW -> NHWC
    B, Him, Wim, Cin = x.shape
    k, stride, pad = 3, 2, 1
    OH, OW = Him // stride, Wim // stride
    N = OH * OW
    D = w.shape[1]
    # TODO(synk): im2col stays in XLA; at real image sizes fuse patch extraction
    # into the kernel (lax.conv or in-kernel DMA over OHxOW tiles).
    xp = jnp.pad(x, ((0, 0), (pad, pad), (pad, pad), (0, 0)))
    patches = []
    for dy in range(k):
        for dx in range(k):
            patches.append(xp[:, dy:dy + OH * stride:stride,
                               dx:dx + OW * stride:stride, :])
    patches = jnp.stack(patches, axis=-2)                 # [B,OH,OW,9,Cin]
    Kc = k * k * Cin
    M = B * N
    cols = patches.reshape(M, Kc).astype(BF16)            # bf16 halves im2col HBM
    Kp = ((Kc + 31) // 32) * 32                           # pad ragged contraction
    # M-tile ~256 rows and a multiple of N so the pos tile repeats exactly.
    TM = N if N >= 256 else N * max(1, 256 // N)
    Mp = ((M + TM - 1) // TM) * TM
    cols = jnp.pad(cols, ((0, Mp - M), (0, Kp - Kc)))
    w_p = jnp.zeros((Kp, D), BF16).at[:Kc, :].set(w.astype(BF16))
    pos_tile = jnp.tile(pos_nd, (TM // N, 1))             # [TM, D], reused each step

    out = pl.pallas_call(
        _backbone_kernel,
        out_shape=jax.ShapeDtypeStruct((Mp, D), F32),
        grid=(Mp // TM,),
        in_specs=[
            pl.BlockSpec((TM, Kp), lambda i: (i, 0)),
            pl.BlockSpec((Kp, D), lambda i: (0, 0)),
            pl.BlockSpec((1, D), lambda i: (0, 0)),
            pl.BlockSpec((TM, D), lambda i: (0, 0)),
        ],
        out_specs=pl.BlockSpec((TM, D), lambda i: (i, 0)),
        compiler_params=pltpu.CompilerParams(dimension_semantics=("parallel",)),
    )(cols, w_p, b.reshape(1, D), pos_tile)
    return out[:M]


# ----------------------------------------------------------------------------
# Kernel 2: fused transformer-encoder layer (fused QKV) + OA scoring head
#           grid=(B,), one batch element per step
# ----------------------------------------------------------------------------
def _encoder_kernel(x_ref, wqkv_ref, bqkv_ref, wo_ref, bo_ref,
                    ln1g_ref, ln1b_ref, w1_ref, b1_ref, w2_ref, b2_ref,
                    ln2g_ref, ln2b_ref, ws_ref, bs_ref,
                    enc_ref, score_ref, *, H, eps):
    # TODO(synk): for realistic N add a second ("arbitrary") grid axis that
    # streams K/V over N-chunks (flash-style) instead of full-N attention.
    x = x_ref[...]                                        # [N, D] f32
    D = x.shape[1]
    qkv = _mm(x, wqkv_ref[...], bqkv_ref[...])            # fused projection [N, 3D]
    attn = _mha(qkv[:, :D], qkv[:, D:2 * D], qkv[:, 2 * D:], H)
    x = x + _mm(attn, wo_ref[...], bo_ref[...])
    x = _layernorm(x, ln1g_ref[...], ln1b_ref[...], eps)
    hid = jnp.maximum(_mm(x, w1_ref[...], b1_ref[...]), 0.0)
    x = x + _mm(hid, w2_ref[...], b2_ref[...])
    x = _layernorm(x, ln2g_ref[...], ln2b_ref[...], eps)
    enc_ref[...] = x
    # OA score head: [1,D]·[N,D]^T -> lane-dense [1,N] store (f32, exact for top-k).
    score_ref[...] = jnp.einsum("od,nd->on", ws_ref[...], x,
                                preferred_element_type=F32) + bs_ref[...]


# ----------------------------------------------------------------------------
# Kernel 3: in-kernel OA gather + spatial/semantic MLPs + aggregator +
#           query refiner + HOI decoder + fused (act|obj) head
#           grid=(B,), one batch element per step
# ----------------------------------------------------------------------------
def _hoi_kernel(enc_ref, idx_ref, wf1_ref, bf1_ref, wf2a_ref, wf2b_ref, bf2_ref,
                wat_ref, wab_ref, ba_ref, q_ref, rwq_ref, rbq_ref, rwkv_ref,
                rbkv_ref, rwo_ref, rbo_ref, rlng_ref, rlnb_ref,
                dwq_ref, dbq_ref, dwkv_ref, dbkv_ref, dwo_ref, dbo_ref,
                dln1g_ref, dln1b_ref, dw1_ref, db1_ref, dw2_ref, db2_ref,
                dln2g_ref, dln2b_ref, wp_ref, bp_ref, out_ref, *, H, eps):
    enc = enc_ref[...]                                    # [N, D] f32
    N, D = enc.shape
    Noa = idx_ref.shape[0]

    # --- OA gather inside the kernel: one-hot [Noa,N] @ enc (exact, f32 MXU) ---
    iota = jax.lax.broadcasted_iota(jnp.int32, (Noa, N), 1)
    onehot = (idx_ref[...] == iota).astype(F32)           # idx_ref: [Noa, 1] int32
    oas = jnp.dot(onehot, enc, preferred_element_type=F32)        # [Noa, D]

    # --- spatial + semantic MLPs (layer 1 fused; layer 2 kept as two dense GEMMs) ---
    hf = jnp.maximum(_mm(oas, wf1_ref[...], bf1_ref[...]), 0.0)   # [Noa, 2D]
    f_sp = _mm(hf[:, :D], wf2a_ref[...]) + bf2_ref[:, :D]         # spatial  [Noa, D]
    f_sm = _mm(hf[:, D:], wf2b_ref[...]) + bf2_ref[:, D:]         # semantic [Noa, D]
    # --- feature aggregator: concat(spatial, semantic) @ Wa == split matmuls ---
    agg = _mm(f_sp, wat_ref[...]) + _mm(f_sm, wab_ref[...]) + ba_ref[...]

    # --- query refiner: learnable queries cross-attend to aggregated OA feats ---
    q_lat = q_ref[...]                                            # [Nq, D]
    q_proj = _mm(q_lat, rwq_ref[...], rbq_ref[...])
    kv = _mm(agg, rwkv_ref[...], rbkv_ref[...])                   # fused K,V [Noa, 2D]
    att = _mha(q_proj, kv[:, :D], kv[:, D:], H)
    refined = q_lat + _mm(att, rwo_ref[...], rbo_ref[...])
    refined = _layernorm(refined, rlng_ref[...], rlnb_ref[...], eps)

    # --- HOI decoder: refined queries cross-attend to encoded image tokens ---
    qd = _mm(refined, dwq_ref[...], dbq_ref[...])
    kvd = _mm(enc, dwkv_ref[...], dbkv_ref[...])                  # [N, 2D]
    attd = _mha(qd, kvd[:, :D], kvd[:, D:], H)
    dec = refined + _mm(attd, dwo_ref[...], dbo_ref[...])
    dec = _layernorm(dec, dln1g_ref[...], dln1b_ref[...], eps)
    hd = jnp.maximum(_mm(dec, dw1_ref[...], db1_ref[...]), 0.0)
    dec = dec + _mm(hd, dw2_ref[...], db2_ref[...])
    dec = _layernorm(dec, dln2g_ref[...], dln2b_ref[...], eps)

    # --- HOI predictor: act|obj heads fused, 128-lane-dense output ---
    out_ref[...] = _mm(dec, wp_ref[...], bp_ref[...])             # [Nq, 128]


# ----------------------------------------------------------------------------
# Plain-JAX glue
# ----------------------------------------------------------------------------
def sinusoidal_pos_encoding_2d(h, w, d):
    d_half = d // 2

    def enc1d(n, dd):
        pos = jnp.arange(n, dtype=F32)[:, None]
        i = jnp.arange(dd // 2, dtype=F32)[None, :]
        div = jnp.exp(-jnp.log(10000.0) * (2.0 * i) / dd)
        ang = pos * div
        return jnp.concatenate([jnp.sin(ang), jnp.cos(ang)], axis=-1)

    ey = jnp.broadcast_to(enc1d(h, d_half)[:, None, :], (h, w, d_half))
    ex = jnp.broadcast_to(enc1d(w, d_half)[None, :, :], (h, w, d_half))
    return jnp.concatenate([ey, ex], axis=-1)             # [h, w, d]


def ssrt_forward(params, imgs, *, num_oas, n_queries, nheads=4, eps=1e-5):
    B = imgs.shape[0]
    Him, Wim = imgs.shape[2], imgs.shape[3]
    OH, OW = Him // 2, Wim // 2
    N = OH * OW
    D = params["backbone"]["w"].shape[1]
    VMEM_LIMIT = 32 * 1024 * 1024

    bf = lambda a: a.astype(BF16)
    row = lambda v: v.reshape(1, -1)

    # --- backbone conv + position encoder (fused, tiled over M) ---
    pos = sinusoidal_pos_encoding_2d(OH, OW, D).reshape(N, D)
    tokens = backbone_conv_tokens(imgs, params["backbone"]["w"],
                                  params["backbone"]["b"], pos)   # [B*N, D]
    tokens = tokens.reshape(B, N, D)                              # grid2vector layout

    # --- fused encoder layer + OA scoring head (grid over batch) ---
    ep = params["encoder"]
    wqkv = bf(jnp.concatenate([ep["mha"]["q"]["w"], ep["mha"]["k"]["w"],
                               ep["mha"]["v"]["w"]], axis=1))
    bqkv = row(jnp.concatenate([ep["mha"]["q"]["b"], ep["mha"]["k"]["b"],
                                ep["mha"]["v"]["b"]], axis=0))
    enc_args = [
        tokens, wqkv, bqkv,
        bf(ep["mha"]["o"]["w"]), row(ep["mha"]["o"]["b"]),
        row(ep["ln1"]["g"]), row(ep["ln1"]["b"]),
        bf(ep["ffn1"]["w"]), row(ep["ffn1"]["b"]),
        bf(ep["ffn2"]["w"]), row(ep["ffn2"]["b"]),
        row(ep["ln2"]["g"]), row(ep["ln2"]["b"]),
        params["oas"]["w"].reshape(1, D),            # f32 on purpose (exact scores)
        params["oas"]["b"].reshape(1, 1),
    ]
    enc_specs = ([pl.BlockSpec((None, N, D), lambda b: (b, 0, 0))]
                 + [_w_spec(a) for a in enc_args[1:]])
    enc, scores = pl.pallas_call(
        functools.partial(_encoder_kernel, H=nheads, eps=eps),
        out_shape=(jax.ShapeDtypeStruct((B, N, D), F32),
                   jax.ShapeDtypeStruct((B, 1, N), F32)),
        grid=(B,),
        in_specs=enc_specs,
        out_specs=(pl.BlockSpec((None, N, D), lambda b: (b, 0, 0)),
                   pl.BlockSpec((None, 1, N), lambda b: (b, 0, 0))),
        compiler_params=pltpu.CompilerParams(
            dimension_semantics=("parallel",), vmem_limit_bytes=VMEM_LIMIT),
    )(*enc_args)

    # --- OA candidate sampler: only top-k selection stays in XLA ---
    # TODO(synk): top-k candidate selection has no clean Pallas equivalent.
    _, idx = jax.lax.top_k(scores.reshape(B, N), num_oas)
    idx = idx.astype(jnp.int32).reshape(B, num_oas, 1)     # gather happens in kernel 3

    # --- fold parameters for the fused post-OA kernel ---
    sp, sm = params["spatial"], params["semantic"]
    qr, dp, pr = params["refiner"], params["decoder"], params["pred"]
    wf1 = bf(jnp.concatenate([sp["l1"]["w"], sm["l1"]["w"]], axis=1))      # [D, 2D]
    bf1 = row(jnp.concatenate([sp["l1"]["b"], sm["l1"]["b"]], axis=0))
    bf2 = row(jnp.concatenate([sp["l2"]["b"], sm["l2"]["b"]], axis=0))
    r_wkv = bf(jnp.concatenate([qr["mha"]["k"]["w"], qr["mha"]["v"]["w"]], axis=1))
    r_bkv = row(jnp.concatenate([qr["mha"]["k"]["b"], qr["mha"]["v"]["b"]], axis=0))
    d_wkv = bf(jnp.concatenate([dp["mha"]["k"]["w"], dp["mha"]["v"]["w"]], axis=1))
    d_bkv = row(jnp.concatenate([dp["mha"]["k"]["b"], dp["mha"]["v"]["b"]], axis=0))

    nact = pr["act"]["w"].shape[1]
    nobj = pr["obj"]["w"].shape[1]
    P = 128                                   # lane-dense padded prediction width
    wp = jnp.zeros((D, P), F32).at[:, :nact].set(pr["act"]["w"]) \
                               .at[:, nact:nact + nobj].set(pr["obj"]["w"])
    bp = jnp.zeros((P,), F32).at[:nact].set(pr["act"]["b"]) \
                             .at[nact:nact + nobj].set(pr["obj"]["b"])

    hoi_args = [
        enc, idx,
        wf1, bf1, bf(sp["l2"]["w"]), bf(sm["l2"]["w"]), bf2,
        bf(params["agg"]["w"][:D]), bf(params["agg"]["w"][D:]),
        row(params["agg"]["b"]),
        qr["queries"],
        bf(qr["mha"]["q"]["w"]), row(qr["mha"]["q"]["b"]),
        r_wkv, r_bkv,
        bf(qr["mha"]["o"]["w"]), row(qr["mha"]["o"]["b"]),
        row(qr["ln"]["g"]), row(qr["ln"]["b"]),
        bf(dp["mha"]["q"]["w"]), row(dp["mha"]["q"]["b"]),
        d_wkv, d_bkv,
        bf(dp["mha"]["o"]["w"]), row(dp["mha"]["o"]["b"]),
        row(dp["ln1"]["g"]), row(dp["ln1"]["b"]),
        bf(dp["ffn1"]["w"]), row(dp["ffn1"]["b"]),
        bf(dp["ffn2"]["w"]), row(dp["ffn2"]["b"]),
        row(dp["ln2"]["g"]), row(dp["ln2"]["b"]),
        bf(wp), row(bp),
    ]
    hoi_specs = ([pl.BlockSpec((None, N, D), lambda b: (b, 0, 0)),
                  pl.BlockSpec((None, num_oas, 1), lambda b: (b, 0, 0))]
                 + [_w_spec(a) for a in hoi_args[2:]])
    logits = pl.pallas_call(
        functools.partial(_hoi_kernel, H=nheads, eps=eps),
        out_shape=jax.ShapeDtypeStruct((B, n_queries, P), F32),
        grid=(B,),
        in_specs=hoi_specs,
        out_specs=pl.BlockSpec((None, n_queries, P), lambda b: (b, 0, 0)),
        compiler_params=pltpu.CompilerParams(
            dimension_semantics=("parallel",), vmem_limit_bytes=VMEM_LIMIT),
    )(*hoi_args)

    return {"action_logits": logits[:, :, :nact],
            "object_logits": logits[:, :, nact:nact + nobj]}


# ----------------------------------------------------------------------------
# Deterministic parameter init (synthetic weights, natural per-submodule layout)
# ----------------------------------------------------------------------------
def init_params(key, *, cin=3, d=32, ffn=64, n_queries=8, nact=6, nobj=5):
    it = iter(jax.random.split(key, 40))

    def lin(kin, kout):
        w = jax.random.normal(next(it), (kin, kout), F32) / math.sqrt(kin)
        return {"w": w.astype(F32), "b": jnp.zeros((kout,), F32)}

    def mha_p():
        return {"q": lin(d, d), "k": lin(d, d), "v": lin(d, d), "o": lin(d, d)}

    def ln_p():
        return {"g": jnp.ones((d,), F32), "b": jnp.zeros((d,), F32)}

    return {
        "backbone": lin(cin * 9, d),
        "encoder": {"mha": mha_p(), "ln1": ln_p(),
                    "ffn1": lin(d, ffn), "ffn2": lin(ffn, d), "ln2": ln_p()},
        "oas": lin(d, 1),
        "spatial": {"l1": lin(d, d), "l2": lin(d, d)},
        "semantic": {"l1": lin(d, d), "l2": lin(d, d)},
        "agg": lin(2 * d, d),
        "refiner": {"queries": 0.02 * jax.random.normal(next(it), (n_queries, d), F32),
                    "mha": mha_p(), "ln": ln_p()},
        "decoder": {"mha": mha_p(), "ln1": ln_p(),
                    "ffn1": lin(d, ffn), "ffn2": lin(ffn, d), "ln2": ln_p()},
        "pred": {"act": lin(d, nact), "obj": lin(d, nobj)},
    }


# ----------------------------------------------------------------------------
if __name__ == "__main__":
    B, CIN, H, W = 2, 3, 16, 16
    NUM_OAS, NOBJ, NACT, N_QUERIES = 8, 5, 6, 8

    key = jax.random.PRNGKey(0)
    pkey, xkey = jax.random.split(key)
    params = init_params(pkey, cin=CIN, d=32, ffn=64,
                         n_queries=N_QUERIES, nact=NACT, nobj=NOBJ)
    imgs = jax.random.normal(xkey, (B, CIN, H, W), F32)

    fwd = jax.jit(functools.partial(ssrt_forward, num_oas=NUM_OAS,
                                    n_queries=N_QUERIES, nheads=4))
    preds = fwd(params, imgs)
    jax.block_until_ready(preds)

    assert preds["action_logits"].shape == (B, N_QUERIES, NACT)
    assert preds["object_logits"].shape == (B, N_QUERIES, NOBJ)
    print("KERNEL_OK")
</pallas_src>

<mosaic_0001>
module attributes {stable_mosaic.version = 11 : i64} {
  func.func @_encoder_kernel(%arg0: i32, %arg1: memref<1x64x32xf32, #tpu.memory_space<vmem>>, %arg2: memref<32x96xbf16, #tpu.memory_space<vmem>>, %arg3: memref<1x96xf32, #tpu.memory_space<vmem>>, %arg4: memref<32x32xbf16, #tpu.memory_space<vmem>>, %arg5: memref<1x32xf32, #tpu.memory_space<vmem>>, %arg6: memref<1x32xf32, #tpu.memory_space<vmem>>, %arg7: memref<1x32xf32, #tpu.memory_space<vmem>>, %arg8: memref<32x64xbf16, #tpu.memory_space<vmem>>, %arg9: memref<1x64xf32, #tpu.memory_space<vmem>>, %arg10: memref<64x32xbf16, #tpu.memory_space<vmem>>, %arg11: memref<1x32xf32, #tpu.memory_space<vmem>>, %arg12: memref<1x32xf32, #tpu.memory_space<vmem>>, %arg13: memref<1x32xf32, #tpu.memory_space<vmem>>, %arg14: memref<1x32xf32, #tpu.memory_space<vmem>>, %arg15: memref<1x1xf32, #tpu.memory_space<vmem>>, %arg16: memref<1x64x32xf32, #tpu.memory_space<vmem>>, %arg17: memref<1x1x64xf32, #tpu.memory_space<vmem>>) attributes {dimension_semantics = [#tpu.dimension_semantics<parallel>], iteration_bounds = array<i64: 2>, scalar_prefetch = 0 : i64, scratch_operands = 0 : i64, tpu.core_type = #tpu.core_type<tc>, window_params = [{transform_indices = @transform_0, window_bounds = array<i64: 1, 64, 32>}, {pipeline_mode = #tpu.pipeline_mode<synchronous>, transform_indices = @transform_1, window_bounds = array<i64: 32, 96>}, {pipeline_mode = #tpu.pipeline_mode<synchronous>, transform_indices = @transform_2, window_bounds = array<i64: 1, 96>}, {pipeline_mode = #tpu.pipeline_mode<synchronous>, transform_indices = @transform_3, window_bounds = array<i64: 32, 32>}, {pipeline_mode = #tpu.pipeline_mode<synchronous>, transform_indices = @transform_4, window_bounds = array<i64: 1, 32>}, {pipeline_mode = #tpu.pipeline_mode<synchronous>, transform_indices = @transform_5, window_bounds = array<i64: 1, 32>}, {pipeline_mode = #tpu.pipeline_mode<synchronous>, transform_indices = @transform_6, window_bounds = array<i64: 1, 32>}, {pipeline_mode = #tpu.pipeline_mode<synchronous>, transform_indices = @transform_7, window_bounds = array<i64: 32, 64>}, {pipeline_mode = #tpu.pipeline_mode<synchronous>, transform_indices = @transform_8, window_bounds = array<i64: 1, 64>}, {pipeline_mode = #tpu.pipeline_mode<synchronous>, transform_indices = @transform_9, window_bounds = array<i64: 64, 32>}, {pipeline_mode = #tpu.pipeline_mode<synchronous>, transform_indices = @transform_10, window_bounds = array<i64: 1, 32>}, {pipeline_mode = #tpu.pipeline_mode<synchronous>, transform_indices = @transform_11, window_bounds = array<i64: 1, 32>}, {pipeline_mode = #tpu.pipeline_mode<synchronous>, transform_indices = @transform_12, window_bounds = array<i64: 1, 32>}, {pipeline_mode = #tpu.pipeline_mode<synchronous>, transform_indices = @transform_13, window_bounds = array<i64: 1, 32>}, {pipeline_mode = #tpu.pipeline_mode<synchronous>, transform_indices = @transform_14, window_bounds = array<i64: 1, 1>}, {transform_indices = @transform_15, window_bounds = array<i64: 1, 64, 32>}, {transform_indices = @transform_16, window_bounds = array<i64: 1, 1, 64>}]} {
    %c0 = arith.constant 0 : index
    %c0_0 = arith.constant 0 : index
    %c0_1 = arith.constant 0 : index
    %0 = vector.load %arg1[%c0, %c0_0, %c0_1] : memref<1x64x32xf32, #tpu.memory_space<vmem>>, vector<1x64x32xf32>
    %1 = vector.shape_cast %0 : vector<1x64x32xf32> to vector<64x32xf32>
    %c0_2 = arith.constant 0 : index
    %c0_3 = arith.constant 0 : index
    %2 = vector.load %arg2[%c0_2, %c0_3] : memref<32x96xbf16, #tpu.memory_space<vmem>>, vector<32x96xbf16>
    %c0_4 = arith.constant 0 : index
    %c0_5 = arith.constant 0 : index
    %3 = vector.load %arg3[%c0_4, %c0_5] : memref<1x96xf32, #tpu.memory_space<vmem>>, vector<1x96xf32>
    %4 = arith.truncf %1 : vector<64x32xf32> to vector<64x32xbf16>
    %cst = arith.constant dense<0.000000e+00> : vector<64x96xf32>
    %5 = tpu.matmul %4, %2, %cst {dimension_numbers = #tpu.dot_dimension_numbers<[1], [0], [0], [1], [0, 0, 1, 1], [], []>} : vector<64x32xbf16>, vector<32x96xbf16>, vector<64x96xf32> -> vector<64x96xf32>
    %6 = vector.broadcast %3 : vector<1x96xf32> to vector<64x96xf32>
    %7 = arith.addf %5, %6 : vector<64x96xf32>
    %8 = vector.extract_strided_slice %7 {offsets = [0, 0], sizes = [64, 32], strides = [1, 1]} : vector<64x96xf32> to vector<64x32xf32>
    %9 = vector.extract_strided_slice %7 {offsets = [0, 32], sizes = [64, 32], strides = [1, 1]} : vector<64x96xf32> to vector<64x32xf32>
    %10 = vector.extract_strided_slice %7 {offsets = [0, 64], sizes = [64, 32], strides = [1, 1]} : vector<64x96xf32> to vector<64x32xf32>
    %11 = vector.shape_cast %8 : vector<64x32xf32> to vector<64x4x8xf32>
    %12 = tpu.transpose %11, [1, 0, 2] : vector<64x4x8xf32> -> vector<4x64x8xf32>
    %13 = arith.truncf %12 : vector<4x64x8xf32> to vector<4x64x8xbf16>
    %14 = vector.shape_cast %9 : vector<64x32xf32> to vector<64x4x8xf32>
    %15 = tpu.transpose %14, [1, 0, 2] : vector<64x4x8xf32> -> vector<4x64x8xf32>
    %16 = arith.truncf %15 : vector<4x64x8xf32> to vector<4x64x8xbf16>
    %17 = vector.shape_cast %10 : vector<64x32xf32> to vector<64x4x8xf32>
    %18 = tpu.transpose %17, [1, 0, 2] : vector<64x4x8xf32> -> vector<4x64x8xf32>
    %19 = arith.truncf %18 : vector<4x64x8xf32> to vector<4x64x8xbf16>
    "tpu.trace_start"() <{level = 10 : i32, message = "hqd,hkd->hqk"}> : () -> ()
    %cst_6 = arith.constant dense<0.000000e+00> : vector<4x64x64xf32>
    %20 = tpu.matmul %13, %16, %cst_6 {dimension_numbers = #tpu.dot_dimension_numbers<[2], [2], [1], [1], [0, 0, 0, 1, 1, 1], [0], [0]>} : vector<4x64x8xbf16>, vector<4x64x8xbf16>, vector<4x64x64xf32> -> vector<4x64x64xf32>
    "tpu.trace_stop"() : () -> ()
    %cst_7 = arith.constant 0.353553385 : f32
    %21 = vector.broadcast %cst_7 : f32 to vector<4x64x64xf32>
    %22 = arith.mulf %20, %21 : vector<4x64x64xf32>
    %cst_8 = arith.constant dense<0xFF800000> : vector<4x64xf32>
    %23 = vector.multi_reduction <maximumf>, %22, %cst_8 [2] : vector<4x64x64xf32> to vector<4x64xf32>
    %24 = vector.shape_cast %23 : vector<4x64xf32> to vector<4x64x1xf32>
    %25 = vector.broadcast %24 : vector<4x64x1xf32> to vector<4x64x64xf32>
    %26 = arith.subf %22, %25 : vector<4x64x64xf32>
    %27 = math.exp %26 : vector<4x64x64xf32>
    %cst_9 = arith.constant dense<0.000000e+00> : vector<4x64xf32>
    %28 = vector.multi_reduction <add>, %27, %cst_9 [2] : vector<4x64x64xf32> to vector<4x64xf32>
    %29 = vector.shape_cast %28 : vector<4x64xf32> to vector<4x64x1xf32>
    %30 = tpu.reciprocal %29 {approx = true} : vector<4x64x1xf32> -> vector<4x64x1xf32>
    %31 = vector.broadcast %30 : vector<4x64x1xf32> to vector<4x64x64xf32>
    %32 = arith.mulf %27, %31 : vector<4x64x64xf32>
    %33 = arith.truncf %32 : vector<4x64x64xf32> to vector<4x64x64xbf16>
    "tpu.trace_start"() <{level = 10 : i32, message = "hqk,hkd->hqd"}> : () -> ()
    %cst_10 = arith.constant dense<0.000000e+00> : vector<4x64x8xf32>
    %34 = tpu.matmul %33, %19, %cst_10 {dimension_numbers = #tpu.dot_dimension_numbers<[2], [1], [1], [2], [0, 0, 0, 1, 1, 2], [0], [0]>} : vector<4x64x64xbf16>, vector<4x64x8xbf16>, vector<4x64x8xf32> -> vector<4x64x8xf32>
    "tpu.trace_stop"() : () -> ()
    %35 = tpu.transpose %34, [1, 0, 2] : vector<4x64x8xf32> -> vector<64x4x8xf32>
    %36 = vector.shape_cast %35 : vector<64x4x8xf32> to vector<64x32xf32>
    %c0_11 = arith.constant 0 : index
    %c0_12 = arith.constant 0 : index
    %37 = vector.load %arg4[%c0_11, %c0_12] : memref<32x32xbf16, #tpu.memory_space<vmem>>, vector<32x32xbf16>
    %c0_13 = arith.constant 0 : index
    %c0_14 = arith.constant 0 : index
    %38 = vector.load %arg5[%c0_13, %c0_14] : memref<1x32xf32, #tpu.memory_space<vmem>>, vector<1x32xf32>
    %39 = arith.truncf %36 : vector<64x32xf32> to vector<64x32xbf16>
    %cst_15 = arith.constant dense<0.000000e+00> : vector<64x32xf32>
    %40 = tpu.matmul %39, %37, %cst_15 {dimension_numbers = #tpu.dot_dimension_numbers<[1], [0], [0], [1], [0, 0, 1, 1], [], []>} : vector<64x32xbf16>, vector<32x32xbf16>, vector<64x32xf32> -> vector<64x32xf32>
    %41 = vector.broadcast %38 : vector<1x32xf32> to vector<64x32xf32>
    %42 = arith.addf %40, %41 : vector<64x32xf32>
    %43 = arith.addf %1, %42 : vector<64x32xf32>
    %c0_16 = arith.constant 0 : index
    %c0_17 = arith.constant 0 : index
    %44 = vector.load %arg6[%c0_16, %c0_17] : memref<1x32xf32, #tpu.memory_space<vmem>>, vector<1x32xf32>
    %c0_18 = arith.constant 0 : index
    %c0_19 = arith.constant 0 : index
    %45 = vector.load %arg7[%c0_18, %c0_19] : memref<1x32xf32, #tpu.memory_space<vmem>>, vector<1x32xf32>
    %cst_20 = arith.constant dense<0.000000e+00> : vector<64xf32>
    %46 = vector.multi_reduction <add>, %43, %cst_20 [1] : vector<64x32xf32> to vector<64xf32>
    %47 = vector.shape_cast %46 : vector<64xf32> to vector<64x1xf32>
    %cst_21 = arith.constant 3.200000e+01 : f32
    %48 = vector.broadcast %cst_21 : f32 to vector<64x1xf32>
    %49 = arith.divf %47, %48 : vector<64x1xf32>
    %50 = vector.broadcast %49 : vector<64x1xf32> to vector<64x32xf32>
    %51 = arith.subf %43, %50 : vector<64x32xf32>
    %52 = arith.mulf %51, %51 : vector<64x32xf32>
    %cst_22 = arith.constant dense<0.000000e+00> : vector<64xf32>
    %53 = vector.multi_reduction <add>, %52, %cst_22 [1] : vector<64x32xf32> to vector<64xf32>
    %54 = vector.shape_cast %53 : vector<64xf32> to vector<64x1xf32>
    %cst_23 = arith.constant 3.200000e+01 : f32
    %55 = vector.broadcast %cst_23 : f32 to vector<64x1xf32>
    %56 = arith.divf %54, %55 : vector<64x1xf32>
    %cst_24 = arith.constant 9.99999974E-6 : f32
    %57 = vector.broadcast %cst_24 : f32 to vector<64x1xf32>
    %58 = arith.addf %56, %57 : vector<64x1xf32>
    %59 = math.rsqrt %58 : vector<64x1xf32>
    %60 = vector.broadcast %59 : vector<64x1xf32> to vector<64x32xf32>
    %61 = arith.mulf %51, %60 : vector<64x32xf32>
    %62 = vector.broadcast %44 : vector<1x32xf32> to vector<64x32xf32>
    %63 = arith.mulf %61, %62 : vector<64x32xf32>
    %64 = vector.broadcast %45 : vector<1x32xf32> to vector<64x32xf32>
    %65 = arith.addf %63, %64 : vector<64x32xf32>
    %c0_25 = arith.constant 0 : index
    %c0_26 = arith.constant 0 : index
    %66 = vector.load %arg8[%c0_25, %c0_26] : memref<32x64xbf16, #tpu.memory_space<vmem>>, vector<32x64xbf16>
    %c0_27 = arith.constant 0 : index
    %c0_28 = arith.constant 0 : index
    %67 = vector.load %arg9[%c0_27, %c0_28] : memref<1x64xf32, #tpu.memory_space<vmem>>, vector<1x64xf32>
    %68 = arith.truncf %65 : vector<64x32xf32> to vector<64x32xbf16>
    %cst_29 = arith.constant dense<0.000000e+00> : vector<64x64xf32>
    %69 = tpu.matmul %68, %66, %cst_29 {dimension_numbers = #tpu.dot_dimension_numbers<[1], [0], [0], [1], [0, 0, 1, 1], [], []>} : vector<64x32xbf16>, vector<32x64xbf16>, vector<64x64xf32> -> vector<64x64xf32>
    %70 = vector.broadcast %67 : vector<1x64xf32> to vector<64x64xf32>
    %71 = arith.addf %69, %70 : vector<64x64xf32>
    %cst_30 = arith.constant 0.000000e+00 : f32
    %72 = vector.broadcast %cst_30 : f32 to vector<64x64xf32>
    %73 = arith.maximumf %71, %72 : vector<64x64xf32>
    %c0_31 = arith.constant 0 : index
    %c0_32 = arith.constant 0 : index
    %74 = vector.load %arg10[%c0_31, %c0_32] : memref<64x32xbf16, #tpu.memory_space<vmem>>, vector<64x32xbf16>
    %c0_33 = arith.constant 0 : index
    %c0_34 = arith.constant 0 : index
    %75 = vector.load %arg11[%c0_33, %c0_34] : memref<1x32xf32, #tpu.memory_space<vmem>>, vector<1x32xf32>
    %76 = arith.truncf %73 : vector<64x64xf32> to vector<64x64xbf16>
    %cst_35 = arith.constant dense<0.000000e+00> : vector<64x32xf32>
    %77 = tpu.matmul %76, %74, %cst_35 {dimension_numbers = #tpu.dot_dimension_numbers<[1], [0], [0], [1], [0, 0, 1, 1], [], []>} : vector<64x64xbf16>, vector<64x32xbf16>, vector<64x32xf32> -> vector<64x32xf32>
    %78 = vector.broadcast %75 : vector<1x32xf32> to vector<64x32xf32>
    %79 = arith.addf %77, %78 : vector<64x32xf32>
    %80 = arith.addf %65, %79 : vector<64x32xf32>
    %c0_36 = arith.constant 0 : index
    %c0_37 = arith.constant 0 : index
    %81 = vector.load %arg12[%c0_36, %c0_37] : memref<1x32xf32, #tpu.memory_space<vmem>>, vector<1x32xf32>
    %c0_38 = arith.constant 0 : index
    %c0_39 = arith.constant 0 : index
    %82 = vector.load %arg13[%c0_38, %c0_39] : memref<1x32xf32, #tpu.memory_space<vmem>>, vector<1x32xf32>
    %cst_40 = arith.constant dense<0.000000e+00> : vector<64xf32>
    %83 = vector.multi_reduction <add>, %80, %cst_40 [1] : vector<64x32xf32> to vector<64xf32>
    %84 = vector.shape_cast %83 : vector<64xf32> to vector<64x1xf32>
    %cst_41 = arith.constant 3.200000e+01 : f32
    %85 = vector.broadcast %cst_41 : f32 to vector<64x1xf32>
    %86 = arith.divf %84, %85 : vector<64x1xf32>
    %87 = vector.broadcast %86 : vector<64x1xf32> to vector<64x32xf32>
    %88 = arith.subf %80, %87 : vector<64x32xf32>
    %89 = arith.mulf %88, %88 : vector<64x32xf32>
    %cst_42 = arith.constant dense<0.000000e+00> : vector<64xf32>
    %90 = vector.multi_reduction <add>, %89, %cst_42 [1] : vector<64x32xf32> to vector<64xf32>
    %91 = vector.shape_cast %90 : vector<64xf32> to vector<64x1xf32>
    %cst_43 = arith.constant 3.200000e+01 : f32
    %92 = vector.broadcast %cst_43 : f32 to vector<64x1xf32>
    %93 = arith.divf %91, %92 : vector<64x1xf32>
    %cst_44 = arith.constant 9.99999974E-6 : f32
    %94 = vector.broadcast %cst_44 : f32 to vector<64x1xf32>
    %95 = arith.addf %93, %94 : vector<64x1xf32>
    %96 = math.rsqrt %95 : vector<64x1xf32>
    %97 = vector.broadcast %96 : vector<64x1xf32> to vector<64x32xf32>
    %98 = arith.mulf %88, %97 : vector<64x32xf32>
    %99 = vector.broadcast %81 : vector<1x32xf32> to vector<64x32xf32>
    %100 = arith.mulf %98, %99 : vector<64x32xf32>
    %101 = vector.broadcast %82 : vector<1x32xf32> to vector<64x32xf32>
    %102 = arith.addf %100, %101 : vector<64x32xf32>
    %c0_45 = arith.constant 0 : index
    %c0_46 = arith.constant 0 : index
    %c0_47 = arith.constant 0 : index
    %103 = vector.load %arg16[%c0_45, %c0_46, %c0_47] : memref<1x64x32xf32, #tpu.memory_space<vmem>>, vector<1x64x32xf32>
    %104 = vector.shape_cast %103 : vector<1x64x32xf32> to vector<64x32xf32>
    %105 = vector.shape_cast %102 : vector<64x32xf32> to vector<1x64x32xf32>
    tpu.vector_store %arg16[%c0_45, %c0_46, %c0_47], %105 {strides = array<i32>} : memref<1x64x32xf32, #tpu.memory_space<vmem>>, vector<1x64x32xf32>,
    %c0_48 = arith.constant 0 : index
    %c0_49 = arith.constant 0 : index
    %106 = vector.load %arg14[%c0_48, %c0_49] : memref<1x32xf32, #tpu.memory_space<vmem>>, vector<1x32xf32>
    "tpu.trace_start"() <{level = 10 : i32, message = "od,nd->on"}> : () -> ()
    %cst_50 = arith.constant dense<0.000000e+00> : vector<1x64xf32>
    %107 = tpu.matmul %106, %102, %cst_50 {dimension_numbers = #tpu.dot_dimension_numbers<[1], [1], [0], [0], [0, 0, 1, 0], [], []>} : vector<1x32xf32>, vector<64x32xf32>, vector<1x64xf32> -> vector<1x64xf32>
    "tpu.trace_stop"() : () -> ()
    %c0_51 = arith.constant 0 : index
    %c0_52 = arith.constant 0 : index
    %108 = vector.load %arg15[%c0_51, %c0_52] : memref<1x1xf32, #tpu.memory_space<vmem>>, vector<1x1xf32>
    %109 = vector.broadcast %108 : vector<1x1xf32> to vector<1x64xf32>
    %110 = arith.addf %107, %109 : vector<1x64xf32>
    %c0_53 = arith.constant 0 : index
    %c0_54 = arith.constant 0 : index
    %c0_55 = arith.constant 0 : index
    %111 = vector.load %arg17[%c0_53, %c0_54, %c0_55] : memref<1x1x64xf32, #tpu.memory_space<vmem>>, vector<1x1x64xf32>
    %112 = vector.shape_cast %111 : vector<1x1x64xf32> to vector<1x64xf32>
    %113 = vector.shape_cast %110 : vector<1x64xf32> to vector<1x1x64xf32>
    tpu.vector_store %arg17[%c0_53, %c0_54, %c0_55], %113 {strides = array<i32>} : memref<1x1x64xf32, #tpu.memory_space<vmem>>, vector<1x1x64xf32>,
    return
  }
  func.func @transform_0(%arg0: i32) -> (i32, i32, i32) {
    %c0_i32 = arith.constant 0 : i32
    %c0_i32_0 = arith.constant 0 : i32
    %c0_i32_1 = arith.constant 0 : i32
    return %arg0, %c0_i32, %c0_i32_0 : i32, i32, i32
  }
  func.func @transform_1(%arg0: i32) -> (i32, i32) {
    %c0_i32 = arith.constant 0 : i32
    %c0_i32_0 = arith.constant 0 : i32
    %c0_i32_1 = arith.constant 0 : i32
    return %c0_i32, %c0_i32_0 : i32, i32
  }
  func.func @transform_2(%arg0: i32) -> (i32, i32) {
    %c0_i32 = arith.constant 0 : i32
    %c0_i32_0 = arith.constant 0 : i32
    %c0_i32_1 = arith.constant 0 : i32
    return %c0_i32, %c0_i32_0 : i32, i32
  }
  func.func @transform_3(%arg0: i32) -> (i32, i32) {
    %c0_i32 = arith.constant 0 : i32
    %c0_i32_0 = arith.constant 0 : i32
    %c0_i32_1 = arith.constant 0 : i32
    return %c0_i32, %c0_i32_0 : i32, i32
  }
  func.func @transform_4(%arg0: i32) -> (i32, i32) {
    %c0_i32 = arith.constant 0 : i32
    %c0_i32_0 = arith.constant 0 : i32
    %c0_i32_1 = arith.constant 0 : i32
    return %c0_i32, %c0_i32_0 : i32, i32
  }
  func.func @transform_5(%arg0: i32) -> (i32, i32) {
    %c0_i32 = arith.constant 0 : i32
    %c0_i32_0 = arith.constant 0 : i32
    %c0_i32_1 = arith.constant 0 : i32
    return %c0_i32, %c0_i32_0 : i32, i32
  }
  func.func @transform_6(%arg0: i32) -> (i32, i32) {
    %c0_i32 = arith.constant 0 : i32
    %c0_i32_0 = arith.constant 0 : i32
    %c0_i32_1 = arith.constant 0 : i32
    return %c0_i32, %c0_i32_0 : i32, i32
  }
  func.func @transform_7(%arg0: i32) -> (i32, i32) {
    %c0_i32 = arith.constant 0 : i32
    %c0_i32_0 = arith.constant 0 : i32
    %c0_i32_1 = arith.constant 0 : i32
    return %c0_i32, %c0_i32_0 : i32, i32
  }
  func.func @transform_8(%arg0: i32) -> (i32, i32) {
    %c0_i32 = arith.constant 0 : i32
    %c0_i32_0 = arith.constant 0 : i32
    %c0_i32_1 = arith.constant 0 : i32
    return %c0_i32, %c0_i32_0 : i32, i32
  }
  func.func @transform_9(%arg0: i32) -> (i32, i32) {
    %c0_i32 = arith.constant 0 : i32
    %c0_i32_0 = arith.constant 0 : i32
    %c0_i32_1 = arith.constant 0 : i32
    return %c0_i32, %c0_i32_0 : i32, i32
  }
  func.func @transform_10(%arg0: i32) -> (i32, i32) {
    %c0_i32 = arith.constant 0 : i32
    %c0_i32_0 = arith.constant 0 : i32
    %c0_i32_1 = arith.constant 0 : i32
    return %c0_i32, %c0_i32_0 : i32, i32
  }
  func.func @transform_11(%arg0: i32) -> (i32, i32) {
    %c0_i32 = arith.constant 0 : i32
    %c0_i32_0 = arith.constant 0 : i32
    %c0_i32_1 = arith.constant 0 : i32
    return %c0_i32, %c0_i32_0 : i32, i32
  }
  func.func @transform_12(%arg0: i32) -> (i32, i32) {
    %c0_i32 = arith.constant 0 : i32
    %c0_i32_0 = arith.constant 0 : i32
    %c0_i32_1 = arith.constant 0 : i32
    return %c0_i32, %c0_i32_0 : i32, i32
  }
  func.func @transform_13(%arg0: i32) -> (i32, i32) {
    %c0_i32 = arith.constant 0 : i32
    %c0_i32_0 = arith.constant 0 : i32
    %c0_i32_1 = arith.constant 0 : i32
    return %c0_i32, %c0_i32_0 : i32, i32
  }
  func.func @transform_14(%arg0: i32) -> (i32, i32) {
    %c0_i32 = arith.constant 0 : i32
    %c0_i32_0 = arith.constant 0 : i32
    %c0_i32_1 = arith.constant 0 : i32
    return %c0_i32, %c0_i32_0 : i32, i32
  }
  func.func @transform_15(%arg0: i32) -> (i32, i32, i32) {
    %c0_i32 = arith.constant 0 : i32
    %c0_i32_0 = arith.constant 0 : i32
    %c0_i32_1 = arith.constant 0 : i32
    return %arg0, %c0_i32, %c0_i32_0 : i32, i32, i32
  }
  func.func @transform_16(%arg0: i32) -> (i32, i32, i32) {
    %c0_i32 = arith.constant 0 : i32
    %c0_i32_0 = arith.constant 0 : i32
    %c0_i32_1 = arith.constant 0 : i32
    return %arg0, %c0_i32, %c0_i32_0 : i32, i32, i32
  }
}

module attributes {stable_mosaic.version = 11 : i64} {
  func.func @_backbone_kernel(%arg0: i32, %arg1: memref<256x32xbf16, #tpu.memory_space<vmem>>, %arg2: memref<32x32xbf16, #tpu.memory_space<vmem>>, %arg3: memref<1x32xf32, #tpu.memory_space<vmem>>, %arg4: memref<256x32xf32, #tpu.memory_space<vmem>>, %arg5: memref<256x32xf32, #tpu.memory_space<vmem>>) attributes {dimension_semantics = [#tpu.dimension_semantics<parallel>], iteration_bounds = array<i64: 1>, scalar_prefetch = 0 : i64, scratch_operands = 0 : i64, tpu.core_type = #tpu.core_type<tc>, window_params = [{transform_indices = @transform_0, window_bounds = array<i64: 256, 32>}, {pipeline_mode = #tpu.pipeline_mode<synchronous>, transform_indices = @transform_1, window_bounds = array<i64: 32, 32>}, {pipeline_mode = #tpu.pipeline_mode<synchronous>, transform_indices = @transform_2, window_bounds = array<i64: 1, 32>}, {pipeline_mode = #tpu.pipeline_mode<synchronous>, transform_indices = @transform_3, window_bounds = array<i64: 256, 32>}, {transform_indices = @transform_4, window_bounds = array<i64: 256, 32>}]} {
    %c0 = arith.constant 0 : index
    %c0_0 = arith.constant 0 : index
    %0 = vector.load %arg1[%c0, %c0_0] : memref<256x32xbf16, #tpu.memory_space<vmem>>, vector<256x32xbf16>
    %c0_1 = arith.constant 0 : index
    %c0_2 = arith.constant 0 : index
    %1 = vector.load %arg2[%c0_1, %c0_2] : memref<32x32xbf16, #tpu.memory_space<vmem>>, vector<32x32xbf16>
    %cst = arith.constant dense<0.000000e+00> : vector<256x32xf32>
    %2 = tpu.matmul %0, %1, %cst {dimension_numbers = #tpu.dot_dimension_numbers<[1], [0], [0], [1], [0, 0, 1, 1], [], []>} : vector<256x32xbf16>, vector<32x32xbf16>, vector<256x32xf32> -> vector<256x32xf32>
    %c0_3 = arith.constant 0 : index
    %c0_4 = arith.constant 0 : index
    %3 = vector.load %arg3[%c0_3, %c0_4] : memref<1x32xf32, #tpu.memory_space<vmem>>, vector<1x32xf32>
    %4 = vector.broadcast %3 : vector<1x32xf32> to vector<256x32xf32>
    %5 = arith.addf %2, %4 : vector<256x32xf32>
    %c0_5 = arith.constant 0 : index
    %c0_6 = arith.constant 0 : index
    %6 = vector.load %arg4[%c0_5, %c0_6] : memref<256x32xf32, #tpu.memory_space<vmem>>, vector<256x32xf32>
    %7 = arith.addf %5, %6 : vector<256x32xf32>
    %c0_7 = arith.constant 0 : index
    %c0_8 = arith.constant 0 : index
    %8 = vector.load %arg5[%c0_7, %c0_8] : memref<256x32xf32, #tpu.memory_space<vmem>>, vector<256x32xf32>
    tpu.vector_store %arg5[%c0_7, %c0_8], %7 {strides = array<i32>} : memref<256x32xf32, #tpu.memory_space<vmem>>, vector<256x32xf32>,
    return
  }
  func.func @transform_0(%arg0: i32) -> (i32, i32) {
    %c0_i32 = arith.constant 0 : i32
    %c0_i32_0 = arith.constant 0 : i32
    return %arg0, %c0_i32 : i32, i32
  }
  func.func @transform_1(%arg0: i32) -> (i32, i32) {
    %c0_i32 = arith.constant 0 : i32
    %c0_i32_0 = arith.constant 0 : i32
    %c0_i32_1 = arith.constant 0 : i32
    return %c0_i32, %c0_i32_0 : i32, i32
  }
  func.func @transform_2(%arg0: i32) -> (i32, i32) {
    %c0_i32 = arith.constant 0 : i32
    %c0_i32_0 = arith.constant 0 : i32
    %c0_i32_1 = arith.constant 0 : i32
    return %c0_i32, %c0_i32_0 : i32, i32
  }
  func.func @transform_3(%arg0: i32) -> (i32, i32) {
    %c0_i32 = arith.constant 0 : i32
    %c0_i32_0 = arith.constant 0 : i32
    %c0_i32_1 = arith.constant 0 : i32
    return %c0_i32, %c0_i32_0 : i32, i32
  }
  func.func @transform_4(%arg0: i32) -> (i32, i32) {
    %c0_i32 = arith.constant 0 : i32
    %c0_i32_0 = arith.constant 0 : i32
    return %arg0, %c0_i32 : i32, i32
  }
}

module attributes {stable_mosaic.version = 11 : i64} {
  func.func @_hoi_kernel(%arg0: i32, %arg1: memref<1x64x32xf32, #tpu.memory_space<vmem>>, %arg2: memref<1x8x1xi32, #tpu.memory_space<vmem>>, %arg3: memref<32x64xbf16, #tpu.memory_space<vmem>>, %arg4: memref<1x64xf32, #tpu.memory_space<vmem>>, %arg5: memref<32x32xbf16, #tpu.memory_space<vmem>>, %arg6: memref<32x32xbf16, #tpu.memory_space<vmem>>, %arg7: memref<1x64xf32, #tpu.memory_space<vmem>>, %arg8: memref<32x32xbf16, #tpu.memory_space<vmem>>, %arg9: memref<32x32xbf16, #tpu.memory_space<vmem>>, %arg10: memref<1x32xf32, #tpu.memory_space<vmem>>, %arg11: memref<8x32xf32, #tpu.memory_space<vmem>>, %arg12: memref<32x32xbf16, #tpu.memory_space<vmem>>, %arg13: memref<1x32xf32, #tpu.memory_space<vmem>>, %arg14: memref<32x64xbf16, #tpu.memory_space<vmem>>, %arg15: memref<1x64xf32, #tpu.memory_space<vmem>>, %arg16: memref<32x32xbf16, #tpu.memory_space<vmem>>, %arg17: memref<1x32xf32, #tpu.memory_space<vmem>>, %arg18: memref<1x32xf32, #tpu.memory_space<vmem>>, %arg19: memref<1x32xf32, #tpu.memory_space<vmem>>, %arg20: memref<32x32xbf16, #tpu.memory_space<vmem>>, %arg21: memref<1x32xf32, #tpu.memory_space<vmem>>, %arg22: memref<32x64xbf16, #tpu.memory_space<vmem>>, %arg23: memref<1x64xf32, #tpu.memory_space<vmem>>, %arg24: memref<32x32xbf16, #tpu.memory_space<vmem>>, %arg25: memref<1x32xf32, #tpu.memory_space<vmem>>, %arg26: memref<1x32xf32, #tpu.memory_space<vmem>>, %arg27: memref<1x32xf32, #tpu.memory_space<vmem>>, %arg28: memref<32x64xbf16, #tpu.memory_space<vmem>>, %arg29: memref<1x64xf32, #tpu.memory_space<vmem>>, %arg30: memref<64x32xbf16, #tpu.memory_space<vmem>>, %arg31: memref<1x32xf32, #tpu.memory_space<vmem>>, %arg32: memref<1x32xf32, #tpu.memory_space<vmem>>, %arg33: memref<1x32xf32, #tpu.memory_space<vmem>>, %arg34: memref<32x128xbf16, #tpu.memory_space<vmem>>, %arg35: memref<1x128xf32, #tpu.memory_space<vmem>>, %arg36: memref<1x8x128xf32, #tpu.memory_space<vmem>>) attributes {dimension_semantics = [#tpu.dimension_semantics<parallel>], iteration_bounds = array<i64: 2>, scalar_prefetch = 0 : i64, scratch_operands = 0 : i64, tpu.core_type = #tpu.core_type<tc>, window_params = [{transform_indices = @transform_0, window_bounds = array<i64: 1, 64, 32>}, {transform_indices = @transform_1, window_bounds = array<i64: 1, 8, 1>}, {pipeline_mode = #tpu.pipeline_mode<synchronous>, transform_indices = @transform_2, window_bounds = array<i64: 32, 64>}, {pipeline_mode = #tpu.pipeline_mode<synchronous>, transform_indices = @transform_3, window_bounds = array<i64: 1, 64>}, {pipeline_mode = #tpu.pipeline_mode<synchronous>, transform_indices = @transform_4, window_bounds = array<i64: 32, 32>}, {pipeline_mode = #tpu.pipeline_mode<synchronous>, transform_indices = @transform_5, window_bounds = array<i64: 32, 32>}, {pipeline_mode = #tpu.pipeline_mode<synchronous>, transform_indices = @transform_6, window_bounds = array<i64: 1, 64>}, {pipeline_mode = #tpu.pipeline_mode<synchronous>, transform_indices = @transform_7, window_bounds = array<i64: 32, 32>}, {pipeline_mode = #tpu.pipeline_mode<synchronous>, transform_indices = @transform_8, window_bounds = array<i64: 32, 32>}, {pipeline_mode = #tpu.pipeline_mode<synchronous>, transform_indices = @transform_9, window_bounds = array<i64: 1, 32>}, {pipeline_mode = #tpu.pipeline_mode<synchronous>, transform_indices = @transform_10, window_bounds = array<i64: 8, 32>}, {pipeline_mode = #tpu.pipeline_mode<synchronous>, transform_indices = @transform_11, window_bounds = array<i64: 32, 32>}, {pipeline_mode = #tpu.pipeline_mode<synchronous>, transform_indices = @transform_12, window_bounds = array<i64: 1, 32>}, {pipeline_mode = #tpu.pipeline_mode<synchronous>, transform_indices = @transform_13, window_bounds = array<i64: 32, 64>}, {pipeline_mode = #tpu.pipeline_mode<synchronous>, transform_indices = @transform_14, window_bounds = array<i64: 1, 64>}, {pipeline_mode = #tpu.pipeline_mode<synchronous>, transform_indices = @transform_15, window_bounds = array<i64: 32, 32>}, {pipeline_mode = #tpu.pipeline_mode<synchronous>, transform_indices = @transform_16, window_bounds = array<i64: 1, 32>}, {pipeline_mode = #tpu.pipeline_mode<synchronous>, transform_indices = @transform_17, window_bounds = array<i64: 1, 32>}, {pipeline_mode = #tpu.pipeline_mode<synchronous>, transform_indices = @transform_18, window_bounds = array<i64: 1, 32>}, {pipeline_mode = #tpu.pipeline_mode<synchronous>, transform_indices = @transform_19, window_bounds = array<i64: 32, 32>}, {pipeline_mode = #tpu.pipeline_mode<synchronous>, transform_indices = @transform_20, window_bounds = array<i64: 1, 32>}, {pipeline_mode = #tpu.pipeline_mode<synchronous>, transform_indices = @transform_21, window_bounds = array<i64: 32, 64>}, {pipeline_mode = #tpu.pipeline_mode<synchronous>, transform_indices = @transform_22, window_bounds = array<i64: 1, 64>}, {pipeline_mode = #tpu.pipeline_mode<synchronous>, transform_indices = @transform_23, window_bounds = array<i64: 32, 32>}, {pipeline_mode = #tpu.pipeline_mode<synchronous>, transform_indices = @transform_24, window_bounds = array<i64: 1, 32>}, {pipeline_mode = #tpu.pipeline_mode<synchronous>, transform_indices = @transform_25, window_bounds = array<i64: 1, 32>}, {pipeline_mode = #tpu.pipeline_mode<synchronous>, transform_indices = @transform_26, window_bounds = array<i64: 1, 32>}, {pipeline_mode = #tpu.pipeline_mode<synchronous>, transform_indices = @transform_27, window_bounds = array<i64: 32, 64>}, {pipeline_mode = #tpu.pipeline_mode<synchronous>, transform_indices = @transform_28, window_bounds = array<i64: 1, 64>}, {pipeline_mode = #tpu.pipeline_mode<synchronous>, transform_indices = @transform_29, window_bounds = array<i64: 64, 32>}, {pipeline_mode = #tpu.pipeline_mode<synchronous>, transform_indices = @transform_30, window_bounds = array<i64: 1, 32>}, {pipeline_mode = #tpu.pipeline_mode<synchronous>, transform_indices = @transform_31, window_bounds = array<i64: 1, 32>}, {pipeline_mode = #tpu.pipeline_mode<synchronous>, transform_indices = @transform_32, window_bounds = array<i64: 1, 32>}, {pipeline_mode = #tpu.pipeline_mode<synchronous>, transform_indices = @transform_33, window_bounds = array<i64: 32, 128>}, {pipeline_mode = #tpu.pipeline_mode<synchronous>, transform_indices = @transform_34, window_bounds = array<i64: 1, 128>}, {transform_indices = @transform_35, window_bounds = array<i64: 1, 8, 128>}]} {
    %c0 = arith.constant 0 : index
    %c0_0 = arith.constant 0 : index
    %c0_1 = arith.constant 0 : index
    %0 = vector.load %arg1[%c0, %c0_0, %c0_1] : memref<1x64x32xf32, #tpu.memory_space<vmem>>, vector<1x64x32xf32>
    %1 = vector.shape_cast %0 : vector<1x64x32xf32> to vector<64x32xf32>
    %2 = tpu.iota {dimensions = array<i32: 1>} : vector<8x64xi32>
    %c0_2 = arith.constant 0 : index
    %c0_3 = arith.constant 0 : index
    %c0_4 = arith.constant 0 : index
    %3 = vector.load %arg2[%c0_2, %c0_3, %c0_4] : memref<1x8x1xi32, #tpu.memory_space<vmem>>, vector<1x8x1xi32>
    %4 = vector.shape_cast %3 : vector<1x8x1xi32> to vector<8x1xi32>
    %5 = vector.broadcast %4 : vector<8x1xi32> to vector<8x64xi32>
    %6 = arith.cmpi eq, %5, %2 : vector<8x64xi32>
    %7 = arith.extui %6 : vector<8x64xi1> to vector<8x64xi32>
    %8 = arith.sitofp %7 : vector<8x64xi32> to vector<8x64xf32>
    %cst = arith.constant dense<0.000000e+00> : vector<8x32xf32>
    %9 = tpu.matmul %8, %1, %cst {dimension_numbers = #tpu.dot_dimension_numbers<[1], [0], [0], [1], [0, 0, 1, 1], [], []>} : vector<8x64xf32>, vector<64x32xf32>, vector<8x32xf32> -> vector<8x32xf32>
    %c0_5 = arith.constant 0 : index
    %c0_6 = arith.constant 0 : index
    %10 = vector.load %arg3[%c0_5, %c0_6] : memref<32x64xbf16, #tpu.memory_space<vmem>>, vector<32x64xbf16>
    %c0_7 = arith.constant 0 : index
    %c0_8 = arith.constant 0 : index
    %11 = vector.load %arg4[%c0_7, %c0_8] : memref<1x64xf32, #tpu.memory_space<vmem>>, vector<1x64xf32>
    %12 = arith.truncf %9 : vector<8x32xf32> to vector<8x32xbf16>
    %cst_9 = arith.constant dense<0.000000e+00> : vector<8x64xf32>
    %13 = tpu.matmul %12, %10, %cst_9 {dimension_numbers = #tpu.dot_dimension_numbers<[1], [0], [0], [1], [0, 0, 1, 1], [], []>} : vector<8x32xbf16>, vector<32x64xbf16>, vector<8x64xf32> -> vector<8x64xf32>
    %14 = vector.broadcast %11 : vector<1x64xf32> to vector<8x64xf32>
    %15 = arith.addf %13, %14 : vector<8x64xf32>
    %cst_10 = arith.constant 0.000000e+00 : f32
    %16 = vector.broadcast %cst_10 : f32 to vector<8x64xf32>
    %17 = arith.maximumf %15, %16 : vector<8x64xf32>
    %18 = vector.extract_strided_slice %17 {offsets = [0, 0], sizes = [8, 32], strides = [1, 1]} : vector<8x64xf32> to vector<8x32xf32>
    %c0_11 = arith.constant 0 : index
    %c0_12 = arith.constant 0 : index
    %19 = vector.load %arg5[%c0_11, %c0_12] : memref<32x32xbf16, #tpu.memory_space<vmem>>, vector<32x32xbf16>
    %20 = arith.truncf %18 : vector<8x32xf32> to vector<8x32xbf16>
    %cst_13 = arith.constant dense<0.000000e+00> : vector<8x32xf32>
    %21 = tpu.matmul %20, %19, %cst_13 {dimension_numbers = #tpu.dot_dimension_numbers<[1], [0], [0], [1], [0, 0, 1, 1], [], []>} : vector<8x32xbf16>, vector<32x32xbf16>, vector<8x32xf32> -> vector<8x32xf32>
    %c0_14 = arith.constant 0 : index
    %c0_15 = arith.constant 0 : index
    %22 = vector.load %arg7[%c0_14, %c0_15] : memref<1x64xf32, #tpu.memory_space<vmem>>, vector<1x32xf32>
    %23 = vector.broadcast %22 : vector<1x32xf32> to vector<8x32xf32>
    %24 = arith.addf %21, %23 : vector<8x32xf32>
    %25 = vector.extract_strided_slice %17 {offsets = [0, 32], sizes = [8, 32], strides = [1, 1]} : vector<8x64xf32> to vector<8x32xf32>
    %c0_16 = arith.constant 0 : index
    %c0_17 = arith.constant 0 : index
    %26 = vector.load %arg6[%c0_16, %c0_17] : memref<32x32xbf16, #tpu.memory_space<vmem>>, vector<32x32xbf16>
    %27 = arith.truncf %25 : vector<8x32xf32> to vector<8x32xbf16>
    %cst_18 = arith.constant dense<0.000000e+00> : vector<8x32xf32>
    %28 = tpu.matmul %27, %26, %cst_18 {dimension_numbers = #tpu.dot_dimension_numbers<[1], [0], [0], [1], [0, 0, 1, 1], [], []>} : vector<8x32xbf16>, vector<32x32xbf16>, vector<8x32xf32> -> vector<8x32xf32>
    %c0_19 = arith.constant 0 : index
    %c32 = arith.constant 32 : index
    %29 = vector.load %arg7[%c0_19, %c32] : memref<1x64xf32, #tpu.memory_space<vmem>>, vector<1x32xf32>
    %30 = vector.broadcast %29 : vector<1x32xf32> to vector<8x32xf32>
    %31 = arith.addf %28, %30 : vector<8x32xf32>
    %c0_20 = arith.constant 0 : index
    %c0_21 = arith.constant 0 : index
    %32 = vector.load %arg8[%c0_20, %c0_21] : memref<32x32xbf16, #tpu.memory_space<vmem>>, vector<32x32xbf16>
    %33 = arith.truncf %24 : vector<8x32xf32> to vector<8x32xbf16>
    %cst_22 = arith.constant dense<0.000000e+00> : vector<8x32xf32>
    %34 = tpu.matmul %33, %32, %cst_22 {dimension_numbers = #tpu.dot_dimension_numbers<[1], [0], [0], [1], [0, 0, 1, 1], [], []>} : vector<8x32xbf16>, vector<32x32xbf16>, vector<8x32xf32> -> vector<8x32xf32>
    %c0_23 = arith.constant 0 : index
    %c0_24 = arith.constant 0 : index
    %35 = vector.load %arg9[%c0_23, %c0_24] : memref<32x32xbf16, #tpu.memory_space<vmem>>, vector<32x32xbf16>
    %36 = arith.truncf %31 : vector<8x32xf32> to vector<8x32xbf16>
    %cst_25 = arith.constant dense<0.000000e+00> : vector<8x32xf32>
    %37 = tpu.matmul %36, %35, %cst_25 {dimension_numbers = #tpu.dot_dimension_numbers<[1], [0], [0], [1], [0, 0, 1, 1], [], []>} : vector<8x32xbf16>, vector<32x32xbf16>, vector<8x32xf32> -> vector<8x32xf32>
    %38 = arith.addf %34, %37 : vector<8x32xf32>
    %c0_26 = arith.constant 0 : index
    %c0_27 = arith.constant 0 : index
    %39 = vector.load %arg10[%c0_26, %c0_27] : memref<1x32xf32, #tpu.memory_space<vmem>>, vector<1x32xf32>
    %40 = vector.broadcast %39 : vector<1x32xf32> to vector<8x32xf32>
    %41 = arith.addf %38, %40 : vector<8x32xf32>
    %c0_28 = arith.constant 0 : index
    %c0_29 = arith.constant 0 : index
    %42 = vector.load %arg11[%c0_28, %c0_29] : memref<8x32xf32, #tpu.memory_space<vmem>>, vector<8x32xf32>
    %c0_30 = arith.constant 0 : index
    %c0_31 = arith.constant 0 : index
    %43 = vector.load %arg12[%c0_30, %c0_31] : memref<32x32xbf16, #tpu.memory_space<vmem>>, vector<32x32xbf16>
    %c0_32 = arith.constant 0 : index
    %c0_33 = arith.constant 0 : index
    %44 = vector.load %arg13[%c0_32, %c0_33] : memref<1x32xf32, #tpu.memory_space<vmem>>, vector<1x32xf32>
    %45 = arith.truncf %42 : vector<8x32xf32> to vector<8x32xbf16>
    %cst_34 = arith.constant dense<0.000000e+00> : vector<8x32xf32>
    %46 = tpu.matmul %45, %43, %cst_34 {dimension_numbers = #tpu.dot_dimension_numbers<[1], [0], [0], [1], [0, 0, 1, 1], [], []>} : vector<8x32xbf16>, vector<32x32xbf16>, vector<8x32xf32> -> vector<8x32xf32>
    %47 = vector.broadcast %44 : vector<1x32xf32> to vector<8x32xf32>
    %48 = arith.addf %46, %47 : vector<8x32xf32>
    %c0_35 = arith.constant 0 : index
    %c0_36 = arith.constant 0 : index
    %49 = vector.load %arg14[%c0_35, %c0_36] : memref<32x64xbf16, #tpu.memory_space<vmem>>, vector<32x64xbf16>
    %c0_37 = arith.constant 0 : index
    %c0_38 = arith.constant 0 : index
    %50 = vector.load %arg15[%c0_37, %c0_38] : memref<1x64xf32, #tpu.memory_space<vmem>>, vector<1x64xf32>
    %51 = arith.truncf %41 : vector<8x32xf32> to vector<8x32xbf16>
    %cst_39 = arith.constant dense<0.000000e+00> : vector<8x64xf32>
    %52 = tpu.matmul %51, %49, %cst_39 {dimension_numbers = #tpu.dot_dimension_numbers<[1], [0], [0], [1], [0, 0, 1, 1], [], []>} : vector<8x32xbf16>, vector<32x64xbf16>, vector<8x64xf32> -> vector<8x64xf32>
    %53 = vector.broadcast %50 : vector<1x64xf32> to vector<8x64xf32>
    %54 = arith.addf %52, %53 : vector<8x64xf32>
    %55 = vector.extract_strided_slice %54 {offsets = [0, 0], sizes = [8, 32], strides = [1, 1]} : vector<8x64xf32> to vector<8x32xf32>
    %56 = vector.extract_strided_slice %54 {offsets = [0, 32], sizes = [8, 32], strides = [1, 1]} : vector<8x64xf32> to vector<8x32xf32>
    %57 = vector.shape_cast %48 : vector<8x32xf32> to vector<8x4x8xf32>
    %58 = tpu.transpose %57, [1, 0, 2] : vector<8x4x8xf32> -> vector<4x8x8xf32>
    %59 = arith.truncf %58 : vector<4x8x8xf32> to vector<4x8x8xbf16>
    %60 = vector.shape_cast %55 : vector<8x32xf32> to vector<8x4x8xf32>
    %61 = tpu.transpose %60, [1, 0, 2] : vector<8x4x8xf32> -> vector<4x8x8xf32>
    %62 = arith.truncf %61 : vector<4x8x8xf32> to vector<4x8x8xbf16>
    %63 = vector.shape_cast %56 : vector<8x32xf32> to vector<8x4x8xf32>
    %64 = tpu.transpose %63, [1, 0, 2] : vector<8x4x8xf32> -> vector<4x8x8xf32>
    %65 = arith.truncf %64 : vector<4x8x8xf32> to vector<4x8x8xbf16>
    "tpu.trace_start"() <{level = 10 : i32, message = "hqd,hkd->hqk"}> : () -> ()
    %cst_40 = arith.constant dense<0.000000e+00> : vector<4x8x8xf32>
    %66 = tpu.matmul %59, %62, %cst_40 {dimension_numbers = #tpu.dot_dimension_numbers<[2], [2], [1], [1], [0, 0, 0, 1, 1, 1], [0], [0]>} : vector<4x8x8xbf16>, vector<4x8x8xbf16>, vector<4x8x8xf32> -> vector<4x8x8xf32>
    "tpu.trace_stop"() : () -> ()
    %cst_41 = arith.constant 0.353553385 : f32
    %67 = vector.broadcast %cst_41 : f32 to vector<4x8x8xf32>
    %68 = arith.mulf %66, %67 : vector<4x8x8xf32>
    %cst_42 = arith.constant dense<0xFF800000> : vector<4x8xf32>
    %69 = vector.multi_reduction <maximumf>, %68, %cst_42 [2] : vector<4x8x8xf32> to vector<4x8xf32>
    %70 = vector.shape_cast %69 : vector<4x8xf32> to vector<4x8x1xf32>
    %71 = vector.broadcast %70 : vector<4x8x1xf32> to vector<4x8x8xf32>
    %72 = arith.subf %68, %71 : vector<4x8x8xf32>
    %73 = math.exp %72 : vector<4x8x8xf32>
    %cst_43 = arith.constant dense<0.000000e+00> : vector<4x8xf32>
    %74 = vector.multi_reduction <add>, %73, %cst_43 [2] : vector<4x8x8xf32> to vector<4x8xf32>
    %75 = vector.shape_cast %74 : vector<4x8xf32> to vector<4x8x1xf32>
    %76 = tpu.reciprocal %75 {approx = true} : vector<4x8x1xf32> -> vector<4x8x1xf32>
    %77 = vector.broadcast %76 : vector<4x8x1xf32> to vector<4x8x8xf32>
    %78 = arith.mulf %73, %77 : vector<4x8x8xf32>
    %79 = arith.truncf %78 : vector<4x8x8xf32> to vector<4x8x8xbf16>
    "tpu.trace_start"() <{level = 10 : i32, message = "hqk,hkd->hqd"}> : () -> ()
    %cst_44 = arith.constant dense<0.000000e+00> : vector<4x8x8xf32>
    %80 = tpu.matmul %79, %65, %cst_44 {dimension_numbers = #tpu.dot_dimension_numbers<[2], [1], [1], [2], [0, 0, 0, 1, 1, 2], [0], [0]>} : vector<4x8x8xbf16>, vector<4x8x8xbf16>, vector<4x8x8xf32> -> vector<4x8x8xf32>
    "tpu.trace_stop"() : () -> ()
    %81 = tpu.transpose %80, [1, 0, 2] : vector<4x8x8xf32> -> vector<8x4x8xf32>
    %82 = vector.shape_cast %81 : vector<8x4x8xf32> to vector<8x32xf32>
    %c0_45 = arith.constant 0 : index
    %c0_46 = arith.constant 0 : index
    %83 = vector.load %arg16[%c0_45, %c0_46] : memref<32x32xbf16, #tpu.memory_space<vmem>>, vector<32x32xbf16>
    %c0_47 = arith.constant 0 : index
    %c0_48 = arith.constant 0 : index
    %84 = vector.load %arg17[%c0_47, %c0_48] : memref<1x32xf32, #tpu.memory_space<vmem>>, vector<1x32xf32>
    %85 = arith.truncf %82 : vector<8x32xf32> to vector<8x32xbf16>
    %cst_49 = arith.constant dense<0.000000e+00> : vector<8x32xf32>
    %86 = tpu.matmul %85, %83, %cst_49 {dimension_numbers = #tpu.dot_dimension_numbers<[1], [0], [0], [1], [0, 0, 1, 1], [], []>} : vector<8x32xbf16>, vector<32x32xbf16>, vector<8x32xf32> -> vector<8x32xf32>
    %87 = vector.broadcast %84 : vector<1x32xf32> to vector<8x32xf32>
    %88 = arith.addf %86, %87 : vector<8x32xf32>
    %89 = arith.addf %42, %88 : vector<8x32xf32>
    %c0_50 = arith.constant 0 : index
    %c0_51 = arith.constant 0 : index
    %90 = vector.load %arg18[%c0_50, %c0_51] : memref<1x32xf32, #tpu.memory_space<vmem>>, vector<1x32xf32>
    %c0_52 = arith.constant 0 : index
    %c0_53 = arith.constant 0 : index
    %91 = vector.load %arg19[%c0_52, %c0_53] : memref<1x32xf32, #tpu.memory_space<vmem>>, vector<1x32xf32>
    %cst_54 = arith.constant dense<0.000000e+00> : vector<8xf32>
    %92 = vector.multi_reduction <add>, %89, %cst_54 [1] : vector<8x32xf32> to vector<8xf32>
    %93 = vector.shape_cast %92 : vector<8xf32> to vector<8x1xf32>
    %cst_55 = arith.constant 3.200000e+01 : f32
    %94 = vector.broadcast %cst_55 : f32 to vector<8x1xf32>
    %95 = arith.divf %93, %94 : vector<8x1xf32>
    %96 = vector.broadcast %95 : vector<8x1xf32> to vector<8x32xf32>
    %97 = arith.subf %89, %96 : vector<8x32xf32>
    %98 = arith.mulf %97, %97 : vector<8x32xf32>
    %cst_56 = arith.constant dense<0.000000e+00> : vector<8xf32>
    %99 = vector.multi_reduction <add>, %98, %cst_56 [1] : vector<8x32xf32> to vector<8xf32>
    %100 = vector.shape_cast %99 : vector<8xf32> to vector<8x1xf32>
    %cst_57 = arith.constant 3.200000e+01 : f32
    %101 = vector.broadcast %cst_57 : f32 to vector<8x1xf32>
    %102 = arith.divf %100, %101 : vector<8x1xf32>
    %cst_58 = arith.constant 9.99999974E-6 : f32
    %103 = vector.broadcast %cst_58 : f32 to vector<8x1xf32>
    %104 = arith.addf %102, %103 : vector<8x1xf32>
    %105 = math.rsqrt %104 : vector<8x1xf32>
    %106 = vector.broadcast %105 : vector<8x1xf32> to vector<8x32xf32>
    %107 = arith.mulf %97, %106 : vector<8x32xf32>
    %108 = vector.broadcast %90 : vector<1x32xf32> to vector<8x32xf32>
    %109 = arith.mulf %107, %108 : vector<8x32xf32>
    %110 = vector.broadcast %91 : vector<1x32xf32> to vector<8x32xf32>
    %111 = arith.addf %109, %110 : vector<8x32xf32>
    %c0_59 = arith.constant 0 : index
    %c0_60 = arith.constant 0 : index
    %112 = vector.load %arg20[%c0_59, %c0_60] : memref<32x32xbf16, #tpu.memory_space<vmem>>, vector<32x32xbf16>
    %c0_61 = arith.constant 0 : index
    %c0_62 = arith.constant 0 : index
    %113 = vector.load %arg21[%c0_61, %c0_62] : memref<1x32xf32, #tpu.memory_space<vmem>>, vector<1x32xf32>
    %114 = arith.truncf %111 : vector<8x32xf32> to vector<8x32xbf16>
    %cst_63 = arith.constant dense<0.000000e+00> : vector<8x32xf32>
    %115 = tpu.matmul %114, %112, %cst_63 {dimension_numbers = #tpu.dot_dimension_numbers<[1], [0], [0], [1], [0, 0, 1, 1], [], []>} : vector<8x32xbf16>, vector<32x32xbf16>, vector<8x32xf32> -> vector<8x32xf32>
    %116 = vector.broadcast %113 : vector<1x32xf32> to vector<8x32xf32>
    %117 = arith.addf %115, %116 : vector<8x32xf32>
    %c0_64 = arith.constant 0 : index
    %c0_65 = arith.constant 0 : index
    %118 = vector.load %arg22[%c0_64, %c0_65] : memref<32x64xbf16, #tpu.memory_space<vmem>>, vector<32x64xbf16>
    %c0_66 = arith.constant 0 : index
    %c0_67 = arith.constant 0 : index
    %119 = vector.load %arg23[%c0_66, %c0_67] : memref<1x64xf32, #tpu.memory_space<vmem>>, vector<1x64xf32>
    %120 = arith.truncf %1 : vector<64x32xf32> to vector<64x32xbf16>
    %cst_68 = arith.constant dense<0.000000e+00> : vector<64x64xf32>
    %121 = tpu.matmul %120, %118, %cst_68 {dimension_numbers = #tpu.dot_dimension_numbers<[1], [0], [0], [1], [0, 0, 1, 1], [], []>} : vector<64x32xbf16>, vector<32x64xbf16>, vector<64x64xf32> -> vector<64x64xf32>
    %122 = vector.broadcast %119 : vector<1x64xf32> to vector<64x64xf32>
    %123 = arith.addf %121, %122 : vector<64x64xf32>
    %124 = vector.extract_strided_slice %123 {offsets = [0, 0], sizes = [64, 32], strides = [1, 1]} : vector<64x64xf32> to vector<64x32xf32>
    %125 = vector.extract_strided_slice %123 {offsets = [0, 32], sizes = [64, 32], strides = [1, 1]} : vector<64x64xf32> to vector<64x32xf32>
    %126 = vector.shape_cast %117 : vector<8x32xf32> to vector<8x4x8xf32>
    %127 = tpu.transpose %126, [1, 0, 2] : vector<8x4x8xf32> -> vector<4x8x8xf32>
    %128 = arith.truncf %127 : vector<4x8x8xf32> to vector<4x8x8xbf16>
    %129 = vector.shape_cast %124 : vector<64x32xf32> to vector<64x4x8xf32>
    %130 = tpu.transpose %129, [1, 0, 2] : vector<64x4x8xf32> -> vector<4x64x8xf32>
    %131 = arith.truncf %130 : vector<4x64x8xf32> to vector<4x64x8xbf16>
    %132 = vector.shape_cast %125 : vector<64x32xf32> to vector<64x4x8xf32>
    %133 = tpu.transpose %132, [1, 0, 2] : vector<64x4x8xf32> -> vector<4x64x8xf32>
    %134 = arith.truncf %133 : vector<4x64x8xf32> to vector<4x64x8xbf16>
    "tpu.trace_start"() <{level = 10 : i32, message = "hqd,hkd->hqk"}> : () -> ()
    %cst_69 = arith.constant dense<0.000000e+00> : vector<4x8x64xf32>
    %135 = tpu.matmul %128, %131, %cst_69 {dimension_numbers = #tpu.dot_dimension_numbers<[2], [2], [1], [1], [0, 0, 0, 1, 1, 1], [0], [0]>} : vector<4x8x8xbf16>, vector<4x64x8xbf16>, vector<4x8x64xf32> -> vector<4x8x64xf32>
    "tpu.trace_stop"() : () -> ()
    %cst_70 = arith.constant 0.353553385 : f32
    %136 = vector.broadcast %cst_70 : f32 to vector<4x8x64xf32>
    %137 = arith.mulf %135, %136 : vector<4x8x64xf32>
    %cst_71 = arith.constant dense<0xFF800000> : vector<4x8xf32>
    %138 = vector.multi_reduction <maximumf>, %137, %cst_71 [2] : vector<4x8x64xf32> to vector<4x8xf32>
    %139 = vector.shape_cast %138 : vector<4x8xf32> to vector<4x8x1xf32>
    %140 = vector.broadcast %139 : vector<4x8x1xf32> to vector<4x8x64xf32>
    %141 = arith.subf %137, %140 : vector<4x8x64xf32>
    %142 = math.exp %141 : vector<4x8x64xf32>
    %cst_72 = arith.constant dense<0.000000e+00> : vector<4x8xf32>
    %143 = vector.multi_reduction <add>, %142, %cst_72 [2] : vector<4x8x64xf32> to vector<4x8xf32>
    %144 = vector.shape_cast %143 : vector<4x8xf32> to vector<4x8x1xf32>
    %145 = tpu.reciprocal %144 {approx = true} : vector<4x8x1xf32> -> vector<4x8x1xf32>
    %146 = vector.broadcast %145 : vector<4x8x1xf32> to vector<4x8x64xf32>
    %147 = arith.mulf %142, %146 : vector<4x8x64xf32>
    %148 = arith.truncf %147 : vector<4x8x64xf32> to vector<4x8x64xbf16>
    "tpu.trace_start"() <{level = 10 : i32, message = "hqk,hkd->hqd"}> : () -> ()
    %cst_73 = arith.constant dense<0.000000e+00> : vector<4x8x8xf32>
    %149 = tpu.matmul %148, %134, %cst_73 {dimension_numbers = #tpu.dot_dimension_numbers<[2], [1], [1], [2], [0, 0, 0, 1, 1, 2], [0], [0]>} : vector<4x8x64xbf16>, vector<4x64x8xbf16>, vector<4x8x8xf32> -> vector<4x8x8xf32>
    "tpu.trace_stop"() : () -> ()
    %150 = tpu.transpose %149, [1, 0, 2] : vector<4x8x8xf32> -> vector<8x4x8xf32>
    %151 = vector.shape_cast %150 : vector<8x4x8xf32> to vector<8x32xf32>
    %c0_74 = arith.constant 0 : index
    %c0_75 = arith.constant 0 : index
    %152 = vector.load %arg24[%c0_74, %c0_75] : memref<32x32xbf16, #tpu.memory_space<vmem>>, vector<32x32xbf16>
    %c0_76 = arith.constant 0 : index
    %c0_77 = arith.constant 0 : index
    %153 = vector.load %arg25[%c0_76, %c0_77] : memref<1x32xf32, #tpu.memory_space<vmem>>, vector<1x32xf32>
    %154 = arith.truncf %151 : vector<8x32xf32> to vector<8x32xbf16>
    %cst_78 = arith.constant dense<0.000000e+00> : vector<8x32xf32>
    %155 = tpu.matmul %154, %152, %cst_78 {dimension_numbers = #tpu.dot_dimension_numbers<[1], [0], [0], [1], [0, 0, 1, 1], [], []>} : vector<8x32xbf16>, vector<32x32xbf16>, vector<8x32xf32> -> vector<8x32xf32>
    %156 = vector.broadcast %153 : vector<1x32xf32> to vector<8x32xf32>
    %157 = arith.addf %155, %156 : vector<8x32xf32>
    %158 = arith.addf %111, %157 : vector<8x32xf32>
    %c0_79 = arith.constant 0 : index
    %c0_80 = arith.constant 0 : index
    %159 = vector.load %arg26[%c0_79, %c0_80] : memref<1x32xf32, #tpu.memory_space<vmem>>, vector<1x32xf32>
    %c0_81 = arith.constant 0 : index
    %c0_82 = arith.constant 0 : index
    %160 = vector.load %arg27[%c0_81, %c0_82] : memref<1x32xf32, #tpu.memory_space<vmem>>, vector<1x32xf32>
    %cst_83 = arith.constant dense<0.000000e+00> : vector<8xf32>
    %161 = vector.multi_reduction <add>, %158, %cst_83 [1] : vector<8x32xf32> to vector<8xf32>
    %162 = vector.shape_cast %161 : vector<8xf32> to vector<8x1xf32>
    %cst_84 = arith.constant 3.200000e+01 : f32
    %163 = vector.broadcast %cst_84 : f32 to vector<8x1xf32>
    %164 = arith.divf %162, %163 : vector<8x1xf32>
    %165 = vector.broadcast %164 : vector<8x1xf32> to vector<8x32xf32>
    %166 = arith.subf %158, %165 : vector<8x32xf32>
    %167 = arith.mulf %166, %166 : vector<8x32xf32>
    %cst_85 = arith.constant dense<0.000000e+00> : vector<8xf32>
    %168 = vector.multi_reduction <add>, %167, %cst_85 [1] : vector<8x32xf32> to vector<8xf32>
    %169 = vector.shape_cast %168 : vector<8xf32> to vector<8x1xf32>
    %cst_86 = arith.constant 3.200000e+01 : f32
    %170 = vector.broadcast %cst_86 : f32 to vector<8x1xf32>
    %171 = arith.divf %169, %170 : vector<8x1xf32>
    %cst_87 = arith.constant 9.99999974E-6 : f32
    %172 = vector.broadcast %cst_87 : f32 to vector<8x1xf32>
    %173 = arith.addf %171, %172 : vector<8x1xf32>
    %174 = math.rsqrt %173 : vector<8x1xf32>
    %175 = vector.broadcast %174 : vector<8x1xf32> to vector<8x32xf32>
    %176 = arith.mulf %166, %175 : vector<8x32xf32>
    %177 = vector.broadcast %159 : vector<1x32xf32> to vector<8x32xf32>
    %178 = arith.mulf %176, %177 : vector<8x32xf32>
    %179 = vector.broadcast %160 : vector<1x32xf32> to vector<8x32xf32>
    %180 = arith.addf %178, %179 : vector<8x32xf32>
    %c0_88 = arith.constant 0 : index
    %c0_89 = arith.constant 0 : index
    %181 = vector.load %arg28[%c0_88, %c0_89] : memref<32x64xbf16, #tpu.memory_space<vmem>>, vector<32x64xbf16>
    %c0_90 = arith.constant 0 : index
    %c0_91 = arith.constant 0 : index
    %182 = vector.load %arg29[%c0_90, %c0_91] : memref<1x64xf32, #tpu.memory_space<vmem>>, vector<1x64xf32>
    %183 = arith.truncf %180 : vector<8x32xf32> to vector<8x32xbf16>
    %cst_92 = arith.constant dense<0.000000e+00> : vector<8x64xf32>
    %184 = tpu.matmul %183, %181, %cst_92 {dimension_numbers = #tpu.dot_dimension_numbers<[1], [0], [0], [1], [0, 0, 1, 1], [], []>} : vector<8x32xbf16>, vector<32x64xbf16>, vector<8x64xf32> -> vector<8x64xf32>
    %185 = vector.broadcast %182 : vector<1x64xf32> to vector<8x64xf32>
    %186 = arith.addf %184, %185 : vector<8x64xf32>
    %cst_93 = arith.constant 0.000000e+00 : f32
    %187 = vector.broadcast %cst_93 : f32 to vector<8x64xf32>
    %188 = arith.maximumf %186, %187 : vector<8x64xf32>
    %c0_94 = arith.constant 0 : index
    %c0_95 = arith.constant 0 : index
    %189 = vector.load %arg30[%c0_94, %c0_95] : memref<64x32xbf16, #tpu.memory_space<vmem>>, vector<64x32xbf16>
    %c0_96 = arith.constant 0 : index
    %c0_97 = arith.constant 0 : index
    %190 = vector.load %arg31[%c0_96, %c0_97] : memref<1x32xf32, #tpu.memory_space<vmem>>, vector<1x32xf32>
    %191 = arith.truncf %188 : vector<8x64xf32> to vector<8x64xbf16>
    %cst_98 = arith.constant dense<0.000000e+00> : vector<8x32xf32>
    %192 = tpu.matmul %191, %189, %cst_98 {dimension_numbers = #tpu.dot_dimension_numbers<[1], [0], [0], [1], [0, 0, 1, 1], [], []>} : vector<8x64xbf16>, vector<64x32xbf16>, vector<8x32xf32> -> vector<8x32xf32>
    %193 = vector.broadcast %190 : vector<1x32xf32> to vector<8x32xf32>
    %194 = arith.addf %192, %193 : vector<8x32xf32>
    %195 = arith.addf %180, %194 : vector<8x32xf32>
    %c0_99 = arith.constant 0 : index
    %c0_100 = arith.constant 0 : index
    %196 = vector.load %arg32[%c0_99, %c0_100] : memref<1x32xf32, #tpu.memory_space<vmem>>, vector<1x32xf32>
    %c0_101 = arith.constant 0 : index
    %c0_102 = arith.constant 0 : index
    %197 = vector.load %arg33[%c0_101, %c0_102] : memref<1x32xf32, #tpu.memory_space<vmem>>, vector<1x32xf32>
    %cst_103 = arith.constant dense<0.000000e+00> : vector<8xf32>
    %198 = vector.multi_reduction <add>, %195, %cst_103 [1] : vector<8x32xf32> to vector<8xf32>
    %199 = vector.shape_cast %198 : vector<8xf32> to vector<8x1xf32>
    %cst_104 = arith.constant 3.200000e+01 : f32
    %200 = vector.broadcast %cst_104 : f32 to vector<8x1xf32>
    %201 = arith.divf %199, %200 : vector<8x1xf32>
    %202 = vector.broadcast %201 : vector<8x1xf32> to vector<8x32xf32>
    %203 = arith.subf %195, %202 : vector<8x32xf32>
    %204 = arith.mulf %203, %203 : vector<8x32xf32>
    %cst_105 = arith.constant dense<0.000000e+00> : vector<8xf32>
    %205 = vector.multi_reduction <add>, %204, %cst_105 [1] : vector<8x32xf32> to vector<8xf32>
    %206 = vector.shape_cast %205 : vector<8xf32> to vector<8x1xf32>
    %cst_106 = arith.constant 3.200000e+01 : f32
    %207 = vector.broadcast %cst_106 : f32 to vector<8x1xf32>
    %208 = arith.divf %206, %207 : vector<8x1xf32>
    %cst_107 = arith.constant 9.99999974E-6 : f32
    %209 = vector.broadcast %cst_107 : f32 to vector<8x1xf32>
    %210 = arith.addf %208, %209 : vector<8x1xf32>
    %211 = math.rsqrt %210 : vector<8x1xf32>
    %212 = vector.broadcast %211 : vector<8x1xf32> to vector<8x32xf32>
    %213 = arith.mulf %203, %212 : vector<8x32xf32>
    %214 = vector.broadcast %196 : vector<1x32xf32> to vector<8x32xf32>
    %215 = arith.mulf %213, %214 : vector<8x32xf32>
    %216 = vector.broadcast %197 : vector<1x32xf32> to vector<8x32xf32>
    %217 = arith.addf %215, %216 : vector<8x32xf32>
    %c0_108 = arith.constant 0 : index
    %c0_109 = arith.constant 0 : index
    %218 = vector.load %arg34[%c0_108, %c0_109] : memref<32x128xbf16, #tpu.memory_space<vmem>>, vector<32x128xbf16>
    %c0_110 = arith.constant 0 : index
    %c0_111 = arith.constant 0 : index
    %219 = vector.load %arg35[%c0_110, %c0_111] : memref<1x128xf32, #tpu.memory_space<vmem>>, vector<1x128xf32>
    %220 = arith.truncf %217 : vector<8x32xf32> to vector<8x32xbf16>
    %cst_112 = arith.constant dense<0.000000e+00> : vector<8x128xf32>
    %221 = tpu.matmul %220, %218, %cst_112 {dimension_numbers = #tpu.dot_dimension_numbers<[1], [0], [0], [1], [0, 0, 1, 1], [], []>} : vector<8x32xbf16>, vector<32x128xbf16>, vector<8x128xf32> -> vector<8x128xf32>
    %222 = vector.broadcast %219 : vector<1x128xf32> to vector<8x128xf32>
    %223 = arith.addf %221, %222 : vector<8x128xf32>
    %c0_113 = arith.constant 0 : index
    %c0_114 = arith.constant 0 : index
    %c0_115 = arith.constant 0 : index
    %224 = vector.load %arg36[%c0_113, %c0_114, %c0_115] : memref<1x8x128xf32, #tpu.memory_space<vmem>>, vector<1x8x128xf32>
    %225 = vector.shape_cast %224 : vector<1x8x128xf32> to vector<8x128xf32>
    %226 = vector.shape_cast %223 : vector<8x128xf32> to vector<1x8x128xf32>
    tpu.vector_store %arg36[%c0_113, %c0_114, %c0_115], %226 {strides = array<i32>} : memref<1x8x128xf32, #tpu.memory_space<vmem>>, vector<1x8x128xf32>,
    return
  }
  func.func @transform_0(%arg0: i32) -> (i32, i32, i32) {
    %c0_i32 = arith.constant 0 : i32
    %c0_i32_0 = arith.constant 0 : i32
    %c0_i32_1 = arith.constant 0 : i32
    return %arg0, %c0_i32, %c0_i32_0 : i32, i32, i32
  }
  func.func @transform_1(%arg0: i32) -> (i32, i32, i32) {
    %c0_i32 = arith.constant 0 : i32
    %c0_i32_0 = arith.constant 0 : i32
    %c0_i32_1 = arith.constant 0 : i32
    return %arg0, %c0_i32, %c0_i32_0 : i32, i32, i32
  }
  func.func @transform_2(%arg0: i32) -> (i32, i32) {
    %c0_i32 = arith.constant 0 : i32
    %c0_i32_0 = arith.constant 0 : i32
    %c0_i32_1 = arith.constant 0 : i32
    return %c0_i32, %c0_i32_0 : i32, i32
  }
  func.func @transform_3(%arg0: i32) -> (i32, i32) {
    %c0_i32 = arith.constant 0 : i32
    %c0_i32_0 = arith.constant 0 : i32
    %c0_i32_1 = arith.constant 0 : i32
    return %c0_i32, %c0_i32_0 : i32, i32
  }
  func.func @transform_4(%arg0: i32) -> (i32, i32) {
    %c0_i32 = arith.constant 0 : i32
    %c0_i32_0 = arith.constant 0 : i32
    %c0_i32_1 = arith.constant 0 : i32
    return %c0_i32, %c0_i32_0 : i32, i32
  }
  func.func @transform_5(%arg0: i32) -> (i32, i32) {
    %c0_i32 = arith.constant 0 : i32
    %c0_i32_0 = arith.constant 0 : i32
    %c0_i32_1 = arith.constant 0 : i32
    return %c0_i32, %c0_i32_0 : i32, i32
  }
  func.func @transform_6(%arg0: i32) -> (i32, i32) {
    %c0_i32 = arith.constant 0 : i32
    %c0_i32_0 = arith.constant 0 : i32
    %c0_i32_1 = arith.constant 0 : i32
    return %c0_i32, %c0_i32_0 : i32, i32
  }
  func.func @transform_7(%arg0: i32) -> (i32, i32) {
    %c0_i32 = arith.constant 0 : i32
    %c0_i32_0 = arith.constant 0 : i32
    %c0_i32_1 = arith.constant 0 : i32
    return %c0_i32, %c0_i32_0 : i32, i32
  }
  func.func @transform_8(%arg0: i32) -> (i32, i32) {
    %c0_i32 = arith.constant 0 : i32
    %c0_i32_0 = arith.constant 0 : i32
    %c0_i32_1 = arith.constant 0 : i32
    return %c0_i32, %c0_i32_0 : i32, i32
  }
  func.func @transform_9(%arg0: i32) -> (i32, i32) {
    %c0_i32 = arith.constant 0 : i32
    %c0_i32_0 = arith.constant 0 : i32
    %c0_i32_1 = arith.constant 0 : i32
    return %c0_i32, %c0_i32_0 : i32, i32
  }
  func.func @transform_10(%arg0: i32) -> (i32, i32) {
    %c0_i32 = arith.constant 0 : i32
    %c0_i32_0 = arith.constant 0 : i32
    %c0_i32_1 = arith.constant 0 : i32
    return %c0_i32, %c0_i32_0 : i32, i32
  }
  func.func @transform_11(%arg0: i32) -> (i32, i32) {
    %c0_i32 = arith.constant 0 : i32
    %c0_i32_0 = arith.constant 0 : i32
    %c0_i32_1 = arith.constant 0 : i32
    return %c0_i32, %c0_i32_0 : i32, i32
  }
  func.func @transform_12(%arg0: i32) -> (i32, i32) {
    %c0_i32 = arith.constant 0 : i32
    %c0_i32_0 = arith.constant 0 : i32
    %c0_i32_1 = arith.constant 0 : i32
    return %c0_i32, %c0_i32_0 : i32, i32
  }
  func.func @transform_13(%arg0: i32) -> (i32, i32) {
    %c0_i32 = arith.constant 0 : i32
    %c0_i32_0 = arith.constant 0 : i32
    %c0_i32_1 = arith.constant 0 : i32
    return %c0_i32, %c0_i32_0 : i32, i32
  }
  func.func @transform_14(%arg0: i32) -> (i32, i32) {
    %c0_i32 = arith.constant 0 : i32
    %c0_i32_0 = arith.constant 0 : i32
    %c0_i32_1 = arith.constant 0 : i32
    return %c0_i32, %c0_i32_0 : i32, i32
  }
  func.func @transform_15(%arg0: i32) -> (i32, i32) {
    %c0_i32 = arith.constant 0 : i32
    %c0_i32_0 = arith.constant 0 : i32
    %c0_i32_1 = arith.constant 0 : i32
    return %c0_i32, %c0_i32_0 : i32, i32
  }
  func.func @transform_16(%arg0: i32) -> (i32, i32) {
    %c0_i32 = arith.constant 0 : i32
    %c0_i32_0 = arith.constant 0 : i32
    %c0_i32_1 = arith.constant 0 : i32
    return %c0_i32, %c0_i32_0 : i32, i32
  }
  func.func @transform_17(%arg0: i32) -> (i32, i32) {
    %c0_i32 = arith.constant 0 : i32
    %c0_i32_0 = arith.constant 0 : i32
    %c0_i32_1 = arith.constant 0 : i32
    return %c0_i32, %c0_i32_0 : i32, i32
  }
  func.func @transform_18(%arg0: i32) -> (i32, i32) {
    %c0_i32 = arith.constant 0 : i32
    %c0_i32_0 = arith.constant 0 : i32
    %c0_i32_1 = arith.constant 0 : i32
    return %c0_i32, %c0_i32_0 : i32, i32
  }
  func.func @transform_19(%arg0: i32) -> (i32, i32) {
    %c0_i32 = arith.constant 0 : i32
    %c0_i32_0 = arith.constant 0 : i32
    %c0_i32_1 = arith.constant 0 : i32
    return %c0_i32, %c0_i32_0 : i32, i32
  }
  func.func @transform_20(%arg0: i32) -> (i32, i32) {
    %c0_i32 = arith.constant 0 : i32
    %c0_i32_0 = arith.constant 0 : i32
    %c0_i32_1 = arith.constant 0 : i32
    return %c0_i32, %c0_i32_0 : i32, i32
  }
  func.func @transform_21(%arg0: i32) -> (i32, i32) {
    %c0_i32 = arith.constant 0 : i32
    %c0_i32_0 = arith.constant 0 : i32
    %c0_i32_1 = arith.constant 0 : i32
    return %c0_i32, %c0_i32_0 : i32, i32
  }
  func.func @transform_22(%arg0: i32) -> (i32, i32) {
    %c0_i32 = arith.constant 0 : i32
    %c0_i32_0 = arith.constant 0 : i32
    %c0_i32_1 = arith.constant 0 : i32
    return %c0_i32, %c0_i32_0 : i32, i32
  }
  func.func @transform_23(%arg0: i32) -> (i32, i32) {
    %c0_i32 = arith.constant 0 : i32
    %c0_i32_0 = arith.constant 0 : i32
    %c0_i32_1 = arith.constant 0 : i32
    return %c0_i32, %c0_i32_0 : i32, i32
  }
  func.func @transform_24(%arg0: i32) -> (i32, i32) {
    %c0_i32 = arith.constant 0 : i32
    %c0_i32_0 = arith.constant 0 : i32
    %c0_i32_1 = arith.constant 0 : i32
    return %c0_i32, %c0_i32_0 : i32, i32
  }
  func.func @transform_25(%arg0: i32) -> (i32, i32) {
    %c0_i32 = arith.constant 0 : i32
    %c0_i32_0 = arith.constant 0 : i32
    %c0_i32_1 = arith.constant 0 : i32
    return %c0_i32, %c0_i32_0 : i32, i32
  }
  func.func @transform_26(%arg0: i32) -> (i32, i32) {
    %c0_i32 = arith.constant 0 : i32
    %c0_i32_0 = arith.constant 0 : i32
    %c0_i32_1 = arith.constant 0 : i32
    return %c0_i32, %c0_i32_0 : i32, i32
  }
  func.func @transform_27(%arg0: i32) -> (i32, i32) {
    %c0_i32 = arith.constant 0 : i32
    %c0_i32_0 = arith.constant 0 : i32
    %c0_i32_1 = arith.constant 0 : i32
    return %c0_i32, %c0_i32_0 : i32, i32
  }
  func.func @transform_28(%arg0: i32) -> (i32, i32) {
    %c0_i32 = arith.constant 0 : i32
    %c0_i32_0 = arith.constant 0 : i32
    %c0_i32_1 = arith.constant 0 : i32
    return %c0_i32, %c0_i32_0 : i32, i32
  }
  func.func @transform_29(%arg0: i32) -> (i32, i32) {
    %c0_i32 = arith.constant 0 : i32
    %c0_i32_0 = arith.constant 0 : i32
    %c0_i32_1 = arith.constant 0 : i32
    return %c0_i32, %c0_i32_0 : i32, i32
  }
  func.func @transform_30(%arg0: i32) -> (i32, i32) {
    %c0_i32 = arith.constant 0 : i32
    %c0_i32_0 = arith.constant 0 : i32
    %c0_i32_1 = arith.constant 0 : i32
    return %c0_i32, %c0_i32_0 : i32, i32
  }
  func.func @transform_31(%arg0: i32) -> (i32, i32) {
    %c0_i32 = arith.constant 0 : i32
    %c0_i32_0 = arith.constant 0 : i32
    %c0_i32_1 = arith.constant 0 : i32
    return %c0_i32, %c0_i32_0 : i32, i32
  }
  func.func @transform_32(%arg0: i32) -> (i32, i32) {
    %c0_i32 = arith.constant 0 : i32
    %c0_i32_0 = arith.constant 0 : i32
    %c0_i32_1 = arith.constant 0 : i32
    return %c0_i32, %c0_i32_0 : i32, i32
  }
  func.func @transform_33(%arg0: i32) -> (i32, i32) {
    %c0_i32 = arith.constant 0 : i32
    %c0_i32_0 = arith.constant 0 : i32
    %c0_i32_1 = arith.constant 0 : i32
    return %c0_i32, %c0_i32_0 : i32, i32
  }
  func.func @transform_34(%arg0: i32) -> (i32, i32) {
    %c0_i32 = arith.constant 0 : i32
    %c0_i32_0 = arith.constant 0 : i32
    %c0_i32_1 = arith.constant 0 : i32
    return %c0_i32, %c0_i32_0 : i32, i32
  }
  func.func @transform_35(%arg0: i32) -> (i32, i32, i32) {
    %c0_i32 = arith.constant 0 : i32
    %c0_i32_0 = arith.constant 0 : i32
    %c0_i32_1 = arith.constant 0 : i32
    return %arg0, %c0_i32, %c0_i32_0 : i32, i32, i32
  }
}

</mosaic_0001>

<bundles_post_ra>
// kernel: ssrt_forward.3
= control target key start
LH: loop header
LB: loop body
LE: loop exit
PB: predicated region body
PF: predicated region fallthrough
CT: control target
= control target key end

     0   :  { %vm153_vm0 = vcmask 261120   ;;  %s930_s1 = inlined_call_operand.vmem [shape: bf16[32,32], index: 1, kind: input, shape index: {}]   ;;  %s931_s0 = inlined_call_operand.vmem [shape: bf16[256,32], index: 0, kind: input, shape index: {}]   ;;  %s932_s2 = inlined_call_operand.vmem [shape: f32[1,32], index: 2, kind: input, shape index: {}]   ;;  %s933_s3 = inlined_call_operand.vmem [shape: f32[256,32], index: 3, kind: input, shape index: {}]   ;;  %s934_s4 = inlined_call_operand.vmem [shape: f32[256,32], index: 4, kind: output, shape index: {}]  }
   0x1   :  { %v556_v0 = vld [vmem:[%s930_s1] sm:$0xff]   ;;  %v557_v1 = vld [vmem:[%s930_s1 + $0x8] sm:$0xff]   ;;  %v562_v6 = vld [vmem:[%s931_s0 + $0x10] sm:$0xff]  }
   0x2   :  { %516 = vmatprep.subr.bf16.mxu0 %v556_v0  ;;  %552 = vmatprep.subr.bf16.mxu1 %v556_v0  ;;  %v558_v2 = vld [vmem:[%s931_s0] sm:$0xff]   ;;  %v560_v4 = vld [vmem:[%s931_s0 + $0x8] sm:$0xff]   ;;  %v563_v7 = vld [vmem:[%s931_s0 + $0x50] sm:$0xff]  }
   0x3   :  { %517 = vmatpush3.bf16.msra.mxu0 %v556_v0  ;;  %554 = vmatpush3.bf16.msra.mxu1 %v556_v0  ;;  %v559_v3 = vld [vmem:[%s931_s0 + $0x40] sm:$0xff]   ;;  %v561_v5 = vld [vmem:[%s931_s0 + $0x48] sm:$0xff]   ;;  %v564_v8 = vld [vmem:[%s931_s0 + $0x18] sm:$0xff]  }
   0x4   :  { %518 = vmatprep.subr.bf16.mxu0 %v557_v1  ;;  %553 = vmatprep.subr.bf16.mxu1 %v557_v1  ;;  %v565_v9 = vld [vmem:[%s931_s0 + $0x58] sm:$0xff]   ;;  %v566_v10 = vld [vmem:[%s931_s0 + $0x20] sm:$0xff]   ;;  %v568_v12 = vld [vmem:[%s931_s0 + $0x28] sm:$0xff]  }
   0x5   :  { %520 = vmatprep.mubr.msk.bf16.mxu0 %vm153_vm0, %v558_v2  ;;  %536 = vmatprep.mubr.msk.bf16.mxu1 %vm153_vm0, %v559_v3  ;;  %v567_v11 = vld [vmem:[%s931_s0 + $0x60] sm:$0xff]   ;;  %v569_v13 = vld [vmem:[%s931_s0 + $0x68] sm:$0xff]   ;;  %v570_v14 = vld [vmem:[%s931_s0 + $0x30] sm:$0xff]  }
   0x6   :  { %v571_v15 = vld [vmem:[%s931_s0 + $0x70] sm:$0xff]   ;;  %v572_v16 = vld [vmem:[%s931_s0 + $0x38] sm:$0xff]   ;;  %v672_v18 = vld [vmem:[%s932_s2] ss:$0 sm:$0xff] }
   0x7   :  { %519 = vmatpush3.bf16.msra.mxu0 %v557_v1  ;;  %555 = vmatpush3.bf16.msra.mxu1 %v557_v1  ;;  %v573_v17 = vld [vmem:[%s931_s0 + $0x78] sm:$0xff]   ;;  %v365_v20 = vld [vmem:[%s933_s3 + $0x10] sm:$0xff]  ;;  %v363_v26 = vld [vmem:[%s933_s3] sm:$0xff] }
   0x8   :  { %v381_v22 = vld [vmem:[%s933_s3 + $0x90] sm:$0xff]  ;;  %v379_v28 = vld [vmem:[%s933_s3 + $0x80] sm:$0xff]  ;;  %v366_v32 = vld [vmem:[%s933_s3 + $0x18] sm:$0xff] }
   0x9   :  { %v382_v34 = vld [vmem:[%s933_s3 + $0x98] sm:$0xff]  ;;  %v364_v40 = vld [vmem:[%s933_s3 + $0x8] sm:$0xff]  ;;  %v369_v52 = vld [vmem:[%s933_s3 + $0x30] sm:$0xff] }
   0xa   :  { %521 = vmatmul.mubr.msk.bf16.vlgmr.msra.gmra.mrb[0].mxu0 %vm153_vm0, %v560_v4  ;;  %537 = vmatmul.mubr.msk.bf16.vlgmr.msra.gmra.mrb[0].mxu1 %vm153_vm0, %v561_v5  ;;  %v380_v42 = vld [vmem:[%s933_s3 + $0x88] sm:$0xff]  ;;  %v385_v54 = vld [vmem:[%s933_s3 + $0xb0] sm:$0xff]  ;;  %v367_v58 = vld [vmem:[%s933_s3 + $0x20] sm:$0xff] }
   0xb   :  { %524 = vmatprep.mubr.msk.bf16.mxu0 %vm153_vm0, %v562_v6  ;;  %540 = vmatprep.mubr.msk.bf16.mxu1 %vm153_vm0, %v563_v7  ;;  %v383_v60 = vld [vmem:[%s933_s3 + $0xa0] sm:$0xff]  ;;  %v370_v0 = vld [vmem:[%s933_s3 + $0x38] sm:$0xff] }
   0xc   :  { %v386_v2 = vld [vmem:[%s933_s3 + $0xb8] sm:$0xff] }
  0x12   :  { %525 = vmatmul.mubr.msk.bf16.gmra.mrb[4].mxu0 %vm153_vm0, %v564_v8  ;;  %541 = vmatmul.mubr.msk.bf16.gmra.mrb[4].mxu1 %vm153_vm0, %v565_v9  ;;  %v368_v8 = vld [vmem:[%s933_s3 + $0x28] sm:$0xff] }
  0x13   :  { %528 = vmatprep.mubr.msk.bf16.mxu0 %vm153_vm0, %v566_v10  ;;  %544 = vmatprep.mubr.msk.bf16.mxu1 %vm153_vm0, %v567_v11  ;;  %v384_v10 = vld [vmem:[%s933_s3 + $0xa8] sm:$0xff] }
  0x1a   :  { %529 = vmatmul.mubr.msk.bf16.gmra.mrb[8].mxu0 %vm153_vm0, %v568_v12  ;;  %545 = vmatmul.mubr.msk.bf16.gmra.mrb[8].mxu1 %vm153_vm0, %v569_v13 }
  0x1b   :  { %532 = vmatprep.mubr.msk.bf16.mxu0 %vm153_vm0, %v570_v14  ;;  %548 = vmatprep.mubr.msk.bf16.mxu1 %vm153_vm0, %v571_v15 }
  0x22   :  { %533 = vmatmul.mubr.msk.bf16.gmra.mrb[12].mxu0 %vm153_vm0, %v572_v16  ;;  %549 = vmatmul.mubr.msk.bf16.gmra.mrb[12].mxu1 %vm153_vm0, %v573_v17 }
  0xdd   :  { %v522_v19 = vpop.f32.mrb[0].mxu0  ;;  %v538_v21 = vpop.f32.mrb[0].mxu1 }
  0xde   :  { %v245_v23 = vadd.f32 %v522_v19, %v672_v18  ;;  %v309_v24 = vadd.f32 %v538_v21, %v672_v18  ;;  %v236_v25 = vpop.f32.mrb[1].mxu0  ;;  %v300_v27 = vpop.f32.mrb[1].mxu1  ;;  %v373_v21 = vld [vmem:[%s933_s3 + $0x50] sm:$0xff] }
  0xdf   :  { %v237_v29 = vadd.f32 %v672_v18, %v236_v25  ;;  %v301_v30 = vadd.f32 %v672_v18, %v300_v27  ;;  %v523_v31 = vpop.f32.mrb[2].mxu0  ;;  %v539_v33 = vpop.f32.mrb[2].mxu1  ;;  %v371_v27 = vld [vmem:[%s933_s3 + $0x40] sm:$0xff] }
  0xe0   :  { %v397_v35 = vadd.f32 %v365_v20, %v245_v23  ;;  %v413_v36 = vadd.f32 %v381_v22, %v309_v24  ;;  %v248_v37 = vadd.f32 %v523_v31, %v672_v18  ;;  %v312_v38 = vadd.f32 %v539_v33, %v672_v18  ;;  %v239_v39 = vpop.f32.mrb[3].mxu0  ;;  %v303_v41 = vpop.f32.mrb[3].mxu1  ;;  %v389_v23 = vld [vmem:[%s933_s3 + $0xd0] sm:$0xff]  ;;  %v374_v33 = vld [vmem:[%s933_s3 + $0x58] sm:$0xff] }
  0xe1   :  { %v395_v43 = vadd.f32 %v363_v26, %v237_v29  ;;  %v411_v44 = vadd.f32 %v379_v28, %v301_v30  ;;  %v240_v45 = vadd.f32 %v672_v18, %v239_v39  ;;  %v304_v46 = vadd.f32 %v672_v18, %v303_v41  ;;  %v387_v29 = vld [vmem:[%s933_s3 + $0xc0] sm:$0xff]  ;;  %v372_v41 = vld [vmem:[%s933_s3 + $0x48] sm:$0xff] }
  0xe2   :  { %429 = vst.msk [vmem:[%s934_s4 + $0x10] sm:$0xff] %vm153_vm0, %v397_v35  ;;  %445 = vst.msk [vmem:[%s934_s4 + $0x90] sm:$0xff] %vm153_vm0, %v413_v36  ;;  %v398_v47 = vadd.f32 %v366_v32, %v248_v37  ;;  %v414_v48 = vadd.f32 %v382_v34, %v312_v38  ;;  %v390_v35 = vld [vmem:[%s933_s3 + $0xd8] sm:$0xff] }
  0xe3   :  { %427 = vst.msk [vmem:[%s934_s4] sm:$0xff] %vm153_vm0, %v395_v43  ;;  %443 = vst.msk [vmem:[%s934_s4 + $0x80] sm:$0xff] %vm153_vm0, %v411_v44  ;;  %v396_v49 = vadd.f32 %v364_v40, %v240_v45  ;;  %v412_v50 = vadd.f32 %v380_v42, %v304_v46  ;;  %v388_v43 = vld [vmem:[%s933_s3 + $0xc8] sm:$0xff] }
  0xe4   :  { %430 = vst.msk [vmem:[%s934_s4 + $0x18] sm:$0xff] %vm153_vm0, %v398_v47  ;;  %446 = vst.msk [vmem:[%s934_s4 + $0x98] sm:$0xff] %vm153_vm0, %v414_v48 }
  0xe5   :  { %428 = vst.msk [vmem:[%s934_s4 + $0x8] sm:$0xff] %vm153_vm0, %v396_v49  ;;  %444 = vst.msk [vmem:[%s934_s4 + $0x88] sm:$0xff] %vm153_vm0, %v412_v50  ;;  %v526_v51 = vpop.f32.mrb[4].mxu0  ;;  %v542_v53 = vpop.f32.mrb[4].mxu1 }
  0xe6   :  { %v261_v55 = vadd.f32 %v526_v51, %v672_v18  ;;  %v325_v56 = vadd.f32 %v542_v53, %v672_v18  ;;  %v252_v57 = vpop.f32.mrb[5].mxu0  ;;  %v316_v59 = vpop.f32.mrb[5].mxu1  ;;  %v377_v53 = vld [vmem:[%s933_s3 + $0x70] sm:$0xff] }
  0xe7   :  { %v253_v61 = vadd.f32 %v672_v18, %v252_v57  ;;  %v317_v62 = vadd.f32 %v672_v18, %v316_v59  ;;  %v527_v63 = vpop.f32.mrb[6].mxu0  ;;  %v543_v1 = vpop.f32.mrb[6].mxu1  ;;  %v375_v59 = vld [vmem:[%s933_s3 + $0x60] sm:$0xff] }
  0xe8   :  { %v401_v3 = vadd.f32 %v369_v52, %v261_v55  ;;  %v417_v4 = vadd.f32 %v385_v54, %v325_v56  ;;  %v264_v5 = vadd.f32 %v527_v63, %v672_v18  ;;  %v328_v6 = vadd.f32 %v543_v1, %v672_v18  ;;  %v255_v7 = vpop.f32.mrb[7].mxu0  ;;  %v319_v9 = vpop.f32.mrb[7].mxu1  ;;  %v393_v55 = vld [vmem:[%s933_s3 + $0xf0] sm:$0xff]  ;;  %v378_v1 = vld [vmem:[%s933_s3 + $0x78] sm:$0xff] }
  0xe9   :  { %v399_v11 = vadd.f32 %v367_v58, %v253_v61  ;;  %v415_v12 = vadd.f32 %v383_v60, %v317_v62  ;;  %v256_v13 = vadd.f32 %v672_v18, %v255_v7  ;;  %v320_v14 = vadd.f32 %v672_v18, %v319_v9  ;;  %v391_v61 = vld [vmem:[%s933_s3 + $0xe0] sm:$0xff]  ;;  %v376_v9 = vld [vmem:[%s933_s3 + $0x68] sm:$0xff] }
  0xea   :  { %433 = vst.msk [vmem:[%s934_s4 + $0x30] sm:$0xff] %vm153_vm0, %v401_v3  ;;  %449 = vst.msk [vmem:[%s934_s4 + $0xb0] sm:$0xff] %vm153_vm0, %v417_v4  ;;  %v402_v15 = vadd.f32 %v370_v0, %v264_v5  ;;  %v418_v16 = vadd.f32 %v386_v2, %v328_v6  ;;  %v394_v3 = vld [vmem:[%s933_s3 + $0xf8] sm:$0xff] }
  0xeb   :  { %431 = vst.msk [vmem:[%s934_s4 + $0x20] sm:$0xff] %vm153_vm0, %v399_v11  ;;  %447 = vst.msk [vmem:[%s934_s4 + $0xa0] sm:$0xff] %vm153_vm0, %v415_v12  ;;  %v400_v17 = vadd.f32 %v368_v8, %v256_v13  ;;  %v416_v19 = vadd.f32 %v384_v10, %v320_v14  ;;  %v392_v11 = vld [vmem:[%s933_s3 + $0xe8] sm:$0xff] }
  0xec   :  { %434 = vst.msk [vmem:[%s934_s4 + $0x38] sm:$0xff] %vm153_vm0, %v402_v15  ;;  %450 = vst.msk [vmem:[%s934_s4 + $0xb8] sm:$0xff] %vm153_vm0, %v418_v16 }
  0xed   :  { %432 = vst.msk [vmem:[%s934_s4 + $0x28] sm:$0xff] %vm153_vm0, %v400_v17  ;;  %448 = vst.msk [vmem:[%s934_s4 + $0xa8] sm:$0xff] %vm153_vm0, %v416_v19  ;;  %v530_v20 = vpop.f32.mrb[8].mxu0  ;;  %v546_v22 = vpop.f32.mrb[8].mxu1 }
  0xee   :  { %v277_v24 = vadd.f32 %v530_v20, %v672_v18  ;;  %v341_v25 = vadd.f32 %v546_v22, %v672_v18  ;;  %v268_v26 = vpop.f32.mrb[9].mxu0  ;;  %v332_v28 = vpop.f32.mrb[9].mxu1 }
  0xef   :  { %v269_v30 = vadd.f32 %v672_v18, %v268_v26  ;;  %v333_v31 = vadd.f32 %v672_v18, %v332_v28  ;;  %v531_v32 = vpop.f32.mrb[10].mxu0  ;;  %v547_v34 = vpop.f32.mrb[10].mxu1 }
  0xf0   :  { %v405_v36 = vadd.f32 %v373_v21, %v277_v24  ;;  %v421_v37 = vadd.f32 %v389_v23, %v341_v25  ;;  %v280_v38 = vadd.f32 %v531_v32, %v672_v18  ;;  %v344_v39 = vadd.f32 %v547_v34, %v672_v18  ;;  %v271_v40 = vpop.f32.mrb[11].mxu0  ;;  %v335_v42 = vpop.f32.mrb[11].mxu1 }
  0xf1   :  { %v403_v44 = vadd.f32 %v371_v27, %v269_v30  ;;  %v419_v45 = vadd.f32 %v387_v29, %v333_v31  ;;  %v272_v46 = vadd.f32 %v672_v18, %v271_v40  ;;  %v336_v47 = vadd.f32 %v672_v18, %v335_v42 }
  0xf2   :  { %437 = vst.msk [vmem:[%s934_s4 + $0x50] sm:$0xff] %vm153_vm0, %v405_v36  ;;  %453 = vst.msk [vmem:[%s934_s4 + $0xd0] sm:$0xff] %vm153_vm0, %v421_v37  ;;  %v406_v48 = vadd.f32 %v374_v33, %v280_v38  ;;  %v422_v49 = vadd.f32 %v390_v35, %v344_v39 }
  0xf3   :  { %435 = vst.msk [vmem:[%s934_s4 + $0x40] sm:$0xff] %vm153_vm0, %v403_v44  ;;  %451 = vst.msk [vmem:[%s934_s4 + $0xc0] sm:$0xff] %vm153_vm0, %v419_v45  ;;  %v404_v50 = vadd.f32 %v372_v41, %v272_v46  ;;  %v420_v51 = vadd.f32 %v388_v43, %v336_v47 }
  0xf4   :  { %438 = vst.msk [vmem:[%s934_s4 + $0x58] sm:$0xff] %vm153_vm0, %v406_v48  ;;  %454 = vst.msk [vmem:[%s934_s4 + $0xd8] sm:$0xff] %vm153_vm0, %v422_v49 }
  0xf5   :  { %436 = vst.msk [vmem:[%s934_s4 + $0x48] sm:$0xff] %vm153_vm0, %v404_v50  ;;  %452 = vst.msk [vmem:[%s934_s4 + $0xc8] sm:$0xff] %vm153_vm0, %v420_v51  ;;  %v534_v52 = vpop.f32.mrb[12].mxu0  ;;  %v550_v54 = vpop.f32.mrb[12].mxu1 }
  0xf6   :  { %v293_v56 = vadd.f32 %v534_v52, %v672_v18  ;;  %v357_v57 = vadd.f32 %v550_v54, %v672_v18  ;;  %v284_v58 = vpop.f32.mrb[13].mxu0  ;;  %v348_v60 = vpop.f32.mrb[13].mxu1 }
  0xf7   :  { %v285_v62 = vadd.f32 %v672_v18, %v284_v58  ;;  %v349_v63 = vadd.f32 %v672_v18, %v348_v60  ;;  %v535_v0 = vpop.f32.mrb[14].mxu0  ;;  %v551_v2 = vpop.f32.mrb[14].mxu1 }
  0xf8   :  { %v409_v4 = vadd.f32 %v377_v53, %v293_v56  ;;  %v425_v5 = vadd.f32 %v393_v55, %v357_v57  ;;  %v296_v6 = vadd.f32 %v535_v0, %v672_v18  ;;  %v360_v7 = vadd.f32 %v551_v2, %v672_v18  ;;  %v287_v8 = vpop.f32.mrb[15].mxu0  ;;  %v351_v10 = vpop.f32.mrb[15].mxu1 }
  0xf9   :  { %v407_v12 = vadd.f32 %v375_v59, %v285_v62  ;;  %v423_v13 = vadd.f32 %v391_v61, %v349_v63  ;;  %v288_v14 = vadd.f32 %v672_v18, %v287_v8  ;;  %v352_v15 = vadd.f32 %v672_v18, %v351_v10 }
  0xfa   :  { %441 = vst.msk [vmem:[%s934_s4 + $0x70] sm:$0xff] %vm153_vm0, %v409_v4  ;;  %457 = vst.msk [vmem:[%s934_s4 + $0xf0] sm:$0xff] %vm153_vm0, %v425_v5  ;;  %v410_v16 = vadd.f32 %v378_v1, %v296_v6  ;;  %v426_v17 = vadd.f32 %v394_v3, %v360_v7 }
  0xfb   :  { %439 = vst.msk [vmem:[%s934_s4 + $0x60] sm:$0xff] %vm153_vm0, %v407_v12  ;;  %455 = vst.msk [vmem:[%s934_s4 + $0xe0] sm:$0xff] %vm153_vm0, %v423_v13  ;;  %v408_v18 = vadd.f32 %v376_v9, %v288_v14  ;;  %v424_v19 = vadd.f32 %v392_v11, %v352_v15 }
  0xfc   :  { %442 = vst.msk [vmem:[%s934_s4 + $0x78] sm:$0xff] %vm153_vm0, %v410_v16  ;;  %458 = vst.msk [vmem:[%s934_s4 + $0xf8] sm:$0xff] %vm153_vm0, %v426_v17 }
  0xfd   :  { %440 = vst.msk [vmem:[%s934_s4 + $0x68] sm:$0xff] %vm153_vm0, %v408_v18  ;;  %456 = vst.msk [vmem:[%s934_s4 + $0xe8] sm:$0xff] %vm153_vm0, %v424_v19 }

// kernel: ssrt_forward.4
= control target key start
LH: loop header
LB: loop body
LE: loop exit
PB: predicated region body
PF: predicated region fallthrough
CT: control target
= control target key end

     0   :  { %s8180_s23 = smov 0   ;;  %s10719_s0 = inlined_call_operand.vmem [shape: f32[2,64,32], index: 0, kind: input, shape index: {}]   ;;  %s10720_s1 = inlined_call_operand.vmem [shape: bf16[32,96], index: 1, kind: input, shape index: {}]   ;;  %s10721_s2 = inlined_call_operand.vmem [shape: f32[1,96], index: 2, kind: input, shape index: {}]   ;;  %s10722_s3 = inlined_call_operand.vmem [shape: bf16[32,32], index: 3, kind: input, shape index: {}]   ;;  %s10723_s4 = inlined_call_operand.vmem [shape: f32[1,32], index: 4, kind: input, shape index: {}]   ;;  %s10724_s5 = inlined_call_operand.vmem [shape: f32[1,32], index: 5, kind: input, shape index: {}]   ;;  %s10725_s6 = inlined_call_operand.vmem [shape: f32[1,32], index: 6, kind: input, shape index: {}]   ;;  %s10726_s7 = inlined_call_operand.vmem [shape: bf16[32,64], index: 7, kind: input, shape index: {}]   ;;  %s10727_s8 = inlined_call_operand.vmem [shape: f32[1,64], index: 8, kind: input, shape index: {}]   ;;  %s10728_s9 = inlined_call_operand.vmem [shape: bf16[64,32], index: 9, kind: input, shape index: {}]   ;;  %s10729_s10 = inlined_call_operand.vmem [shape: f32[1,32], index: 10, kind: input, shape index: {}]   ;;  %s10730_s11 = inlined_call_operand.vmem [shape: f32[1,32], index: 11, kind: input, shape index: {}]   ;;  %s10731_s12 = inlined_call_operand.vmem [shape: f32[1,32], index: 12, kind: input, shape index: {}]   ;;  %s10732_s13 = inlined_call_operand.vmem [shape: f32[1,32], index: 13, kind: input, shape index: {}]   ;;  %s10733_s14 = inlined_call_operand.<no memory space> [shape: f32[1,1], index: 14, kind: input, shape index: {}]   ;;  %s10734_s15 = inlined_call_operand.vmem [shape: f32[2,64,32], index: 15, kind: output, shape index: {0}]   ;;  %s10735_s16 = inlined_call_operand.vmem [shape: f32[2,1,64], index: 16, kind: output, shape index: {1}]  }
   0x1   :  { %10743 = sst [smem:[#allocation19_spill]] %s10719_s0  ;;  %v22_v0 = vstv %s10733_s14 }
   0x2   :  { %23 = vst [vmem:[#allocation2] sm:$0x1] %v22_v0 }
   0x3 LB: > { %s7326_s24 = sadd.s32 4294967295, %s8076_s23   ;;  %p7330_p0 = scmp.ge.s32.totalorder %s8076_s23, 1  ;;  %s8076_s23 = sphi %s8180_s23, %s29_s23  }
   0x4   : > { %p467_p1 = scmp.lt.s32.totalorder %s8076_s23, 3 }
   0x6   : > { %p468_p2 = pnand %p7330_p0, %p467_p1 }
   0x8   : > { %471 = sbr.rel (%p468_p2) target bundleno = 3095 (0xc17), region = 80 }
   0xf   : > { %v7892_v1 = vld [vmem:[%s10720_s1] sm:$0xff]   ;;  %p520_p3 = scmp.lt.s32.totalorder %s7326_s24, 1  ;;  %v7893_v2 = vld [vmem:[%s10720_s1 + $0x8] sm:$0xff]   ;;  %s10744_s0 = sld [smem:[#allocation19_spill]]  ;;  %vm569_vm0 = vcmask 261120   ;;  %v732_v41 = vlaneseq  ;;  %vm4231_vm1 = vcmask 64512  }
  0x10   : > { %7577 = vmatprep.subr.bf16.mxu1 %v7892_v1  ;;  %v7335_v15 = vld [vmem:[%s10721_s2] ss:$0 sm:$0xff]  ;;  %s8078_s20 = smov 120   ;;  %s8079_s21 = smov 112   ;;  %v8082_v39 = vmov 1983009808   ;;  %vm10674_vm6 = vmpackc.low %vm569_vm0, %vm569_vm0 }
  0x11   : > { %s10793_s24 = smov (!%p520_p3, %s7326_s24), 1  ;;  %7578 = vmatpush3.bf16.msra.mxu1 %v7892_v1  ;;  %s8080_s22 = smov 104   ;;  %v730_v40 = vunpack.c.l.s4 %v8082_v39  ;;  %v8315_v45 = vshrl.u32 %v732_v41, 7  ;;  %v8083_v50 = vmov 1934713408   ;;  %vm4620_vm2 = vcmask 523264  }
  0x12   : > { %7579 = vmatprep.subr.bf16.mxu1 %v7893_v2  ;;  %s7476_s28 = sshll.u32 %s10793_s24, 6  ;;  %s8081_s25 = smov 96   ;;  %v762_v51 = vunpack.c.l.s4 %v8083_v50  ;;  %vm6489_vm3 = vcmask 130048   ;;  %vm6498_vm4 = vcmask 195584   ;;  %vm8089_vm5 = vmmov 0  }
  0x13   : > { %v731_v44 = vunpack.c.0.s8 %v730_v40  ;;  %10745 = vst [vmem:[#allocation3_spill] sm:$0xff] %v8315_v45  ;;  %s8084_s26 = smov 64   ;;  %s8085_s29 = smov 16   ;;  %vm7244_vm7 = vcmask 516096  }
  0x14   : > { %v763_v58 = vunpack.c.0.s8 %v762_v51  ;;  %s8086_s18 = smov 8   ;;  %s8087_s19 = smov 24  }
  0x15   : > { %s8202_s17 = scalar_lea.vmem %s10744_s0, %s7476_s28  ;;  %7580 = vmatpush3.bf16.msra.mxu1 %v7893_v2  ;;  %v8324_v48 = vsub.s32 %v731_v44, %v8315_v45  ;;  %s532_s14 = scalar_lea.vmem %s10735_s16, %s10793_s24 }
  0x16   : > { %v534_v3 = vld [vmem:[%s8202_s17] sm:$0xff]  ;;  %v535_v4 = vld [vmem:[%s8202_s17 + $0x8] sm:$0xff]  ;;  %v536_v5 = vld [vmem:[%s8202_s17 + $0x10] sm:$0xff] }
  0x17   : > { %v547_v6 = vpack.c.bf16 %v535_v4, %v534_v3  ;;  %v537_v7 = vld [vmem:[%s8202_s17 + $0x18] sm:$0xff]  ;;  %v538_v8 = vld [vmem:[%s8202_s17 + $0x20] sm:$0xff]  ;;  %v539_v9 = vld [vmem:[%s8202_s17 + $0x28] sm:$0xff] }
  0x18   : > { %v548_v10 = vpack.c.bf16 %v537_v7, %v536_v5  ;;  %v549_v11 = vpack.c.bf16 %v539_v9, %v538_v8  ;;  %v540_v12 = vld [vmem:[%s8202_s17 + $0x30] sm:$0xff]  ;;  %v541_v13 = vld [vmem:[%s8202_s17 + $0x38] sm:$0xff] }
  0x19   : > { %7581 = vmatprep.mubr.msk.bf16.mxu1 %vm569_vm0, %v547_v6  ;;  %v550_v14 = vpack.c.bf16 %v541_v13, %v540_v12  ;;  %v8363_v6 = vsub.s32 %v763_v58, %v8315_v45 }
  0x1a   : > { %7582 = vmatmul.mubr.msk.bf16.vlgmr.msra.gmra.mrb[0].mxu1 %vm569_vm0, %v548_v10 }
  0x1b   : > { %7585 = vmatprep.mubr.msk.bf16.mxu1 %vm569_vm0, %v549_v11 }
  0x22   : > { %7586 = vmatmul.mubr.msk.bf16.gmra.mrb[4].mxu1 %vm569_vm0, %v550_v14 }
  0xed   : > { %v7583_v16 = vpop.f32.mrb[0].mxu1 }
  0xee   : > { %v8219_v17 = vadd.f32 %v7583_v16, %v7335_v15  ;;  %v616_v18 = vpop.f32.mrb[1].mxu1 }
  0xef   : > { %v8221_v19 = vadd.f32 %v7335_v15, %v616_v18  ;;  %v7584_v20 = vpop.f32.mrb[2].mxu1 }
  0xf0   : > { %659 = vrot.lane.b32.xlu0 %v8219_v17, %s8078_s20  ;;  %v619_v21 = vpop.f32.mrb[3].mxu1  ;;  %v8226_v22 = vadd.f32 %v7584_v20, %v7335_v15 }
  0xf1   : > { %679 = vrot.lane.b32.xlu1 %v8221_v19, %s8079_s21  ;;  %v8236_v27 = vadd.f32 %v7335_v15, %v619_v21 }
  0xf4   : > { %683 = vrot.lane.b32.xlu0 %v8219_v17, %s8079_s21 }
  0xf5   : > { %661 = vrot.lane.b32.xlu1 %v8226_v22, %s8078_s20  ;;  %v7587_v23 = vpop.f32.mrb[4].mxu1 }
  0xf6   : > { %v632_v24 = vpop.f32.mrb[5].mxu1  ;;  %v8240_v28 = vadd.f32 %v7587_v23, %v7335_v15 }
  0xf7   : > { %v7588_v25 = vpop.f32.mrb[6].mxu1  ;;  %v8253_v30 = vadd.f32 %v7335_v15, %v632_v24 }
  0xf8   : > { %707 = vrot.lane.b32.xlu0 %v8219_v17, %s8080_s22  ;;  %v635_v26 = vpop.f32.mrb[7].mxu1  ;;  %v8245_v29 = vadd.f32 %v7588_v25, %v7335_v15 }
  0xf9   : > { %685 = vrot.lane.b32.xlu1 %v8226_v22, %s8079_s21  ;;  %v8255_v31 = vadd.f32 %v7335_v15, %v635_v26 }
  0xfc   : > { %655 = vrot.lane.b32.xlu0 %v8221_v19, %s8078_s20 }
  0xfd   : > { %709 = vrot.lane.b32.xlu1 %v8226_v22, %s8080_s22 }
 0x100   : > { %703 = vrot.lane.b32.xlu0 %v8221_v19, %s8080_s22 }
 0x101   : > { %681 = vrot.lane.b32.xlu1 %v8236_v27, %s8079_s21 }
 0x104   : > { %657 = vrot.lane.b32.xlu0 %v8236_v27, %s8078_s20 }
 0x105   : > { %705 = vrot.lane.b32.xlu1 %v8236_v27, %s8080_s22 }
 0x108   : > { %667 = vrot.lane.b32.xlu0 %v8240_v28, %s8078_s20 }
 0x109   : > { %669 = vrot.lane.b32.xlu1 %v8245_v29, %s8078_s20 }
 0x10c   : > { %691 = vrot.lane.b32.xlu0 %v8240_v28, %s8079_s21 }
 0x10d   : > { %693 = vrot.lane.b32.xlu1 %v8245_v29, %s8079_s21 }
 0x110   : > { %663 = vrot.lane.b32.xlu0 %v8253_v30, %s8078_s20 }
 0x111   : > { %665 = vrot.lane.b32.xlu1 %v8255_v31, %s8078_s20 }
 0x114   : > { %687 = vrot.lane.b32.xlu0 %v8253_v30, %s8079_s21 }
 0x115   : > { %689 = vrot.lane.b32.xlu1 %v8255_v31, %s8079_s21 }
 0x118   : > { %711 = vrot.lane.b32.xlu0 %v8253_v30, %s8080_s22 }
 0x119   : > { %713 = vrot.lane.b32.xlu1 %v8255_v31, %s8080_s22 }
 0x11c   : > { %715 = vrot.lane.b32.xlu0 %v8240_v28, %s8080_s22 }
 0x11d   : > { %717 = vrot.lane.b32.xlu1 %v8245_v29, %s8080_s22 }
 0x120   : > { %1831 = vrot.lane.b32.xlu0 %v8221_v19, %s8081_s25 }
 0x121   : > { %1833 = vrot.lane.b32.xlu1 %v8236_v27, %s8081_s25 }
 0x124   : > { %1835 = vrot.lane.b32.xlu0 %v8219_v17, %s8081_s25 }
 0x125   : > { %1837 = vrot.lane.b32.xlu1 %v8226_v22, %s8081_s25 }
 0x128   : > { %1839 = vrot.lane.b32.xlu0 %v8253_v30, %s8081_s25 }
 0x129   : > { %1845 = vrot.lane.b32.xlu1 %v8245_v29, %s8081_s25 }
 0x12c   : > { %1843 = vrot.lane.b32.xlu0 %v8240_v28, %s8081_s25 }
 0x12d   : > { %1841 = vrot.lane.b32.xlu1 %v8255_v31, %s8081_s25 }
 0x162   : > { %v8283_v32 = vpop.permute.xlu0 %659 }
 0x163   : > { %v8285_v33 = vpop.permute.xlu1 %679  ;;  %1851 = vrot.lane.b32.xlu0 %v8283_v32, %s8081_s25 }
 0x164   : > { %v727_v49 = vcombine.low %v8221_v19, %v8285_v33  ;;  %v728_v53 = vcombine.high %v8221_v19, %v8285_v33 }
 0x166   : > { %v8289_v34 = vpop.permute.xlu0 %683  ;;  %v735_v57 = vrot.slane %v727_v49, %v8324_v48  ;;  %v742_v0 = vrot.slane %v728_v53, %v8324_v48 }
 0x167   : > { %v8291_v35 = vpop.permute.xlu1 %661  ;;  %1867 = vrot.lane.b32.xlu0 %v8289_v34, %s8081_s25 }
 0x168   : > { %1853 = vrot.lane.b32.xlu1 %v8291_v35, %s8081_s25 }
 0x16a   : > { %v8297_v36 = vpop.permute.xlu0 %707 }
 0x16b   : > { %v8299_v37 = vpop.permute.xlu1 %685  ;;  %1883 = vrot.lane.b32.xlu0 %v8297_v36, %s8081_s25 }
 0x16c   : > { %1869 = vrot.lane.b32.xlu1 %v8299_v37, %s8081_s25 }
 0x16e   : > { %v8305_v38 = vpop.permute.xlu0 %655 }
 0x16f   : > { %v8307_v42 = vpop.permute.xlu1 %709  ;;  %1847 = vrot.lane.b32.xlu0 %v8305_v38, %s8081_s25 }
 0x170   : > { %1885 = vrot.lane.b32.xlu1 %v8307_v42, %s8081_s25 }
 0x172   : > { %v8313_v43 = vpop.permute.xlu0 %703 }
 0x173   : > { %v8317_v46 = vpop.permute.xlu1 %681  ;;  %1863 = vrot.lane.b32.xlu0 %v8285_v33, %s8081_s25  ;;  %v743_v54 = vcombine.low %v8305_v38, %v8313_v43  ;;  %v744_v55 = vcombine.high %v8305_v38, %v8313_v43 }
 0x174   : > { %v795_v62 = vcombine.low %v8236_v27, %v8317_v46  ;;  %v796_v63 = vcombine.high %v8236_v27, %v8317_v46 }
 0x175   : > { %v751_v59 = vrot.slane %v743_v54, %v8324_v48  ;;  %v758_v60 = vrot.slane %v744_v55, %v8324_v48 }
 0x176   : > { %v8321_v47 = vpop.permute.xlu0 %657  ;;  %v803_v10 = vrot.slane %v795_v62, %v8324_v48  ;;  %v810_v11 = vrot.slane %v796_v63, %v8324_v48 }
 0x177   : > { %v8328_v52 = vpop.permute.xlu1 %705  ;;  %1879 = vrot.lane.b32.xlu0 %v8313_v43, %s8081_s25  ;;  %1849 = vrot.lane.b32.xlu1 %v8321_v47, %s8081_s25  ;;  %v759_v1 = vcombine.low %v735_v57, %v751_v59  ;;  %v760_v2 = vcombine.high %v735_v57, %v751_v59  ;;  %v775_v7 = vcombine.low %v742_v0, %v758_v60 }
 0x178   : > { %v811_v3 = vcombine.low %v8321_v47, %v8328_v52  ;;  %v812_v4 = vcombine.high %v8321_v47, %v8328_v52  ;;  %v776_v8 = vcombine.high %v742_v0, %v758_v60 }
 0x179   : > { %v767_v14 = vrot.slane %v759_v1, %v8363_v6  ;;  %v774_v15 = vrot.slane %v760_v2, %v8363_v6  ;;  %v783_v24 = vrot.slane %v775_v7, %v8363_v6 }
 0x17a   : > { %v8340_v56 = vpop.permute.xlu0 %667  ;;  %v819_v12 = vrot.slane %v811_v3, %v8324_v48  ;;  %v826_v13 = vrot.slane %v812_v4, %v8324_v48  ;;  %v790_v25 = vrot.slane %v776_v8, %v8363_v6 }
 0x17b   : > { %v8345_v61 = vpop.permute.xlu1 %669  ;;  %1859 = vrot.lane.b32.xlu0 %v8340_v56, %s8081_s25  ;;  %1865 = vrot.lane.b32.xlu1 %v8317_v46, %s8081_s25  ;;  %v1271_v49 = vcombine.low %v767_v14, %v774_v15  ;;  %v7342_v50 = vcombine.high %v767_v14, %v774_v15 }
 0x17c   : > { %v827_v16 = vcombine.low %v803_v10, %v819_v12  ;;  %v828_v18 = vcombine.high %v803_v10, %v819_v12  ;;  %v843_v20 = vcombine.low %v810_v11, %v826_v13  ;;  %v844_v21 = vcombine.high %v810_v11, %v826_v13 }
 0x17d   : > { %v1287_v53 = vcombine.low %v783_v24, %v790_v25  ;;  %v7343_v54 = vcombine.high %v783_v24, %v790_v25  ;;  %v8400_v63 = vrot.slane %v1271_v49, %v8324_v48  ;;  %v8403_v0 = vrot.slane %v7342_v50, %v8324_v48 }
 0x17e   : > { %v8360_v5 = vpop.permute.xlu0 %691  ;;  %v835_v39 = vrot.slane %v827_v16, %v8363_v6  ;;  %v842_v40 = vrot.slane %v828_v18, %v8363_v6  ;;  %v851_v41 = vrot.slane %v843_v20, %v8363_v6  ;;  %v858_v44 = vrot.slane %v844_v21, %v8363_v6 }
 0x17f   : > { %v8365_v9 = vpop.permute.xlu1 %693  ;;  %1881 = vrot.lane.b32.xlu1 %v8328_v52, %s8081_s25  ;;  %v8408_v1 = vrot.slane %v1287_v53, %v8324_v48  ;;  %v8411_v2 = vrot.slane %v7343_v54, %v8324_v48  ;;  %v1303_v11 = vcombine.low %v8400_v63, %v8403_v0  ;;  %v880_v53 = vcombine.high %v8283_v32, %v8297_v36 }
 0x180   : > { %v1339_v55 = vcombine.low %v835_v39, %v842_v40  ;;  %v7344_v57 = vcombine.high %v835_v39, %v842_v40  ;;  %v1355_v58 = vcombine.low %v851_v41, %v858_v44  ;;  %v7345_v59 = vcombine.high %v851_v41, %v858_v44 }
 0x181   : > { %v1319_v12 = vcombine.low %v8408_v1, %v8411_v2  ;;  %v1311_v16 = vrot.slane %v1303_v11, %v8363_v6  ;;  %v879_v44 = vcombine.low %v8283_v32, %v8297_v36  ;;  %v863_v54 = vcombine.low %v8219_v17, %v8289_v34 }
 0x182   : > { %v8375_v23 = vpop.permute.xlu0 %663  ;;  %v8414_v3 = vrot.slane %v1339_v55, %v8324_v48  ;;  %v8417_v4 = vrot.slane %v7344_v57, %v8324_v48  ;;  %v8422_v7 = vrot.slane %v1355_v58, %v8324_v48  ;;  %v8425_v8 = vrot.slane %v7345_v59, %v8324_v48 }
 0x183   : > { %v8379_v26 = vpop.permute.xlu1 %665  ;;  %1855 = vrot.lane.b32.xlu0 %v8375_v23, %s8081_s25  ;;  %1861 = vrot.lane.b32.xlu1 %v8345_v61, %s8081_s25  ;;  %v1327_v18 = vrot.slane %v1319_v12, %v8363_v6  ;;  %v947_v55 = vcombine.low %v8291_v35, %v8307_v42  ;;  %v948_v57 = vcombine.high %v8291_v35, %v8307_v42 }
 0x184   : > { %v1371_v13 = vcombine.low %v8414_v3, %v8417_v4  ;;  %v1387_v14 = vcombine.low %v8422_v7, %v8425_v8  ;;  %v887_v58 = vrot.slane %v879_v44, %v8324_v48  ;;  %v931_v59 = vcombine.low %v8226_v22, %v8299_v37 }
 0x185   : > { %v1335_v24 = vcombine.low %v1311_v16, %v1327_v18  ;;  %v1336_v39 = vcombine.high %v1311_v16, %v1327_v18  ;;  %v894_v11 = vrot.slane %v880_v53, %v8324_v48  ;;  %v932_v12 = vcombine.high %v8226_v22, %v8299_v37 }
 0x186   : > { %v8389_v51 = vpop.permute.xlu0 %687  ;;  %v1379_v20 = vrot.slane %v1371_v13, %v8363_v6  ;;  %v1395_v21 = vrot.slane %v1387_v14, %v8363_v6  ;;  %v871_v13 = vrot.slane %v863_v54, %v8324_v48  ;;  %v955_v14 = vrot.slane %v947_v55, %v8324_v48 }
 0x187   : > { %1871 = vrot.lane.b32.xlu0 %v8389_v51, %s8081_s25  ;;  %1857 = vrot.lane.b32.xlu1 %v8379_v26, %s8081_s25  ;;  %v8395_v60 = vpop.permute.xlu1 %689 }
 0x188   : > { %v1403_v25 = vcombine.low %v1379_v20, %v1395_v21  ;;  %v1404_v40 = vcombine.high %v1379_v20, %v1395_v21  ;;  %v895_v18 = vcombine.low %v871_v13, %v887_v58  ;;  %v896_v20 = vcombine.high %v871_v13, %v887_v58 }
 0x18a   : > { %v8397_v62 = vpop.permute.xlu0 %711  ;;  %v1815_v49 = vpack.c.bf16 %v1403_v25, %v1335_v24  ;;  %v1819_v50 = vpack.c.bf16 %v1404_v40, %v1336_v39  ;;  %v946_v25 = vrot.slane %v932_v12, %v8324_v48 }
 0x18b   : > { %1887 = vrot.lane.b32.xlu0 %v8397_v62, %s8081_s25  ;;  %1873 = vrot.lane.b32.xlu1 %v8395_v60, %s8081_s25  ;;  %v8427_v10 = vpop.permute.xlu1 %713 }
 0x18c   : > { %7597 = vmatprep.mubr.msk.bf16.mxu1 %vm4231_vm1, %v1815_v49  ;;  %7613 = vmatprep.mubr.msk.bf16.mxu0 %vm4231_vm1, %v1819_v50  ;;  %v910_v50 = vrot.slane %v896_v20, %v8363_v6 }
 0x18e   : > { %v8441_v15 = vpop.permute.xlu0 %715 }
 0x18f   : > { %1875 = vrot.lane.b32.xlu0 %v8360_v5, %s8081_s25  ;;  %1889 = vrot.lane.b32.xlu1 %v8427_v10, %s8081_s25  ;;  %10746 = vst [vmem:[#allocation4_spill] sm:$0xff] %v8441_v15  ;;  %v8451_v41 = vpop.permute.xlu1 %717 }
 0x190   : > { %10747 = vst [vmem:[#allocation5_spill] sm:$0xff] %v8451_v41 }
 0x193   : > { %1891 = vrot.lane.b32.xlu0 %v8441_v15, %s8081_s25  ;;  %1877 = vrot.lane.b32.xlu1 %v8365_v9, %s8081_s25 }
 0x197   : > { %3033 = vrot.lane.b32.xlu0 %v8236_v27, %s8084_s26  ;;  %1893 = vrot.lane.b32.xlu1 %v8451_v41, %s8081_s25  ;;  %v864_v27 = vcombine.high %v8219_v17, %v8289_v34 }
 0x199   : > { %v878_v16 = vrot.slane %v864_v27, %v8324_v48 }
 0x19b   : > { %3031 = vrot.lane.b32.xlu1 %v8221_v19, %s8084_s26  ;;  %3063 = vrot.lane.b32.xlu0 %v8285_v33, %s8084_s26  ;;  %v962_v19 = vrot.slane %v948_v57, %v8324_v48  ;;  %v939_v33 = vrot.slane %v931_v59, %v8324_v48  ;;  %v911_v21 = vcombine.low %v878_v16, %v894_v11 }
 0x19c   : > { %v912_v24 = vcombine.high %v878_v16, %v894_v11 }
 0x19d   : > { %v963_v39 = vcombine.low %v939_v33, %v955_v14  ;;  %v964_v40 = vcombine.high %v939_v33, %v955_v14  ;;  %v979_v44 = vcombine.low %v946_v25, %v962_v19  ;;  %v980_v49 = vcombine.high %v946_v25, %v962_v19 }
 0x19e   : > { %v926_v53 = vrot.slane %v912_v24, %v8363_v6 }
 0x19f   : > { %3047 = vrot.lane.b32.xlu1 %v8305_v38, %s8084_s26  ;;  %3079 = vrot.lane.b32.xlu0 %v8313_v43, %s8084_s26  ;;  %v903_v38 = vrot.slane %v895_v18, %v8363_v6  ;;  %v919_v43 = vrot.slane %v911_v21, %v8363_v6  ;;  %v971_v54 = vrot.slane %v963_v39, %v8363_v6 }
 0x1a0   : > { %v978_v55 = vrot.slane %v964_v40, %v8363_v6  ;;  %v987_v27 = vrot.slane %v979_v44, %v8363_v6  ;;  %v994_v57 = vrot.slane %v980_v49, %v8363_v6 }
 0x1a1   : > { %v1407_v58 = vcombine.low %v903_v38, %v910_v50  ;;  %v7346_v59 = vcombine.high %v903_v38, %v910_v50  ;;  %v1423_v11 = vcombine.low %v919_v43, %v926_v53  ;;  %v7347_v12 = vcombine.high %v919_v43, %v926_v53 }
 0x1a2   : > { %v1475_v16 = vcombine.low %v971_v54, %v978_v55  ;;  %v7348_v19 = vcombine.high %v971_v54, %v978_v55  ;;  %v1015_v43 = vcombine.low %v8375_v23, %v8397_v62  ;;  %v1016_v53 = vcombine.high %v8375_v23, %v8397_v62 }
 0x1a3   : > { %3049 = vrot.lane.b32.xlu1 %v8321_v47, %s8084_s26  ;;  %3035 = vrot.lane.b32.xlu0 %v8219_v17, %s8084_s26  ;;  %v1304_v47 = vcombine.high %v8400_v63, %v8403_v0  ;;  %v1320_v17 = vcombine.high %v8408_v1, %v8411_v2  ;;  %v1388_v63 = vcombine.high %v8422_v7, %v8425_v8 }
 0x1a4   : > { %v1491_v0 = vcombine.low %v987_v27, %v994_v57  ;;  %v7349_v1 = vcombine.high %v987_v27, %v994_v57  ;;  %v8524_v33 = vrot.slane %v1407_v58, %v8324_v48  ;;  %v8539_v21 = vrot.slane %v7348_v19, %v8324_v48 }
 0x1a5   : > { %v1318_v13 = vrot.slane %v1304_v47, %v8363_v6  ;;  %v1334_v14 = vrot.slane %v1320_v17, %v8363_v6  ;;  %v1402_v20 = vrot.slane %v1388_v63, %v8363_v6  ;;  %v1203_v54 = vcombine.low %v8245_v29, %v8365_v9 }
 0x1a6   : > { %v8542_v24 = vrot.slane %v1491_v0, %v8324_v48  ;;  %v8545_v25 = vrot.slane %v7349_v1, %v8324_v48  ;;  %v1083_v55 = vcombine.low %v8379_v26, %v8427_v10  ;;  %v1084_v27 = vcombine.high %v8379_v26, %v8427_v10 }
 0x1a7   : > { %3065 = vrot.lane.b32.xlu1 %v8317_v46, %s8084_s26  ;;  %3051 = vrot.lane.b32.xlu0 %v8283_v32, %s8084_s26  ;;  %v1372_v46 = vcombine.high %v8414_v3, %v8417_v4  ;;  %v1337_v32 = vcombine.low %v1318_v13, %v1334_v14  ;;  %v1338_v2 = vcombine.high %v1318_v13, %v1334_v14 }
 0x1a8   : > { %v8527_v3 = vrot.slane %v7346_v59, %v8324_v48  ;;  %v8530_v4 = vrot.slane %v1423_v11, %v8324_v48  ;;  %v1523_v50 = vcombine.low %v8542_v24, %v8545_v25  ;;  %v999_v57 = vcombine.low %v8253_v30, %v8389_v51 }
 0x1a9   : > { %v1386_v18 = vrot.slane %v1372_v46, %v8363_v6  ;;  %v1000_v47 = vcombine.high %v8253_v30, %v8389_v51  ;;  %v1151_v17 = vcombine.low %v8340_v56, %v8441_v15  ;;  %v1152_v58 = vcombine.high %v8340_v56, %v8441_v15 }
 0x1aa   : > { %v1439_v44 = vcombine.low %v8524_v33, %v8527_v3  ;;  %v1067_v59 = vcombine.low %v8255_v31, %v8395_v60  ;;  %v1068_v11 = vcombine.high %v8255_v31, %v8395_v60  ;;  %v1220_v13 = vcombine.high %v8345_v61, %v8451_v41 }
 0x1ab   : > { %3081 = vrot.lane.b32.xlu1 %v8328_v52, %s8084_s26  ;;  %3067 = vrot.lane.b32.xlu0 %v8289_v34, %s8084_s26  ;;  %v8533_v52 = vrot.slane %v7347_v12, %v8324_v48  ;;  %v1405_v7 = vcombine.low %v1386_v18, %v1402_v20  ;;  %v1406_v8 = vcombine.high %v1386_v18, %v1402_v20 }
 0x1ac   : > { %v8536_v34 = vrot.slane %v1475_v16, %v8324_v48  ;;  %v1219_v12 = vcombine.low %v8345_v61, %v8451_v41  ;;  %v1023_v19 = vrot.slane %v1015_v43, %v8324_v48  ;;  %v1030_v46 = vrot.slane %v1016_v53, %v8324_v48 }
 0x1ad   : > { %v8551_v39 = vpack.c.bf16 %v1405_v7, %v1337_v32  ;;  %v8553_v40 = vpack.c.bf16 %v1406_v8, %v1338_v2  ;;  %v1455_v49 = vcombine.low %v8530_v4, %v8533_v52  ;;  %v1091_v0 = vrot.slane %v1083_v55, %v8324_v48 }
 0x1ae   : > { %v1507_v38 = vcombine.low %v8536_v34, %v8539_v21  ;;  %v1098_v1 = vrot.slane %v1084_v27, %v8324_v48  ;;  %v1014_v32 = vrot.slane %v1000_v47, %v8324_v48  ;;  %v1159_v2 = vrot.slane %v1151_v17, %v8324_v48 }
 0x1af   : > { %3037 = vrot.lane.b32.xlu1 %v8226_v22, %s8084_s26  ;;  %3083 = vrot.lane.b32.xlu0 %v8297_v36, %s8084_s26  ;;  %10748 = vst [vmem:[#allocation6_spill] sm:$0xff] %v8551_v39  ;;  %10749 = vst [vmem:[#allocation7_spill] sm:$0xff] %v8553_v40  ;;  %v1135_v22 = vcombine.low %v8240_v28, %v8360_v5  ;;  %v1136_v36 = vcombine.high %v8240_v28, %v8360_v5 }
 0x1b0   : > { %v1166_v18 = vrot.slane %v1152_v58, %v8324_v48  ;;  %v1075_v20 = vrot.slane %v1067_v59, %v8324_v48  ;;  %v1227_v7 = vrot.slane %v1219_v12, %v8324_v48  ;;  %v1234_v8 = vrot.slane %v1220_v13, %v8324_v48  ;;  %v8623_v59 = vpop.permute.xlu0 %1831 }
 0x1b1   : > { %v1143_v14 = vrot.slane %v1135_v22, %v8324_v48  ;;  %v1150_v16 = vrot.slane %v1136_v36, %v8324_v48  ;;  %v1047_v43 = vcombine.low %v1014_v32, %v1030_v46  ;;  %v1048_v53 = vcombine.high %v1014_v32, %v1030_v46 }
 0x1b3   : > { %3053 = vrot.lane.b32.xlu1 %v8291_v35, %s8084_s26  ;;  %3041 = vrot.lane.b32.xlu0 %v8255_v31, %s8084_s26  ;;  %v1204_v35 = vcombine.high %v8245_v29, %v8365_v9  ;;  %v1211_v31 = vrot.slane %v1203_v54, %v8324_v48  ;;  %v1099_v54 = vcombine.low %v1075_v20, %v1091_v0 }
 0x1b4   : > { %v1168_v47 = vcombine.high %v1143_v14, %v1159_v2  ;;  %v1183_v17 = vcombine.low %v1150_v16, %v1166_v18  ;;  %v1184_v58 = vcombine.high %v1150_v16, %v1166_v18  ;;  %v1055_v46 = vrot.slane %v1047_v43, %v8363_v6  ;;  %v8649_v43 = vpop.permute.xlu0 %1835 }
 0x1b5   : > { %v1218_v63 = vrot.slane %v1204_v35, %v8324_v48  ;;  %v1100_v35 = vcombine.high %v1075_v20, %v1091_v0  ;;  %v1236_v12 = vcombine.high %v1211_v31, %v1227_v7  ;;  %v1062_v0 = vrot.slane %v1048_v53, %v8363_v6 }
 0x1b6   : > { %v1198_v32 = vrot.slane %v1184_v58, %v8363_v6 }
 0x1b7   : > { %3069 = vrot.lane.b32.xlu1 %v8299_v37, %s8084_s26  ;;  %3071 = vrot.lane.b32.xlu0 %v8389_v51, %s8084_s26  ;;  %v1007_v37 = vrot.slane %v999_v57, %v8324_v48  ;;  %v1082_v51 = vrot.slane %v1068_v11, %v8324_v48  ;;  %v1167_v57 = vcombine.low %v1143_v14, %v1159_v2 }
 0x1b8   : > { %v1235_v11 = vcombine.low %v1211_v31, %v1227_v7  ;;  %v1252_v13 = vcombine.high %v1218_v63, %v1234_v8  ;;  %v1107_v14 = vrot.slane %v1099_v54, %v8363_v6  ;;  %v1114_v16 = vrot.slane %v1100_v35, %v8363_v6 }
 0x1b9   : > { %v1031_v22 = vcombine.low %v1007_v37, %v1023_v19  ;;  %v1032_v36 = vcombine.high %v1007_v37, %v1023_v19  ;;  %v1115_v55 = vcombine.low %v1082_v51, %v1098_v1  ;;  %v1116_v27 = vcombine.high %v1082_v51, %v1098_v1  ;;  %v8645_v51 = vpop.permute.xlu1 %1833 }
 0x1ba   : > { %v1182_v1 = vrot.slane %v1168_v47, %v8363_v6  ;;  %v1191_v37 = vrot.slane %v1183_v17, %v8363_v6  ;;  %v1243_v2 = vrot.slane %v1235_v11, %v8363_v6  ;;  %v1266_v20 = vrot.slane %v1252_v13, %v8363_v6 }
 0x1bb   : > { %3085 = vrot.lane.b32.xlu1 %v8307_v42, %s8084_s26  ;;  %3087 = vrot.lane.b32.xlu0 %v8397_v62, %s8084_s26  ;;  %v1251_v42 = vcombine.low %v1218_v63, %v1234_v8  ;;  %v1039_v19 = vrot.slane %v1031_v22, %v8363_v6  ;;  %v1046_v62 = vrot.slane %v1032_v36, %v8363_v6 }
 0x1bc   : > { %v1123_v31 = vrot.slane %v1115_v55, %v8363_v6  ;;  %v1130_v63 = vrot.slane %v1116_v27, %v8363_v6  ;;  %v1559_v22 = vcombine.low %v1055_v46, %v1062_v0  ;;  %v7351_v36 = vcombine.high %v1055_v46, %v1062_v0 }
 0x1bd   : > { %v1259_v18 = vrot.slane %v1251_v42, %v8363_v6  ;;  %v1543_v7 = vcombine.low %v1039_v19, %v1046_v62  ;;  %v7350_v8 = vcombine.high %v1039_v19, %v1046_v62  ;;  %v1611_v53 = vcombine.low %v1107_v14, %v1114_v16  ;;  %v8669_v62 = vpop.permute.xlu1 %1837 }
 0x1be   : > { %v7352_v54 = vcombine.high %v1107_v14, %v1114_v16  ;;  %v1627_v35 = vcombine.low %v1123_v31, %v1130_v63  ;;  %v7353_v55 = vcombine.high %v1123_v31, %v1130_v63  ;;  %v1695_v47 = vcombine.low %v1191_v37, %v1198_v32  ;;  %v8683_v14 = vpop.permute.xlu0 %1839 }
 0x1bf   : > { %3039 = vrot.lane.b32.xlu1 %v8253_v30, %s8084_s26  ;;  %3043 = vrot.lane.b32.xlu0 %v8240_v28, %s8084_s26  ;;  %v1175_v30 = vrot.slane %v1167_v57, %v8363_v6  ;;  %v1250_v28 = vrot.slane %v1236_v12, %v8363_v6  ;;  %v7355_v17 = vcombine.high %v1191_v37, %v1198_v32 }
 0x1c0   : > { %v7357_v12 = vcombine.high %v1259_v18, %v1266_v20  ;;  %v8661_v42 = vrot.slane %v7350_v8, %v8324_v48  ;;  %v8664_v13 = vrot.slane %v1559_v22, %v8324_v48  ;;  %v8667_v19 = vrot.slane %v7351_v36, %v8324_v48 }
 0x1c1   : > { %v1679_v27 = vcombine.low %v1175_v30, %v1182_v1  ;;  %v7354_v57 = vcombine.high %v1175_v30, %v1182_v1  ;;  %v1747_v58 = vcombine.low %v1243_v2, %v1250_v28  ;;  %v7356_v11 = vcombine.high %v1243_v2, %v1250_v28 }
 0x1c2   : > { %v8672_v46 = vrot.slane %v1611_v53, %v8324_v48  ;;  %v8681_v0 = vrot.slane %v7353_v55, %v8324_v48  ;;  %v8692_v63 = vrot.slane %v1695_v47, %v8324_v48  ;;  %v8695_v30 = vrot.slane %v7355_v17, %v8324_v48  ;;  %v8735_v53 = vpop.permute.xlu1 %1845  ;;  %v8751_v55 = vpop.permute.xlu0 %1843 }
 0x1c3   : > { %3055 = vrot.lane.b32.xlu1 %v8375_v23, %s8084_s26  ;;  %3059 = vrot.lane.b32.xlu0 %v8340_v56, %s8084_s26  ;;  %v1763_v23 = vcombine.low %v1259_v18, %v1266_v20  ;;  %v8658_v56 = vrot.slane %v1543_v7, %v8324_v48  ;;  %v8686_v16 = vrot.slane %v1679_v27, %v8324_v48 }
 0x1c4   : > { %v8689_v31 = vrot.slane %v7354_v57, %v8324_v48  ;;  %v8700_v1 = vrot.slane %v1747_v58, %v8324_v48  ;;  %v8703_v37 = vrot.slane %v7356_v11, %v8324_v48  ;;  %v8709_v2 = vrot.slane %v7357_v12, %v8324_v48 }
 0x1c5   : > { %v8706_v32 = vrot.slane %v1763_v23, %v8324_v48  ;;  %v1575_v28 = vcombine.low %v8658_v56, %v8661_v42  ;;  %v1591_v18 = vcombine.low %v8664_v13, %v8667_v19  ;;  %v1447_v7 = vrot.slane %v1439_v44, %v8363_v6 }
 0x1c6   : > { %v1463_v8 = vrot.slane %v1455_v49, %v8363_v6  ;;  %v1515_v22 = vrot.slane %v1507_v38, %v8363_v6  ;;  %v1531_v36 = vrot.slane %v1523_v50, %v8363_v6  ;;  %v1711_v44 = vcombine.low %v8686_v16, %v8689_v31 }
 0x1c7   : > { %3045 = vrot.lane.b32.xlu1 %v8245_v29, %s8084_s26  ;;  %3075 = vrot.lane.b32.xlu0 %v8360_v5, %s8084_s26  ;;  %v8675_v29 = vrot.slane %v7352_v54, %v8324_v48  ;;  %v8678_v5 = vrot.slane %v1627_v35, %v8324_v48  ;;  %v1727_v49 = vcombine.low %v8692_v63, %v8695_v30 }
 0x1c8   : > { %v1779_v54 = vcombine.low %v8700_v1, %v8703_v37  ;;  %v1795_v38 = vcombine.low %v8706_v32, %v8709_v2  ;;  %v1508_v50 = vcombine.high %v8536_v34, %v8539_v21  ;;  %v1524_v35 = vcombine.high %v8542_v24, %v8545_v25 }
 0x1c9   : > { %v1659_v20 = vcombine.low %v8678_v5, %v8681_v0  ;;  %v1599_v27 = vrot.slane %v1591_v18, %v8363_v6  ;;  %v1440_v57 = vcombine.high %v8524_v33, %v8527_v3  ;;  %v1456_v47 = vcombine.high %v8530_v4, %v8533_v52  ;;  %v8769_v18 = vpop.permute.xlu1 %1841 }
 0x1ca   : > { %v1471_v34 = vcombine.low %v1447_v7, %v1463_v8  ;;  %v1539_v21 = vcombine.low %v1515_v22, %v1531_v36  ;;  %v1540_v11 = vcombine.high %v1515_v22, %v1531_v36  ;;  %v1719_v24 = vrot.slane %v1711_v44, %v8363_v6 }
 0x1cb   : > { %3061 = vrot.lane.b32.xlu1 %v8345_v61, %s8084_s26  ;;  %v1643_v61 = vcombine.low %v8672_v46, %v8675_v29  ;;  %v1667_v58 = vrot.slane %v1659_v20, %v8363_v6  ;;  %v1735_v25 = vrot.slane %v1727_v49, %v8363_v6  ;;  %v1787_v23 = vrot.slane %v1779_v54, %v8363_v6 }
 0x1cc   : > { %v1803_v33 = vrot.slane %v1795_v38, %v8363_v6  ;;  %v1522_v12 = vrot.slane %v1508_v50, %v8363_v6  ;;  %v1470_v22 = vrot.slane %v1456_v47, %v8363_v6  ;;  %v8773_v36 = vpack.c.bf16 %v1539_v21, %v1471_v34 }
 0x1cd   : > { %v1651_v17 = vrot.slane %v1643_v61, %v8363_v6  ;;  %v1472_v44 = vcombine.high %v1447_v7, %v1463_v8  ;;  %v1576_v49 = vcombine.high %v8658_v56, %v8661_v42  ;;  %v1592_v54 = vcombine.high %v8664_v13, %v8667_v19 }
 0x1ce   : > { %v1743_v38 = vcombine.low %v1719_v24, %v1735_v25  ;;  %v1811_v50 = vcombine.low %v1787_v23, %v1803_v33  ;;  %v1644_v7 = vcombine.high %v8672_v46, %v8675_v29  ;;  %v1660_v56 = vcombine.high %v8678_v5, %v8681_v0 }
 0x1cf   : > { %3077 = vrot.lane.b32.xlu1 %v8365_v9, %s8084_s26  ;;  %v1583_v9 = vrot.slane %v1575_v28, %v8363_v6  ;;  %v1538_v28 = vrot.slane %v1524_v35, %v8363_v6  ;;  %v1675_v61 = vcombine.low %v1651_v17, %v1667_v58  ;;  %v1676_v20 = vcombine.high %v1651_v17, %v1667_v58 }
 0x1d0   : > { %v1744_v35 = vcombine.high %v1719_v24, %v1735_v25  ;;  %v8792_v58 = vrot.slane %v1576_v49, %v8363_v6  ;;  %v8795_v34 = vrot.slane %v1592_v54, %v8363_v6  ;;  %v1712_v46 = vcombine.high %v8686_v16, %v8689_v31 }
 0x1d1   : > { %v1607_v4 = vcombine.low %v1583_v9, %v1599_v27  ;;  %v1608_v52 = vcombine.high %v1583_v9, %v1599_v27  ;;  %v1812_v9 = vcombine.high %v1787_v23, %v1803_v33  ;;  %v1541_v47 = vcombine.low %v1522_v12, %v1538_v28 }
 0x1d2   : > { %v1542_v19 = vcombine.high %v1522_v12, %v1538_v28  ;;  %v8803_v0 = vpack.c.bf16 %v1811_v50, %v1743_v38  ;;  %v8810_v25 = vrot.slane %v1644_v7, %v8363_v6  ;;  %v8813_v23 = vrot.slane %v1660_v56, %v8363_v6 }
 0x1d3   : > { %3057 = vrot.lane.b32.xlu1 %v8379_v26, %s8084_s26  ;;  %v1454_v26 = vrot.slane %v1440_v57, %v8363_v6  ;;  %v8781_v57 = vpack.c.bf16 %v1540_v11, %v1472_v44  ;;  %v8787_v8 = vpack.c.bf16 %v1675_v61, %v1607_v4  ;;  %v8789_v13 = vpack.c.bf16 %v1676_v20, %v1608_v52 }
 0x1d4   : > { %10750 = vst [vmem:[#allocation8_spill] sm:$0xff] %v8803_v0  ;;  %v8805_v21 = vpack.c.bf16 %v1812_v9, %v1744_v35  ;;  %v1728_v16 = vcombine.high %v8692_v63, %v8695_v30  ;;  %v1780_v4 = vcombine.high %v8700_v1, %v8703_v37  ;;  %v8826_v28 = vrot.slane %v1712_v46, %v8363_v6 }
 0x1d5   : > { %v1852_v3 = vpop.permute.xlu0 %1851  ;;  %v1474_v17 = vcombine.high %v1454_v26, %v1470_v22  ;;  %v1796_v63 = vcombine.high %v8706_v32, %v8709_v2 }
 0x1d6   : > { %10751 = vst [vmem:[#allocation9_spill] sm:$0xff] %v8805_v21  ;;  %v8839_v44 = vrot.slane %v1728_v16, %v8363_v6  ;;  %v8842_v9 = vrot.slane %v1780_v4, %v8363_v6 }
 0x1d7   : > { %3073 = vrot.lane.b32.xlu1 %v8395_v60, %s8084_s26  ;;  %v1473_v60 = vcombine.low %v1454_v26, %v1470_v22 }
 0x1d9   : > { %v1868_v27 = vpop.permute.xlu0 %1867  ;;  %v8807_v24 = vpack.c.bf16 %v1541_v47, %v1473_v60 }
 0x1da   : > { %v1854_v42 = vpop.permute.xlu1 %1853  ;;  %v2063_v29 = vcombine.low %v8649_v43, %v1868_v27  ;;  %v2064_v5 = vcombine.high %v8649_v43, %v1868_v27  ;;  %v8845_v27 = vrot.slane %v1796_v63, %v8363_v6 }
 0x1db   : > { %3089 = vrot.lane.b32.xlu1 %v8427_v10, %s8084_s26  ;;  %10752 = vst [vmem:[#allocation10_spill] sm:$0xff] %v8807_v24  ;;  %v8817_v10 = vpack.c.bf16 %v1542_v19, %v1474_v17 }
 0x1dc   : > { %v2071_v30 = vrot.slane %v2063_v29, %v8324_v48 }
 0x1dd   : > { %v1884_v11 = vpop.permute.xlu0 %1883  ;;  %10753 = vst [vmem:[#allocation11_spill] sm:$0xff] %v8817_v10 }
 0x1de   : > { %v2079_v43 = vcombine.low %v1852_v3, %v1884_v11  ;;  %v2080_v31 = vcombine.high %v1852_v3, %v1884_v11  ;;  %v1870_v33 = vpop.permute.xlu1 %1869  ;;  %v2078_v3 = vrot.slane %v2064_v5, %v8324_v48 }
 0x1df   : > { %v2131_v37 = vcombine.low %v8669_v62, %v1870_v33  ;;  %v2132_v20 = vcombine.high %v8669_v62, %v1870_v33 }
 0x1e0   : > { %v2087_v61 = vrot.slane %v2079_v43, %v8324_v48  ;;  %v2094_v1 = vrot.slane %v2080_v31, %v8324_v48 }
 0x1e1   : > { %v1848_v26 = vpop.permute.xlu0 %1847  ;;  %v2139_v60 = vrot.slane %v2131_v37, %v8324_v48  ;;  %v2146_v19 = vrot.slane %v2132_v20, %v8324_v48 }
 0x1e2   : > { %v2095_v32 = vcombine.low %v2071_v30, %v2087_v61  ;;  %v2096_v2 = vcombine.high %v2071_v30, %v2087_v61  ;;  %v2111_v49 = vcombine.low %v2078_v3, %v2094_v1  ;;  %v2112_v54 = vcombine.high %v2078_v3, %v2094_v1  ;;  %v1886_v38 = vpop.permute.xlu1 %1885 }
 0x1e3   : > { %v2147_v50 = vcombine.low %v1854_v42, %v1886_v38  ;;  %v2148_v35 = vcombine.high %v1854_v42, %v1886_v38 }
 0x1e4   : > { %v2103_v62 = vrot.slane %v2095_v32, %v8363_v6  ;;  %v2110_v47 = vrot.slane %v2096_v2, %v8363_v6  ;;  %v2119_v7 = vrot.slane %v2111_v49, %v8363_v6  ;;  %v2126_v56 = vrot.slane %v2112_v54, %v8363_v6 }
 0x1e5   : > { %v2155_v42 = vrot.slane %v2147_v50, %v8324_v48  ;;  %v2162_v17 = vrot.slane %v2148_v35, %v8324_v48  ;;  %v1864_v46 = vpop.permute.xlu0 %1863 }
 0x1e6   : > { %v2607_v29 = vcombine.low %v2103_v62, %v2110_v47  ;;  %v7362_v63 = vcombine.high %v2103_v62, %v2110_v47  ;;  %v2623_v30 = vcombine.low %v2119_v7, %v2126_v56  ;;  %v7363_v3 = vcombine.high %v2119_v7, %v2126_v56 }
 0x1e7   : > { %v2163_v43 = vcombine.low %v2139_v60, %v2155_v42  ;;  %v2164_v31 = vcombine.high %v2139_v60, %v2155_v42  ;;  %v2179_v33 = vcombine.low %v2146_v19, %v2162_v17  ;;  %v2180_v4 = vcombine.high %v2146_v19, %v2162_v17 }
 0x1e8   : > { %v1927_v49 = vcombine.low %v8623_v59, %v1864_v46  ;;  %v1928_v54 = vcombine.high %v8623_v59, %v1864_v46  ;;  %v8870_v62 = vrot.slane %v2607_v29, %v8324_v48  ;;  %v8880_v59 = vrot.slane %v2623_v30, %v8324_v48 }
 0x1e9   : > { %v2171_v1 = vrot.slane %v2163_v43, %v8363_v6  ;;  %v2178_v37 = vrot.slane %v2164_v31, %v8363_v6  ;;  %v2187_v20 = vrot.slane %v2179_v33, %v8363_v6  ;;  %v2194_v32 = vrot.slane %v2180_v4, %v8363_v6  ;;  %v1880_v2 = vpop.permute.xlu0 %1879  ;;  %v1850_v38 = vpop.permute.xlu1 %1849 }
 0x1ea   : > { %v1943_v50 = vcombine.low %v1848_v26, %v1880_v2  ;;  %v1944_v35 = vcombine.high %v1848_v26, %v1880_v2  ;;  %v1935_v60 = vrot.slane %v1927_v49, %v8324_v48  ;;  %v1942_v19 = vrot.slane %v1928_v54, %v8324_v48 }
 0x1eb   : > { %v2675_v47 = vcombine.low %v2171_v1, %v2178_v37  ;;  %v7364_v7 = vcombine.high %v2171_v1, %v2178_v37  ;;  %v2691_v56 = vcombine.low %v2187_v20, %v2194_v32  ;;  %v8877_v43 = vrot.slane %v7362_v63, %v8324_v48 }
 0x1ec   : > { %v1951_v42 = vrot.slane %v1943_v50, %v8324_v48  ;;  %v1958_v17 = vrot.slane %v1944_v35, %v8324_v48  ;;  %v8883_v26 = vrot.slane %v7363_v3, %v8324_v48  ;;  %v7365_v46 = vcombine.high %v2187_v20, %v2194_v32 }
 0x1ed   : > { %v1866_v1 = vpop.permute.xlu1 %1865  ;;  %v8886_v37 = vrot.slane %v2675_v47, %v8324_v48  ;;  %v8889_v2 = vrot.slane %v7364_v7, %v8324_v48  ;;  %v8892_v63 = vrot.slane %v2691_v56, %v8324_v48  ;;  %v8903_v35 = vpop.permute.xlu0 %1859  ;;  %v2639_v47 = vcombine.low %v8870_v62, %v8877_v43 }
 0x1ee   : > { %v1959_v29 = vcombine.low %v1935_v60, %v1951_v42  ;;  %v1960_v31 = vcombine.high %v1935_v60, %v1951_v42  ;;  %v1975_v33 = vcombine.low %v1942_v19, %v1958_v17  ;;  %v1976_v4 = vcombine.high %v1942_v19, %v1958_v17 }
 0x1ef   : > { %v1995_v30 = vcombine.low %v8645_v51, %v1866_v1  ;;  %v8900_v54 = vrot.slane %v7365_v46, %v8324_v48  ;;  %v1996_v50 = vcombine.high %v8645_v51, %v1866_v1  ;;  %v2655_v7 = vcombine.low %v8880_v59, %v8883_v26 }
 0x1f0   : > { %v1967_v3 = vrot.slane %v1959_v29, %v8363_v6  ;;  %v1974_v20 = vrot.slane %v1960_v31, %v8363_v6  ;;  %v1983_v32 = vrot.slane %v1975_v33, %v8363_v6  ;;  %v1990_v49 = vrot.slane %v1976_v4, %v8363_v6 }
 0x1f1   : > { %v1882_v17 = vpop.permute.xlu1 %1881  ;;  %v2003_v29 = vrot.slane %v1995_v30, %v8324_v48  ;;  %v2707_v51 = vcombine.low %v8886_v37, %v8889_v2 }
 0x1f2   : > { %v2471_v56 = vcombine.low %v1967_v3, %v1974_v20  ;;  %v7358_v60 = vcombine.high %v1967_v3, %v1974_v20  ;;  %v2487_v19 = vcombine.low %v1983_v32, %v1990_v49  ;;  %v7359_v42 = vcombine.high %v1983_v32, %v1990_v49 }
 0x1f3   : > { %v2011_v31 = vcombine.low %v1850_v38, %v1882_v17  ;;  %v2012_v46 = vcombine.high %v1850_v38, %v1882_v17  ;;  %v2010_v3 = vrot.slane %v1996_v50, %v8324_v48  ;;  %v2723_v32 = vcombine.low %v8892_v63, %v8900_v54 }
 0x1f4   : > { %v2478_v33 = vrot.slane %v2471_v56, %v8324_v48  ;;  %v2486_v4 = vrot.slane %v7358_v60, %v8324_v48  ;;  %v8915_v1 = vrot.slane %v2487_v19, %v8324_v48  ;;  %v8918_v16 = vrot.slane %v7359_v42, %v8324_v48 }
 0x1f5   : > { %v2019_v20 = vrot.slane %v2011_v31, %v8324_v48  ;;  %v2026_v30 = vrot.slane %v2012_v46, %v8324_v48  ;;  %v1856_v38 = vpop.permute.xlu0 %1855  ;;  %v8925_v49 = vpop.permute.xlu1 %1861  ;;  %v2647_v19 = vrot.slane %v2639_v47, %v8363_v6  ;;  %v1814_v42 = vcombine.high %v8842_v9, %v8845_v27 }
 0x1f6   : > { %v2503_v56 = vcombine.low %v2478_v33, %v2486_v4  ;;  %v2519_v60 = vcombine.low %v8915_v1, %v8918_v16  ;;  %v2663_v46 = vrot.slane %v2655_v7, %v8363_v6  ;;  %v2715_v11 = vrot.slane %v2707_v51, %v8363_v6 }
 0x1f7   : > { %v2027_v50 = vcombine.low %v2003_v29, %v2019_v20  ;;  %v2028_v17 = vcombine.high %v2003_v29, %v2019_v20  ;;  %v2043_v31 = vcombine.low %v2010_v3, %v2026_v30  ;;  %v2044_v61 = vcombine.high %v2010_v3, %v2026_v30 }
 0x1f8   : > { %v2731_v5 = vrot.slane %v2723_v32, %v8363_v6  ;;  %v2504_v12 = vcombine.high %v2478_v33, %v2486_v4  ;;  %v8940_v29 = vrot.slane %v2503_v56, %v8363_v6  ;;  %v8943_v7 = vrot.slane %v2519_v60, %v8363_v6 }
 0x1f9   : > { %v2035_v22 = vrot.slane %v2027_v50, %v8363_v6  ;;  %v2042_v52 = vrot.slane %v2028_v17, %v8363_v6  ;;  %v2051_v47 = vrot.slane %v2043_v31, %v8363_v6  ;;  %v2058_v45 = vrot.slane %v2044_v61, %v8363_v6  ;;  %v1872_v15 = vpop.permute.xlu0 %1871  ;;  %v1858_v41 = vpop.permute.xlu1 %1857 }
 0x1fa   : > { %v10754_v51 = vcombine.low %v8792_v58, %v8795_v34  ;;  %v10755_v33 = vcombine.low %v8810_v25, %v8813_v23  ;;  %v10757_v3 = vcombine.high %v8792_v58, %v8795_v34  ;;  %v10758_v61 = vcombine.high %v8810_v25, %v8813_v23 }
 0x1fb   : > { %v2539_v30 = vcombine.low %v2035_v22, %v2042_v52  ;;  %v7360_v32 = vcombine.high %v2035_v22, %v2042_v52  ;;  %v2199_v56 = vcombine.low %v8683_v14, %v1872_v15  ;;  %v10760_v60 = vcombine.low %v8826_v28, %v8839_v44 }
 0x1fc   : > { %v8951_v4 = vpack.c.bf16 %v10755_v33, %v10754_v51  ;;  %v8959_v20 = vpack.c.bf16 %v10758_v61, %v10757_v3  ;;  %v10761_v50 = vcombine.low %v8842_v9, %v8845_v27  ;;  %v2555_v31 = vcombine.low %v2051_v47, %v2058_v45 }
 0x1fd   : > { %v2200_v58 = vcombine.high %v8683_v14, %v1872_v15  ;;  %v2671_v34 = vcombine.low %v2647_v19, %v2663_v46  ;;  %v10763_v25 = vcombine.high %v8826_v28, %v8839_v44  ;;  %v7361_v52 = vcombine.high %v2051_v47, %v2058_v45  ;;  %v1888_v22 = vpop.permute.xlu0 %1887  ;;  %v1874_v61 = vpop.permute.xlu1 %1873 }
 0x1fe   : > { %10756 = vst [vmem:[#allocation12_spill] sm:$0xff] %v8951_v4  ;;  %10759 = vst [vmem:[#allocation13_spill] sm:$0xff] %v8959_v20  ;;  %v8968_v17 = vpack.c.bf16 %v10761_v50, %v10760_v60  ;;  %v2739_v51 = vcombine.low %v2715_v11, %v2731_v5  ;;  %v2672_v33 = vcombine.high %v2647_v19, %v2663_v46 }
 0x1ff   : > { %v8974_v23 = vpack.c.bf16 %v1814_v42, %v10763_v25  ;;  %v8977_v3 = vrot.slane %v2504_v12, %v8363_v6  ;;  %v2215_v9 = vcombine.low %v1856_v38, %v1888_v22  ;;  %v2216_v27 = vcombine.high %v1856_v38, %v1888_v22 }
 0x200   : > { %10762 = vst [vmem:[#allocation14_spill] sm:$0xff] %v8968_v17  ;;  %v8984_v14 = vrot.slane %v2539_v30, %v8324_v48  ;;  %v8987_v45 = vrot.slane %v7360_v32, %v8324_v48  ;;  %v2207_v28 = vrot.slane %v2199_v56, %v8324_v48  ;;  %v2740_v44 = vcombine.high %v2715_v11, %v2731_v5 }
 0x201   : > { %10764 = vst [vmem:[#allocation15_spill] sm:$0xff] %v8974_v23  ;;  %v8991_v12 = vrot.slane %v2555_v31, %v8324_v48  ;;  %v2214_v38 = vrot.slane %v2200_v58, %v8324_v48  ;;  %v2223_v19 = vrot.slane %v2215_v9, %v8324_v48  ;;  %v2230_v42 = vrot.slane %v2216_v27, %v8324_v48  ;;  %v1876_v32 = vpop.permute.xlu0 %1875  ;;  %v1890_v25 = vpop.permute.xlu1 %1889 }
 0x202   : > { %v8997_v46 = vrot.slane %v7361_v52, %v8324_v48  ;;  %v2267_v47 = vcombine.low %v8769_v18, %v1874_v61  ;;  %v2268_v30 = vcombine.high %v8769_v18, %v1874_v61  ;;  %v9001_v50 = vpack.c.bf16 %v2739_v51, %v2671_v34 }
 0x203   : > { %v2231_v5 = vcombine.low %v2207_v28, %v2223_v19  ;;  %v2232_v11 = vcombine.high %v2207_v28, %v2223_v19  ;;  %v2247_v56 = vcombine.low %v2214_v38, %v2230_v42  ;;  %v2248_v31 = vcombine.high %v2214_v38, %v2230_v42 }
 0x204   : > { %v2283_v58 = vcombine.low %v1858_v41, %v1890_v25  ;;  %v2284_v22 = vcombine.high %v1858_v41, %v1890_v25  ;;  %v2571_v9 = vcombine.low %v8984_v14, %v8987_v45  ;;  %v9005_v27 = vpack.c.bf16 %v2740_v44, %v2672_v33 }
 0x205   : > { %v2239_v52 = vrot.slane %v2231_v5, %v8363_v6  ;;  %v2246_v15 = vrot.slane %v2232_v11, %v8363_v6  ;;  %v2255_v18 = vrot.slane %v2247_v56, %v8363_v6  ;;  %v2262_v34 = vrot.slane %v2248_v31, %v8363_v6  ;;  %v1892_v38 = vpop.permute.xlu0 %1891  ;;  %v1878_v42 = vpop.permute.xlu1 %1877 }
 0x206   : > { %v2275_v51 = vrot.slane %v2267_v47, %v8324_v48  ;;  %v2282_v61 = vrot.slane %v2268_v30, %v8324_v48  ;;  %v2291_v28 = vrot.slane %v2283_v58, %v8324_v48  ;;  %v2298_v41 = vrot.slane %v2284_v22, %v8324_v48 }
 0x207   : > { %v2743_v19 = vcombine.low %v2239_v52, %v2246_v15  ;;  %v2335_v33 = vcombine.low %v8751_v55, %v1876_v32  ;;  %v2336_v44 = vcombine.high %v8751_v55, %v1876_v32  ;;  %v2587_v5 = vcombine.low %v8991_v12, %v8997_v46 }
 0x208   : > { %v2299_v11 = vcombine.low %v2275_v51, %v2291_v28  ;;  %v2300_v56 = vcombine.high %v2275_v51, %v2291_v28  ;;  %v2315_v31 = vcombine.low %v2282_v61, %v2298_v41  ;;  %v2316_v47 = vcombine.high %v2282_v61, %v2298_v41 }
 0x209   : > { %v7366_v25 = vcombine.high %v2239_v52, %v2246_v15  ;;  %v2759_v30 = vcombine.low %v2255_v18, %v2262_v34  ;;  %v2579_v58 = vrot.slane %v2571_v9, %v8363_v6  ;;  %v9022_v22 = vsel %vm4231_vm1, %v9001_v50, 0  ;;  %v9029_v17 = vpop.permute.xlu0 %3033  ;;  %v1894_v61 = vpop.permute.xlu1 %1893 }
 0x20a   : > { %v7367_v60 = vcombine.high %v2255_v18, %v2262_v34  ;;  %v2307_v23 = vrot.slane %v2299_v11, %v8363_v6  ;;  %v2314_v55 = vrot.slane %v2300_v56, %v8363_v6  ;;  %v9027_v32 = vrot.slane %v2315_v31, %v8363_v6 }
 0x20b   : > { %v9032_v51 = vrot.slane %v2316_v47, %v8363_v6  ;;  %v2403_v15 = vcombine.low %v8735_v53, %v1878_v42  ;;  %v2351_v9 = vcombine.low %v8903_v35, %v1892_v38  ;;  %v2352_v52 = vcombine.high %v8903_v35, %v1892_v38 }
 0x20c   : > { %v9038_v18 = vrot.slane %v2743_v19, %v8324_v48  ;;  %v2343_v34 = vrot.slane %v2335_v33, %v8324_v48  ;;  %v2350_v28 = vrot.slane %v2336_v44, %v8324_v48  ;;  %v2595_v41 = vrot.slane %v2587_v5, %v8363_v6 }
 0x20d   : > { %v9044_v11 = vrot.slane %v7366_v25, %v8324_v48  ;;  %v9047_v56 = vrot.slane %v2759_v30, %v8324_v48  ;;  %v2359_v31 = vrot.slane %v2351_v9, %v8324_v48  ;;  %v2366_v35 = vrot.slane %v2352_v52, %v8324_v48  ;;  %v3032_v30 = vpop.permute.xlu1 %3031 }
 0x20e   : > { %v9052_v38 = vrot.slane %v7367_v60, %v8324_v48  ;;  %v2811_v19 = vcombine.low %v2307_v23, %v2314_v55  ;;  %v7368_v47 = vcombine.high %v2307_v23, %v2314_v55  ;;  %v2404_v33 = vcombine.high %v8735_v53, %v1878_v42  ;;  %v3064_v60 = vpop.permute.xlu0 %3063 }
 0x20f   : > { %v2827_v44 = vcombine.low %v9027_v32, %v9032_v51  ;;  %v2411_v5 = vrot.slane %v2403_v15, %v8324_v48  ;;  %v2367_v25 = vcombine.low %v2343_v34, %v2359_v31  ;;  %v2368_v20 = vcombine.high %v2343_v34, %v2359_v31 }
 0x210   : > { %v2603_v4 = vcombine.low %v2579_v58, %v2595_v41  ;;  %v2604_v10 = vcombine.high %v2579_v58, %v2595_v41  ;;  %v2419_v9 = vcombine.low %v8925_v49, %v1894_v61  ;;  %v2420_v52 = vcombine.high %v8925_v49, %v1894_v61 }
 0x211   : > { %v2375_v24 = vrot.slane %v2367_v25, %v8363_v6  ;;  %v2382_v23 = vrot.slane %v2368_v20, %v8363_v6  ;;  %v2383_v53 = vcombine.low %v2350_v28, %v2366_v35  ;;  %v2384_v42 = vcombine.high %v2350_v28, %v2366_v35 }
 0x212   : > { %v10765_v55 = vcombine.low %v8940_v29, %v8943_v7  ;;  %v10766_v34 = vcombine.high %v8940_v29, %v8943_v7  ;;  %v2427_v58 = vrot.slane %v2419_v9, %v8324_v48  ;;  %v2434_v41 = vrot.slane %v2420_v52, %v8324_v48 }
 0x213   : > { %v9071_v49 = vrot.slane %v2811_v19, %v8324_v48  ;;  %v9074_v61 = vrot.slane %v7368_v47, %v8324_v48  ;;  %v7369_v20 = vcombine.high %v9027_v32, %v9032_v51  ;;  %v2418_v28 = vrot.slane %v2404_v33, %v8324_v48  ;;  %v3080_v19 = vpop.permute.xlu0 %3079 }
 0x214   : > { %v3015_v15 = vpack.c.bf16 %v2603_v4, %v10765_v55  ;;  %v3019_v31 = vpack.c.bf16 %v2604_v10, %v10766_v34  ;;  %v3048_v4 = vpop.permute.xlu1 %3047  ;;  %v2435_v7 = vcombine.low %v2411_v5, %v2427_v58  ;;  %v2436_v35 = vcombine.high %v2411_v5, %v2427_v58 }
 0x215   : > { %v9084_v47 = vrot.slane %v2827_v44, %v8324_v48  ;;  %v2391_v25 = vrot.slane %v2383_v53, %v8363_v6  ;;  %v2398_v32 = vrot.slane %v2384_v42, %v8363_v6  ;;  %v2879_v51 = vcombine.low %v2375_v24, %v2382_v23 }
 0x216   : > { %7792 = vmatprep.subr.msk.bf16.mxu1 %vm4231_vm1, %v3015_v15  ;;  %7796 = vmatprep.subr.msk.bf16.mxu0 %vm4231_vm1, %v3019_v31  ;;  %v4245_v10 = vsel %vm4231_vm1, %v3015_v15, 0  ;;  %v4334_v29 = vsel %vm4231_vm1, %v3019_v31, 0  ;;  %v2443_v33 = vrot.slane %v2435_v7, %v8363_v6  ;;  %v2450_v9 = vrot.slane %v2436_v35, %v8363_v6 }
 0x217   : > { %10767 = vst [vmem:[#allocation16_spill] sm:$0xff] %v9084_v47  ;;  %7590 = vmatpush3.bf16.xpose.msra.mxu1 %v4245_v10  ;;  %7606 = vmatpush3.bf16.xpose.msra.mxu0 %v4334_v29  ;;  %v2451_v52 = vcombine.low %v2418_v28, %v2434_v41  ;;  %v4337_v5 = vsel %vm4231_vm1, %v9005_v27, 0  ;;  %v2452_v44 = vcombine.high %v2418_v28, %v2434_v41  ;;  %v9102_v10 = vpop.permute.xlu0 %3035 }
 0x218   : > { %7793 = vmatprep.subr.msk.bf16.mxu1 %vm4231_vm1, %v9001_v50  ;;  %7797 = vmatprep.subr.msk.bf16.mxu0 %vm4231_vm1, %v9005_v27  ;;  %v3127_v53 = vcombine.low %v3032_v30, %v3064_v60  ;;  %v3128_v42 = vcombine.high %v3032_v30, %v3064_v60  ;;  %v3143_v55 = vcombine.low %v3048_v4, %v3080_v19  ;;  %v9096_v15 = vpop.permute.xlu1 %3049 }
 0x219   : > { %v9099_v34 = vrot.slane %v7369_v20, %v8324_v48  ;;  %v7370_v50 = vcombine.high %v2375_v24, %v2382_v23  ;;  %v2459_v31 = vrot.slane %v2451_v52, %v8363_v6  ;;  %v3144_v58 = vcombine.high %v3048_v4, %v3080_v19 }
 0x21a   : > { %v2895_v29 = vcombine.low %v2391_v25, %v2398_v32  ;;  %v2466_v7 = vrot.slane %v2452_v44, %v8363_v6  ;;  %v3135_v27 = vrot.slane %v3127_v53, %v8324_v48  ;;  %v3151_v41 = vrot.slane %v3143_v55, %v8324_v48 }
 0x21b   : > { %v9108_v30 = vrot.slane %v2879_v51, %v8324_v48  ;;  %v7371_v60 = vcombine.high %v2391_v25, %v2398_v32  ;;  %v3158_v20 = vrot.slane %v3144_v58, %v8324_v48  ;;  %v2775_v24 = vcombine.low %v9038_v18, %v9044_v11  ;;  %v9121_v32 = vpop.permute.xlu0 %3051 }
 0x21c   : > { %v2947_v23 = vcombine.low %v2443_v33, %v2450_v9  ;;  %v3142_v28 = vrot.slane %v3128_v42, %v8324_v48  ;;  %v3159_v4 = vcombine.low %v3135_v27, %v3151_v41  ;;  %v3160_v35 = vcombine.high %v3135_v27, %v3151_v41  ;;  %v9114_v19 = vpop.permute.xlu1 %3065 }
 0x21d   : > { %10768 = vst [vmem:[#allocation17_spill] sm:$0xff] %v9108_v30  ;;  %v9117_v52 = vrot.slane %v7370_v50, %v8324_v48  ;;  %v7372_v44 = vcombine.high %v2443_v33, %v2450_v9  ;;  %v2963_v53 = vcombine.low %v2459_v31, %v2466_v7  ;;  %v2791_v25 = vcombine.low %v9047_v56, %v9052_v38 }
 0x21e   : > { %v7373_v51 = vcombine.high %v2459_v31, %v2466_v7  ;;  %v3175_v55 = vcombine.low %v3142_v28, %v3158_v20  ;;  %v3176_v58 = vcombine.high %v3142_v28, %v3158_v20  ;;  %v2783_v42 = vrot.slane %v2775_v24, %v8363_v6 }
 0x21f   : > { %7592 = vmatpush3.bf16.xpose.msra.mxu1 %v9022_v22  ;;  %7608 = vmatpush3.bf16.xpose.msra.mxu0 %v4337_v5  ;;  %v9126_v27 = vrot.slane %v3159_v4, %v8363_v6  ;;  %v9129_v50 = vrot.slane %v3160_v35, %v8363_v6  ;;  %v2799_v33 = vrot.slane %v2791_v25, %v8363_v6  ;;  %v9168_v40 = vpop.permute.xlu0 %3067 }
 0x220   : > { %v2843_v9 = vcombine.low %v9071_v49, %v9074_v61  ;;  %v9135_v31 = vrot.slane %v2895_v29, %v8324_v48  ;;  %v9138_v22 = vrot.slane %v7371_v60, %v8324_v48  ;;  %v9141_v7 = vrot.slane %v2947_v23, %v8324_v48  ;;  %v3082_v41 = vpop.permute.xlu1 %3081 }
 0x221   : > { %v2859_v5 = vcombine.low %v9084_v47, %v9099_v34  ;;  %v9146_v20 = vrot.slane %v7372_v44, %v8324_v48  ;;  %v9149_v24 = vrot.slane %v2963_v53, %v8324_v48  ;;  %v3195_v29 = vcombine.low %v9029_v17, %v9114_v19 }
 0x222   : > { %v2851_v28 = vrot.slane %v2843_v9, %v8363_v6  ;;  %v9155_v60 = vrot.slane %v7373_v51, %v8324_v48  ;;  %v9158_v23 = vrot.slane %v3175_v55, %v8363_v6  ;;  %v9161_v4 = vrot.slane %v3176_v58, %v8363_v6 }
 0x223   : > { %v2867_v35 = vrot.slane %v2859_v5, %v8363_v6  ;;  %v2807_v53 = vcombine.low %v2783_v42, %v2799_v33  ;;  %v3211_v25 = vcombine.low %v9096_v15, %v3082_v41  ;;  %v3212_v9 = vcombine.high %v9096_v15, %v3082_v41 }
 0x224   : > { %10769 = vst [vmem:[#allocation18_spill] sm:$0xff] %v9161_v4  ;;  %v2808_v39 = vcombine.high %v2783_v42, %v2799_v33  ;;  %v2911_v55 = vcombine.low %v9108_v30, %v9117_v52  ;;  %v9172_v58 = vpop.permute.xlu1 %3037  ;;  %v3196_v44 = vcombine.high %v9029_v17, %v9114_v19  ;;  %v3203_v0 = vrot.slane %v3195_v29, %v8324_v48 }
 0x225   : > { %v2875_v51 = vcombine.low %v2851_v28, %v2867_v35  ;;  %v2876_v21 = vcombine.high %v2851_v28, %v2867_v35  ;;  %v3219_v15 = vrot.slane %v3211_v25, %v8324_v48  ;;  %v3263_v42 = vcombine.low %v9102_v10, %v9168_v40 }
 0x226   : > { %v2927_v33 = vcombine.low %v9135_v31, %v9138_v22  ;;  %v3226_v28 = vrot.slane %v3212_v9, %v8324_v48  ;;  %v2919_v5 = vrot.slane %v2911_v55, %v8363_v6  ;;  %v2979_v19 = vcombine.low %v9141_v7, %v9146_v20 }
 0x227   : > { %v3017_v41 = vpack.c.bf16 %v2875_v51, %v2807_v53  ;;  %v3021_v47 = vpack.c.bf16 %v2876_v21, %v2808_v39  ;;  %v3227_v35 = vcombine.low %v3203_v0, %v3219_v15  ;;  %v3228_v30 = vcombine.high %v3203_v0, %v3219_v15  ;;  %v3084_v15 = vpop.permute.xlu0 %3083 }
 0x228   : > { %v2935_v21 = vrot.slane %v2927_v33, %v8363_v6  ;;  %v9193_v29 = vpop.permute.xlu1 %3053  ;;  %v3210_v25 = vrot.slane %v3196_v44, %v8324_v48  ;;  %v3271_v9 = vrot.slane %v3263_v42, %v8324_v48  ;;  %v2987_v51 = vrot.slane %v2979_v19, %v8363_v6 }
 0x229   : > { %7794 = vmatprep.subr.msk.bf16.mxu1 %vm4231_vm1, %v3017_v41  ;;  %7798 = vmatprep.subr.msk.bf16.mxu0 %vm4231_vm1, %v3021_v47  ;;  %v4251_v17 = vsel %vm4231_vm1, %v3017_v41, 0  ;;  %v4340_v39 = vsel %vm4231_vm1, %v3021_v47, 0  ;;  %v3264_v47 = vcombine.high %v9102_v10, %v9168_v40  ;;  %v2995_v55 = vcombine.low %v9149_v24, %v9155_v60 }
 0x22a   : > { %7594 = vmatpush3.bf16.xpose.msra.mxu1 %v4251_v17  ;;  %7610 = vmatpush3.bf16.xpose.msra.mxu0 %v4340_v39  ;;  %v9207_v41 = vrot.slane %v3227_v35, %v8363_v6  ;;  %v3243_v33 = vcombine.low %v3210_v25, %v3226_v28  ;;  %v3244_v53 = vcombine.high %v3210_v25, %v3226_v28 }
 0x22b   : > { %v2520_v17 = vcombine.high %v8915_v1, %v8918_v16  ;;  %v9212_v44 = vrot.slane %v3228_v30, %v8363_v6  ;;  %v2943_v40 = vcombine.low %v2919_v5, %v2935_v21  ;;  %v3003_v10 = vrot.slane %v2995_v55, %v8363_v6 }
 0x22c   : > { %v2572_v42 = vcombine.high %v8984_v14, %v8987_v45  ;;  %v9217_v39 = vpop.permute.xlu1 %3069  ;;  %v2588_v35 = vcombine.high %v8991_v12, %v8997_v46  ;;  %v3279_v28 = vcombine.low %v9121_v32, %v3084_v15  ;;  %v3280_v16 = vcombine.high %v9121_v32, %v3084_v15 }
 0x22d   : > { %v2534_v19 = vrot.slane %v2520_v17, %v8363_v6  ;;  %v3011_v1 = vcombine.low %v2987_v51, %v3003_v10  ;;  %v2944_v30 = vcombine.high %v2919_v5, %v2935_v21  ;;  %v3012_v25 = vcombine.high %v2987_v51, %v3003_v10 }
 0x22e   : > { %v2586_v0 = vrot.slane %v2572_v42, %v8363_v6  ;;  %v9226_v55 = vrot.slane %v3243_v33, %v8363_v6  ;;  %v9229_v14 = vrot.slane %v3244_v53, %v8363_v6  ;;  %v2602_v45 = vrot.slane %v2588_v35, %v8363_v6 }
 0x22f   : > { %v3287_v17 = vrot.slane %v3279_v28, %v8324_v48  ;;  %v3018_v12 = vpack.c.bf16 %v3011_v1, %v2943_v40  ;;  %v3022_v46 = vpack.c.bf16 %v3012_v25, %v2944_v30  ;;  %v2537_v4 = vcombine.low %v8977_v3, %v2534_v19  ;;  %v9266_v25 = vpop.permute.xlu0 %3041 }
 0x230   : > { %v2640_v32 = vcombine.high %v8870_v62, %v8877_v43  ;;  %v3086_v5 = vpop.permute.xlu1 %3085  ;;  %v2605_v21 = vcombine.low %v2586_v0, %v2602_v45  ;;  %v2538_v51 = vcombine.high %v8977_v3, %v2534_v19  ;;  %v2606_v15 = vcombine.high %v2586_v0, %v2602_v45 }
 0x231   : > { %v3294_v33 = vrot.slane %v3280_v16, %v8324_v48  ;;  %7795 = vmatprep.subr.msk.bf16.mxu1 %vm4231_vm1, %v3018_v12  ;;  %7799 = vmatprep.subr.msk.bf16.mxu0 %vm4231_vm1, %v3022_v46  ;;  %v4254_v53 = vsel %vm4231_vm1, %v3018_v12, 0  ;;  %v4343_v40 = vsel %vm4231_vm1, %v3022_v46, 0  ;;  %v3295_v10 = vcombine.low %v3271_v9, %v3287_v17 }
 0x232   : > { %v3296_v42 = vcombine.high %v3271_v9, %v3287_v17  ;;  %v3278_v35 = vrot.slane %v3264_v47, %v8324_v48  ;;  %7596 = vmatpush3.bf16.xpose.msra.mxu1 %v4254_v53  ;;  %7612 = vmatpush3.bf16.xpose.msra.mxu0 %v4343_v40  ;;  %v3023_v62 = vpack.c.bf16 %v2605_v21, %v2537_v4 }
 0x233   : > { %v3027_v43 = vpack.c.bf16 %v2606_v15, %v2538_v51  ;;  %v3739_v3 = vcombine.low %v9207_v41, %v9212_v44  ;;  %v7376_v0 = vcombine.high %v9207_v41, %v9212_v44  ;;  %v3755_v19 = vcombine.low %v9226_v55, %v9229_v14 }
 0x234   : > { %v2656_v28 = vcombine.high %v8880_v59, %v8883_v26  ;;  %v9251_v16 = vpop.permute.xlu1 %3039  ;;  %7800 = vmatprep.subr.msk.bf16.mxu1 %vm4231_vm1, %v3023_v62  ;;  %v2654_v4 = vrot.slane %v2640_v32, %v8363_v6  ;;  %v2708_v47 = vcombine.high %v8886_v37, %v8889_v2  ;;  %v2724_v9 = vcombine.high %v8892_v63, %v8900_v54 }
 0x235   : > { %7804 = vmatprep.subr.msk.bf16.mxu0 %vm4231_vm1, %v3027_v43  ;;  %v9261_v1 = vrot.slane %v3295_v10, %v8363_v6  ;;  %v9264_v30 = vrot.slane %v3296_v42, %v8363_v6  ;;  %v3311_v59 = vcombine.low %v3278_v35, %v3294_v33  ;;  %v3312_v26 = vcombine.high %v3278_v35, %v3294_v33 }
 0x236   : > { %v2670_v45 = vrot.slane %v2656_v28, %v8363_v6  ;;  %v2722_v17 = vrot.slane %v2708_v47, %v8363_v6  ;;  %v2738_v12 = vrot.slane %v2724_v9, %v8363_v6  ;;  %v3331_v37 = vcombine.low %v9172_v58, %v9217_v39 }
 0x237   : > { %v3332_v2 = vcombine.high %v9172_v58, %v9217_v39  ;;  %v3347_v63 = vcombine.low %v9193_v29, %v3086_v5  ;;  %v3348_v54 = vcombine.high %v9193_v29, %v3086_v5  ;;  %v2776_v46 = vcombine.high %v9038_v18, %v9044_v11 }
 0x238   : > { %v9279_v32 = vpop.permute.xlu1 %3055  ;;  %v2673_v21 = vcombine.low %v2654_v4, %v2670_v45  ;;  %v2741_v51 = vcombine.low %v2722_v17, %v2738_v12  ;;  %v2674_v15 = vcombine.high %v2654_v4, %v2670_v45  ;;  %v2742_v33 = vcombine.high %v2722_v17, %v2738_v12 }
 0x239   : > { %7598 = vmatmul.mubr.msk.bf16.vlgmr.msra.gmra.mrb[8].mxu1 %vm4231_vm1, %v8773_v36  ;;  %7614 = vmatmul.mubr.msk.bf16.vlgmr.msra.gmra.mrb[0].mxu0 %vm4231_vm1, %v8781_v57  ;;  %v4423_v58 = vsel %vm4231_vm1, %v3023_v62, 0  ;;  %v3339_v39 = vrot.slane %v3331_v37, %v8324_v48  ;;  %v3346_v29 = vrot.slane %v3332_v2, %v8324_v48  ;;  %v3355_v18 = vrot.slane %v3347_v63, %v8324_v48 }
 0x23a   : > { %7601 = vmatprep.mubr.msk.bf16.mxu1 %vm4231_vm1, %v8787_v8  ;;  %7617 = vmatprep.mubr.msk.bf16.mxu0 %vm4231_vm1, %v8789_v13  ;;  %v4512_v11 = vsel %vm4231_vm1, %v3027_v43, 0  ;;  %v3024_v36 = vpack.c.bf16 %v2741_v51, %v2673_v21  ;;  %v3028_v5 = vpack.c.bf16 %v2742_v33, %v2674_v15  ;;  %v3362_v57 = vrot.slane %v3348_v54, %v8324_v48  ;;  %v3072_v8 = vpop.permute.xlu0 %3071  ;;  %v10771_v54 = vld [vmem:[#allocation8_spill] sm:$0xff] }
 0x23b   : > { %v9296_v53 = vrot.slane %v3311_v59, %v8363_v6  ;;  %v9299_v40 = vrot.slane %v3312_v26, %v8363_v6  ;;  %7622 = vmatpush3.bf16.xpose.msra.mxu1 %v4423_v58  ;;  %7638 = vmatpush3.bf16.xpose.msra.mxu0 %v4512_v11  ;;  %v3363_v10 = vcombine.low %v3339_v39, %v3355_v18  ;;  %v10770_v26 = vld [vmem:[#allocation16_spill] sm:$0xff] }
 0x23c   : > { %v9301_v42 = vpop.permute.xlu1 %3045  ;;  %7801 = vmatprep.subr.msk.bf16.mxu1 %vm4231_vm1, %v3024_v36  ;;  %7805 = vmatprep.subr.msk.bf16.mxu0 %vm4231_vm1, %v3028_v5  ;;  %v3364_v13 = vcombine.high %v3339_v39, %v3355_v18  ;;  %v3379_v35 = vcombine.low %v3346_v29, %v3362_v57  ;;  %v3380_v62 = vcombine.high %v3346_v29, %v3362_v57  ;;  %v4426_v21 = vsel %vm4231_vm1, %v3024_v36, 0  ;;  %v10773_v39 = vld [vmem:[#allocation6_spill] sm:$0xff]  ;;  %v10774_v18 = vld [vmem:[#allocation7_spill] sm:$0xff] }
 0x23d   : > { %v7377_v43 = vcombine.high %v9226_v55, %v9229_v14  ;;  %v2790_v28 = vrot.slane %v2776_v46, %v8363_v6  ;;  %v2792_v4 = vcombine.high %v9047_v56, %v9052_v38  ;;  %v2844_v47 = vcombine.high %v9071_v49, %v9074_v61  ;;  %v10772_v46 = vld [vmem:[#allocation9_spill] sm:$0xff] }
 0x23e   : > { %v3807_v9 = vcombine.low %v9261_v1, %v9264_v30  ;;  %v7378_v59 = vcombine.high %v9261_v1, %v9264_v30  ;;  %v2860_v45 = vcombine.high %v10770_v26, %v9099_v34  ;;  %v3399_v17 = vcombine.low %v9251_v16, %v3072_v8  ;;  %v3088_v58 = vpop.permute.xlu0 %3087 }
 0x23f   : > { %v3823_v12 = vcombine.low %v9296_v53, %v9299_v40  ;;  %v9322_v37 = vrot.slane %v3363_v10, %v8363_v6  ;;  %v2806_v56 = vrot.slane %v2792_v4, %v8363_v6  ;;  %v2858_v38 = vrot.slane %v2844_v47, %v8363_v6 }
 0x240   : > { %v9326_v49 = vpop.permute.xlu1 %3061  ;;  %v9329_v61 = vrot.slane %v3364_v13, %v8363_v6  ;;  %v9332_v2 = vrot.slane %v3379_v35, %v8363_v6  ;;  %v9335_v34 = vrot.slane %v3380_v62, %v8363_v6  ;;  %v2874_v63 = vrot.slane %v2860_v45, %v8363_v6 }
 0x241   : > { %7602 = vmatmul.mubr.msk.bf16.gmra.mrb[12].mxu1 %vm4231_vm1, %v10771_v54  ;;  %7618 = vmatmul.mubr.msk.bf16.gmra.mrb[4].mxu0 %vm4231_vm1, %v10772_v46  ;;  %v2809_v51 = vcombine.low %v2790_v28, %v2806_v56  ;;  %v2810_v15 = vcombine.high %v2790_v28, %v2806_v56  ;;  %v3400_v33 = vcombine.high %v9251_v16, %v3072_v8  ;;  %v4515_v29 = vsel %vm4231_vm1, %v3028_v5, 0  ;;  %v10775_v16 = vld [vmem:[#allocation17_spill] sm:$0xff] }
 0x242   : > { %7629 = vmatprep.mubr.msk.bf16.mxu1 %vm4231_vm1, %v10773_v39  ;;  %7645 = vmatprep.mubr.msk.bf16.mxu0 %vm4231_vm1, %v10774_v18  ;;  %v2877_v11 = vcombine.low %v2858_v38, %v2874_v63  ;;  %v2878_v57 = vcombine.high %v2858_v38, %v2874_v63  ;;  %v3407_v10 = vrot.slane %v3399_v17, %v8324_v48 }
 0x243   : > { %7624 = vmatpush3.bf16.xpose.msra.mxu1 %v4426_v21  ;;  %7640 = vmatpush3.bf16.xpose.msra.mxu0 %v4515_v29  ;;  %v3415_v36 = vcombine.low %v9279_v32, %v3088_v58  ;;  %v3416_v13 = vcombine.high %v9279_v32, %v3088_v58  ;;  %v2912_v8 = vcombine.high %v10775_v16, %v9117_v52 }
 0x244   : > { %v9354_v35 = vpop.permute.xlu1 %3077  ;;  %v3025_v62 = vpack.c.bf16 %v2877_v11, %v2809_v51  ;;  %v3029_v5 = vpack.c.bf16 %v2878_v57, %v2810_v15  ;;  %v2928_v28 = vcombine.high %v9135_v31, %v9138_v22  ;;  %v2980_v4 = vcombine.high %v9141_v7, %v9146_v20 }
 0x245   : > { %v3414_v47 = vrot.slane %v3400_v33, %v8324_v48  ;;  %v3423_v26 = vrot.slane %v3415_v36, %v8324_v48  ;;  %v3430_v45 = vrot.slane %v3416_v13, %v8324_v48  ;;  %v2996_v32 = vcombine.high %v9149_v24, %v9155_v60 }
 0x246   : > { %7802 = vmatprep.subr.msk.bf16.mxu1 %vm4231_vm1, %v3025_v62  ;;  %7806 = vmatprep.subr.msk.bf16.mxu0 %vm4231_vm1, %v3029_v5  ;;  %v2926_v52 = vrot.slane %v2912_v8, %v8363_v6  ;;  %v2942_v31 = vrot.slane %v2928_v28, %v8363_v6  ;;  %v2994_v22 = vrot.slane %v2980_v4, %v8363_v6  ;;  %v4429_v15 = vsel %vm4231_vm1, %v3025_v62, 0  ;;  %v10778_v8 = vld [vmem:[#allocation18_spill] sm:$0xff] }
 0x247   : > { %v3431_v7 = vcombine.low %v3407_v10, %v3423_v26  ;;  %v3432_v20 = vcombine.high %v3407_v10, %v3423_v26  ;;  %v3447_v17 = vcombine.low %v3414_v47, %v3430_v45  ;;  %v3448_v56 = vcombine.high %v3414_v47, %v3430_v45 }
 0x248   : > { %v7379_v38 = vcombine.high %v9296_v53, %v9299_v40  ;;  %v3875_v24 = vcombine.low %v9322_v37, %v9329_v61  ;;  %v7380_v60 = vcombine.high %v9322_v37, %v9329_v61  ;;  %v3010_v63 = vrot.slane %v2996_v32, %v8363_v6  ;;  %v9377_v54 = vpop.permute.xlu1 %3057 }
 0x249   : > { %v3891_v46 = vcombine.low %v9332_v2, %v9335_v34  ;;  %v9382_v21 = vrot.slane %v3431_v7, %v8363_v6  ;;  %v9385_v51 = vrot.slane %v3432_v20, %v8363_v6  ;;  %v2945_v33 = vcombine.low %v2926_v52, %v2942_v31 }
 0x24a   : > { %v3013_v58 = vcombine.low %v2994_v22, %v3010_v63  ;;  %v2946_v39 = vcombine.high %v2926_v52, %v2942_v31  ;;  %v3014_v29 = vcombine.high %v2994_v22, %v3010_v63  ;;  %v7381_v37 = vcombine.high %v9332_v2, %v9335_v34 }
 0x24b   : > { %v9391_v61 = vrot.slane %v3447_v17, %v8363_v6  ;;  %v9394_v18 = vrot.slane %v3448_v56, %v8363_v6  ;;  %7626 = vmatpush3.bf16.xpose.msra.mxu1 %v4429_v15  ;;  %v4518_v11 = vsel %vm4231_vm1, %v3029_v5, 0  ;;  %v3943_v57 = vcombine.low %v9382_v21, %v9385_v51 }
 0x24c   : > { %7642 = vmatpush3.bf16.xpose.msra.mxu0 %v4518_v11  ;;  %v3026_v10 = vpack.c.bf16 %v3013_v58, %v2945_v33  ;;  %v3030_v36 = vpack.c.bf16 %v3014_v29, %v2946_v39  ;;  %v10776_v13 = vcombine.low %v9126_v27, %v9129_v50  ;;  %v10777_v34 = vcombine.high %v9126_v27, %v9129_v50 }
 0x24d   : > { %v10779_v62 = vcombine.low %v9158_v23, %v10778_v8  ;;  %v10780_v28 = vcombine.high %v9158_v23, %v10778_v8  ;;  %v9427_v47 = vrot.slane %v3739_v3, %v8324_v48  ;;  %v7382_v27 = vcombine.high %v9382_v21, %v9385_v51  ;;  %v3074_v3 = vpop.permute.xlu1 %3073 }
 0x24e   : > { %v9403_v2 = vrot.slane %v10776_v13, %v8324_v48  ;;  %v9409_v16 = vrot.slane %v10777_v34, %v8324_v48  ;;  %7803 = vmatprep.subr.msk.bf16.mxu1 %vm4231_vm1, %v3026_v10  ;;  %7807 = vmatprep.subr.msk.bf16.mxu0 %vm4231_vm1, %v3030_v36  ;;  %v9437_v50 = vrot.slane %v7376_v0, %v8324_v48  ;;  %v4432_v55 = vsel %vm4231_vm1, %v3026_v10, 0 }
 0x24f   : > { %v9415_v5 = vrot.slane %v10779_v62, %v8324_v48  ;;  %v9421_v4 = vrot.slane %v10780_v28, %v8324_v48  ;;  %v9443_v23 = vrot.slane %v3755_v19, %v8324_v48  ;;  %v3959_v26 = vcombine.low %v9391_v61, %v9394_v18  ;;  %v10781_v62 = vld [vmem:[#allocation10_spill] sm:$0xff] }
 0x250   : > { %v3703_v45 = vcombine.low %v9403_v2, %v9409_v16  ;;  %v9455_v41 = vrot.slane %v7377_v43, %v8324_v48  ;;  %v7383_v44 = vcombine.high %v9391_v61, %v9394_v18  ;;  %v3771_v0 = vcombine.low %v9427_v47, %v9437_v50 }
 0x251   : > { %v3719_v32 = vcombine.low %v9415_v5, %v9421_v4  ;;  %v9465_v19 = vrot.slane %v3807_v9, %v8324_v48  ;;  %v9471_v52 = vrot.slane %v7378_v59, %v8324_v48  ;;  %v4521_v22 = vsel %vm4231_vm1, %v3030_v36, 0 }
 0x252   : > { %v3711_v14 = vrot.slane %v3703_v45, %v8363_v6  ;;  %v3787_v31 = vcombine.low %v9443_v23, %v9455_v41  ;;  %v3779_v9 = vrot.slane %v3771_v0, %v8363_v6  ;;  %v9484_v1 = vrot.slane %v3823_v12, %v8324_v48  ;;  %v3090_v12 = vpop.permute.xlu1 %3089  ;;  %v10782_v0 = vld [vmem:[#allocation11_spill] sm:$0xff] }
 0x253   : > { %v3727_v43 = vrot.slane %v3719_v32, %v8363_v6  ;;  %v9487_v30 = vrot.slane %v7379_v38, %v8324_v48  ;;  %7628 = vmatpush3.bf16.xpose.msra.mxu1 %v4432_v55  ;;  %v3839_v17 = vcombine.low %v9465_v19, %v9471_v52  ;;  %v9495_v63 = vrot.slane %v3875_v24, %v8324_v48 }
 0x254   : > { %v3795_v7 = vrot.slane %v3787_v31, %v8363_v6  ;;  %7644 = vmatpush3.bf16.xpose.msra.mxu0 %v4521_v22  ;;  %v9498_v53 = vrot.slane %v7380_v60, %v8324_v48  ;;  %v9501_v40 = vrot.slane %v3891_v46, %v8324_v48  ;;  %v9505_v58 = vrot.slane %v7381_v37, %v8324_v48  ;;  %v10784_v31 = vld [vmem:[#allocation13_spill] sm:$0xff] }
 0x255   : > { %v3735_v59 = vcombine.low %v3711_v14, %v3727_v43  ;;  %v3736_v20 = vcombine.high %v3711_v14, %v3727_v43  ;;  %v3855_v56 = vcombine.low %v9484_v1, %v9487_v30  ;;  %v3847_v33 = vrot.slane %v3839_v17, %v8363_v6 }
 0x256   : > { %v3803_v38 = vcombine.low %v3779_v9, %v3795_v7  ;;  %v3804_v15 = vcombine.high %v3779_v9, %v3795_v7  ;;  %v3907_v24 = vcombine.low %v9495_v63, %v9498_v53  ;;  %v3467_v29 = vcombine.low %v9266_v25, %v3074_v3 }
 0x257   : > { %v3863_v39 = vrot.slane %v3855_v56, %v8363_v6  ;;  %v3468_v60 = vcombine.high %v9266_v25, %v3074_v3  ;;  %v3923_v18 = vcombine.low %v9501_v40, %v9505_v58  ;;  %v3483_v11 = vcombine.low %v9377_v54, %v3090_v12 }
 0x258   : > { %v4215_v61 = vpack.c.bf16 %v3803_v38, %v3735_v59  ;;  %v4219_v46 = vpack.c.bf16 %v3804_v15, %v3736_v20  ;;  %v3915_v37 = vrot.slane %v3907_v24, %v8363_v6  ;;  %v3475_v13 = vrot.slane %v3467_v29, %v8324_v48 }
 0x259   : > { %v3871_v10 = vcombine.low %v3847_v33, %v3863_v39  ;;  %v3872_v36 = vcombine.high %v3847_v33, %v3863_v39  ;;  %v3931_v34 = vrot.slane %v3923_v18, %v8363_v6  ;;  %v3482_v8 = vrot.slane %v3468_v60, %v8324_v48 }
 0x25a   : > { %7653 = vmatprep.subr.bf16.mxu1 %v4215_v61  ;;  %7669 = vmatprep.subr.bf16.mxu0 %v4219_v46  ;;  %v3484_v25 = vcombine.high %v9377_v54, %v3090_v12  ;;  %v3491_v28 = vrot.slane %v3483_v11, %v8324_v48  ;;  %v9527_v3 = vrot.slane %v3943_v57, %v8324_v48  ;;  %v10783_v54 = vld [vmem:[#allocation12_spill] sm:$0xff] }
 0x25b   : > { %7630 = vmatmul.mubr.msk.bf16.vlgmr.msra.gmra.mrb[16].mxu1 %vm4231_vm1, %v10781_v62  ;;  %v9530_v45 = vrot.slane %v7382_v27, %v8324_v48  ;;  %v9533_v32 = vrot.slane %v3959_v26, %v8324_v48  ;;  %7646 = vmatmul.mubr.msk.bf16.vlgmr.msra.gmra.mrb[8].mxu0 %vm4231_vm1, %v10782_v0  ;;  %v3939_v55 = vcombine.low %v3915_v37, %v3931_v34 }
 0x25c   : > { %7633 = vmatprep.mubr.msk.bf16.mxu1 %vm4231_vm1, %v10783_v54  ;;  %v3940_v14 = vcombine.high %v3915_v37, %v3931_v34  ;;  %v3498_v43 = vrot.slane %v3484_v25, %v8324_v48  ;;  %7649 = vmatprep.mubr.msk.bf16.mxu0 %vm4231_vm1, %v10784_v31  ;;  %v3499_v21 = vcombine.low %v3475_v13, %v3491_v28 }
 0x25d   : > { %7654 = vmatpush3.bf16.msra.mxu1 %v4215_v61  ;;  %v3500_v51 = vcombine.high %v3475_v13, %v3491_v28  ;;  %v9543_v57 = vrot.slane %v7383_v44, %v8324_v48  ;;  %7670 = vmatpush3.bf16.msra.mxu0 %v4219_v46  ;;  %v4216_v27 = vpack.c.bf16 %v3939_v55, %v3871_v10  ;;  %v10785_v46 = vld [vmem:[#allocation14_spill] sm:$0xff]  ;;  %v10786_v10 = vld [vmem:[#allocation15_spill] sm:$0xff] }
 0x25e   : > { %v4220_v26 = vpack.c.bf16 %v3940_v14, %v3872_v36  ;;  %v3515_v22 = vcombine.low %v3482_v8, %v3498_v43  ;;  %v3516_v9 = vcombine.high %v3482_v8, %v3498_v43  ;;  %v3507_v59 = vrot.slane %v3499_v21, %v8363_v6 }
 0x25f   : > { %v3514_v7 = vrot.slane %v3500_v51, %v8363_v6  ;;  %v3975_v20 = vcombine.low %v9527_v3, %v9530_v45  ;;  %v3991_v17 = vcombine.low %v9533_v32, %v9543_v57  ;;  %7655 = vmatprep.subr.bf16.mxu1 %v4216_v27  ;;  %v3704_v12 = vcombine.high %v9403_v2, %v9409_v16 }
 0x260   : > { %7671 = vmatprep.subr.bf16.mxu0 %v4220_v26  ;;  %v3523_v44 = vrot.slane %v3515_v22, %v8363_v6  ;;  %v3530_v56 = vrot.slane %v3516_v9, %v8363_v6  ;;  %v3720_v61 = vcombine.high %v9415_v5, %v9421_v4  ;;  %v3772_v5 = vcombine.high %v9427_v47, %v9437_v50 }
 0x261   : > { %7656 = vmatpush3.bf16.msra.mxu1 %v4216_v27  ;;  %v4011_v38 = vcombine.low %v3507_v59, %v3514_v7  ;;  %v7384_v15 = vcombine.high %v3507_v59, %v3514_v7  ;;  %v3983_v33 = vrot.slane %v3975_v20, %v8363_v6  ;;  %v3999_v39 = vrot.slane %v3991_v17, %v8363_v6 }
 0x262   : > { %7672 = vmatpush3.bf16.msra.mxu0 %v4220_v26  ;;  %v4027_v24 = vcombine.low %v3523_v44, %v3530_v56  ;;  %v7385_v29 = vcombine.high %v3523_v44, %v3530_v56  ;;  %v3718_v60 = vrot.slane %v3704_v12, %v8363_v6  ;;  %v3734_v13 = vrot.slane %v3720_v61, %v8363_v6 }
 0x263   : > { %7634 = vmatmul.mubr.msk.bf16.gmra.mrb[20].mxu1 %vm4231_vm1, %v10785_v46  ;;  %v4007_v18 = vcombine.low %v3983_v33, %v3999_v39  ;;  %v4018_v2 = vrot.slane %v4011_v38, %v8324_v48  ;;  %v4026_v16 = vrot.slane %v7384_v15, %v8324_v48  ;;  %v4008_v11 = vcombine.high %v3983_v33, %v3999_v39 }
 0x264   : > { %7650 = vmatmul.mubr.msk.bf16.gmra.mrb[12].mxu0 %vm4231_vm1, %v10786_v10  ;;  %v4034_v37 = vrot.slane %v4027_v24, %v8324_v48  ;;  %v4042_v36 = vrot.slane %v7385_v29, %v8324_v48  ;;  %v3788_v34 = vcombine.high %v9443_v23, %v9455_v41  ;;  %v3840_v8 = vcombine.high %v9465_v19, %v9471_v52 }
 0x265   : > { %v4043_v4 = vcombine.low %v4018_v2, %v4026_v16  ;;  %v3856_v25 = vcombine.high %v9484_v1, %v9487_v30  ;;  %v3737_v28 = vcombine.low %v3718_v60, %v3734_v13  ;;  %v3786_v0 = vrot.slane %v3772_v5, %v8363_v6 }
 0x266   : > { %v4059_v62 = vcombine.low %v4034_v37, %v4042_v36  ;;  %v3738_v54 = vcombine.high %v3718_v60, %v3734_v13  ;;  %v3802_v14 = vrot.slane %v3788_v34, %v8363_v6  ;;  %v3854_v47 = vrot.slane %v3840_v8, %v8363_v6 }
 0x267   : > { %v4051_v55 = vrot.slane %v4043_v4, %v8363_v6  ;;  %v3870_v50 = vrot.slane %v3856_v25, %v8363_v6  ;;  %v3908_v41 = vcombine.high %v9495_v63, %v9498_v53  ;;  %v3924_v19 = vcombine.high %v9501_v40, %v9505_v58 }
 0x268   : > { %v4067_v23 = vrot.slane %v4059_v62, %v8363_v6  ;;  %v3976_v52 = vcombine.high %v9527_v3, %v9530_v45  ;;  %v3805_v1 = vcombine.low %v3786_v0, %v3802_v14  ;;  %v3806_v30 = vcombine.high %v3786_v0, %v3802_v14 }
 0x269   : > { %v3873_v43 = vcombine.low %v3854_v47, %v3870_v50  ;;  %v3992_v31 = vcombine.high %v9533_v32, %v9543_v57  ;;  %v3922_v27 = vrot.slane %v3908_v41, %v8363_v6  ;;  %v3938_v26 = vrot.slane %v3924_v19, %v8363_v6 }
 0x26a   : > { %v4075_v21 = vcombine.low %v4051_v55, %v4067_v23  ;;  %v4076_v51 = vcombine.high %v4051_v55, %v4067_v23  ;;  %v9593_v22 = vpack.c.bf16 %v3805_v1, %v3737_v28  ;;  %v9595_v63 = vpack.c.bf16 %v3806_v30, %v3738_v54 }
 0x26b   : > { %v3990_v53 = vrot.slane %v3976_v52, %v8363_v6  ;;  %v4006_v40 = vrot.slane %v3992_v31, %v8363_v6  ;;  %v3941_v45 = vcombine.low %v3922_v27, %v3938_v26  ;;  %v4044_v9 = vcombine.high %v4018_v2, %v4026_v16 }
 0x26c   : > { %v4217_v58 = vpack.c.bf16 %v4075_v21, %v4007_v18  ;;  %v4221_v3 = vpack.c.bf16 %v4076_v51, %v4008_v11  ;;  %v4060_v32 = vcombine.high %v4034_v37, %v4042_v36  ;;  %v3874_v57 = vcombine.high %v3854_v47, %v3870_v50 }
 0x26d   : > { %v4009_v59 = vcombine.low %v3990_v53, %v4006_v40  ;;  %v3942_v7 = vcombine.high %v3922_v27, %v3938_v26  ;;  %v9599_v20 = vpack.c.bf16 %v3941_v45, %v3873_v43  ;;  %v4058_v17 = vrot.slane %v4044_v9, %v8363_v6 }
 0x26e   : > { %7657 = vmatprep.subr.bf16.mxu1 %v4217_v58  ;;  %7673 = vmatprep.subr.bf16.mxu0 %v4221_v3  ;;  %v4010_v44 = vcombine.high %v3990_v53, %v4006_v40  ;;  %v4074_v56 = vrot.slane %v4060_v32, %v8363_v6 }
 0x26f   : > { %7658 = vmatpush3.bf16.msra.mxu1 %v4217_v58  ;;  %7674 = vmatpush3.bf16.msra.mxu0 %v4221_v3  ;;  %v9603_v12 = vpack.c.bf16 %v3942_v7, %v3874_v57 }
 0x270   : > { %v4077_v38 = vcombine.low %v4058_v17, %v4074_v56  ;;  %v4078_v15 = vcombine.high %v4058_v17, %v4074_v56 }
 0x272   : > { %v9605_v33 = vpack.c.bf16 %v4077_v38, %v4009_v59  ;;  %v9607_v39 = vpack.c.bf16 %v4078_v15, %v4010_v44 }
 0x30c   : > { %v7599_v24 = vpop.f32.mrb[8].mxu1  ;;  %v7615_v29 = vpop.f32.mrb[0].mxu0 }
 0x30d   : > { %v9609_v60 = vmul.f32 0.35355338, %v7599_v24  ;;  %v4290_v61 = vpop.f32.mrb[9].mxu1  ;;  %v4379_v46 = vpop.f32.mrb[1].mxu0  ;;  %v9613_v37 = vmul.f32 0.35355338, %v7615_v29 }
 0x30e   : > { %v9611_v18 = vmul.f32 0.35355338, %v4290_v61  ;;  %v7600_v2 = vpop.f32.mrb[10].mxu1  ;;  %v7616_v16 = vpop.f32.mrb[2].mxu0  ;;  %v9615_v36 = vmul.f32 0.35355338, %v4379_v46 }
 0x30f   : > { %v4293_v11 = vpop.f32.mrb[11].mxu1  ;;  %v4382_v10 = vpop.f32.mrb[3].mxu0  ;;  %v4627_v13 = vsel %vm4620_vm2, %v9609_v60, -inf  ;;  %v9621_v4 = vmul.f32 0.35355338, %v7600_v2  ;;  %v4651_v25 = vsel %vm4620_vm2, %v9613_v37, -inf }
 0x310   : > { %v4621_v5 = vsel %vm4620_vm2, %v9611_v18, -inf  ;;  %4628 = vmax.xlane.f32.xlu1 %v4627_v13  ;;  %v9623_v34 = vmul.f32 0.35355338, %v4293_v11  ;;  %v4645_v28 = vsel %vm4620_vm2, %v9615_v36, -inf  ;;  %v9629_v23 = vmul.f32 0.35355338, %v7616_v16 }
 0x311   : > { %4622 = vmax.xlane.f32.xlu0 %v4621_v5  ;;  %v4630_v52 = vsel %vm4620_vm2, %v9621_v4, -inf  ;;  %v9637_v1 = vmul.f32 0.35355338, %v4382_v10 }
 0x312   : > { %v4624_v19 = vsel %vm4620_vm2, %v9623_v34, -inf  ;;  %v4654_v31 = vsel %vm4620_vm2, %v9629_v23, -inf }
 0x313   : > { %v4648_v26 = vsel %vm4620_vm2, %v9637_v1, -inf }
 0x314   : > { %v7619_v8 = vpop.f32.mrb[4].mxu0  ;;  %v7603_v62 = vpop.f32.mrb[12].mxu1  ;;  %4652 = vmax.xlane.f32.xlu1 %v4651_v25 }
 0x315   : > { %v4395_v0 = vpop.f32.mrb[5].mxu0  ;;  %4646 = vmax.xlane.f32.xlu0 %v4645_v28  ;;  %v4306_v54 = vpop.f32.mrb[13].mxu1  ;;  %v9631_v41 = vmul.f32 0.35355338, %v7603_v62  ;;  %v9639_v30 = vmul.f32 0.35355338, %v7619_v8 }
 0x316   : > { %v7604_v55 = vpop.f32.mrb[14].mxu1  ;;  %v7620_v14 = vpop.f32.mrb[6].mxu0  ;;  %v9645_v21 = vmul.f32 0.35355338, %v4306_v54  ;;  %v9653_v53 = vmul.f32 0.35355338, %v4395_v0 }
 0x317   : > { %v4309_v47 = vpop.f32.mrb[15].mxu1  ;;  %v4398_v50 = vpop.f32.mrb[7].mxu0  ;;  %v4639_v43 = vsel %vm4620_vm2, %v9631_v41, -inf  ;;  %v9647_v51 = vmul.f32 0.35355338, %v7604_v55  ;;  %v4663_v27 = vsel %vm4620_vm2, %v9639_v30, -inf }
 0x318   : > { %4625 = vmax.xlane.f32.xlu1 %v4624_v19  ;;  %v9655_v40 = vmul.f32 0.35355338, %v7620_v14  ;;  %v4633_v58 = vsel %vm4620_vm2, %v9645_v21, -inf  ;;  %v9661_v45 = vmul.f32 0.35355338, %v4309_v47  ;;  %v4657_v9 = vsel %vm4620_vm2, %v9653_v53, -inf }
 0x319   : > { %4631 = vmax.xlane.f32.xlu0 %v4630_v52  ;;  %v4642_v3 = vsel %vm4620_vm2, %v9647_v51, -inf  ;;  %v9667_v32 = vmul.f32 0.35355338, %v4398_v50 }
 0x31a   : > { %v4666_v59 = vsel %vm4620_vm2, %v9655_v40, -inf  ;;  %v4636_v57 = vsel %vm4620_vm2, %v9661_v45, -inf }
 0x31b   : > { %v4660_v46 = vsel %vm4620_vm2, %v9667_v32, -inf }
 0x31c   : > { %4640 = vmax.xlane.f32.xlu1 %v4639_v43 }
 0x31d   : > { %4655 = vmax.xlane.f32.xlu0 %v4654_v31 }
 0x320   : > { %4664 = vmax.xlane.f32.xlu1 %v4663_v27 }
 0x321   : > { %4649 = vmax.xlane.f32.xlu0 %v4648_v26 }
 0x324   : > { %4634 = vmax.xlane.f32.xlu1 %v4633_v58 }
 0x325   : > { %4643 = vmax.xlane.f32.xlu0 %v4642_v3 }
 0x328   : > { %4658 = vmax.xlane.f32.xlu1 %v4657_v9 }
 0x329   : > { %4667 = vmax.xlane.f32.xlu0 %v4666_v59 }
 0x32d   : > { %4637 = vmax.xlane.f32.xlu0 %v4636_v57 }
 0x32e   : > { %v7631_v7 = vpop.f32.mrb[16].mxu1  ;;  %v7647_v44 = vpop.f32.mrb[8].mxu0 }
 0x32f   : > { %v9671_v17 = vmul.f32 0.35355338, %v7631_v7  ;;  %v4468_v56 = vpop.f32.mrb[17].mxu1  ;;  %v4557_v38 = vpop.f32.mrb[9].mxu0  ;;  %v9677_v2 = vmul.f32 0.35355338, %v7647_v44 }
 0x330   : > { %v7632_v15 = vpop.f32.mrb[18].mxu1  ;;  %v7648_v29 = vpop.f32.mrb[10].mxu0  ;;  %v9685_v5 = vmul.f32 0.35355338, %v4468_v56  ;;  %v9693_v19 = vmul.f32 0.35355338, %v4557_v38 }
 0x331   : > { %v9673_v24 = vmul.f32 0.35355338, %v7632_v15  ;;  %v4471_v61 = vpop.f32.mrb[19].mxu1  ;;  %v4560_v16 = vpop.f32.mrb[11].mxu0  ;;  %v4675_v11 = vsel %vm4620_vm2, %v9671_v17, -inf  ;;  %4661 = vmax.xlane.f32.xlu0 %v4660_v46  ;;  %v4699_v8 = vsel %vm4620_vm2, %v9677_v2, -inf }
 0x332   : > { %4676 = vmax.xlane.f32.xlu1 %v4675_v11  ;;  %v9681_v10 = vmul.f32 0.35355338, %v7648_v29  ;;  %v9689_v55 = vmul.f32 0.35355338, %v4471_v61  ;;  %v4669_v43 = vsel %vm4620_vm2, %v9685_v5, -inf  ;;  %v4693_v58 = vsel %vm4620_vm2, %v9693_v19, -inf }
 0x333   : > { %v4678_v13 = vsel %vm4620_vm2, %v9673_v24, -inf  ;;  %v9697_v31 = vmul.f32 0.35355338, %v4560_v16 }
 0x334   : > { %v4702_v50 = vsel %vm4620_vm2, %v9681_v10, -inf  ;;  %v4672_v27 = vsel %vm4620_vm2, %v9689_v55, -inf }
 0x335   : > { %4679 = vmax.xlane.f32.xlu0 %v4678_v13  ;;  %v4696_v9 = vsel %vm4620_vm2, %v9697_v31, -inf }
 0x336   : > { %v7635_v25 = vpop.f32.mrb[20].mxu1  ;;  %4700 = vmax.xlane.f32.xlu1 %v4699_v8 }
 0x337   : > { %v7651_v62 = vpop.f32.mrb[12].mxu0  ;;  %v4484_v28 = vpop.f32.mrb[21].mxu1  ;;  %v9701_v26 = vmul.f32 0.35355338, %v7635_v25  ;;  %v10787_v25 = vld [vmem:[#allocation5_spill] sm:$0xff] }
 0x338   : > { %v4573_v0 = vpop.f32.mrb[13].mxu0  ;;  %v7636_v54 = vpop.f32.mrb[22].mxu1  ;;  %v9709_v59 = vmul.f32 0.35355338, %v7651_v62  ;;  %v9717_v56 = vmul.f32 0.35355338, %v4484_v28 }
 0x339   : > { %v7652_v14 = vpop.f32.mrb[14].mxu0  ;;  %v4487_v47 = vpop.f32.mrb[23].mxu1  ;;  %4703 = vmax.xlane.f32.xlu0 %v4702_v50  ;;  %v9705_v3 = vmul.f32 0.35355338, %v7636_v54  ;;  %v4687_v57 = vsel %vm4620_vm2, %v9701_v26, -inf  ;;  %v10788_v62 = vld [vmem:[#allocation4_spill] sm:$0xff] }
 0x33a   : > { %v4576_v52 = vpop.f32.mrb[15].mxu0  ;;  %4670 = vmax.xlane.f32.xlu1 %v4669_v43  ;;  %v9713_v7 = vmul.f32 0.35355338, %v7652_v14  ;;  %v4711_v38 = vsel %vm4620_vm2, %v9709_v59, -inf  ;;  %v9721_v15 = vmul.f32 0.35355338, %v4487_v47  ;;  %v9741_v28 = vpop.permute.xlu0 %3043 }
 0x33b   : > { %v4690_v44 = vsel %vm4620_vm2, %v9705_v3, -inf  ;;  %v9725_v61 = vmul.f32 0.35355338, %v4573_v0  ;;  %v4681_v46 = vsel %vm4620_vm2, %v9717_v56, -inf  ;;  %v9729_v16 = vmul.f32 0.35355338, %v4576_v52 }
 0x33c   : > { %v4714_v29 = vsel %vm4620_vm2, %v9713_v7, -inf  ;;  %v4684_v11 = vsel %vm4620_vm2, %v9721_v15, -inf }
 0x33d   : > { %4673 = vmax.xlane.f32.xlu0 %v4672_v27  ;;  %v4705_v13 = vsel %vm4620_vm2, %v9725_v61, -inf  ;;  %v4708_v8 = vsel %vm4620_vm2, %v9729_v16, -inf }
 0x33e   : > { %4694 = vmax.xlane.f32.xlu1 %v4693_v58  ;;  %v9743_v0 = vpop.permute.xlu0 %3059 }
 0x341   : > { %4697 = vmax.xlane.f32.xlu0 %v4696_v9 }
 0x342   : > { %4688 = vmax.xlane.f32.xlu1 %v4687_v57  ;;  %v9745_v54 = vpop.permute.xlu0 %3075 }
 0x345   : > { %4691 = vmax.xlane.f32.xlu0 %v4690_v44 }
 0x346   : > { %4712 = vmax.xlane.f32.xlu1 %v4711_v38 }
 0x349   : > { %4715 = vmax.xlane.f32.xlu0 %v4714_v29 }
 0x34a   : > { %4682 = vmax.xlane.f32.xlu1 %v4681_v46 }
 0x34d   : > { %4685 = vmax.xlane.f32.xlu0 %v4684_v11 }
 0x34e   : > { %4706 = vmax.xlane.f32.xlu1 %v4705_v13 }
 0x351   : > { %4709 = vmax.xlane.f32.xlu0 %v4708_v8 }
 0x35f   : > { %3093 = vrot.lane.b32.xlu1 %v10787_v25, %s8084_s26 }
 0x367   : > { %3091 = vrot.lane.b32.xlu0 %v10788_v62, %s8084_s26 }
 0x39d   : > { %v4629_v14 = vpop.xlane.xlu1 %4628 }
 0x39e   : > { %v4623_v47 = vpop.xlane.xlu0 %4622  ;;  %v4719_v50 = vsub.f32 %v9609_v60, %v4629_v14 }
 0x39f   : > { %v4717_v52 = vsub.f32 %v9611_v18, %v4623_v47 }
 0x3a0   : > { %v4753_v43 = vmul.f32 1.442695, %v4719_v50 }
 0x3a1   : > { %v4749_v27 = vmul.f32 1.442695, %v4717_v52  ;;  %v4653_v58 = vpop.xlane.xlu1 %4652 }
 0x3a2   : > { %v4647_v9 = vpop.xlane.xlu0 %4646  ;;  %7902 = vpow2.f32 %v4753_v43  ;;  %v4727_v57 = vsub.f32 %v9613_v37, %v4653_v58 }
 0x3a3   : > { %v4725_v44 = vsub.f32 %v9615_v36, %v4647_v9  ;;  %7904 = vpow2.f32 %v4749_v27 }
 0x3a4   : > { %v4769_v38 = vmul.f32 1.442695, %v4727_v57 }
 0x3a5   : > { %v4765_v29 = vmul.f32 1.442695, %v4725_v44  ;;  %v4626_v46 = vpop.xlane.xlu1 %4625 }
 0x3a6   : > { %v4632_v11 = vpop.xlane.xlu0 %4631  ;;  %7906 = vpow2.f32 %v4769_v38  ;;  %v4718_v13 = vsub.f32 %v9623_v34, %v4626_v46 }
 0x3a7   : > { %v4720_v60 = vsub.f32 %v9621_v4, %v4632_v11  ;;  %7908 = vpow2.f32 %v4765_v29 }
 0x3a8   : > { %v4751_v18 = vmul.f32 1.442695, %v4718_v13 }
 0x3a9   : > { %v4755_v8 = vmul.f32 1.442695, %v4720_v60  ;;  %v4641_v25 = vpop.xlane.xlu1 %4640 }
 0x3aa   : > { %v4656_v62 = vpop.xlane.xlu0 %4655  ;;  %7910 = vpow2.f32 %v4751_v18  ;;  %v4723_v37 = vsub.f32 %v9631_v41, %v4641_v25 }
 0x3ab   : > { %v4728_v36 = vsub.f32 %v9629_v23, %v4656_v62  ;;  %7912 = vpow2.f32 %v4755_v8 }
 0x3ac   : > { %v9755_v14 = vpop.eup %7902  ;;  %v4761_v47 = vmul.f32 1.442695, %v4723_v37 }
 0x3ad   : > { %v4771_v50 = vmul.f32 1.442695, %v4728_v36  ;;  %v9757_v52 = vpop.eup %7904  ;;  %v4665_v34 = vpop.xlane.xlu1 %4664  ;;  %v4819_v4 = vsel %vm4620_vm2, %v9755_v14, 0.0 }
 0x3ae   : > { %v4650_v43 = vpop.xlane.xlu0 %4649  ;;  %7914 = vpow2.f32 %v4761_v47  ;;  %v4731_v27 = vsub.f32 %v9639_v30, %v4665_v34  ;;  %4820 = vadd.xlane.f32.xlu1 %v4819_v4  ;;  %v4813_v23 = vsel %vm4620_vm2, %v9757_v52, 0.0 }
 0x3af   : > { %v4726_v41 = vsub.f32 %v9637_v1, %v4650_v43  ;;  %7916 = vpow2.f32 %v4771_v50  ;;  %4814 = vadd.xlane.f32.xlu0 %v4813_v23 }
 0x3b0   : > { %v9765_v58 = vpop.eup %7906  ;;  %v4777_v9 = vmul.f32 1.442695, %v4731_v27 }
 0x3b1   : > { %v4767_v57 = vmul.f32 1.442695, %v4726_v41  ;;  %v9767_v44 = vpop.eup %7908  ;;  %v4635_v38 = vpop.xlane.xlu1 %4634  ;;  %v4843_v29 = vsel %vm4620_vm2, %v9765_v58, 0.0 }
 0x3b2   : > { %v4644_v46 = vpop.xlane.xlu0 %4643  ;;  %7918 = vpow2.f32 %v4777_v9  ;;  %v4721_v30 = vsub.f32 %v9645_v21, %v4635_v38  ;;  %4844 = vadd.xlane.f32.xlu1 %v4843_v29  ;;  %v4837_v1 = vsel %vm4620_vm2, %v9767_v44, 0.0 }
 0x3b3   : > { %7920 = vpow2.f32 %v4767_v57  ;;  %4838 = vadd.xlane.f32.xlu0 %v4837_v1  ;;  %v4724_v18 = vsub.f32 %v9647_v51, %v4644_v46 }
 0x3b4   : > { %v9774_v11 = vpop.eup %7910  ;;  %v4757_v13 = vmul.f32 1.442695, %v4721_v30 }
 0x3b5   : > { %v9776_v60 = vpop.eup %7912  ;;  %v4659_v8 = vpop.xlane.xlu1 %4658  ;;  %v4816_v25 = vsel %vm4620_vm2, %v9774_v11, 0.0  ;;  %v4763_v34 = vmul.f32 1.442695, %v4724_v18 }
 0x3b6   : > { %v4668_v62 = vpop.xlane.xlu0 %4667  ;;  %7922 = vpow2.f32 %v4757_v13  ;;  %v4729_v21 = vsub.f32 %v9653_v53, %v4659_v8  ;;  %4817 = vadd.xlane.f32.xlu1 %v4816_v25  ;;  %v4822_v37 = vsel %vm4620_vm2, %v9776_v60, 0.0 }
 0x3b7   : > { %4823 = vadd.xlane.f32.xlu0 %v4822_v37  ;;  %v4732_v51 = vsub.f32 %v9655_v40, %v4668_v62 }
 0x3b8   : > { %v9784_v36 = vpop.eup %7914  ;;  %v4773_v47 = vmul.f32 1.442695, %v4729_v21 }
 0x3b9   : > { %v9786_v50 = vpop.eup %7916  ;;  %v4831_v4 = vsel %vm4620_vm2, %v9784_v36, 0.0  ;;  %v4779_v57 = vmul.f32 1.442695, %v4732_v51 }
 0x3ba   : > { %v4638_v43 = vpop.xlane.xlu0 %4637  ;;  %7924 = vpow2.f32 %v4773_v47  ;;  %4832 = vadd.xlane.f32.xlu1 %v4831_v4  ;;  %v4846_v27 = vsel %vm4620_vm2, %v9786_v50, 0.0 }
 0x3bb   : > { %v4722_v53 = vsub.f32 %v9661_v45, %v4638_v43  ;;  %4847 = vadd.xlane.f32.xlu0 %v4846_v27  ;;  %7926 = vpow2.f32 %v4763_v34 }
 0x3bc   : > { %v9794_v41 = vpop.eup %7918 }
 0x3bd   : > { %v4759_v23 = vmul.f32 1.442695, %v4722_v53  ;;  %v9796_v9 = vpop.eup %7920  ;;  %v4855_v40 = vsel %vm4620_vm2, %v9794_v41, 0.0 }
 0x3be   : > { %v4662_v38 = vpop.xlane.xlu0 %4661  ;;  %4856 = vadd.xlane.f32.xlu1 %v4855_v40  ;;  %v4840_v46 = vsel %vm4620_vm2, %v9796_v9, 0.0 }
 0x3bf   : > { %7928 = vpow2.f32 %v4759_v23  ;;  %v4677_v29 = vpop.xlane.xlu1 %4676  ;;  %v4730_v45 = vsub.f32 %v9667_v32, %v4662_v38  ;;  %4841 = vadd.xlane.f32.xlu0 %v4840_v46 }
 0x3c0   : > { %v4735_v30 = vsub.f32 %v9671_v17, %v4677_v29  ;;  %v9804_v1 = vpop.eup %7922  ;;  %7930 = vpow2.f32 %v4779_v57 }
 0x3c1   : > { %v4775_v18 = vmul.f32 1.442695, %v4730_v45  ;;  %v4825_v25 = vsel %vm4620_vm2, %v9804_v1, 0.0 }
 0x3c2   : > { %v4785_v13 = vmul.f32 1.442695, %v4735_v30  ;;  %v4680_v8 = vpop.xlane.xlu0 %4679 }
 0x3c3   : > { %v4701_v62 = vpop.xlane.xlu1 %4700  ;;  %v4736_v21 = vsub.f32 %v9673_v24, %v4680_v8  ;;  %4826 = vadd.xlane.f32.xlu0 %v4825_v25 }
 0x3c4   : > { %7932 = vpow2.f32 %v4785_v13  ;;  %v9809_v32 = vpop.eup %7924  ;;  %v4743_v24 = vsub.f32 %v9677_v2, %v4701_v62 }
 0x3c5   : > { %7934 = vpow2.f32 %v4775_v18  ;;  %v4787_v37 = vmul.f32 1.442695, %v4736_v21  ;;  %v4849_v47 = vsel %vm4620_vm2, %v9809_v32, 0.0  ;;  %v9813_v51 = vpop.eup %7926 }
 0x3c6   : > { %v4704_v17 = vpop.xlane.xlu0 %4703  ;;  %v4834_v38 = vsel %vm4620_vm2, %v9813_v51, 0.0  ;;  %v4801_v30 = vmul.f32 1.442695, %v4743_v24 }
 0x3c7   : > { %v4671_v34 = vpop.xlane.xlu1 %4670  ;;  %4850 = vadd.xlane.f32.xlu0 %v4849_v47  ;;  %7936 = vpow2.f32 %v4787_v37  ;;  %v4744_v2 = vsub.f32 %v9681_v10, %v4704_v17 }
 0x3c8   : > { %v4733_v4 = vsub.f32 %v9685_v5, %v4671_v34 }
 0x3c9   : > { %v9816_v43 = vpop.eup %7928  ;;  %v4803_v21 = vmul.f32 1.442695, %v4744_v2 }
 0x3ca   : > { %v4781_v53 = vmul.f32 1.442695, %v4733_v4  ;;  %v4674_v27 = vpop.xlane.xlu0 %4673  ;;  %v4828_v23 = vsel %vm4620_vm2, %v9816_v43, 0.0  ;;  %v9824_v29 = vpop.eup %7930 }
 0x3cb   : > { %v4695_v57 = vpop.xlane.xlu1 %4694  ;;  %v4734_v40 = vsub.f32 %v9689_v55, %v4674_v27  ;;  %4829 = vadd.xlane.f32.xlu1 %v4828_v23  ;;  %4835 = vadd.xlane.f32.xlu0 %v4834_v38  ;;  %v4858_v25 = vsel %vm4620_vm2, %v9824_v29, 0.0 }
 0x3cc   : > { %7938 = vpow2.f32 %v4781_v53  ;;  %v4741_v5 = vsub.f32 %v9693_v19, %v4695_v57 }
 0x3cd   : > { %v4783_v45 = vmul.f32 1.442695, %v4734_v40 }
 0x3ce   : > { %v9828_v46 = vpop.eup %7932  ;;  %v4797_v13 = vmul.f32 1.442695, %v4741_v5  ;;  %v4698_v18 = vpop.xlane.xlu0 %4697 }
 0x3cf   : > { %7940 = vpow2.f32 %v4783_v45  ;;  %v4689_v55 = vpop.xlane.xlu1 %4688  ;;  %v4742_v8 = vsub.f32 %v9697_v31, %v4698_v18  ;;  %v4867_v62 = vsel %vm4620_vm2, %v9828_v46, 0.0  ;;  %v9835_v19 = vpop.eup %7934  ;;  %4859 = vadd.xlane.f32.xlu0 %v4858_v25  ;;  %v3535_v18 = vcombine.low %v9741_v28, %v9745_v54 }
 0x3d0   : > { %7942 = vpow2.f32 %v4797_v13  ;;  %v4739_v10 = vsub.f32 %v9701_v26, %v4689_v55  ;;  %4868 = vadd.xlane.f32.xlu1 %v4867_v62  ;;  %v4852_v4 = vsel %vm4620_vm2, %v9835_v19, 0.0  ;;  %v3536_v62 = vcombine.high %v9741_v28, %v9745_v54 }
 0x3d1   : > { %v4799_v37 = vmul.f32 1.442695, %v4742_v8  ;;  %7944 = vpow2.f32 %v4801_v30  ;;  %v9841_v24 = vpop.eup %7936  ;;  %v3543_v54 = vrot.slane %v3535_v18, %v8324_v48 }
 0x3d2   : > { %v4793_v17 = vmul.f32 1.442695, %v4739_v10  ;;  %v4692_v47 = vpop.xlane.xlu0 %4691  ;;  %v4870_v40 = vsel %vm4620_vm2, %v9841_v24, 0.0 }
 0x3d3   : > { %7946 = vpow2.f32 %v4799_v37  ;;  %v4713_v31 = vpop.xlane.xlu1 %4712  ;;  %v4740_v34 = vsub.f32 %v9705_v3, %v4692_v47  ;;  %4853 = vadd.xlane.f32.xlu0 %v4852_v4  ;;  %v3604_v37 = vcombine.high %v9301_v42, %v9354_v35 }
 0x3d4   : > { %7948 = vpow2.f32 %v4803_v21  ;;  %v4747_v2 = vsub.f32 %v9709_v59, %v4713_v31  ;;  %v3603_v21 = vcombine.low %v9301_v42, %v9354_v35 }
 0x3d5   : > { %v4795_v53 = vmul.f32 1.442695, %v4740_v34  ;;  %7950 = vpow2.f32 %v4793_v17 }
 0x3d6   : > { %v9843_v26 = vpop.eup %7938  ;;  %v4716_v27 = vpop.xlane.xlu0 %4715  ;;  %v4809_v47 = vmul.f32 1.442695, %v4747_v2 }
 0x3d7   : > { %v4683_v23 = vpop.xlane.xlu1 %4682  ;;  %v4861_v57 = vsel %vm4620_vm2, %v9843_v26, 0.0  ;;  %7952 = vpow2.f32 %v4795_v53  ;;  %4871 = vadd.xlane.f32.xlu0 %v4870_v40  ;;  %v4748_v17 = vsub.f32 %v9713_v7, %v4716_v27  ;;  %v3550_v7 = vrot.slane %v3536_v62, %v8324_v48 }
 0x3d8   : > { %v4737_v3 = vsub.f32 %v9717_v56, %v4683_v23  ;;  %4862 = vadd.xlane.f32.xlu1 %v4861_v57  ;;  %v3611_v57 = vrot.slane %v3603_v21, %v8324_v48  ;;  %v3618_v40 = vrot.slane %v3604_v37, %v8324_v48 }
 0x3d9   : > { %v9850_v38 = vpop.eup %7940 }
 0x3da   : > { %v9852_v5 = vpop.eup %7942  ;;  %v4789_v45 = vmul.f32 1.442695, %v4737_v3  ;;  %v4686_v30 = vpop.xlane.xlu0 %4685  ;;  %v4864_v13 = vsel %vm4620_vm2, %v9850_v38, 0.0  ;;  %v4811_v3 = vmul.f32 1.442695, %v4748_v17 }
 0x3db   : > { %v4707_v55 = vpop.xlane.xlu1 %4706  ;;  %v4885_v56 = vsel %vm4620_vm2, %v9852_v5, 0.0  ;;  %v4738_v8 = vsub.f32 %v9721_v15, %v4686_v30  ;;  %v9862_v25 = vpop.eup %7944  ;;  %4865 = vadd.xlane.f32.xlu0 %v4864_v13 }
 0x3dc   : > { %v4745_v59 = vsub.f32 %v9725_v61, %v4707_v55  ;;  %4886 = vadd.xlane.f32.xlu1 %v4885_v56  ;;  %7954 = vpow2.f32 %v4789_v45  ;;  %v4891_v53 = vsel %vm4620_vm2, %v9862_v25, 0.0 }
 0x3dd   : > { %v9867_v10 = vpop.eup %7946  ;;  %v4791_v15 = vmul.f32 1.442695, %v4738_v8 }
 0x3de   : > { %v4805_v31 = vmul.f32 1.442695, %v4745_v59  ;;  %v4710_v34 = vpop.xlane.xlu0 %4709  ;;  %v4888_v61 = vsel %vm4620_vm2, %v9867_v10, 0.0  ;;  %v9876_v28 = vpop.eup %7948 }
 0x3df   : > { %7956 = vpow2.f32 %v4791_v15  ;;  %v3094_v4 = vpop.permute.xlu1 %3093  ;;  %v4746_v42 = vsub.f32 %v9729_v16, %v4710_v34  ;;  %v9882_v35 = vpop.eup %7950  ;;  %4889 = vadd.xlane.f32.xlu0 %v4888_v61  ;;  %v4894_v18 = vsel %vm4620_vm2, %v9876_v28, 0.0 }
 0x3e0   : > { %7958 = vpow2.f32 %v4805_v31  ;;  %v3619_v27 = vcombine.low %v9326_v49, %v3094_v4  ;;  %v3620_v23 = vcombine.high %v9326_v49, %v3094_v4  ;;  %4892 = vadd.xlane.f32.xlu1 %v4891_v53  ;;  %v4879_v49 = vsel %vm4620_vm2, %v9882_v35, 0.0 }
 0x3e1   : > { %v4807_v2 = vmul.f32 1.442695, %v4746_v42  ;;  %v9889_v45 = vpop.eup %7952  ;;  %7960 = vpow2.f32 %v4809_v47 }
 0x3e2   : > { %v3627_v16 = vrot.slane %v3619_v27, %v8324_v48  ;;  %v3634_v30 = vrot.slane %v3620_v23, %v8324_v48  ;;  %v3092_v13 = vpop.permute.xlu0 %3091  ;;  %v4882_v15 = vsel %vm4620_vm2, %v9889_v45, 0.0 }
 0x3e3   : > { %7962 = vpow2.f32 %v4807_v2  ;;  %v3551_v55 = vcombine.low %v9743_v0, %v3092_v13  ;;  %v3552_v56 = vcombine.high %v9743_v0, %v3092_v13  ;;  %4895 = vadd.xlane.f32.xlu0 %v4894_v18 }
 0x3e4   : > { %v3635_v8 = vcombine.low %v3611_v57, %v3627_v16  ;;  %v3636_v62 = vcombine.high %v3611_v57, %v3627_v16  ;;  %v3651_v59 = vcombine.low %v3618_v40, %v3634_v30  ;;  %v3652_v21 = vcombine.high %v3618_v40, %v3634_v30  ;;  %4880 = vadd.xlane.f32.xlu1 %v4879_v49 }
 0x3e5   : > { %7964 = vpow2.f32 %v4811_v3  ;;  %v3559_v37 = vrot.slane %v3551_v55, %v8324_v48  ;;  %v3566_v17 = vrot.slane %v3552_v56, %v8324_v48 }
 0x3e6   : > { %v3643_v47 = vrot.slane %v3635_v8, %v8363_v6  ;;  %v3650_v31 = vrot.slane %v3636_v62, %v8363_v6  ;;  %v3659_v0 = vrot.slane %v3651_v59, %v8363_v6  ;;  %v3666_v34 = vrot.slane %v3652_v21, %v8363_v6  ;;  %v9907_v27 = vpop.eup %7954 }
 0x3e7   : > { %v3567_v61 = vcombine.low %v3543_v54, %v3559_v37  ;;  %v3568_v4 = vcombine.high %v3543_v54, %v3559_v37  ;;  %v3583_v53 = vcombine.low %v3550_v7, %v3566_v17  ;;  %v3584_v42 = vcombine.high %v3550_v7, %v3566_v17  ;;  %4883 = vadd.xlane.f32.xlu0 %v4882_v15 }
 0x3e8   : > { %v4147_v23 = vcombine.low %v3643_v47, %v3650_v31  ;;  %v7388_v57 = vcombine.high %v3643_v47, %v3650_v31  ;;  %v4163_v40 = vcombine.low %v3659_v0, %v3666_v34  ;;  %v7389_v3 = vcombine.high %v3659_v0, %v3666_v34 }
 0x3e9   : > { %v9909_v2 = vpop.eup %7956  ;;  %v3575_v16 = vrot.slane %v3567_v61, %v8363_v6  ;;  %v3582_v30 = vrot.slane %v3568_v4, %v8363_v6  ;;  %v3591_v13 = vrot.slane %v3583_v53, %v8363_v6  ;;  %v3598_v18 = vrot.slane %v3584_v42, %v8363_v6 }
 0x3ea   : > { %v9915_v54 = vpop.eup %7958  ;;  %v4154_v7 = vrot.slane %v4147_v23, %v8324_v48  ;;  %v4162_v49 = vrot.slane %v7388_v57, %v8324_v48  ;;  %v4170_v55 = vrot.slane %v4163_v40, %v8324_v48  ;;  %v4178_v56 = vrot.slane %v7389_v3, %v8324_v48 }
 0x3eb   : > { %v4079_v8 = vcombine.low %v3575_v16, %v3582_v30  ;;  %v7386_v62 = vcombine.high %v3575_v16, %v3582_v30  ;;  %v4095_v59 = vcombine.low %v3591_v13, %v3598_v18  ;;  %v7387_v21 = vcombine.high %v3591_v13, %v3598_v18  ;;  %v9921_v37 = vpop.eup %7960 }
 0x3ec   : > { %v4873_v17 = vsel %vm4620_vm2, %v9907_v27, 0.0  ;;  %v4897_v15 = vsel %vm4620_vm2, %v9915_v54, 0.0  ;;  %v4876_v47 = vsel %vm4620_vm2, %v9909_v2, 0.0  ;;  %v4179_v42 = vcombine.low %v4154_v7, %v4162_v49 }
 0x3ed   : > { %v9929_v31 = vpop.eup %7962  ;;  %v4086_v0 = vrot.slane %v4079_v8, %v8324_v48  ;;  %v4094_v34 = vrot.slane %v7386_v62, %v8324_v48  ;;  %v4102_v61 = vrot.slane %v4095_v59, %v8324_v48  ;;  %v4110_v4 = vrot.slane %v7387_v21, %v8324_v48  ;;  %4874 = vadd.xlane.f32.xlu1 %v4873_v17 }
 0x3ee   : > { %4877 = vadd.xlane.f32.xlu0 %v4876_v47  ;;  %v4900_v53 = vsel %vm4620_vm2, %v9929_v31, 0.0  ;;  %v4195_v23 = vcombine.low %v4170_v55, %v4178_v56  ;;  %v4180_v57 = vcombine.high %v4154_v7, %v4162_v49  ;;  %v4187_v18 = vrot.slane %v4179_v42, %v8363_v6 }
 0x3ef   : > { %v9937_v40 = vpop.eup %7964  ;;  %v4111_v3 = vcombine.low %v4086_v0, %v4094_v34  ;;  %v4127_v16 = vcombine.low %v4102_v61, %v4110_v4  ;;  %v4112_v30 = vcombine.high %v4086_v0, %v4094_v34  ;;  %v4128_v13 = vcombine.high %v4102_v61, %v4110_v4 }
 0x3f0   : > { %v4203_v8 = vrot.slane %v4195_v23, %v8363_v6  ;;  %v4194_v62 = vrot.slane %v4180_v57, %v8363_v6  ;;  %v4196_v59 = vcombine.high %v4170_v55, %v4178_v56  ;;  %v4903_v55 = vsel %vm4620_vm2, %v9921_v37, 0.0 }
 0x3f1   : > { %4898 = vadd.xlane.f32.xlu1 %v4897_v15  ;;  %v4119_v21 = vrot.slane %v4111_v3, %v8363_v6  ;;  %v4135_v17 = vrot.slane %v4127_v16, %v8363_v6  ;;  %v4126_v7 = vrot.slane %v4112_v30, %v8363_v6  ;;  %v4142_v49 = vrot.slane %v4128_v13, %v8363_v6 }
 0x3f2   : > { %4901 = vadd.xlane.f32.xlu0 %v4900_v53  ;;  %v4211_v47 = vcombine.low %v4187_v18, %v4203_v8  ;;  %v4212_v0 = vcombine.high %v4187_v18, %v4203_v8  ;;  %v4210_v34 = vrot.slane %v4196_v59, %v8363_v6  ;;  %v4906_v57 = vsel %vm4620_vm2, %v9937_v40, 0.0 }
 0x3f3   : > { %v4143_v61 = vcombine.low %v4119_v21, %v4135_v17  ;;  %v4144_v4 = vcombine.high %v4119_v21, %v4135_v17  ;;  %v4145_v42 = vcombine.low %v4126_v7, %v4142_v49  ;;  %v4146_v23 = vcombine.high %v4126_v7, %v4142_v49 }
 0x3f4   : > { %v4213_v56 = vcombine.low %v4194_v62, %v4210_v34  ;;  %v4214_v15 = vcombine.high %v4194_v62, %v4210_v34 }
 0x3f5   : > { %4904 = vadd.xlane.f32.xlu1 %v4903_v55  ;;  %v4218_v3 = vpack.c.bf16 %v4211_v47, %v4143_v61  ;;  %v4222_v16 = vpack.c.bf16 %v4212_v0, %v4144_v4 }
 0x3f6   : > { %4907 = vadd.xlane.f32.xlu0 %v4906_v57  ;;  %v9951_v53 = vpack.c.bf16 %v4213_v56, %v4145_v42  ;;  %v9953_v30 = vpack.c.bf16 %v4214_v15, %v4146_v23 }
 0x3f7   : > { %7659 = vmatprep.subr.bf16.mxu1 %v4218_v3  ;;  %7675 = vmatprep.subr.bf16.mxu0 %v4222_v16 }
 0x3f8   : > { %7660 = vmatpush3.bf16.msra.mxu1 %v4218_v3  ;;  %7676 = vmatpush3.bf16.msra.mxu0 %v4222_v16 }
 0x3f9   : > { %7685 = vmatprep.subr.bf16.mxu1 %v9593_v22  ;;  %7701 = vmatprep.subr.bf16.mxu0 %v9595_v63 }
 0x43b   : > { %v4821_v13 = vpop.xlane.xlu1 %4820 }
 0x43c   : > { %v4815_v18 = vpop.xlane.xlu0 %4814 }
 0x43d   : > { %7966 = vrcp.f32 %v4815_v18 }
 0x43e   : > { %7968 = vrcp.f32 %v4821_v13 }
 0x43f   : > { %v4845_v8 = vpop.xlane.xlu1 %4844 }
 0x440   : > { %v4839_v62 = vpop.xlane.xlu0 %4838 }
 0x443   : > { %v4818_v59 = vpop.xlane.xlu1 %4817 }
 0x444   : > { %7970 = vrcp.f32 %v4818_v59  ;;  %v4824_v21 = vpop.xlane.xlu0 %4823 }
 0x445   : > { %7972 = vrcp.f32 %v4824_v21 }
 0x447   : > { %v7967_v7 = vpop.eup %7966  ;;  %v4833_v0 = vpop.xlane.xlu1 %4832 }
 0x448   : > { %v4848_v17 = vpop.xlane.xlu0 %4847  ;;  %v7969_v47 = vpop.eup %7968  ;;  %v4941_v4 = vmul.f32 %v7967_v7, %v9757_v52 }
 0x449   : > { %7974 = vrcp.f32 %v4848_v17  ;;  %v4943_v23 = vmul.f32 %v7969_v47, %v9755_v14 }
 0x44a   : > { %7976 = vrcp.f32 %v4839_v62 }
 0x44b   : > { %7978 = vrcp.f32 %v4845_v8  ;;  %v4857_v3 = vpop.xlane.xlu1 %4856 }
 0x44c   : > { %v4842_v49 = vpop.xlane.xlu0 %4841 }
 0x44d   : > { %7980 = vrcp.f32 %v4842_v49 }
 0x44e   : > { %v7971_v34 = vpop.eup %7970 }
 0x44f   : > { %v7973_v61 = vpop.eup %7972  ;;  %v4942_v42 = vmul.f32 %v7971_v34, %v9774_v11 }
 0x450   : > { %v4944_v55 = vmul.f32 %v7973_v61, %v9776_v60  ;;  %v4827_v56 = vpop.xlane.xlu0 %4826 }
 0x451   : > { %v4973_v15 = vpack.c.bf16 %v4942_v42, %v4941_v4  ;;  %7982 = vrcp.f32 %v4827_v56 }
 0x452   : > { %v4974_v57 = vpack.c.bf16 %v4944_v55, %v4943_v23  ;;  %7984 = vrcp.f32 %v4833_v0 }
 0x453   : > { %7661 = vmatprep.mubr.msk.bf16.mxu1 %vm4620_vm2, %v4973_v15  ;;  %v7975_v16 = vpop.eup %7974 }
 0x454   : > { %7662 = vmatmul.mubr.msk.bf16.vlgmr.msra.gmra.mrb[24].mxu1 %vm4620_vm2, %v4974_v57  ;;  %v4851_v13 = vpop.xlane.xlu0 %4850  ;;  %v7977_v18 = vpop.eup %7976  ;;  %v4952_v11 = vmul.f32 %v7975_v16, %v9786_v50 }
 0x455   : > { %7686 = vmatpush3.bf16.msra.mxu1 %v9593_v22  ;;  %v7979_v52 = vpop.eup %7978  ;;  %v4949_v62 = vmul.f32 %v7977_v18, %v9767_v44 }
 0x456   : > { %7687 = vmatprep.subr.bf16.mxu1 %v9599_v20  ;;  %v4951_v21 = vmul.f32 %v7979_v52, %v9765_v58 }
 0x457   : > { %v7981_v14 = vpop.eup %7980 }
 0x458   : > { %v4830_v60 = vpop.xlane.xlu1 %4829  ;;  %v4836_v8 = vpop.xlane.xlu0 %4835  ;;  %v4950_v59 = vmul.f32 %v7981_v14, %v9796_v9  ;;  %v4978_v17 = vpack.c.bf16 %v4952_v11, %v4951_v21 }
 0x459   : > { %7986 = vrcp.f32 %v4830_v60  ;;  %7688 = vmatpush3.bf16.msra.mxu1 %v9599_v20 }
 0x45a   : > { %7988 = vrcp.f32 %v4836_v8  ;;  %7689 = vmatprep.subr.bf16.mxu1 %v9605_v33  ;;  %v4977_v22 = vpack.c.bf16 %v4950_v59, %v4949_v62 }
 0x45b   : > { %v7983_v20 = vpop.eup %7982 }
 0x45c   : > { %7677 = vmatprep.mubr.msk.bf16.mxu0 %vm4620_vm2, %v4977_v22  ;;  %v4860_v7 = vpop.xlane.xlu0 %4859  ;;  %v7985_v50 = vpop.eup %7984  ;;  %v4945_v49 = vmul.f32 %v7983_v20, %v9804_v1 }
 0x45d   : > { %7690 = vmatpush3.bf16.msra.mxu1 %v9605_v33  ;;  %7678 = vmatmul.mubr.msk.bf16.vlgmr.msra.gmra.mrb[16].mxu0 %vm4620_vm2, %v4978_v17  ;;  %7990 = vrcp.f32 %v4860_v7  ;;  %v4869_v58 = vpop.xlane.xlu1 %4868  ;;  %v4947_v34 = vmul.f32 %v7985_v50, %v9784_v36 }
 0x45e   : > { %7691 = vmatprep.subr.bf16.mxu1 %v9951_v53  ;;  %7702 = vmatpush3.bf16.msra.mxu0 %v9595_v63  ;;  %7992 = vrcp.f32 %v4851_v13 }
 0x45f   : > { %7703 = vmatprep.subr.bf16.mxu0 %v9603_v12  ;;  %7994 = vrcp.f32 %v4857_v3 }
 0x460   : > { %v4854_v44 = vpop.xlane.xlu0 %4853 }
 0x461   : > { %7692 = vmatpush3.bf16.msra.mxu1 %v9951_v53  ;;  %7996 = vrcp.f32 %v4854_v44 }
 0x462   : > { %7704 = vmatpush3.bf16.msra.mxu0 %v9603_v12 }
 0x463   : > { %v7987_v9 = vpop.eup %7986  ;;  %7705 = vmatprep.subr.bf16.mxu0 %v9607_v39 }
 0x464   : > { %v7989_v33 = vpop.eup %7988  ;;  %v4946_v63 = vmul.f32 %v7987_v9, %v9816_v43  ;;  %v4872_v0 = vpop.xlane.xlu0 %4871 }
 0x465   : > { %v4863_v47 = vpop.xlane.xlu1 %4862  ;;  %v4948_v61 = vmul.f32 %v7989_v33, %v9813_v51  ;;  %7998 = vrcp.f32 %v4872_v0 }
 0x466   : > { %v4975_v4 = vpack.c.bf16 %v4946_v63, %v4945_v49  ;;  %7706 = vmatpush3.bf16.msra.mxu0 %v9607_v39  ;;  %8000 = vrcp.f32 %v4863_v47 }
 0x467   : > { %v4976_v53 = vpack.c.bf16 %v4948_v61, %v4947_v34  ;;  %7707 = vmatprep.subr.bf16.mxu0 %v9953_v30  ;;  %v7991_v12 = vpop.eup %7990  ;;  %8002 = vrcp.f32 %v4869_v58 }
 0x468   : > { %7665 = vmatprep.mubr.msk.bf16.mxu1 %vm4620_vm2, %v4975_v4  ;;  %v4866_v42 = vpop.xlane.xlu0 %4865  ;;  %v7993_v43 = vpop.eup %7992  ;;  %v4956_v39 = vmul.f32 %v7991_v12, %v9824_v29 }
 0x469   : > { %v4887_v1 = vpop.xlane.xlu1 %4886  ;;  %7666 = vmatmul.mubr.msk.bf16.gmra.mrb[28].mxu1 %vm4620_vm2, %v4976_v53  ;;  %v7995_v36 = vpop.eup %7994  ;;  %8004 = vrcp.f32 %v4866_v42  ;;  %v4953_v55 = vmul.f32 %v7993_v43, %v9809_v32 }
 0x46a   : > { %7708 = vmatpush3.bf16.msra.mxu0 %v9953_v30  ;;  %8006 = vrcp.f32 %v4887_v1  ;;  %v4955_v57 = vmul.f32 %v7995_v36, %v9794_v41 }
 0x46b   : > { %v7997_v51 = vpop.eup %7996 }
 0x46c   : > { %v4890_v23 = vpop.xlane.xlu0 %4889  ;;  %v4954_v56 = vmul.f32 %v7997_v51, %v9835_v19  ;;  %v4980_v16 = vpack.c.bf16 %v4956_v39, %v4955_v57 }
 0x46d   : > { %v4893_v15 = vpop.xlane.xlu1 %4892  ;;  %8008 = vrcp.f32 %v4890_v23 }
 0x46e   : > { %v4979_v3 = vpack.c.bf16 %v4954_v56, %v4953_v55  ;;  %8010 = vrcp.f32 %v4893_v15 }
 0x46f   : > { %v7999_v13 = vpop.eup %7998 }
 0x470   : > { %7681 = vmatprep.mubr.msk.bf16.mxu0 %vm4620_vm2, %v4979_v3  ;;  %v4896_v30 = vpop.xlane.xlu0 %4895  ;;  %v8001_v29 = vpop.eup %8000  ;;  %v4960_v19 = vmul.f32 %v7999_v13, %v9841_v24 }
 0x471   : > { %7682 = vmatmul.mubr.msk.bf16.gmra.mrb[20].mxu0 %vm4620_vm2, %v4980_v16  ;;  %8012 = vrcp.f32 %v4896_v30  ;;  %v8003_v18 = vpop.eup %8002  ;;  %v4881_v52 = vpop.xlane.xlu1 %4880  ;;  %v4957_v41 = vmul.f32 %v8001_v29, %v9843_v26 }
 0x472   : > { %v4959_v8 = vmul.f32 %v8003_v18, %v9828_v46 }
 0x473   : > { %v8005_v32 = vpop.eup %8004 }
 0x474   : > { %v4884_v14 = vpop.xlane.xlu0 %4883  ;;  %v4958_v11 = vmul.f32 %v8005_v32, %v9850_v38  ;;  %v8007_v60 = vpop.eup %8006  ;;  %v4982_v21 = vpack.c.bf16 %v4960_v19, %v4959_v8 }
 0x475   : > { %8014 = vrcp.f32 %v4884_v14  ;;  %v4965_v17 = vmul.f32 %v8007_v60, %v9852_v5 }
 0x476   : > { %v4981_v62 = vpack.c.bf16 %v4958_v11, %v4957_v41  ;;  %8016 = vrcp.f32 %v4881_v52 }
 0x477   : > { %v8009_v59 = vpop.eup %8008 }
 0x478   : > { %7693 = vmatprep.mubr.msk.bf16.mxu1 %vm4620_vm2, %v4981_v62  ;;  %v4966_v24 = vmul.f32 %v8009_v59, %v9867_v10  ;;  %v8011_v7 = vpop.eup %8010 }
 0x479   : > { %7694 = vmatmul.mubr.msk.bf16.vlgmr.msra.gmra.mrb[32].mxu1 %vm4620_vm2, %v4982_v21  ;;  %v4967_v20 = vmul.f32 %v8011_v7, %v9862_v25 }
 0x47a   : > { %v4875_v22 = vpop.xlane.xlu1 %4874  ;;  %v4985_v38 = vpack.c.bf16 %v4966_v24, %v4965_v17 }
 0x47b   : > { %8018 = vrcp.f32 %v4875_v22  ;;  %v4878_v26 = vpop.xlane.xlu0 %4877  ;;  %v8013_v46 = vpop.eup %8012 }
 0x47c   : > { %8020 = vrcp.f32 %v4878_v26  ;;  %v4968_v58 = vmul.f32 %v8013_v46, %v9876_v28  ;;  %7709 = vmatprep.mubr.msk.bf16.mxu0 %vm4620_vm2, %v4985_v38 }
 0x47e   : > { %v4899_v44 = vpop.xlane.xlu1 %4898  ;;  %v4986_v5 = vpack.c.bf16 %v4968_v58, %v4967_v20 }
 0x47f   : > { %8022 = vrcp.f32 %v4899_v44  ;;  %v4902_v50 = vpop.xlane.xlu0 %4901  ;;  %v8015_v9 = vpop.eup %8014 }
 0x480   : > { %8024 = vrcp.f32 %v4902_v50  ;;  %7710 = vmatmul.mubr.msk.bf16.vlgmr.msra.gmra.mrb[24].mxu0 %vm4620_vm2, %v4986_v5  ;;  %v8017_v49 = vpop.eup %8016  ;;  %v4964_v25 = vmul.f32 %v8015_v9, %v9889_v45 }
 0x481   : > { %v4963_v34 = vmul.f32 %v8017_v49, %v9882_v35 }
 0x482   : > { %v4905_v10 = vpop.xlane.xlu1 %4904 }
 0x483   : > { %8026 = vrcp.f32 %v4905_v10  ;;  %v4908_v33 = vpop.xlane.xlu0 %4907  ;;  %v4984_v12 = vpack.c.bf16 %v4964_v25, %v4963_v34 }
 0x484   : > { %8028 = vrcp.f32 %v4908_v33 }
 0x485   : > { %v8019_v63 = vpop.eup %8018 }
 0x486   : > { %v8021_v47 = vpop.eup %8020  ;;  %v4961_v28 = vmul.f32 %v8019_v63, %v9907_v27 }
 0x487   : > { %v4962_v0 = vmul.f32 %v8021_v47, %v9909_v2 }
 0x489   : > { %v8023_v61 = vpop.eup %8022  ;;  %v4983_v4 = vpack.c.bf16 %v4962_v0, %v4961_v28 }
 0x48a   : > { %v8025_v53 = vpop.eup %8024  ;;  %v4969_v1 = vmul.f32 %v8023_v61, %v9915_v54 }
 0x48b   : > { %7697 = vmatprep.mubr.msk.bf16.mxu1 %vm4620_vm2, %v4983_v4  ;;  %v4970_v42 = vmul.f32 %v8025_v53, %v9929_v31 }
 0x48c   : > { %7698 = vmatmul.mubr.msk.bf16.gmra.mrb[36].mxu1 %vm4620_vm2, %v4984_v12 }
 0x48d   : > { %v8027_v43 = vpop.eup %8026  ;;  %v4987_v45 = vpack.c.bf16 %v4970_v42, %v4969_v1 }
 0x48e   : > { %v8029_v36 = vpop.eup %8028  ;;  %v4971_v27 = vmul.f32 %v8027_v43, %v9921_v37 }
 0x48f   : > { %7713 = vmatprep.mubr.msk.bf16.mxu0 %vm4620_vm2, %v4987_v45  ;;  %v4972_v35 = vmul.f32 %v8029_v36, %v9937_v40 }
 0x491   : > { %v4988_v2 = vpack.c.bf16 %v4972_v35, %v4971_v27 }
 0x493   : > { %7714 = vmatmul.mubr.msk.bf16.gmra.mrb[28].mxu0 %vm4620_vm2, %v4988_v2 }
 0x527   : > { %v7663_v51 = vpop.f32.mrb[24].mxu1 }
 0x528   : > { %v5035_v39 = vpop.f32.mrb[25].mxu1 }
 0x529   : > { %v7664_v23 = vpop.f32.mrb[26].mxu1 }
 0x52a   : > { %v5038_v54 = vpop.f32.mrb[27].mxu1 }
 0x530   : > { %v7679_v55 = vpop.f32.mrb[16].mxu0 }
 0x531   : > { %v5112_v31 = vpop.f32.mrb[17].mxu0 }
 0x532   : > { %v10019_v56 = vpop.f32.mrb[18].mxu0 }
 0x533   : > { %v10021_v15 = vpop.f32.mrb[19].mxu0 }
 0x53c   : > { %v10023_v57 = vpop.f32.mrb[28].mxu1 }
 0x53d   : > { %v10025_v3 = vpop.f32.mrb[29].mxu1 }
 0x53e   : > { %v10027_v37 = vpop.f32.mrb[30].mxu1 }
 0x53f   : > { %v10029_v40 = vpop.f32.mrb[31].mxu1 }
 0x544   : > { %v10031_v16 = vpop.f32.mrb[20].mxu0 }
 0x545   : > { %v10033_v13 = vpop.f32.mrb[21].mxu0 }
 0x546   : > { %v10035_v30 = vpop.f32.mrb[22].mxu0 }
 0x547   : > { %v10037_v29 = vpop.f32.mrb[23].mxu0 }
 0x54c   : > { %v7695_v18 = vpop.f32.mrb[32].mxu1 }
 0x54d   : > { %v5433_v52 = vcombine.low %v7663_v51, %v7695_v18  ;;  %v5434_v32 = vcombine.high %v7663_v51, %v7695_v18  ;;  %v5189_v19 = vpop.f32.mrb[33].mxu1 }
 0x54e   : > { %v5297_v14 = vcombine.low %v5035_v39, %v5189_v19  ;;  %v5298_v41 = vcombine.high %v5035_v39, %v5189_v19  ;;  %v7696_v11 = vpop.f32.mrb[34].mxu1 }
 0x54f   : > { %v5501_v60 = vcombine.low %v7664_v23, %v7696_v11  ;;  %v5502_v8 = vcombine.high %v7664_v23, %v7696_v11  ;;  %v5192_v62 = vpop.f32.mrb[35].mxu1  ;;  %v5441_v22 = vrot.slane %v5433_v52, %v8324_v48  ;;  %v5448_v17 = vrot.slane %v5434_v32, %v8324_v48 }
 0x550   : > { %v5365_v59 = vcombine.low %v5038_v54, %v5192_v62  ;;  %v5366_v21 = vcombine.high %v5038_v54, %v5192_v62  ;;  %v5305_v24 = vrot.slane %v5297_v14, %v8324_v48  ;;  %v5312_v7 = vrot.slane %v5298_v41, %v8324_v48 }
 0x551   : > { %v10044_v38 = vrot.slane %v5501_v60, %v8324_v48  ;;  %v10047_v46 = vrot.slane %v5502_v8, %v8324_v48 }
 0x552   : > { %v10050_v50 = vrot.slane %v5365_v59, %v8324_v48  ;;  %v10053_v5 = vrot.slane %v5366_v21, %v8324_v48 }
 0x553   : > { %v7711_v26 = vpop.f32.mrb[24].mxu0 }
 0x554   : > { %v5449_v20 = vcombine.low %v7679_v55, %v7711_v26  ;;  %v5450_v58 = vcombine.high %v7679_v55, %v7711_v26  ;;  %v5266_v44 = vpop.f32.mrb[25].mxu0 }
 0x555   : > { %v5313_v10 = vcombine.low %v5112_v31, %v5266_v44  ;;  %v5314_v9 = vcombine.high %v5112_v31, %v5266_v44  ;;  %v7712_v33 = vpop.f32.mrb[26].mxu0 }
 0x556   : > { %v5457_v49 = vrot.slane %v5449_v20, %v8324_v48  ;;  %v5464_v63 = vrot.slane %v5450_v58, %v8324_v48  ;;  %v5517_v47 = vcombine.low %v10019_v56, %v7712_v33  ;;  %v5518_v25 = vcombine.high %v10019_v56, %v7712_v33  ;;  %v5269_v28 = vpop.f32.mrb[27].mxu0 }
 0x557   : > { %v5321_v0 = vrot.slane %v5313_v10, %v8324_v48  ;;  %v5328_v34 = vrot.slane %v5314_v9, %v8324_v48  ;;  %v5381_v61 = vcombine.low %v10021_v15, %v5269_v28  ;;  %v5382_v4 = vcombine.high %v10021_v15, %v5269_v28 }
 0x558   : > { %v5465_v53 = vcombine.low %v5441_v22, %v5457_v49  ;;  %v5466_v12 = vcombine.high %v5441_v22, %v5457_v49  ;;  %v5481_v1 = vcombine.low %v5448_v17, %v5464_v63  ;;  %v5482_v42 = vcombine.high %v5448_v17, %v5464_v63 }
 0x559   : > { %v5329_v43 = vcombine.low %v5305_v24, %v5321_v0  ;;  %v5330_v45 = vcombine.high %v5305_v24, %v5321_v0  ;;  %v5345_v36 = vcombine.low %v5312_v7, %v5328_v34  ;;  %v5346_v27 = vcombine.high %v5312_v7, %v5328_v34 }
 0x55a   : > { %v5473_v35 = vrot.slane %v5465_v53, %v8363_v6  ;;  %v5480_v2 = vrot.slane %v5466_v12, %v8363_v6  ;;  %v5489_v51 = vrot.slane %v5481_v1, %v8363_v6  ;;  %v5496_v39 = vrot.slane %v5482_v42, %v8363_v6 }
 0x55b   : > { %v5337_v23 = vrot.slane %v5329_v43, %v8363_v6  ;;  %v5344_v54 = vrot.slane %v5330_v45, %v8363_v6  ;;  %v5353_v55 = vrot.slane %v5345_v36, %v8363_v6  ;;  %v5360_v31 = vrot.slane %v5346_v27, %v8363_v6 }
 0x55c   : > { %v5977_v56 = vcombine.low %v5473_v35, %v5480_v2  ;;  %v7426_v15 = vcombine.high %v5473_v35, %v5480_v2  ;;  %v5993_v18 = vcombine.low %v5489_v51, %v5496_v39  ;;  %v7427_v52 = vcombine.high %v5489_v51, %v5496_v39 }
 0x55d   : > { %v5841_v32 = vcombine.low %v5337_v23, %v5344_v54  ;;  %v7422_v19 = vcombine.high %v5337_v23, %v5344_v54  ;;  %v5857_v14 = vcombine.low %v5353_v55, %v5360_v31  ;;  %v7423_v41 = vcombine.high %v5353_v55, %v5360_v31 }
 0x55e   : > { %v10072_v60 = vrot.slane %v5977_v56, %v8324_v48  ;;  %v10075_v8 = vrot.slane %v7426_v15, %v8324_v48  ;;  %v10078_v62 = vrot.slane %v5993_v18, %v8324_v48  ;;  %v10081_v59 = vrot.slane %v7427_v52, %v8324_v48 }
 0x55f   : > { %v7699_v11 = vpop.f32.mrb[36].mxu1  ;;  %v10084_v22 = vrot.slane %v5841_v32, %v8324_v48  ;;  %v10087_v17 = vrot.slane %v7422_v19, %v8324_v48  ;;  %v10090_v24 = vrot.slane %v5857_v14, %v8324_v48  ;;  %v10093_v7 = vrot.slane %v7423_v41, %v8324_v48 }
 0x560   : > { %v5205_v21 = vpop.f32.mrb[37].mxu1  ;;  %v5525_v20 = vrot.slane %v5517_v47, %v8324_v48  ;;  %v5532_v58 = vrot.slane %v5518_v25, %v8324_v48  ;;  %v5389_v44 = vrot.slane %v5381_v61, %v8324_v48  ;;  %v5396_v10 = vrot.slane %v5382_v4, %v8324_v48 }
 0x561   : > { %v7700_v26 = vpop.f32.mrb[38].mxu1  ;;  %v5705_v33 = vcombine.low %v10023_v57, %v7699_v11  ;;  %v5706_v49 = vcombine.high %v10023_v57, %v7699_v11  ;;  %v5569_v63 = vcombine.low %v10025_v3, %v5205_v21  ;;  %v5570_v28 = vcombine.high %v10025_v3, %v5205_v21 }
 0x562   : > { %v5208_v9 = vpop.f32.mrb[39].mxu1  ;;  %v5533_v0 = vcombine.low %v10044_v38, %v5525_v20  ;;  %v5534_v34 = vcombine.high %v10044_v38, %v5525_v20  ;;  %v5549_v47 = vcombine.low %v10047_v46, %v5532_v58  ;;  %v5550_v25 = vcombine.high %v10047_v46, %v5532_v58 }
 0x563   : > { %v5397_v61 = vcombine.low %v10050_v50, %v5389_v44  ;;  %v5398_v4 = vcombine.high %v10050_v50, %v5389_v44  ;;  %v5413_v53 = vcombine.low %v10053_v5, %v5396_v10  ;;  %v5414_v57 = vcombine.high %v10053_v5, %v5396_v10 }
 0x564   : > { %v5541_v12 = vrot.slane %v5533_v0, %v8363_v6  ;;  %v5548_v3 = vrot.slane %v5534_v34, %v8363_v6  ;;  %v5557_v1 = vrot.slane %v5549_v47, %v8363_v6  ;;  %v5564_v38 = vrot.slane %v5550_v25, %v8363_v6 }
 0x565   : > { %v5405_v43 = vrot.slane %v5397_v61, %v8363_v6  ;;  %v5412_v46 = vrot.slane %v5398_v4, %v8363_v6  ;;  %v5421_v45 = vrot.slane %v5413_v53, %v8363_v6  ;;  %v5428_v50 = vrot.slane %v5414_v57, %v8363_v6 }
 0x566   : > { %v7715_v42 = vpop.f32.mrb[28].mxu0  ;;  %v6045_v27 = vcombine.low %v5541_v12, %v5548_v3  ;;  %v7428_v5 = vcombine.high %v5541_v12, %v5548_v3  ;;  %v6061_v35 = vcombine.low %v5557_v1, %v5564_v38  ;;  %v7429_v2 = vcombine.high %v5557_v1, %v5564_v38 }
 0x567   : > { %v5282_v36 = vpop.f32.mrb[29].mxu0  ;;  %v5909_v39 = vcombine.low %v5405_v43, %v5412_v46  ;;  %v7424_v23 = vcombine.high %v5405_v43, %v5412_v46  ;;  %v5925_v54 = vcombine.low %v5421_v45, %v5428_v50  ;;  %v7425_v55 = vcombine.high %v5421_v45, %v5428_v50 }
 0x568   : > { %v10119_v51 = vpop.f32.mrb[30].mxu0  ;;  %v10124_v56 = vrot.slane %v6045_v27, %v8324_v48  ;;  %v10127_v15 = vrot.slane %v7428_v5, %v8324_v48  ;;  %v10130_v18 = vrot.slane %v6061_v35, %v8324_v48  ;;  %v10133_v52 = vrot.slane %v7429_v2, %v8324_v48 }
 0x569   : > { %v10121_v31 = vpop.f32.mrb[31].mxu0  ;;  %v10136_v32 = vrot.slane %v5909_v39, %v8324_v48  ;;  %v10139_v19 = vrot.slane %v7424_v23, %v8324_v48  ;;  %v10142_v14 = vrot.slane %v5925_v54, %v8324_v48  ;;  %v10145_v41 = vrot.slane %v7425_v55, %v8324_v48 }
 0x56a   : > { %v5713_v11 = vrot.slane %v5705_v33, %v8324_v48  ;;  %v5720_v21 = vrot.slane %v5706_v49, %v8324_v48  ;;  %v5577_v20 = vrot.slane %v5569_v63, %v8324_v48  ;;  %v5584_v58 = vrot.slane %v5570_v28, %v8324_v48 }
 0x56b   : > { %v5773_v44 = vcombine.low %v10027_v37, %v7700_v26  ;;  %v5774_v10 = vcombine.high %v10027_v37, %v7700_v26  ;;  %v5637_v0 = vcombine.low %v10029_v40, %v5208_v9  ;;  %v5638_v34 = vcombine.high %v10029_v40, %v5208_v9 }
 0x56c   : > { %v5721_v47 = vcombine.low %v10031_v16, %v7715_v42  ;;  %v5722_v25 = vcombine.high %v10031_v16, %v7715_v42  ;;  %v5585_v33 = vcombine.low %v10033_v13, %v5282_v36  ;;  %v5586_v49 = vcombine.high %v10033_v13, %v5282_v36 }
 0x56d   : > { %v5781_v63 = vrot.slane %v5773_v44, %v8324_v48  ;;  %v10161_v28 = vrot.slane %v5774_v10, %v8324_v48  ;;  %v10164_v61 = vrot.slane %v5637_v0, %v8324_v48  ;;  %v10167_v37 = vrot.slane %v5638_v34, %v8324_v48 }
 0x56e   : > { %v5729_v40 = vrot.slane %v5721_v47, %v8324_v48  ;;  %v5736_v26 = vrot.slane %v5722_v25, %v8324_v48  ;;  %v5593_v16 = vrot.slane %v5585_v33, %v8324_v48  ;;  %v5600_v9 = vrot.slane %v5586_v49, %v8324_v48 }
 0x56f   : > { %v5789_v13 = vcombine.low %v10035_v30, %v10119_v51  ;;  %v5790_v4 = vcombine.high %v10035_v30, %v10119_v51  ;;  %v5653_v53 = vcombine.low %v10037_v29, %v10121_v31  ;;  %v5654_v57 = vcombine.high %v10037_v29, %v10121_v31 }
 0x570   : > { %v5737_v12 = vcombine.low %v5713_v11, %v5729_v40  ;;  %v5738_v3 = vcombine.high %v5713_v11, %v5729_v40  ;;  %v5753_v1 = vcombine.low %v5720_v21, %v5736_v26  ;;  %v5754_v38 = vcombine.high %v5720_v21, %v5736_v26 }
 0x571   : > { %v5601_v42 = vcombine.low %v5577_v20, %v5593_v16  ;;  %v5602_v43 = vcombine.high %v5577_v20, %v5593_v16  ;;  %v5617_v46 = vcombine.low %v5584_v58, %v5600_v9  ;;  %v5618_v45 = vcombine.high %v5584_v58, %v5600_v9 }
 0x572   : > { %v5745_v50 = vrot.slane %v5737_v12, %v8363_v6  ;;  %v5752_v36 = vrot.slane %v5738_v3, %v8363_v6  ;;  %v5761_v30 = vrot.slane %v5753_v1, %v8363_v6  ;;  %v5768_v27 = vrot.slane %v5754_v38, %v8363_v6 }
 0x573   : > { %v5609_v5 = vrot.slane %v5601_v42, %v8363_v6  ;;  %v5616_v29 = vrot.slane %v5602_v43, %v8363_v6  ;;  %v5625_v35 = vrot.slane %v5617_v46, %v8363_v6  ;;  %v5632_v2 = vrot.slane %v5618_v45, %v8363_v6 }
 0x574   : > { %v6249_v51 = vcombine.low %v5745_v50, %v5752_v36  ;;  %v7434_v39 = vcombine.high %v5745_v50, %v5752_v36  ;;  %v6265_v23 = vcombine.low %v5761_v30, %v5768_v27  ;;  %v7435_v54 = vcombine.high %v5761_v30, %v5768_v27 }
 0x575   : > { %v6113_v55 = vcombine.low %v5609_v5, %v5616_v29  ;;  %v7430_v31 = vcombine.high %v5609_v5, %v5616_v29  ;;  %v6129_v11 = vcombine.low %v5625_v35, %v5632_v2  ;;  %v7431_v21 = vcombine.high %v5625_v35, %v5632_v2 }
 0x576   : > { %v10190_v20 = vrot.slane %v6249_v51, %v8324_v48  ;;  %v10193_v58 = vrot.slane %v7434_v39, %v8324_v48  ;;  %v10196_v44 = vrot.slane %v6265_v23, %v8324_v48  ;;  %v10199_v10 = vrot.slane %v7435_v54, %v8324_v48 }
 0x577   : > { %v10202_v0 = vrot.slane %v6113_v55, %v8324_v48  ;;  %v10205_v34 = vrot.slane %v7430_v31, %v8324_v48  ;;  %v10208_v47 = vrot.slane %v6129_v11, %v8324_v48  ;;  %v10211_v25 = vrot.slane %v7431_v21, %v8324_v48  ;;  %v7894_v11 = vld [vmem:[%s10722_s3] sm:$0xff]  }
 0x578   : > { %v5797_v33 = vrot.slane %v5789_v13, %v8324_v48  ;;  %v5804_v49 = vrot.slane %v5790_v4, %v8324_v48  ;;  %v5661_v40 = vrot.slane %v5653_v53, %v8324_v48  ;;  %v5668_v26 = vrot.slane %v5654_v57, %v8324_v48  ;;  %7717 = vmatprep.subr.bf16.mxu1 %v7894_v11 }
 0x579   : > { %v6010_v16 = vcombine.high %v10072_v60, %v10075_v8  ;;  %v6026_v9 = vcombine.high %v10078_v62, %v10081_v59  ;;  %v6078_v12 = vcombine.high %v10124_v56, %v10127_v15  ;;  %v6094_v3 = vcombine.high %v10130_v18, %v10133_v52  ;;  %7718 = vmatpush3.bf16.msra.mxu1 %v7894_v11 }
 0x57a   : > { %v5805_v1 = vcombine.low %v5781_v63, %v5797_v33  ;;  %v5806_v13 = vcombine.high %v5781_v63, %v5797_v33  ;;  %v5821_v4 = vcombine.low %v10161_v28, %v5804_v49  ;;  %v5822_v53 = vcombine.high %v10161_v28, %v5804_v49 }
 0x57b   : > { %v5669_v57 = vcombine.low %v10164_v61, %v5661_v40  ;;  %v5670_v38 = vcombine.high %v10164_v61, %v5661_v40  ;;  %v5685_v42 = vcombine.low %v10167_v37, %v5668_v26  ;;  %v5686_v43 = vcombine.high %v10167_v37, %v5668_v26 }
 0x57c   : > { %v5813_v46 = vrot.slane %v5805_v1, %v8363_v6  ;;  %v5820_v45 = vrot.slane %v5806_v13, %v8363_v6  ;;  %v5829_v50 = vrot.slane %v5821_v4, %v8363_v6  ;;  %v5836_v63 = vrot.slane %v5822_v53, %v8363_v6 }
 0x57d   : > { %v5677_v36 = vrot.slane %v5669_v57, %v8363_v6  ;;  %v5684_v28 = vrot.slane %v5670_v38, %v8363_v6  ;;  %v5693_v30 = vrot.slane %v5685_v42, %v8363_v6  ;;  %v5700_v61 = vrot.slane %v5686_v43, %v8363_v6 }
 0x57e   : > { %v6317_v27 = vcombine.low %v5813_v46, %v5820_v45  ;;  %v7436_v5 = vcombine.high %v5813_v46, %v5820_v45  ;;  %v6333_v29 = vcombine.low %v5829_v50, %v5836_v63  ;;  %v7437_v37 = vcombine.high %v5829_v50, %v5836_v63 }
 0x57f   : > { %v6181_v35 = vcombine.low %v5677_v36, %v5684_v28  ;;  %v7432_v2 = vcombine.high %v5677_v36, %v5684_v28  ;;  %v6197_v51 = vcombine.low %v5693_v30, %v5700_v61  ;;  %v7433_v39 = vcombine.high %v5693_v30, %v5700_v61 }
 0x580   : > { %v10240_v23 = vrot.slane %v6317_v27, %v8324_v48  ;;  %v10243_v54 = vrot.slane %v7436_v5, %v8324_v48  ;;  %v10246_v55 = vrot.slane %v6333_v29, %v8324_v48  ;;  %v10249_v31 = vrot.slane %v7437_v37, %v8324_v48 }
 0x581   : > { %v10255_v21 = vrot.slane %v6181_v35, %v8324_v48  ;;  %v10258_v33 = vrot.slane %v7432_v2, %v8324_v48  ;;  %v10261_v49 = vrot.slane %v6197_v51, %v8324_v48  ;;  %v10264_v40 = vrot.slane %v7433_v39, %v8324_v48 }
 0x582   : > { %v6024_v26 = vrot.slane %v6010_v16, %v8363_v6  ;;  %v6040_v1 = vrot.slane %v6026_v9, %v8363_v6  ;;  %v6092_v13 = vrot.slane %v6078_v12, %v8363_v6  ;;  %v6108_v4 = vrot.slane %v6094_v3, %v8363_v6 }
 0x583   : > { %v6009_v53 = vcombine.low %v10072_v60, %v10075_v8  ;;  %v6025_v57 = vcombine.low %v10078_v62, %v10081_v59  ;;  %v6077_v38 = vcombine.low %v10124_v56, %v10127_v15  ;;  %v6093_v48 = vcombine.low %v10130_v18, %v10133_v52 }
 0x584   : > { %v6043_v16 = vcombine.low %v6024_v26, %v6040_v1  ;;  %v6111_v9 = vcombine.low %v6092_v13, %v6108_v4  ;;  %v5874_v12 = vcombine.high %v10084_v22, %v10087_v17  ;;  %v5890_v3 = vcombine.high %v10090_v24, %v10093_v7 }
 0x585   : > { %v10283_v60 = vrot.slane %v6009_v53, %v8363_v6  ;;  %v10286_v8 = vrot.slane %v6025_v57, %v8363_v6  ;;  %v10289_v62 = vrot.slane %v6077_v38, %v8363_v6  ;;  %v10292_v59 = vrot.slane %v6093_v48, %v8363_v6 }
 0x586   : > { %v7835_v56 = vpack.i.bf16 %v6111_v9, %v6043_v16  ;;  %v5888_v15 = vrot.slane %v5874_v12, %v8363_v6  ;;  %v5904_v18 = vrot.slane %v5890_v3, %v8363_v6  ;;  %v5942_v52 = vcombine.high %v10136_v32, %v10139_v19 }
 0x587   : > { %v6042_v42 = vcombine.high %v10283_v60, %v10286_v8  ;;  %v6110_v43 = vcombine.high %v10289_v62, %v10292_v59  ;;  %v5958_v46 = vcombine.high %v10142_v14, %v10145_v41  ;;  %v5873_v45 = vcombine.low %v10084_v22, %v10087_v17 }
 0x588   : > { %7836 = vrot.lane.b32.xlu1 %v7835_v56, %s8085_s29  ;;  %v5908_v50 = vcombine.high %v5888_v15, %v5904_v18  ;;  %v5956_v63 = vrot.slane %v5942_v52, %v8363_v6  ;;  %v5889_v36 = vcombine.low %v10090_v24, %v10093_v7  ;;  %v5941_v28 = vcombine.low %v10136_v32, %v10139_v19  ;;  %v7895_v7 = vld [vmem:[%s10722_s3 + $0x8] sm:$0xff]  }
 0x589   : > { %v7830_v30 = vpack.i.bf16 %v6110_v43, %v6042_v42  ;;  %v5972_v61 = vrot.slane %v5958_v46, %v8363_v6  ;;  %v10314_v27 = vrot.slane %v5873_v45, %v8363_v6  ;;  %v5957_v22 = vcombine.low %v10142_v14, %v10145_v41  ;;  %7719 = vmatprep.subr.bf16.mxu1 %v7895_v7 }
 0x58a   : > { %v10319_v17 = vrot.slane %v5889_v36, %v8363_v6  ;;  %v10322_v5 = vrot.slane %v5941_v28, %v8363_v6  ;;  %v5907_v29 = vcombine.low %v5888_v15, %v5904_v18  ;;  %v6044_v24 = vcombine.high %v6024_v26, %v6040_v1  ;;  %7720 = vmatpush3.bf16.msra.mxu1 %v7895_v7 }
 0x58b   : > { %7831 = vrot.lane.b32.xlu0 %v7830_v30, %s8086_s18  ;;  %v5976_v32 = vcombine.high %v5956_v63, %v5972_v61  ;;  %v10329_v19 = vrot.slane %v5957_v22, %v8363_v6  ;;  %v5975_v14 = vcombine.low %v5956_v63, %v5972_v61  ;;  %v6112_v41 = vcombine.high %v6092_v13, %v6108_v4 }
 0x58c   : > { %v5906_v37 = vcombine.high %v10314_v27, %v10319_v17  ;;  %v6281_v35 = vcombine.low %v10190_v20, %v10193_v58  ;;  %v6297_v2 = vcombine.low %v10196_v44, %v10199_v10  ;;  %v6349_v51 = vcombine.low %v10240_v23, %v10243_v54 }
 0x58d   : > { %v7850_v39 = vpack.i.bf16 %v5976_v32, %v5908_v50  ;;  %v5974_v11 = vcombine.high %v10322_v5, %v10329_v19  ;;  %v7845_v26 = vpack.i.bf16 %v5975_v14, %v5907_v29  ;;  %v7855_v1 = vpack.i.bf16 %v6112_v41, %v6044_v24 }
 0x58e   : > { %v10342_v13 = vrot.slane %v6281_v35, %v8363_v6  ;;  %v10345_v4 = vrot.slane %v6297_v2, %v8363_v6  ;;  %v10348_v53 = vrot.slane %v6349_v51, %v8363_v6  ;;  %v6365_v57 = vcombine.low %v10246_v55, %v10249_v31 }
 0x58f   : > { %7851 = vrot.lane.b32.xlu0 %v7850_v39, %s8087_s19  ;;  %v7840_v38 = vpack.i.bf16 %v5974_v11, %v5906_v37  ;;  %v6145_v48 = vcombine.low %v10202_v0, %v10205_v34  ;;  %v6161_v16 = vcombine.low %v10208_v47, %v10211_v25  ;;  %v6213_v9 = vcombine.low %v10255_v21, %v10258_v33 }
 0x590   : > { %v6314_v12 = vcombine.high %v10342_v13, %v10345_v4  ;;  %v10362_v3 = vrot.slane %v6365_v57, %v8363_v6  ;;  %v6229_v56 = vcombine.low %v10261_v49, %v10264_v40  ;;  %v6282_v15 = vcombine.high %v10190_v20, %v10193_v58 }
 0x591   : > { %7841 = vrot.lane.b32.xlu1 %v7840_v38, %s8086_s18  ;;  %v10370_v18 = vrot.slane %v6145_v48, %v8363_v6  ;;  %v10373_v52 = vrot.slane %v6161_v16, %v8363_v6  ;;  %v10376_v42 = vrot.slane %v6213_v9, %v8363_v6  ;;  %v6298_v43 = vcombine.high %v10196_v44, %v10199_v10 }
 0x592   : > { %v6382_v46 = vcombine.high %v10348_v53, %v10362_v3  ;;  %v10383_v45 = vrot.slane %v6229_v56, %v8363_v6  ;;  %v6296_v20 = vrot.slane %v6282_v15, %v8363_v6  ;;  %v6350_v58 = vcombine.high %v10240_v23, %v10243_v54 }
 0x593   : > { %v6178_v50 = vcombine.high %v10370_v18, %v10373_v52  ;;  %v6312_v63 = vrot.slane %v6298_v43, %v8363_v6  ;;  %v6366_v36 = vcombine.high %v10246_v55, %v10249_v31  ;;  %v6146_v44 = vcombine.high %v10202_v0, %v10205_v34 }
 0x594   : > { %v7860_v10 = vpack.i.bf16 %v6382_v46, %v6314_v12  ;;  %v6246_v28 = vcombine.high %v10376_v42, %v10383_v45  ;;  %v6364_v30 = vrot.slane %v6350_v58, %v8363_v6  ;;  %v6162_v23 = vcombine.high %v10208_v47, %v10211_v25 }
 0x595   : > { %7846 = vrot.lane.b32.xlu1 %v7845_v26, %s8085_s29  ;;  %v6315_v54 = vcombine.low %v6296_v20, %v6312_v63  ;;  %v6380_v61 = vrot.slane %v6366_v36, %v8363_v6  ;;  %v6160_v22 = vrot.slane %v6146_v44, %v8363_v6  ;;  %v6214_v55 = vcombine.high %v10255_v21, %v10258_v33 }
 0x596   : > { %v7870_v0 = vpack.i.bf16 %v6246_v28, %v6178_v50  ;;  %v6176_v34 = vrot.slane %v6162_v23, %v8363_v6  ;;  %v6230_v31 = vcombine.high %v10261_v49, %v10264_v40  ;;  %v6316_v29 = vcombine.high %v6296_v20, %v6312_v63 }
 0x597   : > { %v6383_v24 = vcombine.low %v6364_v30, %v6380_v61  ;;  %v6228_v47 = vrot.slane %v6214_v55, %v8363_v6  ;;  %v6384_v25 = vcombine.high %v6364_v30, %v6380_v61  ;;  %v6041_v7 = vcombine.low %v10283_v60, %v10286_v8 }
 0x598   : > { %7871 = vrot.lane.b32.xlu0 %v7870_v0, %s8086_s18  ;;  %v6179_v32 = vcombine.low %v6160_v22, %v6176_v34  ;;  %v6244_v14 = vrot.slane %v6230_v31, %v8363_v6  ;;  %v6180_v21 = vcombine.high %v6160_v22, %v6176_v34  ;;  %v6109_v33 = vcombine.low %v10289_v62, %v10292_v59 }
 0x599   : > { %7856 = vrot.lane.b32.xlu1 %v7855_v1, %s8087_s19  ;;  %v7865_v49 = vpack.i.bf16 %v6383_v24, %v6315_v54  ;;  %v7885_v40 = vpack.i.bf16 %v6384_v25, %v6316_v29  ;;  %v5905_v41 = vcombine.low %v10314_v27, %v10319_v17  ;;  %v5973_v37 = vcombine.low %v10322_v5, %v10329_v19 }
 0x59a   : > { %v6247_v60 = vcombine.low %v6228_v47, %v6244_v14  ;;  %v6248_v8 = vcombine.high %v6228_v47, %v6244_v14  ;;  %v6313_v35 = vcombine.low %v10342_v13, %v10345_v4  ;;  %v6381_v6 = vcombine.low %v10348_v53, %v10362_v3  ;;  %v7438_v53 = vld [vmem:[%s10723_s4] ss:$0 sm:$0xff] }
 0x59b   : > { %v6177_v62 = vcombine.low %v10370_v18, %v10373_v52  ;;  %v6245_v59 = vcombine.low %v10376_v42, %v10383_v45 }
 0x59c   : > { %v7875_v2 = vpack.i.bf16 %v6247_v60, %v6179_v32  ;;  %v7880_v51 = vpack.i.bf16 %v6248_v8, %v6180_v21 }
 0x59d   : > { %7861 = vrot.lane.b32.xlu1 %v7860_v10, %s8086_s18 }
 0x59e   : > { %7876 = vrot.lane.b32.xlu0 %v7875_v2, %s8085_s29 }
 0x5a1   : > { %7866 = vrot.lane.b32.xlu1 %v7865_v49, %s8085_s29 }
 0x5a2   : > { %7881 = vrot.lane.b32.xlu0 %v7880_v51, %s8087_s19 }
 0x5a5   : > { %7886 = vrot.lane.b32.xlu1 %v7885_v40, %s8087_s19 }
 0x5fa   : > { %v7837_v27 = vpop.permute.xlu1 %7836 }
 0x5fb   : > { %v7839_v38 = vunpack.i.h.bf16 %v7837_v27  ;;  %v7838_v48 = vunpack.i.l.bf16 %v7837_v27 }
 0x5fd   : > { %v7832_v17 = vpop.permute.xlu0 %7831 }
 0x5fe   : > { %v7834_v11 = vunpack.i.h.bf16 %v7832_v17  ;;  %v7833_v26 = vunpack.i.l.bf16 %v7832_v17 }
 0x600   : > { %v6484_v52 = vsel %vm4231_vm1, %v6109_v33, %v7834_v11  ;;  %v6483_v42 = vsel %vm4231_vm1, %v6041_v7, %v7833_v26 }
 0x601   : > { %v7852_v1 = vpop.permute.xlu0 %7851  ;;  %v6492_v10 = vsel %vm6489_vm3, %v6483_v42, %v7838_v48  ;;  %v6493_v28 = vsel %vm6489_vm3, %v6484_v52, %v7839_v38  ;;  %v8063_v48 = vld [vmem:[%s8202_s17 + $0x10] sm:$0xff]  ;;  %v8065_v52 = vld [vmem:[%s8202_s17 + $0x18] sm:$0xff] }
 0x602   : > { %v7854_v15 = vunpack.i.h.bf16 %v7852_v1  ;;  %v7853_v18 = vunpack.i.l.bf16 %v7852_v1  ;;  %v8062_v1 = vld [vmem:[%s8202_s17] sm:$0xff] }
 0x603   : > { %v7842_v5 = vpop.permute.xlu1 %7841 }
 0x604   : > { %v7844_v19 = vunpack.i.h.bf16 %v7842_v5  ;;  %v7843_v39 = vunpack.i.l.bf16 %v7842_v5 }
 0x606   : > { %v6481_v12 = vsel %vm4231_vm1, %v5905_v41, %v7843_v39  ;;  %v6482_v56 = vsel %vm4231_vm1, %v5973_v37, %v7844_v19 }
 0x607   : > { %v7847_v57 = vpop.permute.xlu1 %7846 }
 0x608   : > { %v7849_v16 = vunpack.i.h.bf16 %v7847_v57  ;;  %v7848_v9 = vunpack.i.l.bf16 %v7847_v57 }
 0x60a   : > { %v6490_v43 = vsel %vm6489_vm3, %v6481_v12, %v7848_v9  ;;  %v6491_v46 = vsel %vm6489_vm3, %v6482_v56, %v7849_v16  ;;  %v7872_v45 = vpop.permute.xlu0 %7871  ;;  %v8064_v12 = vld [vmem:[%s8202_s17 + $0x8] sm:$0xff] }
 0x60b   : > { %v7857_v20 = vpop.permute.xlu1 %7856  ;;  %v6499_v58 = vsel %vm6498_vm4, %v6490_v43, %v7853_v18  ;;  %v6500_v50 = vsel %vm6498_vm4, %v6491_v46, %v7854_v15  ;;  %v7874_v22 = vunpack.i.h.bf16 %v7872_v45  ;;  %v7873_v55 = vunpack.i.l.bf16 %v7872_v45 }
 0x60c   : > { %v7859_v63 = vunpack.i.h.bf16 %v7857_v20  ;;  %v7858_v36 = vunpack.i.l.bf16 %v7857_v20  ;;  %v6512_v44 = vpack.c.bf16 %v6500_v50, %v6499_v58 }
 0x60d   : > { %v6486_v25 = vsel %vm4231_vm1, %v6245_v59, %v7874_v22  ;;  %v6485_v7 = vsel %vm4231_vm1, %v6177_v62, %v7873_v55 }
 0x60e   : > { %v6501_v30 = vsel %vm6498_vm4, %v6492_v10, %v7858_v36  ;;  %v6502_v23 = vsel %vm6498_vm4, %v6493_v28, %v7859_v63  ;;  %7721 = vmatprep.mubr.msk.bf16.mxu1 %vm569_vm0, %v6512_v44  ;;  %v8066_v44 = vld [vmem:[%s8202_s17 + $0x20] sm:$0xff] }
 0x60f   : > { %v6513_v54 = vpack.c.bf16 %v6502_v23, %v6501_v30  ;;  %v7862_v61 = vpop.permute.xlu1 %7861  ;;  %v8067_v23 = vld [vmem:[%s8202_s17 + $0x30] sm:$0xff] }
 0x610   : > { %v7877_v0 = vpop.permute.xlu0 %7876  ;;  %v7863_v29 = vunpack.i.l.bf16 %v7862_v61  ;;  %v7864_v47 = vunpack.i.h.bf16 %v7862_v61  ;;  %v8068_v61 = vld [vmem:[%s8202_s17 + $0x28] sm:$0xff] }
 0x611   : > { %7722 = vmatmul.mubr.msk.bf16.vlgmr.msra.gmra.mrb[40].mxu1 %vm569_vm0, %v6513_v54  ;;  %v7879_v34 = vunpack.i.h.bf16 %v7877_v0  ;;  %v7878_v31 = vunpack.i.l.bf16 %v7877_v0  ;;  %v8069_v0 = vld [vmem:[%s8202_s17 + $0x38] sm:$0xff]  ;;  %s10666_s17 = scalar_lea.vmem %s10734_s15, %s7476_s28 }
 0x612   : > { %v6487_v37 = vsel %vm4231_vm1, %v6313_v35, %v7863_v29  ;;  %v6488_v62 = vsel %vm4231_vm1, %v6381_v6, %v7864_v47 }
 0x613   : > { %v7867_v24 = vpop.permute.xlu1 %7866  ;;  %v6494_v40 = vsel %vm6489_vm3, %v6485_v7, %v7878_v31  ;;  %v6495_v41 = vsel %vm6489_vm3, %v6486_v25, %v7879_v34 }
 0x614   : > { %v7882_v32 = vpop.permute.xlu0 %7881  ;;  %v7869_v14 = vunpack.i.h.bf16 %v7867_v24  ;;  %v7868_v21 = vunpack.i.l.bf16 %v7867_v24 }
 0x615   : > { %v7884_v33 = vunpack.i.h.bf16 %v7882_v32  ;;  %v7883_v49 = vunpack.i.l.bf16 %v7882_v32 }
 0x616   : > { %v6496_v17 = vsel %vm6489_vm3, %v6487_v37, %v7868_v21  ;;  %v6497_v13 = vsel %vm6489_vm3, %v6488_v62, %v7869_v14 }
 0x617   : > { %v7887_v60 = vpop.permute.xlu1 %7886  ;;  %v6503_v8 = vsel %vm6498_vm4, %v6494_v40, %v7883_v49  ;;  %v6504_v59 = vsel %vm6498_vm4, %v6495_v41, %v7884_v33 }
 0x618   : > { %v7889_v2 = vunpack.i.h.bf16 %v7887_v60  ;;  %v7888_v51 = vunpack.i.l.bf16 %v7887_v60  ;;  %v6514_v27 = vpack.c.bf16 %v6504_v59, %v6503_v8 }
 0x61a   : > { %v6505_v4 = vsel %vm6498_vm4, %v6496_v17, %v7888_v51  ;;  %v6506_v35 = vsel %vm6498_vm4, %v6497_v13, %v7889_v2  ;;  %7725 = vmatprep.mubr.msk.bf16.mxu1 %vm569_vm0, %v6514_v27 }
 0x61b   : > { %v6515_v5 = vpack.c.bf16 %v6506_v35, %v6505_v4 }
 0x61d   : > { %7726 = vmatmul.mubr.msk.bf16.gmra.mrb[44].mxu1 %vm569_vm0, %v6515_v5 }
 0x6e4   : > { %v7723_v3 = vpop.f32.mrb[40].mxu1 }
 0x6e5   : > { %v6580_v6 = vpop.f32.mrb[41].mxu1  ;;  %v6589_v19 = vadd.f32 %v7723_v3, %v7438_v53 }
 0x6e6   : > { %v6581_v39 = vadd.f32 %v7438_v53, %v6580_v6  ;;  %v7724_v11 = vpop.f32.mrb[42].mxu1 }
 0x6e7   : > { %v6583_v26 = vpop.f32.mrb[43].mxu1  ;;  %v6613_v16 = vadd.f32 %v8063_v48, %v6589_v19  ;;  %v6592_v9 = vadd.f32 %v7724_v11, %v7438_v53 }
 0x6e8   : > { %v6611_v57 = vadd.f32 %v8062_v1, %v6581_v39  ;;  %v6584_v38 = vadd.f32 %v7438_v53, %v6583_v26 }
 0x6e9   : > { %v6614_v42 = vadd.f32 %v8065_v52, %v6592_v9  ;;  %v6627_v43 = vsel %vm569_vm0, %v6613_v16, 0.0  ;;  %v7896_v52 = vld [vmem:[%s10726_s7] sm:$0xff]  }
 0x6ea   : > { %v6612_v56 = vadd.f32 %v8064_v12, %v6584_v38  ;;  %v6621_v15 = vsel %vm569_vm0, %v6611_v57, 0.0  ;;  %7729 = vmatprep.subr.bf16.mxu0 %v7896_v52 }
 0x6eb   : > { %6622 = vadd.xlane.f32.xlu0 %v6621_v15  ;;  %v6630_v50 = vsel %vm569_vm0, %v6614_v42, 0.0  ;;  %7730 = vmatpush3.bf16.msra.mxu0 %v7896_v52 }
 0x6ec   : > { %v6624_v18 = vsel %vm569_vm0, %v6612_v56, 0.0 }
 0x6ed   : > { %6625 = vadd.xlane.f32.xlu1 %v6624_v18 }
 0x6ef   : > { %6628 = vadd.xlane.f32.xlu0 %v6627_v43  ;;  %v7898_v43 = vld [vmem:[%s10728_s9] sm:$0xff]  }
 0x6f0   : > { %v7727_v46 = vpop.f32.mrb[44].mxu1  ;;  %7741 = vmatprep.subr.bf16.mxu1 %v7898_v43 }
 0x6f1   : > { %v6596_v45 = vpop.f32.mrb[45].mxu1  ;;  %v6605_v20 = vadd.f32 %v7727_v46, %v7438_v53  ;;  %v7899_v46 = vld [vmem:[%s10728_s9 + $0x8] sm:$0xff]   ;;  %7742 = vmatpush3.bf16.msra.mxu1 %v7898_v43 }
 0x6f2   : > { %v6597_v58 = vadd.f32 %v7438_v53, %v6596_v45  ;;  %v7728_v63 = vpop.f32.mrb[46].mxu1  ;;  %7743 = vmatprep.subr.bf16.mxu1 %v7899_v46 }
 0x6f3   : > { %6631 = vadd.xlane.f32.xlu0 %v6630_v50  ;;  %v6599_v36 = vpop.f32.mrb[47].mxu1  ;;  %v6608_v28 = vadd.f32 %v7728_v63, %v7438_v53  ;;  %v6617_v54 = vadd.f32 %v8067_v23, %v6605_v20 }
 0x6f4   : > { %v6615_v10 = vadd.f32 %v8066_v44, %v6597_v58  ;;  %v6600_v30 = vadd.f32 %v7438_v53, %v6599_v36 }
 0x6f5   : > { %v6618_v34 = vadd.f32 %v8069_v0, %v6608_v28  ;;  %v6639_v29 = vsel %vm569_vm0, %v6617_v54, 0.0  ;;  %7744 = vmatpush3.bf16.msra.mxu1 %v7899_v46  ;;  %v7901_v46 = vld [vmem:[%s10728_s9 + $0x18] sm:$0xff]  }
 0x6f6   : > { %v6616_v22 = vadd.f32 %v8068_v61, %v6600_v30  ;;  %v6633_v55 = vsel %vm569_vm0, %v6615_v10, 0.0 }
 0x6f7   : > { %6634 = vadd.xlane.f32.xlu1 %v6633_v55  ;;  %v6642_v24 = vsel %vm569_vm0, %v6618_v34, 0.0 }
 0x6f8   : > { %v6636_v31 = vsel %vm569_vm0, %v6616_v22, 0.0 }
 0x6f9   : > { %6637 = vadd.xlane.f32.xlu0 %v6636_v31 }
 0x6fb   : > { %6640 = vadd.xlane.f32.xlu1 %v6639_v29 }
 0x6fd   : > { %6643 = vadd.xlane.f32.xlu0 %v6642_v24 }
 0x778   : > { %v6623_v47 = vpop.xlane.xlu0 %6622 }
 0x779   : > { %v6646_v25 = vmul.f32 0.03125, %v6623_v47 }
 0x77a   : > { %v6626_v7 = vpop.xlane.xlu1 %6625 }
 0x77b   : > { %v10486_v32 = vsub.f32 %v6611_v57, %v6646_v25  ;;  %v6647_v14 = vmul.f32 0.03125, %v6626_v7 }
 0x77c   : > { %v6629_v21 = vpop.xlane.xlu0 %6628 }
 0x77d   : > { %v10488_v33 = vsub.f32 %v6612_v56, %v6647_v14  ;;  %v6648_v49 = vmul.f32 0.03125, %v6629_v21  ;;  %v6662_v40 = vmul.f32 %v10486_v32, %v10486_v32 }
 0x77f   : > { %v10492_v41 = vsub.f32 %v6613_v16, %v6648_v49  ;;  %v6670_v37 = vsel %vm569_vm0, %v6662_v40, 0.0  ;;  %v6663_v60 = vmul.f32 %v10488_v33, %v10488_v33 }
 0x780   : > { %6671 = vadd.xlane.f32.xlu1 %v6670_v37  ;;  %v6632_v8 = vpop.xlane.xlu0 %6631 }
 0x781   : > { %v6649_v59 = vmul.f32 0.03125, %v6632_v8  ;;  %v6673_v62 = vsel %vm569_vm0, %v6663_v60, 0.0  ;;  %v6664_v2 = vmul.f32 %v10492_v41, %v10492_v41  ;;  %v7446_v60 = vld [vmem:[%s10725_s6] ss:$0 sm:$0xff] }
 0x782   : > { %6674 = vadd.xlane.f32.xlu0 %v6673_v62 }
 0x783   : > { %v10500_v51 = vsub.f32 %v6614_v42, %v6649_v59  ;;  %v6676_v27 = vsel %vm569_vm0, %v6664_v2, 0.0  ;;  %v7897_v42 = vld [vmem:[%s10726_s7 + $0x8] sm:$0xff]  }
 0x784   : > { %6677 = vadd.xlane.f32.xlu1 %v6676_v27  ;;  %v6635_v17 = vpop.xlane.xlu1 %6634  ;;  %7731 = vmatprep.subr.bf16.mxu0 %v7897_v42 }
 0x785   : > { %v6650_v13 = vmul.f32 0.03125, %v6635_v17  ;;  %v6665_v4 = vmul.f32 %v10500_v51, %v10500_v51  ;;  %7732 = vmatpush3.bf16.msra.mxu0 %v7897_v42 }
 0x786   : > { %v6638_v35 = vpop.xlane.xlu0 %6637 }
 0x787   : > { %v10505_v5 = vsub.f32 %v6615_v10, %v6650_v13  ;;  %v6679_v53 = vsel %vm569_vm0, %v6665_v4, 0.0  ;;  %v6651_v3 = vmul.f32 0.03125, %v6638_v35 }
 0x788   : > { %6680 = vadd.xlane.f32.xlu0 %v6679_v53  ;;  %v6641_v6 = vpop.xlane.xlu1 %6640 }
 0x789   : > { %v10508_v19 = vsub.f32 %v6616_v22, %v6651_v3  ;;  %v6652_v39 = vmul.f32 0.03125, %v6641_v6  ;;  %v6666_v11 = vmul.f32 %v10505_v5, %v10505_v5 }
 0x78a   : > { %v6644_v26 = vpop.xlane.xlu0 %6643 }
 0x78b   : > { %v10512_v1 = vsub.f32 %v6617_v54, %v6652_v39  ;;  %v6653_v57 = vmul.f32 0.03125, %v6644_v26  ;;  %v6682_v38 = vsel %vm569_vm0, %v6666_v11, 0.0  ;;  %v6667_v48 = vmul.f32 %v10508_v19, %v10508_v19 }
 0x78c   : > { %6683 = vadd.xlane.f32.xlu1 %v6682_v38 }
 0x78d   : > { %v10517_v16 = vsub.f32 %v6618_v34, %v6653_v57  ;;  %v6685_v9 = vsel %vm569_vm0, %v6667_v48, 0.0  ;;  %v6668_v12 = vmul.f32 %v10512_v1, %v10512_v1  ;;  %v7445_v34 = vld [vmem:[%s10724_s5] ss:$0 sm:$0xff] }
 0x78e   : > { %6686 = vadd.xlane.f32.xlu0 %v6685_v9 }
 0x78f   : > { %v6688_v56 = vsel %vm569_vm0, %v6668_v12, 0.0  ;;  %v6669_v15 = vmul.f32 %v10517_v16, %v10517_v16 }
 0x790   : > { %6689 = vadd.xlane.f32.xlu1 %v6688_v56 }
 0x791   : > { %v6691_v18 = vsel %vm569_vm0, %v6669_v15, 0.0 }
 0x792   : > { %6692 = vadd.xlane.f32.xlu0 %v6691_v18 }
 0x80d   : > { %v6672_v45 = vpop.xlane.xlu1 %6671 }
 0x80e   : > { %v6694_v20 = vmul.f32 0.03125, %v6672_v45  ;;  %v7447_v45 = vld [vmem:[%s10727_s8] ss:$0 sm:$0xff] }
 0x80f   : > { %v6675_v58 = vpop.xlane.xlu0 %6674 }
 0x810   : > { %v6702_v50 = vadd.f32 1e-05, %v6694_v20  ;;  %v6695_v63 = vmul.f32 0.03125, %v6675_v58 }
 0x811   : > { %v6678_v36 = vpop.xlane.xlu1 %6677 }
 0x812   : > { %8030 = vrsqrt.f32 %v6702_v50  ;;  %v6703_v44 = vadd.f32 1e-05, %v6695_v63  ;;  %v6696_v10 = vmul.f32 0.03125, %v6678_v36 }
 0x814   : > { %8032 = vrsqrt.f32 %v6703_v44  ;;  %v6704_v28 = vadd.f32 1e-05, %v6696_v10 }
 0x815   : > { %v6681_v30 = vpop.xlane.xlu0 %6680 }
 0x816   : > { %8034 = vrsqrt.f32 %v6704_v28  ;;  %v6697_v23 = vmul.f32 0.03125, %v6681_v30 }
 0x818   : > { %v6705_v54 = vadd.f32 1e-05, %v6697_v23 }
 0x819   : > { %v6684_v61 = vpop.xlane.xlu1 %6683 }
 0x81a   : > { %8036 = vrsqrt.f32 %v6705_v54  ;;  %v6698_v22 = vmul.f32 0.03125, %v6684_v61 }
 0x81b   : > { %v6687_v55 = vpop.xlane.xlu0 %6686 }
 0x81c   : > { %v8031_v0 = vpop.eup %8030  ;;  %v6706_v31 = vadd.f32 1e-05, %v6698_v22  ;;  %v6699_v29 = vmul.f32 0.03125, %v6687_v55 }
 0x81d   : > { %v6718_v24 = vmul.f32 %v8031_v0, %v10486_v32  ;;  %v6690_v47 = vpop.xlane.xlu1 %6689 }
 0x81e   : > { %v8033_v25 = vpop.eup %8032  ;;  %8038 = vrsqrt.f32 %v6706_v31  ;;  %v6707_v7 = vadd.f32 1e-05, %v6699_v29  ;;  %v6700_v14 = vmul.f32 0.03125, %v6690_v47 }
 0x81f   : > { %v6719_v21 = vmul.f32 %v8033_v25, %v10488_v33  ;;  %v6693_v49 = vpop.xlane.xlu0 %6692  ;;  %v6732_v40 = vmul.f32 %v7445_v34, %v6718_v24 }
 0x820   : > { %v8035_v37 = vpop.eup %8034  ;;  %8040 = vrsqrt.f32 %v6707_v7  ;;  %v6708_v8 = vadd.f32 1e-05, %v6700_v14  ;;  %v6701_v59 = vmul.f32 0.03125, %v6693_v49 }
 0x821   : > { %v6720_v62 = vmul.f32 %v8035_v37, %v10492_v41  ;;  %v6733_v32 = vmul.f32 %v7445_v34, %v6719_v21  ;;  %v10547_v27 = vadd.f32 %v7446_v60, %v6732_v40 }
 0x822   : > { %8042 = vrsqrt.f32 %v6708_v8  ;;  %v6709_v2 = vadd.f32 1e-05, %v6701_v59  ;;  %v7454_v8 = vld [vmem:[%s10729_s10] ss:$0 sm:$0xff] }
 0x823   : > { %v10549_v17 = vadd.f32 %v7446_v60, %v6733_v32  ;;  %v6734_v13 = vmul.f32 %v7445_v34, %v6720_v62 }
 0x824   : > { %v8037_v33 = vpop.eup %8036  ;;  %8044 = vrsqrt.f32 %v6709_v2 }
 0x825   : > { %v6721_v4 = vmul.f32 %v8037_v33, %v10500_v51  ;;  %v6759_v35 = vpack.c.bf16 %v10549_v17, %v10547_v27  ;;  %v10555_v41 = vadd.f32 %v7446_v60, %v6734_v13 }
 0x827   : > { %v6735_v53 = vmul.f32 %v7445_v34, %v6721_v4  ;;  %7733 = vmatprep.mubr.msk.bf16.mxu0 %vm569_vm0, %v6759_v35 }
 0x828   : > { %v8039_v3 = vpop.eup %8038 }
 0x829   : > { %v10557_v6 = vadd.f32 %v7446_v60, %v6735_v53  ;;  %v6722_v39 = vmul.f32 %v8039_v3, %v10505_v5 }
 0x82a   : > { %v8041_v11 = vpop.eup %8040 }
 0x82b   : > { %v6723_v26 = vmul.f32 %v8041_v11, %v10508_v19  ;;  %v6760_v57 = vpack.c.bf16 %v10557_v6, %v10555_v41  ;;  %v6736_v51 = vmul.f32 %v7445_v34, %v6722_v39 }
 0x82c   : > { %v8043_v38 = vpop.eup %8042 }
 0x82d   : > { %v6724_v48 = vmul.f32 %v8043_v38, %v10512_v1  ;;  %7734 = vmatmul.mubr.msk.bf16.vlgmr.msra.gmra.mrb[32].mxu0 %vm569_vm0, %v6760_v57  ;;  %v6737_v9 = vmul.f32 %v7445_v34, %v6723_v26  ;;  %v10566_v15 = vadd.f32 %v7446_v60, %v6736_v51 }
 0x82e   : > { %v8045_v12 = vpop.eup %8044 }
 0x82f   : > { %v6725_v56 = vmul.f32 %v8045_v12, %v10517_v16  ;;  %v10568_v18 = vadd.f32 %v7446_v60, %v6737_v9  ;;  %v6738_v5 = vmul.f32 %v7445_v34, %v6724_v48  ;;  %v7900_v16 = vld [vmem:[%s10728_s9 + $0x10] sm:$0xff]  }
 0x830   : > { %7745 = vmatprep.subr.bf16.mxu1 %v7900_v16 }
 0x831   : > { %v6761_v19 = vpack.c.bf16 %v10568_v18, %v10566_v15  ;;  %v6739_v52 = vmul.f32 %v7445_v34, %v6725_v56  ;;  %v10573_v42 = vadd.f32 %v7446_v60, %v6738_v5  ;;  %7746 = vmatpush3.bf16.msra.mxu1 %v7900_v16 }
 0x832   : > { %7747 = vmatprep.subr.bf16.mxu1 %v7901_v46 }
 0x833   : > { %7737 = vmatprep.mubr.msk.bf16.mxu0 %vm569_vm0, %v6761_v19  ;;  %v10575_v1 = vadd.f32 %v7446_v60, %v6739_v52 }
 0x835   : > { %v6762_v43 = vpack.c.bf16 %v10575_v1, %v10573_v42  ;;  %7748 = vmatpush3.bf16.msra.mxu1 %v7901_v46 }
 0x837   : > { %7738 = vmatmul.mubr.msk.bf16.gmra.mrb[36].mxu0 %vm569_vm0, %v6762_v43 }
 0x900   : > { %v7735_v20 = vpop.f32.mrb[32].mxu0 }
 0x901   : > { %v6836_v58 = vadd.f32 %v7735_v20, %v7447_v45  ;;  %v6827_v50 = vpop.f32.mrb[33].mxu0 }
 0x902   : > { %v6828_v63 = vadd.f32 %v7447_v45, %v6827_v50  ;;  %v7736_v36 = vpop.f32.mrb[34].mxu0 }
 0x903   : > { %v6839_v44 = vadd.f32 %v7736_v36, %v7447_v45  ;;  %v6830_v10 = vpop.f32.mrb[35].mxu0  ;;  %v6860_v30 = vmax.f32 %v6836_v58, 0.0 }
 0x904   : > { %v6831_v28 = vadd.f32 %v7447_v45, %v6830_v10  ;;  %v6858_v54 = vmax.f32 %v6828_v63, 0.0 }
 0x905   : > { %v6861_v23 = vmax.f32 %v6839_v44, 0.0 }
 0x906   : > { %v6859_v61 = vmax.f32 %v6831_v28, 0.0 }
 0x907   : > { %v6876_v22 = vpack.c.bf16 %v6861_v23, %v6860_v30 }
 0x908   : > { %v6875_v55 = vpack.c.bf16 %v6859_v61, %v6858_v54 }
 0x90a   : > { %7749 = vmatprep.mubr.msk.bf16.mxu1 %vm4620_vm2, %v6875_v55  ;;  %v7739_v0 = vpop.f32.mrb[36].mxu0 }
 0x90b   : > { %7750 = vmatmul.mubr.msk.bf16.vlgmr.msra.gmra.mrb[48].mxu1 %vm4620_vm2, %v6876_v22  ;;  %v6852_v34 = vadd.f32 %v7739_v0, %v7447_v45  ;;  %v6843_v31 = vpop.f32.mrb[37].mxu0 }
 0x90c   : > { %v6844_v29 = vadd.f32 %v7447_v45, %v6843_v31  ;;  %v7740_v24 = vpop.f32.mrb[38].mxu0 }
 0x90d   : > { %v6855_v47 = vadd.f32 %v7740_v24, %v7447_v45  ;;  %v6846_v25 = vpop.f32.mrb[39].mxu0  ;;  %v6864_v14 = vmax.f32 %v6852_v34, 0.0 }
 0x90e   : > { %v6847_v7 = vadd.f32 %v7447_v45, %v6846_v25  ;;  %v6862_v49 = vmax.f32 %v6844_v29, 0.0 }
 0x90f   : > { %v6865_v21 = vmax.f32 %v6855_v47, 0.0 }
 0x910   : > { %v6863_v40 = vmax.f32 %v6847_v7, 0.0 }
 0x911   : > { %v6878_v37 = vpack.c.bf16 %v6865_v21, %v6864_v14 }
 0x912   : > { %v6877_v60 = vpack.c.bf16 %v6863_v40, %v6862_v49 }
 0x914   : > { %7753 = vmatprep.mubr.msk.bf16.mxu1 %vm4620_vm2, %v6877_v60 }
 0x915   : > { %7754 = vmatmul.mubr.msk.bf16.gmra.mrb[52].mxu1 %vm4620_vm2, %v6878_v37 }
 0x9de   : > { %v7751_v59 = vpop.f32.mrb[48].mxu1 }
 0x9df   : > { %v6955_v62 = vpop.f32.mrb[49].mxu1  ;;  %v6964_v32 = vadd.f32 %v7751_v59, %v7454_v8 }
 0x9e0   : > { %v6956_v2 = vadd.f32 %v7454_v8, %v6955_v62  ;;  %v7752_v33 = vpop.f32.mrb[50].mxu1 }
 0x9e1   : > { %v6958_v13 = vpop.f32.mrb[51].mxu1  ;;  %v6967_v35 = vadd.f32 %v7752_v33, %v7454_v8  ;;  %v6988_v3 = vadd.f32 %v6964_v32, %v10555_v41 }
 0x9e2   : > { %v6986_v4 = vadd.f32 %v6956_v2, %v10547_v27  ;;  %v6959_v53 = vadd.f32 %v7454_v8, %v6958_v13 }
 0x9e3   : > { %v6989_v26 = vadd.f32 %v6967_v35, %v10557_v6  ;;  %v7002_v51 = vsel %vm569_vm0, %v6988_v3, 0.0 }
 0x9e4   : > { %v6987_v39 = vadd.f32 %v6959_v53, %v10549_v17  ;;  %v6996_v11 = vsel %vm569_vm0, %v6986_v4, 0.0  ;;  %v8088_v53 = vmov 0.0|0.0  }
 0x9e5   : > { %6997 = vadd.xlane.f32.xlu1 %v6996_v11  ;;  %v7005_v9 = vsel %vm569_vm0, %v6989_v26, 0.0  ;;  %7776 = vmatprep.subr.bf16.mxu0 %v8088_v53  ;;  %v8091_v11 = vmov 0  }
 0x9e6   : > { %v6999_v57 = vsel %vm569_vm0, %v6987_v39, 0.0  ;;  %7890 = vset.pattern.permute.xlu1 %v8091_v11  ;;  %7891 = vset.pattern.permute.xlu0 %v8091_v11 }
 0x9e7   : > { %7000 = vadd.xlane.f32.xlu0 %v6999_v57 }
 0x9e8   : > { %v7755_v38 = vpop.f32.mrb[52].mxu1 }
 0x9e9   : > { %7003 = vadd.xlane.f32.xlu1 %v7002_v51  ;;  %v6971_v48 = vpop.f32.mrb[53].mxu1  ;;  %v6980_v27 = vadd.f32 %v7755_v38, %v7454_v8 }
 0x9ea   : > { %v6972_v12 = vadd.f32 %v7454_v8, %v6971_v48  ;;  %v7756_v41 = vpop.f32.mrb[54].mxu1 }
 0x9eb   : > { %7006 = vadd.xlane.f32.xlu0 %v7005_v9  ;;  %v6974_v17 = vpop.f32.mrb[55].mxu1  ;;  %v6983_v5 = vadd.f32 %v7756_v41, %v7454_v8  ;;  %v6992_v6 = vadd.f32 %v6980_v27, %v10573_v42 }
 0x9ec   : > { %v6990_v56 = vadd.f32 %v6972_v12, %v10566_v15  ;;  %v6975_v19 = vadd.f32 %v7454_v8, %v6974_v17 }
 0x9ed   : > { %v6993_v16 = vadd.f32 %v6983_v5, %v10575_v1  ;;  %v7014_v45 = vsel %vm569_vm0, %v6992_v6, 0.0 }
 0x9ee   : > { %v6991_v52 = vadd.f32 %v6975_v19, %v10568_v18  ;;  %v7008_v43 = vsel %vm569_vm0, %v6990_v56, 0.0 }
 0x9ef   : > { %7009 = vadd.xlane.f32.xlu1 %v7008_v43  ;;  %v7017_v20 = vsel %vm569_vm0, %v6993_v16, 0.0 }
 0x9f0   : > { %v7011_v46 = vsel %vm569_vm0, %v6991_v52, 0.0 }
 0x9f1   : > { %7012 = vadd.xlane.f32.xlu0 %v7011_v46 }
 0x9f3   : > { %7015 = vadd.xlane.f32.xlu1 %v7014_v45 }
 0x9f5   : > { %7018 = vadd.xlane.f32.xlu0 %v7017_v20  ;;  %v7463_v20 = vld [vmem:[%s10730_s11] ss:$0 sm:$0xff] }
 0xa72   : > { %v6998_v15 = vpop.xlane.xlu1 %6997 }
 0xa73   : > { %v7020_v58 = vmul.f32 0.03125, %v6998_v15 }
 0xa74   : > { %v7001_v50 = vpop.xlane.xlu0 %7000 }
 0xa75   : > { %v10612_v42 = vsub.f32 %v6986_v4, %v7020_v58  ;;  %v7021_v18 = vmul.f32 0.03125, %v7001_v50 }
 0xa76   : > { %v7004_v63 = vpop.xlane.xlu1 %7003 }
 0xa77   : > { %v10614_v36 = vsub.f32 %v6987_v39, %v7021_v18  ;;  %v7022_v44 = vmul.f32 0.03125, %v7004_v63  ;;  %v7036_v1 = vmul.f32 %v10612_v42, %v10612_v42  ;;  %v7137_v39 = vld [vmem:[#allocation2] sm:$0x1] }
 0xa78   : > { %v7007_v10 = vpop.xlane.xlu0 %7006 }
 0xa79   : > { %v10618_v28 = vsub.f32 %v6988_v3, %v7022_v44  ;;  %v7023_v30 = vmul.f32 0.03125, %v7007_v10  ;;  %v7044_v23 = vsel %vm569_vm0, %v7036_v1, 0.0  ;;  %v7037_v54 = vmul.f32 %v10614_v36, %v10614_v36  ;;  %v7464_v10 = vld [vmem:[%s10731_s12] ss:$0 sm:$0xff] }
 0xa7a   : > { %7045 = vadd.xlane.f32.xlu1 %v7044_v23  ;;  %v8090_v3 = vmov 0.0  }
 0xa7b   : > { %v10623_v61 = vsub.f32 %v6989_v26, %v7023_v30  ;;  %v7047_v22 = vsel %vm569_vm0, %v7037_v54, 0.0  ;;  %v7038_v55 = vmul.f32 %v10618_v28, %v10618_v28  ;;  %7773 = vmatprep.mubr.msk.f32.mxu0 %vm8089_vm5, %v8090_v3 }
 0xa7c   : > { %7048 = vadd.xlane.f32.xlu0 %v7047_v22  ;;  %v7010_v0 = vpop.xlane.xlu1 %7009 }
 0xa7d   : > { %v7050_v34 = vsel %vm569_vm0, %v7038_v55, 0.0  ;;  %v7024_v31 = vmul.f32 0.03125, %v7010_v0  ;;  %v7039_v29 = vmul.f32 %v10623_v61, %v10623_v61 }
 0xa7e   : > { %7051 = vadd.xlane.f32.xlu1 %v7050_v34  ;;  %v7013_v24 = vpop.xlane.xlu0 %7012 }
 0xa7f   : > { %v10631_v47 = vsub.f32 %v6990_v56, %v7024_v31  ;;  %v7053_v25 = vsel %vm569_vm0, %v7039_v29, 0.0  ;;  %v7025_v7 = vmul.f32 0.03125, %v7013_v24 }
 0xa80   : > { %7054 = vadd.xlane.f32.xlu0 %v7053_v25  ;;  %v7016_v14 = vpop.xlane.xlu1 %7015 }
 0xa81   : > { %v10634_v21 = vsub.f32 %v6991_v52, %v7025_v7  ;;  %v7026_v49 = vmul.f32 0.03125, %v7016_v14  ;;  %v7040_v40 = vmul.f32 %v10631_v47, %v10631_v47 }
 0xa82   : > { %v7019_v37 = vpop.xlane.xlu0 %7018 }
 0xa83   : > { %v10638_v60 = vsub.f32 %v6992_v6, %v7026_v49  ;;  %v7027_v8 = vmul.f32 0.03125, %v7019_v37  ;;  %v7056_v59 = vsel %vm569_vm0, %v7040_v40, 0.0  ;;  %v7041_v62 = vmul.f32 %v10634_v21, %v10634_v21 }
 0xa84   : > { %7057 = vadd.xlane.f32.xlu1 %v7056_v59 }
 0xa85   : > { %v10643_v32 = vsub.f32 %v6993_v16, %v7027_v8  ;;  %v7059_v2 = vsel %vm569_vm0, %v7041_v62, 0.0  ;;  %v7042_v33 = vmul.f32 %v10638_v60, %v10638_v60 }
 0xa86   : > { %7060 = vadd.xlane.f32.xlu0 %v7059_v2 }
 0xa87   : > { %v7062_v13 = vsel %vm569_vm0, %v7042_v33, 0.0  ;;  %v7043_v4 = vmul.f32 %v10643_v32, %v10643_v32 }
 0xa88   : > { %7063 = vadd.xlane.f32.xlu1 %v7062_v13 }
 0xa89   : > { %v7065_v35 = vsel %vm569_vm0, %v7043_v4, 0.0 }
 0xa8a   : > { %7066 = vadd.xlane.f32.xlu0 %v7065_v35 }
 0xa99   : > { %7140 = vperm.xlu1 %7890, %v7137_v39  }
 0xb07   : > { %v7046_v26 = vpop.xlane.xlu1 %7045 }
 0xb08   : > { %v7068_v57 = vmul.f32 0.03125, %v7046_v26  ;;  %v7136_v26 = vld [vmem:[%s10732_s13] sm:$0x1] }
 0xb09   : > { %v7049_v51 = vpop.xlane.xlu0 %7048 }
 0xb0a   : > { %v7076_v38 = vadd.f32 1e-05, %v7068_v57  ;;  %v7069_v48 = vmul.f32 0.03125, %v7049_v51  ;;  %v10791_v57 = vld [vmem:[#allocation3_spill] sm:$0xff] }
 0xb0b   : > { %v7052_v27 = vpop.xlane.xlu1 %7051  ;;  %v7145_v51 = vsub.s32 0, %v10791_v57 }
 0xb0c   : > { %8046 = vrsqrt.f32 %v7076_v38  ;;  %v7077_v9 = vadd.f32 1e-05, %v7069_v48  ;;  %v7070_v12 = vmul.f32 0.03125, %v7052_v27 }
 0xb0d   : > { %v7055_v41 = vpop.xlane.xlu0 %7054 }
 0xb0e   : > { %8048 = vrsqrt.f32 %v7077_v9  ;;  %v7078_v17 = vadd.f32 1e-05, %v7070_v12  ;;  %v7071_v56 = vmul.f32 0.03125, %v7055_v41 }
 0xb10   : > { %8050 = vrsqrt.f32 %v7078_v17  ;;  %v7079_v5 = vadd.f32 1e-05, %v7071_v56 }
 0xb11   : > { %v7058_v19 = vpop.xlane.xlu1 %7057 }
 0xb12   : > { %8052 = vrsqrt.f32 %v7079_v5  ;;  %v7072_v6 = vmul.f32 0.03125, %v7058_v19 }
 0xb13   : > { %v7061_v52 = vpop.xlane.xlu0 %7060 }
 0xb14   : > { %v7080_v43 = vadd.f32 1e-05, %v7072_v6  ;;  %v7073_v16 = vmul.f32 0.03125, %v7061_v52 }
 0xb15   : > { %v7064_v46 = vpop.xlane.xlu1 %7063 }
 0xb16   : > { %v8047_v45 = vpop.eup %8046  ;;  %8054 = vrsqrt.f32 %v7080_v43  ;;  %v7081_v15 = vadd.f32 1e-05, %v7073_v16  ;;  %v7074_v58 = vmul.f32 0.03125, %v7064_v46 }
 0xb17   : > { %v7092_v50 = vmul.f32 %v8047_v45, %v10612_v42  ;;  %v7067_v18 = vpop.xlane.xlu0 %7066 }
 0xb18   : > { %v8049_v63 = vpop.eup %8048  ;;  %8056 = vrsqrt.f32 %v7081_v15  ;;  %v7082_v44 = vadd.f32 1e-05, %v7074_v58  ;;  %v7075_v1 = vmul.f32 0.03125, %v7067_v18 }
 0xb19   : > { %v7106_v30 = vmul.f32 %v7463_v20, %v7092_v50  ;;  %v7093_v23 = vmul.f32 %v8049_v63, %v10614_v36  ;;  %v7141_v38 = vpop.permute.xlu1 %7140 }
 0xb1a   : > { %v8051_v54 = vpop.eup %8050  ;;  %8058 = vrsqrt.f32 %v7082_v44  ;;  %v7083_v42 = vadd.f32 1e-05, %v7075_v1  ;;  %v7146_v48 = vrot.slane %v7141_v38, %v7145_v51 }
 0xb1b   : > { %v7107_v22 = vmul.f32 %v7463_v20, %v7093_v23  ;;  %v7094_v55 = vmul.f32 %v8051_v54, %v10618_v28  ;;  %v7120_v0 = vadd.f32 %v7464_v10, %v7106_v30 }
 0xb1c   : > { %v8053_v34 = vpop.eup %8052  ;;  %8060 = vrsqrt.f32 %v7083_v42 }
 0xb1d   : > { %v7108_v31 = vmul.f32 %v7463_v20, %v7094_v55  ;;  %v7095_v36 = vmul.f32 %v8053_v34, %v10623_v61  ;;  %v7121_v29 = vadd.f32 %v7464_v10, %v7107_v22  ;;  %7128 = vst.msk [vmem:[%s10666_s17] sm:$0xff] %vm569_vm0, %v7120_v0 }
 0xb1f   : > { %v7109_v25 = vmul.f32 %v7463_v20, %v7095_v36  ;;  %7129 = vst.msk [vmem:[%s10666_s17 + $0x8] sm:$0xff] %vm569_vm0, %v7121_v29  ;;  %v7777_v28 = vpack.c.bf16 %v7121_v29, %v7120_v0  ;;  %v7122_v7 = vadd.f32 %v7464_v10, %v7108_v31 }
 0xb20   : > { %v8055_v14 = vpop.eup %8054 }
 0xb21   : > { %v7096_v49 = vmul.f32 %v8055_v14, %v10631_v47  ;;  %7779 = vmatpush3.bf16.xpose.msk.msra.mxu0 %vm10674_vm6, %v7777_v28  ;;  %v7123_v61 = vadd.f32 %v7464_v10, %v7109_v25  ;;  %7130 = vst.msk [vmem:[%s10666_s17 + $0x10] sm:$0xff] %vm569_vm0, %v7122_v7 }
 0xb22   : > { %v8057_v40 = vpop.eup %8056  ;;  %7780 = vmatprep.subr.bf16.mxu0 %v8088_v53 }
 0xb23   : > { %v7110_v37 = vmul.f32 %v7463_v20, %v7096_v49  ;;  %v7097_v8 = vmul.f32 %v8057_v40, %v10634_v21  ;;  %7131 = vst.msk [vmem:[%s10666_s17 + $0x18] sm:$0xff] %vm569_vm0, %v7123_v61  ;;  %v7781_v35 = vpack.c.bf16 %v7123_v61, %v7122_v7 }
 0xb24   : > { %v8059_v59 = vpop.eup %8058 }
 0xb25   : > { %v7111_v62 = vmul.f32 %v7463_v20, %v7097_v8  ;;  %v7098_v47 = vmul.f32 %v8059_v59, %v10638_v60  ;;  %v7124_v2 = vadd.f32 %v7464_v10, %v7110_v37 }
 0xb26   : > { %v8061_v33 = vpop.eup %8060 }
 0xb27   : > { %v7112_v13 = vmul.f32 %v7463_v20, %v7098_v47  ;;  %v7099_v4 = vmul.f32 %v8061_v33, %v10643_v32  ;;  %v7125_v3 = vadd.f32 %v7464_v10, %v7111_v62  ;;  %7132 = vst.msk [vmem:[%s10666_s17 + $0x20] sm:$0xff] %vm569_vm0, %v7124_v2 }
 0xb29   : > { %v7113_v39 = vmul.f32 %v7463_v20, %v7099_v4  ;;  %7783 = vmatpush3.bf16.xpose.msk.msra.mxu0 %vm10674_vm6, %v7781_v35  ;;  %7133 = vst.msk [vmem:[%s10666_s17 + $0x28] sm:$0xff] %vm569_vm0, %v7125_v3  ;;  %v7126_v21 = vadd.f32 %v7464_v10, %v7112_v13  ;;  %v7785_v32 = vpack.c.bf16 %v7125_v3, %v7124_v2 }
 0xb2a   : > { %7784 = vmatprep.subr.bf16.mxu0 %v8088_v53 }
 0xb2b   : > { %v7127_v60 = vadd.f32 %v7464_v10, %v7113_v39  ;;  %7134 = vst.msk [vmem:[%s10666_s17 + $0x30] sm:$0xff] %vm569_vm0, %v7126_v21 }
 0xb2d   : > { %7135 = vst.msk [vmem:[%s10666_s17 + $0x38] sm:$0xff] %vm569_vm0, %v7127_v60  ;;  %v7789_v11 = vpack.c.bf16 %v7127_v60, %v7126_v21 }
 0xb31   : > { %7787 = vmatpush3.bf16.xpose.msk.msra.mxu0 %vm10674_vm6, %v7785_v32 }
 0xb32   : > { %7788 = vmatprep.subr.bf16.mxu0 %v8088_v53 }
 0xb39   : > { %7791 = vmatpush3.bf16.xpose.msk.msra.mxu0 %vm10674_vm6, %v7789_v11 }
 0xb40   : > { %7774 = vmatmul.mubr.msk.f32.vlgmr.msra.gmra.mrb[40].mxu0 %vm569_vm0, %v7136_v26 }
 0xc13   : > { %v7240_v27 = vpop.f32.mrb[40].mxu0 }
 0xc14   : > { %v7241_v53 = vadd.f32 %v7240_v27, %v7146_v48  ;;  %v7775_v9 = vpop.f32.mrb[41].mxu0 }
 0xc16   : > { %7245 = vst.msk [vmem:[%s532_s14] sm:$0x1] %vm7244_vm7, %v7241_v53 }
 0xc17 PF: > { %s29_s23 = sadd.s32 1, %s8076_s23  }
 0xc18   : > { %p26_p4 = scmp.ge.s32.totalorder %s29_s23, 4  }
 0xc1a   :  { %28 = sbr.rel (!%p26_p4) target bundleno = 3 (0x3), region = 122 }

// kernel: ssrt_forward.5
= control target key start
LH: loop header
LB: loop body
LE: loop exit
PB: predicated region body
PF: predicated region fallthrough
CT: control target
= control target key end

     0   :  { %s7192_s6 = smov 1   ;;  %s7193_s10 = smov 2   ;;  %s8866_s0 = inlined_call_operand.smem [shape: u32[36], index: -1, kind: input, shape index: {}] }
   0x1   :  { %s7248_s5 = sld [smem:[%s8866_s0]]   ;;  %s7194_s14 = smov 3  }
   0x2   :  { %s7253_s9 = sld [smem:[%s8866_s0 + %s7192_s6]]   ;;  %s7195_s18 = smov 4  }
   0x3   :  { %s7258_s13 = sld [smem:[%s8866_s0 + %s7193_s10]]   ;;  %s7196_s22 = smov 5  }
   0x4   :  { %s7263_s17 = sld [smem:[%s8866_s0 + %s7194_s14]]   ;;  %s7197_s26 = smov 6  }
   0x5   :  { %s7268_s21 = sld [smem:[%s8866_s0 + %s7195_s18]]   ;;  %s7198_s30 = smov 7  }
   0x6   :  { %s7273_s25 = sld [smem:[%s8866_s0 + %s7196_s22]]   ;;  %s7199_s4 = smov 8  }
   0x7   :  { %s7278_s29 = sld [smem:[%s8866_s0 + %s7197_s26]]   ;;  %s7200_s10 = smov 9  }
   0x8   :  { %s7283_s3 = sld [smem:[%s8866_s0 + %s7198_s30]]   ;;  %s7201_s15 = smov 10  }
   0x9   :  { %s7288_s8 = sld [smem:[%s8866_s0 + %s7199_s4]]   ;;  %s7202_s20 = smov 11  }
   0xa   :  { %s7293_s14 = sld [smem:[%s8866_s0 + %s7200_s10]]   ;;  %s7203_s26 = smov 12  }
   0xb   :  { %s7298_s19 = sld [smem:[%s8866_s0 + %s7201_s15]]   ;;  %s7204_s1 = smov 13  }
   0xc   :  { %s7303_s24 = sld [smem:[%s8866_s0 + %s7202_s20]]   ;;  %s7205_s7 = smov 14  }
   0xd   :  { %s7308_s30 = sld [smem:[%s8866_s0 + %s7203_s26]]   ;;  %s7206_s15 = smov 15  }
   0xe   :  { %s7313_s6 = sld [smem:[%s8866_s0 + %s7204_s1]]   ;;  %s7207_s22 = smov 16  }
   0xf   :  { %s7318_s12 = sld [smem:[%s8866_s0 + %s7205_s7]]   ;;  %s7208_s28 = smov 17  }
  0x10   :  { %s7323_s20 = sld [smem:[%s8866_s0 + %s7206_s15]]   ;;  %s7209_s7 = smov 18  }
  0x11   :  { %s7328_s27 = sld [smem:[%s8866_s0 + %s7207_s22]]   ;;  %s7210_s15 = smov 19  }
  0x12   :  { %s7333_s4 = sld [smem:[%s8866_s0 + %s7208_s28]]   ;;  %s7211_s22 = smov 20  }
  0x13   :  { %8900 = sst [smem:[#allocation2_spill]] %s7308_s30  ;;  %s7212_s28 = smov 21  }
  0x14   :  { %s7338_s30 = sld [smem:[%s8866_s0 + %s7209_s7]]   ;;  %s7213_s7 = smov 22  }
  0x16   :  { %8901 = sst [smem:[#allocation3_spill]] %s7323_s20 }
  0x17   :  { %8902 = sst [smem:[#allocation4_spill]] %s7328_s27 }
  0x18   :  { %8903 = sst [smem:[#allocation5_spill]] %s7333_s4 }
  0x19   :  { %s7343_s20 = sld [smem:[%s8866_s0 + %s7210_s15]]   ;;  %s7214_s15 = smov 23  }
  0x1a   :  { %8904 = sst [smem:[#allocation6_spill]] %s7338_s30 }
  0x1b   :  { %s7348_s27 = sld [smem:[%s8866_s0 + %s7211_s22]]   ;;  %s7215_s22 = smov 24  }
  0x1c   :  { %s7353_s4 = sld [smem:[%s8866_s0 + %s7212_s28]]   ;;  %s7216_s28 = smov 25  }
  0x1d   :  { %s7358_s30 = sld [smem:[%s8866_s0 + %s7213_s7]]   ;;  %s7217_s7 = smov 26  }
  0x1f   :  { %8905 = sst [smem:[#allocation7_spill]] %s7343_s20 }
  0x20   :  { %s7363_s20 = sld [smem:[%s8866_s0 + %s7214_s15]]   ;;  %s7218_s15 = smov 27  }
  0x21   :  { %8906 = sst [smem:[#allocation8_spill]] %s7348_s27 }
  0x22   :  { %8907 = sst [smem:[#allocation9_spill]] %s7353_s4 }
  0x23   :  { %8908 = sst [smem:[#allocation10_spill]] %s7358_s30 }
  0x24   :  { %s7368_s27 = sld [smem:[%s8866_s0 + %s7215_s22]]   ;;  %s7219_s22 = smov 28  }
  0x25   :  { %s7373_s4 = sld [smem:[%s8866_s0 + %s7216_s28]]   ;;  %s7220_s28 = smov 29  }
  0x26   :  { %8909 = sst [smem:[#allocation11_spill]] %s7363_s20 }
  0x27   :  { %s7378_s30 = sld [smem:[%s8866_s0 + %s7217_s7]]   ;;  %s7221_s7 = smov 30  }
  0x28   :  { %s7383_s20 = sld [smem:[%s8866_s0 + %s7218_s15]]   ;;  %s7222_s15 = smov 31  }
  0x2a   :  { %8910 = sst [smem:[#allocation12_spill]] %s7368_s27 }
  0x2b   :  { %8911 = sst [smem:[#allocation13_spill]] %s7373_s4 }
  0x2c   :  { %s7388_s27 = sld [smem:[%s8866_s0 + %s7219_s22]]   ;;  %s7223_s22 = smov 32  }
  0x2d   :  { %8912 = sst [smem:[#allocation14_spill]] %s7378_s30 }
  0x2e   :  { %8913 = sst [smem:[#allocation15_spill]] %s7383_s20 }
  0x2f   :  { %s7393_s4 = sld [smem:[%s8866_s0 + %s7220_s28]]   ;;  %s7224_s28 = smov 33  }
  0x30   :  { %s7398_s30 = sld [smem:[%s8866_s0 + %s7221_s7]]   ;;  %s7225_s7 = smov 34  }
  0x31   :  { %s7403_s20 = sld [smem:[%s8866_s0 + %s7222_s15]]   ;;  %s7226_s15 = smov 35  }
  0x32   :  { %8914 = sst [smem:[#allocation16_spill]] %s7388_s27 }
  0x33   :  { %s7408_s27 = sld [smem:[%s8866_s0 + %s7223_s22]]   ;;  %s7425_s22 = smov 0  }
  0x35   :  { %8915 = sst [smem:[#allocation17_spill]] %s7393_s4 }
  0x36   :  { %8916 = sst [smem:[#allocation18_spill]] %s7398_s30 }
  0x37   :  { %8917 = sst [smem:[#allocation19_spill]] %s7403_s20 }
  0x38   :  { %s7413_s4 = sld [smem:[%s8866_s0 + %s7224_s28]]  }
  0x39   :  { %s7418_s30 = sld [smem:[%s8866_s0 + %s7225_s7]]  }
  0x3a   :  { %s7423_s20 = sld [smem:[%s8866_s0 + %s7226_s15]]  }
  0x3b LB: > { %s6513_s23 = sadd.s32 4294967295, %s7190_s22   ;;  %p6517_p0 = scmp.ge.s32.totalorder %s7190_s22, 1  ;;  %s7190_s22 = sphi %s7425_s22, %s81_s22  }
  0x3c   : > { %p982_p1 = scmp.lt.s32.totalorder %s7190_s22, 3 }
  0x3e   : > { %p983_p2 = pnand %p6517_p0, %p982_p1 }
  0x40   : > { %986 = sbr.rel (%p983_p2) target bundleno = 5800 (0x16a8), region = 160 }
  0x47   : > { %p1073_p3 = scmp.lt.s32.totalorder %s6513_s23, 1  ;;  %v7227_v0 = vmov 0   ;;  %v7228_v1 = vmov 0.0|0.0   ;;  %v8875_v2 = vmov 0.0   ;;  %vm7230_vm0 = vmmov 0   ;;  %v7116_v11 = vld [vmem:[%s7258_s13] sm:$0xff]  }
  0x48   : > { %7115 = vset.pattern.permute.xlu0 %v7227_v0  ;;  %7047 = vmatprep.subr.bf16.mxu0 %v7228_v1  ;;  %v1095_v17 = vlaneseq  ;;  %vm1104_vm1 = vcmask 523264   ;;  %v7117_v21 = vld [vmem:[%s7258_s13 + $0x8] sm:$0xff]   ;;  %vm1202_vm3 = vcmask 261120   ;;  %v7118_v25 = vld [vmem:[%s7268_s21] sm:$0xff]   ;;  %s7231_s2 = smov 96   ;;  %s8918_s7 = sld [smem:[#allocation2_spill]] }
  0x49   : > { %s9001_s23 = smov (!%p1073_p3, %s6513_s23), 1  ;;  %6783 = vmatprep.subr.bf16.mxu1 %v8875_v2  ;;  %6780 = vmatprep.mubr.msk.f32.mxu0 %vm7230_vm0, %v8875_v2  ;;  %v7119_v26 = vld [vmem:[%s7268_s21 + $0x8] sm:$0xff]   ;;  %v7120_v27 = vld [vmem:[%s7273_s25] sm:$0xff]   ;;  %s7232_s10 = smov 112   ;;  %vm2094_vm4 = vcmask 64512   ;;  %vm2334_vm5 = vcmask 1043456  }
  0x4a   : > { %s8873_s0 = sshll.u32 %s9001_s23, 3  ;;  %s6651_s26 = sshll.u32 %s9001_s23, 6  ;;  %6787 = vmatprep.mubr.msk.bf16.mxu1 %vm7230_vm0, %v8875_v2  ;;  %6784 = vmatpush3.bf16.msra.mxu1 %v7116_v11  ;;  %v1096_v18 = vand.u32 127, %v1095_v17  ;;  %v7121_v28 = vld [vmem:[%s7273_s25 + $0x8] sm:$0xff]   ;;  %v6528_v29 = vld [vmem:[%s7278_s29] ss:$0 sm:$0xff] }
  0x4b   : > { %s1081_s28 = scalar_lea.vmem %s7253_s9, %s8873_s0  ;;  %s1077_s1 = scalar_lea.vmem %s7248_s5, %s6651_s26  ;;  %6785 = vmatprep.subr.bf16.mxu1 %v8875_v2  ;;  %1333 = vrot.lane.b32.xlu1 %v6528_v29, %s7231_s2  ;;  %v6524_v30 = vld [vmem:[%s7263_s17] ss:$0 sm:$0xff]  ;;  %v7123_v41 = vld [vmem:[%s7283_s3 + $0x8] sm:$0xff]   ;;  %vm2665_vm6 = vcmask 130048   ;;  %vm2667_vm7 = vcmask 195584  }
  0x4c   : > { %v1097_v3 = vld [vmem:[%s1081_s28] sm:$0xff]  ;;  %v1088_v5 = vld [vmem:[%s1077_s1 + $0x8] sm:$0xff]  ;;  %v1089_v6 = vld [vmem:[%s1077_s1 + $0x10] sm:$0xff]  ;;  %s7233_s11 = smov 120   ;;  %s7234_s15 = smov 104  }
  0x4d   : > { %1099 = vperm.xlu0 %7115, %v1097_v3   ;;  %v1087_v4 = vld [vmem:[%s1077_s1] sm:$0xff]  ;;  %v1090_v8 = vld [vmem:[%s1077_s1 + $0x18] sm:$0xff]  ;;  %v1092_v10 = vld [vmem:[%s1077_s1 + $0x28] sm:$0xff]  ;;  %s8919_s16 = sld [smem:[#allocation3_spill]]  ;;  %s7237_s18 = smov 16  }
  0x4e   : > { %v7442_v7 = vpack.c.bf16 %v1088_v5, %v1087_v4  ;;  %v1091_v9 = vld [vmem:[%s1077_s1 + $0x20] sm:$0xff]  ;;  %v7450_v12 = vpack.c.bf16 %v1090_v8, %v1089_v6  ;;  %v1093_v13 = vld [vmem:[%s1077_s1 + $0x30] sm:$0xff]  ;;  %v1094_v14 = vld [vmem:[%s1077_s1 + $0x38] sm:$0xff]  ;;  %6786 = vmatpush3.bf16.msra.mxu1 %v7117_v21  ;;  %s8920_s26 = sld [smem:[#allocation9_spill]]  ;;  %s7238_s28 = smov 8  }
  0x4f   : > { %v7454_v15 = vpack.c.bf16 %v1092_v10, %v1091_v9  ;;  %v7457_v16 = vpack.c.bf16 %v1094_v14, %v1093_v13  ;;  %6791 = vmatprep.subr.bf16.mxu1 %v8875_v2  ;;  %v7124_v38 = vld [vmem:[%s7288_s8] sm:$0xff]   ;;  %v7125_v42 = vld [vmem:[%s7288_s8 + $0x8] sm:$0xff]   ;;  %s8874_s1 = smov 24   ;;  %s8922_s0 = sld [smem:[#allocation7_spill]] }
  0x50   : > { %7049 = vmatpush3.bf16.msra.mxu0 %v7442_v7  ;;  %v7122_v39 = vld [vmem:[%s7283_s3] sm:$0xff]   ;;  %v7128_v58 = vld [vmem:[%s7313_s6 + $0x8] sm:$0xff]  }
  0x51   : > { %7050 = vmatprep.subr.bf16.mxu0 %v7228_v1  ;;  %v7126_v56 = vld [vmem:[%s7313_s6] sm:$0xff]   ;;  %v7129_v59 = vld [vmem:[%s7303_s24 + $0x8] sm:$0xff]  }
  0x52   : > { %v7127_v57 = vld [vmem:[%s7303_s24] sm:$0xff]  }
  0x53   : > { %v7511_v60 = vld [vmem:[%s7298_s19] sm:$0xff] }
  0x54   : > { %7052 = vmatpush3.bf16.msra.mxu0 %v7450_v12  ;;  %v1513_v61 = vpack.c.bf16 %v7511_v60, %v7511_v60  ;;  %v6541_v4 = vld [vmem:[%s7293_s14] ss:$0 sm:$0xff] }
  0x55   : > { %7053 = vmatprep.subr.bf16.mxu0 %v7228_v1 }
  0x58   : > { %7055 = vmatpush3.bf16.msra.mxu0 %v7454_v15 }
  0x59   : > { %7056 = vmatprep.subr.bf16.mxu0 %v7228_v1 }
  0x5c   : > { %7058 = vmatpush3.bf16.msra.mxu0 %v7457_v16 }
  0x5d   : > { %6799 = vmatprep.subr.bf16.mxu0 %v8875_v2 }
  0xbd   : > { %v1334_v49 = vpop.permute.xlu1 %1333 }
  0xcc   : > { %v1100_v19 = vpop.permute.xlu0 %1099 }
  0xcd   : > { %vm1101_vm2 = vcmp.eq.s32.totalorder %v1100_v19, %v1096_v18 }
  0xce   : > { %v6522_v20 = vsel %vm1101_vm2, 1.0, %v8875_v2 }
  0xcf   : > { %6781 = vmatmul.mubr.msk.f32.vlgmr.msra.gmra.mrb[0].mxu0 %vm1104_vm1, %v6522_v20  ;;  %v6546_v20 = vld [vmem:[%s7318_s12] ss:$0 sm:$0xff] }
  0xd0   : > { %6803 = vmatprep.mubr.msk.bf16.mxu0 %vm7230_vm0, %v8875_v2  ;;  %6800 = vmatpush3.bf16.msra.mxu0 %v7120_v27 }
  0xd1   : > { %6801 = vmatprep.subr.bf16.mxu0 %v8875_v2 }
  0xd4   : > { %6802 = vmatpush3.bf16.msra.mxu0 %v7121_v28  ;;  %v7235_v28 = vmov 1983009808  }
  0xd5   : > { %6815 = vmatprep.subr.bf16.mxu0 %v8875_v2 }
 0x1a2   : > { %v1174_v22 = vpop.f32.mrb[0].mxu0 }
 0x1a3   : > { %v1183_v23 = vpack.c.bf16 %v1174_v22, %v1174_v22  ;;  %v6782_v24 = vpop.f32.mrb[1].mxu0  ;;  %v6542_v22 = vld [vmem:[%s8918_s7] ss:$0 sm:$0xff]  ;;  %s8921_s7 = sld [smem:[#allocation4_spill]] }
 0x1a5   : > { %6788 = vmatmul.mubr.msk.bf16.vlgmr.msra.gmra.mrb[0].mxu1 %vm1202_vm3, %v1183_v23 }
 0x1a6   : > { %6795 = vmatprep.mubr.msk.bf16.mxu1 %vm7230_vm0, %v8875_v2  ;;  %6792 = vmatpush3.bf16.msra.mxu1 %v7118_v25 }
 0x1a7   : > { %6793 = vmatprep.subr.bf16.mxu1 %v8875_v2 }
 0x1aa   : > { %6794 = vmatpush3.bf16.msra.mxu1 %v7119_v26 }
 0x1ab   : > { %6807 = vmatprep.subr.bf16.mxu1 %v8875_v2 }
 0x278   : > { %v1240_v31 = vpop.f32.mrb[0].mxu1 }
 0x279   : > { %v1241_v32 = vadd.f32 %v6524_v30, %v1240_v31  ;;  %v6789_v33 = vpop.f32.mrb[1].mxu1  ;;  %v7236_v30 = vmov 1934713408  }
 0x27a   : > { %v1243_v34 = vpop.f32.mrb[2].mxu1  ;;  %v1687_v31 = vunpack.c.l.s4 %v7236_v30  ;;  %v1658_v33 = vshrl.u32 %v1095_v17, 7 }
 0x27b   : > { %v1246_v35 = vmax.f32 %v1241_v32, 0.0  ;;  %v6790_v36 = vpop.f32.mrb[3].mxu1 }
 0x27c   : > { %v1688_v36 = vunpack.c.0.s8 %v1687_v31 }
 0x27d   : > { %v1251_v37 = vpack.c.bf16 %v1246_v35, %v1246_v35 }
 0x27f   : > { %1319 = vrot.lane.b32.xlu0 %v1251_v37, %s7231_s2  ;;  %6796 = vmatmul.mubr.msk.bf16.vlgmr.msra.gmra.mrb[4].mxu1 %vm1202_vm3, %v1251_v37 }
 0x280   : > { %6811 = vmatprep.mubr.msk.bf16.mxu1 %vm7230_vm0, %v8875_v2  ;;  %6808 = vmatpush3.bf16.msra.mxu1 %v7124_v38 }
 0x281   : > { %6809 = vmatprep.subr.bf16.mxu1 %v8875_v2 }
 0x284   : > { %6810 = vmatpush3.bf16.msra.mxu1 %v7125_v42 }
 0x285   : > { %6823 = vmatprep.subr.bf16.mxu1 %v8875_v2 }
 0x2f1   : > { %v1320_v40 = vpop.permute.xlu0 %1319 }
 0x2f2   : > { %6804 = vmatmul.mubr.msk.bf16.vlgmr.msra.gmra.mrb[4].mxu0 %vm1202_vm3, %v1320_v40 }
 0x2f3   : > { %6816 = vmatpush3.bf16.msra.mxu0 %v7122_v39  ;;  %6819 = vmatprep.mubr.msk.bf16.mxu0 %vm7230_vm0, %v8875_v2 }
 0x2f4   : > { %6817 = vmatprep.subr.bf16.mxu0 %v8875_v2 }
 0x2f7   : > { %6818 = vmatpush3.bf16.msra.mxu0 %v7123_v41 }
 0x2f8   : > { %6831 = vmatprep.subr.bf16.mxu0 %v8875_v2 }
 0x352   : > { %v1308_v43 = vpop.f32.mrb[4].mxu1 }
 0x353   : > { %v1309_v44 = vadd.f32 %v6528_v29, %v1308_v43  ;;  %v6797_v45 = vpop.f32.mrb[5].mxu1  ;;  %v1655_v29 = vunpack.c.l.s4 %v7235_v28  ;;  %v7553_v43 = vsub.s32 %v1688_v36, %v1658_v33 }
 0x354   : > { %v1311_v46 = vpop.f32.mrb[6].mxu1 }
 0x355   : > { %v1383_v47 = vpack.c.bf16 %v1309_v44, %v1309_v44  ;;  %v6798_v48 = vpop.f32.mrb[7].mxu1  ;;  %v1656_v32 = vunpack.c.0.s8 %v1655_v29 }
 0x357   : > { %6820 = vmatmul.mubr.msk.bf16.vlgmr.msra.gmra.mrb[8].mxu0 %vm1202_vm3, %v1383_v47  ;;  %v7541_v37 = vsub.s32 %v1656_v32, %v1658_v33 }
 0x358   : > { %6835 = vmatprep.mubr.msk.bf16.mxu0 %vm7230_vm0, %v8875_v2  ;;  %6832 = vmatpush3.bf16.msra.mxu0 %v7126_v56 }
 0x359   : > { %6833 = vmatprep.subr.bf16.mxu0 %v8875_v2 }
 0x35c   : > { %6834 = vmatpush3.bf16.msra.mxu0 %v7128_v58 }
 0x35d   : > { %6845 = vmatprep.subr.bf16.mxu0 %v8875_v2 }
 0x3c5   : > { %v1373_v50 = vpop.f32.mrb[4].mxu0 }
 0x3c6   : > { %v1374_v51 = vadd.f32 %v1373_v50, %v1334_v49  ;;  %v6805_v52 = vpop.f32.mrb[5].mxu0 }
 0x3c7   : > { %v1376_v53 = vpop.f32.mrb[6].mxu0 }
 0x3c8   : > { %v1388_v54 = vpack.c.bf16 %v1374_v51, %v1374_v51  ;;  %v6806_v55 = vpop.f32.mrb[7].mxu0 }
 0x3ca   : > { %6812 = vmatmul.mubr.msk.bf16.vlgmr.msra.gmra.mrb[8].mxu1 %vm1202_vm3, %v1388_v54 }
 0x3cb   : > { %6827 = vmatprep.mubr.msk.bf16.mxu1 %vm7230_vm0, %v8875_v2  ;;  %6824 = vmatpush3.bf16.msra.mxu1 %v7127_v57 }
 0x3cc   : > { %6825 = vmatprep.subr.bf16.mxu1 %v8875_v2 }
 0x3cf   : > { %6826 = vmatpush3.bf16.msra.mxu1 %v7129_v59 }
 0x3d0   : > { %6839 = vmatprep.subr.bf16.mxu1 %v8875_v2 }
 0x3d2   : > { %6828 = vmatmul.mubr.msk.bf16.vlgmr.msra.gmra.mrb[12].mxu1 %vm1202_vm3, %v1513_v61 }
 0x3d3   : > { %6841 = vmatprep.mubr.msk.bf16.mxu1 %vm7230_vm0, %v8875_v2 }
 0x42a   : > { %v1493_v62 = vpop.f32.mrb[8].mxu0 }
 0x42b   : > { %v6821_v63 = vpop.f32.mrb[9].mxu0 }
 0x42c   : > { %v1496_v0 = vpop.f32.mrb[10].mxu0 }
 0x42d   : > { %v6822_v1 = vpop.f32.mrb[11].mxu0 }
 0x49d   : > { %v1438_v3 = vpop.f32.mrb[8].mxu1 }
 0x49e   : > { %v1494_v5 = vadd.f32 %v1493_v62, %v1438_v3  ;;  %v6813_v6 = vpop.f32.mrb[9].mxu1 }
 0x49f   : > { %v1441_v8 = vpop.f32.mrb[10].mxu1 }
 0x4a0   : > { %v1506_v9 = vadd.f32 %v6541_v4, %v1494_v5  ;;  %v6814_v10 = vpop.f32.mrb[11].mxu1 }
 0x4a2   : > { %v1580_v11 = vpack.c.bf16 %v1506_v9, %v1506_v9 }
 0x4a4   : > { %6836 = vmatmul.mubr.msk.bf16.vlgmr.msra.gmra.mrb[12].mxu0 %vm1202_vm3, %v1580_v11 }
 0x4a5   : > { %6847 = vmatprep.mubr.msk.bf16.mxu0 %vm7230_vm0, %v8875_v2  ;;  %v1569_v13 = vpop.f32.mrb[12].mxu1 }
 0x4a6   : > { %v6829_v14 = vpop.f32.mrb[13].mxu1  ;;  %v1570_v27 = vadd.f32 %v6542_v22, %v1569_v13 }
 0x4a7   : > { %v1572_v18 = vpop.f32.mrb[14].mxu1 }
 0x4a8   : > { %v6830_v19 = vpop.f32.mrb[15].mxu1 }
 0x577   : > { %v1636_v21 = vpop.f32.mrb[12].mxu0 }
 0x578   : > { %v7525_v23 = vadd.f32 %v6546_v20, %v1636_v21  ;;  %v6837_v24 = vpop.f32.mrb[13].mxu0 }
 0x579   : > { %v1639_v25 = vpop.f32.mrb[14].mxu0 }
 0x57a   : > { %1796 = vrot.lane.b32.xlu0 %v7525_v23, %s7232_s10  ;;  %1793 = vrot.lane.b32.xlu1 %v7525_v23, %s7233_s11  ;;  %v6838_v26 = vpop.f32.mrb[15].mxu0 }
 0x57e   : > { %1643 = vrot.lane.b32.xlu0 %v1570_v27, %s7233_s11  ;;  %1799 = vrot.lane.b32.xlu1 %v7525_v23, %s7234_s15 }
 0x582   : > { %1649 = vrot.lane.b32.xlu0 %v1570_v27, %s7234_s15  ;;  %1646 = vrot.lane.b32.xlu1 %v1570_v27, %s7232_s10 }
 0x5ec   : > { %v7537_v34 = vpop.permute.xlu0 %1796  ;;  %v7539_v35 = vpop.permute.xlu1 %1793 }
 0x5ed   : > { %v1802_v38 = vcombine.low %v7525_v23, %v7537_v34  ;;  %v1803_v39 = vcombine.high %v7525_v23, %v7537_v34 }
 0x5ef   : > { %v1810_v44 = vrot.slane %v1802_v38, %v7541_v37  ;;  %v1817_v45 = vrot.slane %v1803_v39, %v7541_v37 }
 0x5f0   : > { %v1644_v40 = vpop.permute.xlu0 %1643  ;;  %v7547_v41 = vpop.permute.xlu1 %1799 }
 0x5f1   : > { %v1818_v42 = vcombine.low %v7539_v35, %v7547_v41  ;;  %v1819_v17 = vcombine.high %v7539_v35, %v7547_v41 }
 0x5f3   : > { %v1826_v46 = vrot.slane %v1818_v42, %v7541_v37  ;;  %v1833_v47 = vrot.slane %v1819_v17, %v7541_v37 }
 0x5f4   : > { %v1650_v48 = vpop.permute.xlu0 %1649  ;;  %v1647_v49 = vpop.permute.xlu1 %1646 }
 0x5f5   : > { %v1834_v50 = vcombine.low %v1810_v44, %v1826_v46  ;;  %v1835_v51 = vcombine.high %v1810_v44, %v1826_v46  ;;  %v1850_v52 = vcombine.low %v1817_v45, %v1833_v47  ;;  %v1851_v53 = vcombine.high %v1817_v45, %v1833_v47 }
 0x5f6   : > { %v1668_v54 = vcombine.low %v1644_v40, %v1650_v48  ;;  %v1669_v55 = vcombine.high %v1644_v40, %v1650_v48  ;;  %v1652_v56 = vcombine.low %v1570_v27, %v1647_v49  ;;  %v1653_v57 = vcombine.high %v1570_v27, %v1647_v49 }
 0x5f7   : > { %v1842_v58 = vrot.slane %v1834_v50, %v7553_v43  ;;  %v1849_v59 = vrot.slane %v1835_v51, %v7553_v43  ;;  %v1858_v61 = vrot.slane %v1850_v52, %v7553_v43  ;;  %v1865_v62 = vrot.slane %v1851_v53, %v7553_v43 }
 0x5f8   : > { %v1676_v63 = vrot.slane %v1668_v54, %v7541_v37  ;;  %v1683_v0 = vrot.slane %v1669_v55, %v7541_v37  ;;  %v1660_v1 = vrot.slane %v1652_v56, %v7541_v37  ;;  %v1667_v3 = vrot.slane %v1653_v57, %v7541_v37 }
 0x5f9   : > { %v1870_v4 = vcombine.low %v1842_v58, %v1849_v59  ;;  %v6552_v5 = vcombine.high %v1842_v58, %v1849_v59  ;;  %v1886_v6 = vcombine.low %v1858_v61, %v1865_v62  ;;  %v6553_v8 = vcombine.high %v1858_v61, %v1865_v62 }
 0x5fa   : > { %v1684_v9 = vcombine.low %v1660_v1, %v1676_v63  ;;  %v1685_v10 = vcombine.high %v1660_v1, %v1676_v63  ;;  %v1700_v11 = vcombine.low %v1667_v3, %v1683_v0  ;;  %v1701_v13 = vcombine.high %v1667_v3, %v1683_v0 }
 0x5fb   : > { %v1877_v14 = vrot.slane %v1870_v4, %v7541_v37  ;;  %v1885_v18 = vrot.slane %v6552_v5, %v7541_v37  ;;  %v1893_v19 = vrot.slane %v1886_v6, %v7541_v37  ;;  %v1901_v20 = vrot.slane %v6553_v8, %v7541_v37 }
 0x5fc   : > { %v1692_v21 = vrot.slane %v1684_v9, %v7553_v43  ;;  %v1699_v22 = vrot.slane %v1685_v10, %v7553_v43  ;;  %v1708_v24 = vrot.slane %v1700_v11, %v7553_v43  ;;  %v1715_v25 = vrot.slane %v1701_v13, %v7553_v43 }
 0x5fd   : > { %v1902_v26 = vcombine.low %v1877_v14, %v1885_v18  ;;  %v1918_v27 = vcombine.low %v1893_v19, %v1901_v20  ;;  %v1903_v28 = vcombine.high %v1877_v14, %v1885_v18  ;;  %v1919_v29 = vcombine.high %v1893_v19, %v1901_v20 }
 0x5fe   : > { %v1720_v30 = vcombine.low %v1692_v21, %v1699_v22  ;;  %v6550_v31 = vcombine.high %v1692_v21, %v1699_v22  ;;  %v1736_v32 = vcombine.low %v1708_v24, %v1715_v25  ;;  %v6551_v33 = vcombine.high %v1708_v24, %v1715_v25 }
 0x5ff   : > { %v1910_v36 = vrot.slane %v1902_v26, %v7553_v43  ;;  %v1926_v38 = vrot.slane %v1918_v27, %v7553_v43  ;;  %v1917_v46 = vrot.slane %v1903_v28, %v7553_v43  ;;  %v1933_v47 = vrot.slane %v1919_v29, %v7553_v43 }
 0x600   : > { %v1727_v39 = vrot.slane %v1720_v30, %v7541_v37  ;;  %v1735_v40 = vrot.slane %v6550_v31, %v7541_v37  ;;  %v1743_v42 = vrot.slane %v1736_v32, %v7541_v37  ;;  %v1751_v17 = vrot.slane %v6551_v33, %v7541_v37 }
 0x601   : > { %v1934_v44 = vcombine.low %v1910_v36, %v1926_v38  ;;  %v1935_v45 = vcombine.high %v1910_v36, %v1926_v38  ;;  %v1936_v56 = vcombine.low %v1917_v46, %v1933_v47  ;;  %v1937_v57 = vcombine.high %v1917_v46, %v1933_v47 }
 0x602   : > { %v1752_v48 = vcombine.low %v1727_v39, %v1735_v40  ;;  %v1768_v49 = vcombine.low %v1743_v42, %v1751_v17  ;;  %v1753_v58 = vcombine.high %v1727_v39, %v1735_v40  ;;  %v1769_v59 = vcombine.high %v1743_v42, %v1751_v17 }
 0x603   : > { %v1938_v50 = vpack.c.bf16 %v1934_v44, %v1934_v44  ;;  %v1939_v51 = vpack.c.bf16 %v1935_v45, %v1935_v45  ;;  %v1940_v63 = vpack.c.bf16 %v1936_v56, %v1936_v56  ;;  %v1941_v0 = vpack.c.bf16 %v1937_v57, %v1937_v57 }
 0x604   : > { %v1760_v52 = vrot.slane %v1752_v48, %v7553_v43  ;;  %v1776_v53 = vrot.slane %v1768_v49, %v7553_v43  ;;  %v1767_v4 = vrot.slane %v1753_v58, %v7553_v43  ;;  %v1783_v5 = vrot.slane %v1769_v59, %v7553_v43 }
 0x605   : > { %v2099_v54 = vsel %vm2094_vm4, %v1938_v50, 0  ;;  %v2145_v55 = vsel %vm2094_vm4, %v1939_v51, 0  ;;  %v2191_v6 = vsel %vm2094_vm4, %v1940_v63, 0  ;;  %v2237_v8 = vsel %vm2094_vm4, %v1941_v0, 0 }
 0x606   : > { %6840 = vmatpush3.bf16.xpose.msra.mxu1 %v2099_v54  ;;  %6846 = vmatpush3.bf16.xpose.msra.mxu0 %v2145_v55  ;;  %v1784_v61 = vcombine.low %v1760_v52, %v1776_v53  ;;  %v1785_v62 = vcombine.high %v1760_v52, %v1776_v53  ;;  %v1786_v9 = vcombine.low %v1767_v4, %v1783_v5 }
 0x607   : > { %6851 = vmatprep.subr.bf16.mxu1 %v8875_v2  ;;  %6857 = vmatprep.subr.bf16.mxu0 %v8875_v2  ;;  %v1787_v10 = vcombine.high %v1767_v4, %v1783_v5 }
 0x608   : > { %v1788_v1 = vpack.c.bf16 %v1784_v61, %v1784_v61  ;;  %v1789_v3 = vpack.c.bf16 %v1785_v62, %v1785_v62  ;;  %v1790_v11 = vpack.c.bf16 %v1786_v9, %v1786_v9 }
 0x609   : > { %v1791_v13 = vpack.c.bf16 %v1787_v10, %v1787_v10 }
 0x60d   : > { %6842 = vmatmul.mubr.msk.bf16.vlgmr.msra.gmra.mrb[16].mxu1 %vm2094_vm4, %v1788_v1  ;;  %6848 = vmatmul.mubr.msk.bf16.vlgmr.msra.gmra.mrb[16].mxu0 %vm2094_vm4, %v1789_v3 }
 0x60e   : > { %6852 = vmatpush3.bf16.xpose.msra.mxu1 %v2191_v6  ;;  %6858 = vmatpush3.bf16.xpose.msra.mxu0 %v2237_v8 }
 0x60f   : > { %6853 = vmatprep.mubr.msk.bf16.mxu1 %vm7230_vm0, %v8875_v2  ;;  %6859 = vmatprep.mubr.msk.bf16.mxu0 %vm7230_vm0, %v8875_v2 }
 0x610   : > { %6863 = vmatprep.subr.bf16.mxu1 %v8875_v2  ;;  %6869 = vmatprep.subr.bf16.mxu0 %v8875_v2 }
 0x615   : > { %6854 = vmatmul.mubr.msk.bf16.vlgmr.msra.gmra.mrb[20].mxu1 %vm2094_vm4, %v1790_v11  ;;  %6860 = vmatmul.mubr.msk.bf16.vlgmr.msra.gmra.mrb[20].mxu0 %vm2094_vm4, %v1791_v13 }
 0x616   : > { %6865 = vmatprep.mubr.msk.bf16.mxu1 %vm7230_vm0, %v8875_v2  ;;  %6871 = vmatprep.mubr.msk.bf16.mxu0 %vm7230_vm0, %v8875_v2 }
 0x6e0   : > { %v2135_v14 = vpop.f32.mrb[16].mxu1  ;;  %v2181_v18 = vpop.f32.mrb[16].mxu0 }
 0x6e1   : > { %v2279_v19 = vmul.f32 0.35355338, %v2135_v14  ;;  %v2280_v20 = vmul.f32 0.35355338, %v2181_v18  ;;  %v6843_v21 = vpop.f32.mrb[17].mxu1  ;;  %v6849_v22 = vpop.f32.mrb[17].mxu0 }
 0x6e2   : > { %v2138_v24 = vpop.f32.mrb[18].mxu1  ;;  %v2184_v25 = vpop.f32.mrb[18].mxu0 }
 0x6e3   : > { %v6844_v26 = vpop.f32.mrb[19].mxu1  ;;  %v6850_v27 = vpop.f32.mrb[19].mxu0  ;;  %v2283_v28 = vsel %vm2094_vm4, %v2279_v19, -inf  ;;  %v2286_v29 = vsel %vm2094_vm4, %v2280_v20, -inf }
 0x6e4   : > { %2284 = vmax.xlane.f32.xlu1 %v2283_v28  ;;  %2287 = vmax.xlane.f32.xlu0 %v2286_v29 }
 0x6e8   : > { %v2227_v30 = vpop.f32.mrb[20].mxu1  ;;  %v2273_v31 = vpop.f32.mrb[20].mxu0 }
 0x6e9   : > { %v2281_v32 = vmul.f32 0.35355338, %v2227_v30  ;;  %v2282_v33 = vmul.f32 0.35355338, %v2273_v31  ;;  %v6855_v36 = vpop.f32.mrb[21].mxu1  ;;  %v6861_v38 = vpop.f32.mrb[21].mxu0 }
 0x6ea   : > { %v2230_v39 = vpop.f32.mrb[22].mxu1  ;;  %v2276_v40 = vpop.f32.mrb[22].mxu0 }
 0x6eb   : > { %v6856_v42 = vpop.f32.mrb[23].mxu1  ;;  %v6862_v17 = vpop.f32.mrb[23].mxu0  ;;  %v2289_v44 = vsel %vm2094_vm4, %v2281_v32, -inf  ;;  %v2292_v45 = vsel %vm2094_vm4, %v2282_v33, -inf }
 0x6ec   : > { %2290 = vmax.xlane.f32.xlu0 %v2289_v44  ;;  %2293 = vmax.xlane.f32.xlu1 %v2292_v45 }
 0x6fd   : > { %1944 = vrot.lane.b32.xlu1 %v7539_v35, %s7231_s2 }
 0x702   : > { %1942 = vrot.lane.b32.xlu0 %v7525_v23, %s7231_s2 }
 0x771   : > { %v2285_v46 = vpop.xlane.xlu1 %2284  ;;  %v2288_v47 = vpop.xlane.xlu0 %2287 }
 0x772   : > { %v2295_v48 = vsub.f32 %v2279_v19, %v2285_v46  ;;  %v2296_v49 = vsub.f32 %v2280_v20, %v2288_v47 }
 0x774   : > { %v2299_v50 = vmul.f32 1.442695, %v2295_v48  ;;  %v2301_v51 = vmul.f32 1.442695, %v2296_v49 }
 0x776   : > { %7146 = vpow2.f32 %v2299_v50 }
 0x777   : > { %7148 = vpow2.f32 %v2301_v51 }
 0x779   : > { %v2294_v23 = vpop.xlane.xlu1 %2293  ;;  %v2291_v55 = vpop.xlane.xlu0 %2290 }
 0x77a   : > { %v2298_v56 = vsub.f32 %v2282_v33, %v2294_v23  ;;  %v2297_v57 = vsub.f32 %v2281_v32, %v2291_v55 }
 0x77c   : > { %v2305_v58 = vmul.f32 1.442695, %v2298_v56  ;;  %v2303_v59 = vmul.f32 1.442695, %v2297_v57 }
 0x77d   : > { %v1945_v0 = vpop.permute.xlu1 %1944 }
 0x77e   : > { %7150 = vpow2.f32 %v2305_v58 }
 0x77f   : > { %7152 = vpow2.f32 %v2303_v59 }
 0x780   : > { %v7615_v52 = vpop.eup %7146 }
 0x781   : > { %v7617_v53 = vpop.eup %7148  ;;  %v2307_v54 = vsel %vm2094_vm4, %v7615_v52, 0.0 }
 0x782   : > { %2308 = vadd.xlane.f32.xlu0 %v2307_v54  ;;  %v2310_v35 = vsel %vm2094_vm4, %v7617_v53, 0.0 }
 0x783   : > { %2311 = vadd.xlane.f32.xlu1 %v2310_v35 }
 0x788   : > { %v7627_v61 = vpop.eup %7150 }
 0x789   : > { %v7629_v62 = vpop.eup %7152  ;;  %v2316_v63 = vsel %vm2094_vm4, %v7627_v61, 0.0 }
 0x794   : > { %1946 = vrot.lane.b32.xlu1 %v7537_v34, %s7231_s2  ;;  %v2313_v34 = vsel %vm2094_vm4, %v7629_v62, 0.0 }
 0x798   : > { %1948 = vrot.lane.b32.xlu0 %v7547_v41, %s7231_s2  ;;  %v1943_v41 = vpop.permute.xlu0 %1942 }
 0x7b7   : > { %2317 = vadd.xlane.f32.xlu0 %v2316_v63 }
 0x7b8   : > { %2314 = vadd.xlane.f32.xlu1 %v2313_v34 }
 0x80f   : > { %v2309_v1 = vpop.xlane.xlu0 %2308 }
 0x810   : > { %v2312_v3 = vpop.xlane.xlu1 %2311  ;;  %7154 = vrcp.f32 %v2309_v1 }
 0x811   : > { %7156 = vrcp.f32 %v2312_v3 }
 0x813   : > { %v1949_v4 = vpop.permute.xlu0 %1948 }
 0x814   : > { %v1970_v5 = vcombine.low %v1945_v0, %v1949_v4  ;;  %v1971_v6 = vcombine.high %v1945_v0, %v1949_v4  ;;  %v1947_v8 = vpop.permute.xlu1 %1946 }
 0x815   : > { %v1954_v9 = vcombine.low %v1943_v41, %v1947_v8  ;;  %v1955_v10 = vcombine.high %v1943_v41, %v1947_v8 }
 0x816   : > { %v1978_v11 = vrot.slane %v1970_v5, %v7541_v37  ;;  %v1985_v13 = vrot.slane %v1971_v6, %v7541_v37 }
 0x817   : > { %v1962_v14 = vrot.slane %v1954_v9, %v7541_v37  ;;  %v1969_v18 = vrot.slane %v1955_v10, %v7541_v37 }
 0x819   : > { %v1986_v19 = vcombine.low %v1962_v14, %v1978_v11  ;;  %v1987_v20 = vcombine.high %v1962_v14, %v1978_v11  ;;  %v2002_v21 = vcombine.low %v1969_v18, %v1985_v13  ;;  %v2003_v22 = vcombine.high %v1969_v18, %v1985_v13 }
 0x81a   : > { %v7155_v46 = vpop.eup %7154 }
 0x81b   : > { %v1994_v24 = vrot.slane %v1986_v19, %v7553_v43  ;;  %v2001_v25 = vrot.slane %v1987_v20, %v7553_v43  ;;  %v2010_v26 = vrot.slane %v2002_v21, %v7553_v43  ;;  %v2017_v27 = vrot.slane %v2003_v22, %v7553_v43  ;;  %v7157_v49 = vpop.eup %7156 }
 0x81c   : > { %v2323_v23 = vmul.f32 %v7155_v46, %v7615_v52  ;;  %v2324_v55 = vmul.f32 %v7157_v49, %v7617_v53  ;;  %v7130_v46 = vld [vmem:[%s8919_s16] sm:$0xff]  }
 0x81d   : > { %v2022_v28 = vcombine.low %v1994_v24, %v2001_v25  ;;  %v6554_v29 = vcombine.high %v1994_v24, %v2001_v25  ;;  %v2038_v30 = vcombine.low %v2010_v26, %v2017_v27  ;;  %v6555_v31 = vcombine.high %v2010_v26, %v2017_v27 }
 0x81e   : > { %v2327_v41 = vpack.c.bf16 %v2323_v23, %v2323_v23  ;;  %v2328_v0 = vpack.c.bf16 %v2324_v55, %v2324_v55  ;;  %v7131_v55 = vld [vmem:[%s8919_s16 + $0x8] sm:$0xff]  }
 0x81f   : > { %v2029_v32 = vrot.slane %v2022_v28, %v7541_v37  ;;  %v2037_v33 = vrot.slane %v6554_v29, %v7541_v37  ;;  %v2045_v36 = vrot.slane %v2038_v30, %v7541_v37  ;;  %v2053_v38 = vrot.slane %v6555_v31, %v7541_v37 }
 0x821   : > { %v2054_v39 = vcombine.low %v2029_v32, %v2037_v33  ;;  %v2055_v40 = vcombine.high %v2029_v32, %v2037_v33  ;;  %v2070_v42 = vcombine.low %v2045_v36, %v2053_v38  ;;  %v2071_v17 = vcombine.high %v2045_v36, %v2053_v38 }
 0x823   : > { %v2062_v44 = vrot.slane %v2054_v39, %v7553_v43  ;;  %v2069_v45 = vrot.slane %v2055_v40, %v7553_v43  ;;  %v2078_v47 = vrot.slane %v2070_v42, %v7553_v43  ;;  %v2085_v48 = vrot.slane %v2071_v17, %v7553_v43 }
 0x825   : > { %v2086_v50 = vcombine.low %v2062_v44, %v2078_v47  ;;  %v2087_v51 = vcombine.high %v2062_v44, %v2078_v47  ;;  %v2088_v54 = vcombine.low %v2069_v45, %v2085_v48  ;;  %v2089_v35 = vcombine.high %v2069_v45, %v2085_v48 }
 0x827   : > { %v2090_v56 = vpack.c.bf16 %v2086_v50, %v2086_v50  ;;  %v2091_v57 = vpack.c.bf16 %v2087_v51, %v2087_v51  ;;  %v2092_v63 = vpack.c.bf16 %v2088_v54, %v2088_v54  ;;  %v2093_v34 = vpack.c.bf16 %v2089_v35, %v2089_v35 }
 0x829   : > { %v2336_v58 = vsel %vm2334_vm5, %v2090_v56, 0  ;;  %v2382_v59 = vsel %vm2334_vm5, %v2091_v57, 0  ;;  %v2428_v52 = vsel %vm2334_vm5, %v2092_v63, 0  ;;  %v2474_v53 = vsel %vm2334_vm5, %v2093_v34, 0 }
 0x82a   : > { %6864 = vmatpush3.bf16.msra.mxu1 %v2336_v58  ;;  %6870 = vmatpush3.bf16.msra.mxu0 %v2382_v59 }
 0x82b   : > { %6875 = vmatprep.subr.bf16.mxu1 %v8875_v2  ;;  %6881 = vmatprep.subr.bf16.mxu0 %v8875_v2 }
 0x82d   : > { %6866 = vmatmul.mubr.msk.bf16.vlgmr.msra.gmra.mrb[24].mxu1 %vm2094_vm4, %v2327_v41  ;;  %6872 = vmatmul.mubr.msk.bf16.vlgmr.msra.gmra.mrb[24].mxu0 %vm2094_vm4, %v2328_v0 }
 0x82e   : > { %6876 = vmatpush3.bf16.msra.mxu1 %v2428_v52  ;;  %6882 = vmatpush3.bf16.msra.mxu0 %v2474_v53 }
 0x82f   : > { %6877 = vmatprep.mubr.msk.bf16.mxu1 %vm7230_vm0, %v8875_v2  ;;  %6883 = vmatprep.mubr.msk.bf16.mxu0 %vm7230_vm0, %v8875_v2 }
 0x830   : > { %6887 = vmatprep.subr.bf16.mxu1 %v8875_v2  ;;  %6895 = vmatprep.subr.bf16.mxu0 %v8875_v2 }
 0x844   : > { %v2318_v1 = vpop.xlane.xlu0 %2317 }
 0x845   : > { %7158 = vrcp.f32 %v2318_v1  ;;  %v2315_v3 = vpop.xlane.xlu1 %2314 }
 0x846   : > { %7160 = vrcp.f32 %v2315_v3 }
 0x84f   : > { %v7159_v4 = vpop.eup %7158 }
 0x850   : > { %v7161_v5 = vpop.eup %7160  ;;  %v2326_v6 = vmul.f32 %v7159_v4, %v7627_v61 }
 0x851   : > { %v2325_v8 = vmul.f32 %v7161_v5, %v7629_v62 }
 0x852   : > { %v2330_v9 = vpack.c.bf16 %v2326_v6, %v2326_v6 }
 0x853   : > { %v2329_v10 = vpack.c.bf16 %v2325_v8, %v2325_v8 }
 0x854   : > { %6884 = vmatmul.mubr.msk.bf16.vlgmr.msra.gmra.mrb[28].mxu0 %vm2094_vm4, %v2330_v9 }
 0x855   : > { %6878 = vmatmul.mubr.msk.bf16.vlgmr.msra.gmra.mrb[28].mxu1 %vm2094_vm4, %v2329_v10  ;;  %6899 = vmatprep.mubr.msk.bf16.mxu0 %vm7230_vm0, %v8875_v2 }
 0x856   : > { %6891 = vmatprep.mubr.msk.bf16.mxu1 %vm7230_vm0, %v8875_v2  ;;  %6888 = vmatpush3.bf16.msra.mxu1 %v7130_v46 }
 0x857   : > { %6889 = vmatprep.subr.bf16.mxu1 %v8875_v2 }
 0x85a   : > { %6890 = vmatpush3.bf16.msra.mxu1 %v7131_v55 }
 0x900   : > { %v2372_v11 = vpop.f32.mrb[24].mxu1  ;;  %v2418_v13 = vpop.f32.mrb[24].mxu0 }
 0x901   : > { %v6867_v14 = vpop.f32.mrb[25].mxu1  ;;  %v6873_v18 = vpop.f32.mrb[25].mxu0 }
 0x902   : > { %v2375_v19 = vpop.f32.mrb[26].mxu1  ;;  %v2421_v61 = vpop.f32.mrb[26].mxu0 }
 0x903   : > { %v6868_v20 = vpop.f32.mrb[27].mxu1  ;;  %v6874_v62 = vpop.f32.mrb[27].mxu0  ;;  %v7132_v61 = vld [vmem:[%s8920_s26] sm:$0xff]  }
 0x904   : > { %v7133_v20 = vld [vmem:[%s8920_s26 + $0x8] sm:$0xff]   ;;  %6903 = vmatprep.subr.bf16.mxu1 %v7132_v61 }
 0x927   : > { %v2510_v21 = vpop.f32.mrb[28].mxu0 }
 0x928   : > { %v2464_v22 = vpop.f32.mrb[28].mxu1  ;;  %v2532_v24 = vcombine.low %v2418_v13, %v2510_v21  ;;  %v2533_v25 = vcombine.high %v2418_v13, %v2510_v21  ;;  %v6885_v26 = vpop.f32.mrb[29].mxu0 }
 0x929   : > { %v2516_v27 = vcombine.low %v2372_v11, %v2464_v22  ;;  %v2517_v28 = vcombine.high %v2372_v11, %v2464_v22  ;;  %v6879_v29 = vpop.f32.mrb[29].mxu1  ;;  %v2513_v30 = vpop.f32.mrb[30].mxu0 }
 0x92a   : > { %v2540_v31 = vrot.slane %v2532_v24, %v7541_v37  ;;  %v2547_v32 = vrot.slane %v2533_v25, %v7541_v37  ;;  %v2467_v33 = vpop.f32.mrb[30].mxu1  ;;  %v6886_v36 = vpop.f32.mrb[31].mxu0  ;;  %v7134_v30 = vld [vmem:[%s8922_s0] sm:$0xff]  }
 0x92b   : > { %v2524_v38 = vrot.slane %v2516_v27, %v7541_v37  ;;  %v2531_v39 = vrot.slane %v2517_v28, %v7541_v37  ;;  %v6880_v40 = vpop.f32.mrb[31].mxu1  ;;  %6896 = vmatpush3.bf16.msra.mxu0 %v7134_v30 }
 0x92c   : > { %6897 = vmatprep.subr.bf16.mxu0 %v8875_v2 }
 0x92d   : > { %v2548_v42 = vcombine.low %v2524_v38, %v2540_v31  ;;  %v2549_v17 = vcombine.high %v2524_v38, %v2540_v31  ;;  %v2564_v44 = vcombine.low %v2531_v39, %v2547_v32  ;;  %v2565_v45 = vcombine.high %v2531_v39, %v2547_v32  ;;  %v7135_v31 = vld [vmem:[%s8922_s0 + $0x8] sm:$0xff]  }
 0x92f   : > { %v2556_v47 = vrot.slane %v2548_v42, %v7553_v43  ;;  %v2563_v48 = vrot.slane %v2549_v17, %v7553_v43  ;;  %v2572_v49 = vrot.slane %v2564_v44, %v7553_v43  ;;  %v2579_v50 = vrot.slane %v2565_v45, %v7553_v43  ;;  %6898 = vmatpush3.bf16.msra.mxu0 %v7135_v31 }
 0x930   : > { %6915 = vmatprep.subr.bf16.mxu0 %v8875_v2 }
 0x931   : > { %v2584_v51 = vcombine.low %v2556_v47, %v2563_v48  ;;  %v6564_v54 = vcombine.high %v2556_v47, %v2563_v48  ;;  %v2600_v35 = vcombine.low %v2572_v49, %v2579_v50  ;;  %v6565_v23 = vcombine.high %v2572_v49, %v2579_v50 }
 0x933   : > { %v2591_v56 = vrot.slane %v2584_v51, %v7541_v37  ;;  %v2599_v57 = vrot.slane %v6564_v54, %v7541_v37  ;;  %v2607_v58 = vrot.slane %v2600_v35, %v7541_v37  ;;  %v2615_v59 = vrot.slane %v6565_v23, %v7541_v37 }
 0x935   : > { %v2617_v63 = vcombine.high %v2591_v56, %v2599_v57  ;;  %v2633_v34 = vcombine.high %v2607_v58, %v2615_v59  ;;  %v2616_v41 = vcombine.low %v2591_v56, %v2599_v57  ;;  %v2632_v0 = vcombine.low %v2607_v58, %v2615_v59 }
 0x937   : > { %v2631_v52 = vrot.slane %v2617_v63, %v7553_v43  ;;  %v2647_v53 = vrot.slane %v2633_v34, %v7553_v43  ;;  %v2624_v1 = vrot.slane %v2616_v41, %v7553_v43  ;;  %v2640_v3 = vrot.slane %v2632_v0, %v7553_v43 }
 0x939   : > { %v2650_v4 = vcombine.low %v2631_v52, %v2647_v53  ;;  %v2649_v5 = vcombine.high %v2624_v1, %v2640_v3  ;;  %v2651_v6 = vcombine.high %v2631_v52, %v2647_v53  ;;  %v2648_v8 = vcombine.low %v2624_v1, %v2640_v3 }
 0x93b   : > { %2657 = vrot.lane.b32.xlu1 %v2650_v4, %s7237_s18  ;;  %2653 = vrot.lane.b32.xlu0 %v2649_v5, %s7238_s28 }
 0x93f   : > { %2661 = vrot.lane.b32.xlu1 %v2651_v6, %s8874_s1  ;;  %s8923_s1 = sld [smem:[#allocation10_spill]] }
 0x945   : > { %v6576_v32 = vld [vmem:[%s8923_s1] ss:$0 sm:$0xff]  ;;  %s8928_s1 = sld [smem:[#allocation5_spill]] }
 0x94b   : > { %v6570_v57 = vld [vmem:[%s8928_s1] ss:$0 sm:$0xff]  ;;  %s8965_s1 = sld [smem:[#allocation8_spill]] }
 0x9ad   : > { %v2658_v9 = vpop.permute.xlu1 %2657  ;;  %v2654_v10 = vpop.permute.xlu0 %2653 }
 0x9ae   : > { %v2664_v11 = vsel %vm2094_vm4, %v2648_v8, %v2654_v10 }
 0x9af   : > { %v2666_v14 = vsel %vm2665_vm6, %v2664_v11, %v2658_v9 }
 0x9b1   : > { %v2662_v13 = vpop.permute.xlu1 %2661 }
 0x9b2   : > { %v2668_v18 = vsel %vm2667_vm7, %v2666_v14, %v2662_v13 }
 0x9b3   : > { %v2674_v19 = vpack.c.bf16 %v2668_v18, %v2668_v18 }
 0x9b5   : > { %6892 = vmatmul.mubr.msk.bf16.vlgmr.msra.gmra.mrb[32].mxu1 %vm1202_vm3, %v2674_v19 }
 0x9b6   : > { %6907 = vmatprep.mubr.msk.bf16.mxu1 %vm1202_vm3, %v7442_v7  ;;  %6904 = vmatpush3.bf16.msra.mxu1 %v7132_v61  ;;  %v6566_v7 = vld [vmem:[%s8921_s7] ss:$0 sm:$0xff]  ;;  %s8930_s7 = sld [smem:[#allocation6_spill]] }
 0x9b7   : > { %6905 = vmatprep.subr.bf16.mxu1 %v7133_v20 }
 0x9ba   : > { %6906 = vmatpush3.bf16.msra.mxu1 %v7133_v20 }
 0x9bb   : > { %6927 = vmatprep.subr.bf16.mxu1 %v8875_v2 }
 0x9bc   : > { %v6571_v63 = vld [vmem:[%s8930_s7] ss:$0 sm:$0xff]  ;;  %s8995_s7 = sld [smem:[#allocation14_spill]] }
 0x9bd   : > { %6908 = vmatmul.mubr.msk.bf16.vlgmr.msra.gmra.mrb[36].mxu1 %vm1202_vm3, %v7450_v12 }
 0x9be   : > { %6911 = vmatprep.mubr.msk.bf16.mxu1 %vm1202_vm3, %v7454_v15 }
 0x9c5   : > { %6912 = vmatmul.mubr.msk.bf16.gmra.mrb[40].mxu1 %vm1202_vm3, %v7457_v16 }
 0x9c6   : > { %6935 = vmatprep.mubr.msk.bf16.mxu1 %vm7230_vm0, %v8875_v2 }
 0xa88   : > { %v2730_v62 = vpop.f32.mrb[32].mxu1 }
 0xa89   : > { %v2731_v21 = vadd.f32 %v6566_v7, %v2730_v62  ;;  %v6893_v22 = vpop.f32.mrb[33].mxu1 }
 0xa8a   : > { %v2733_v24 = vpop.f32.mrb[34].mxu1 }
 0xa8b   : > { %v6894_v25 = vpop.f32.mrb[35].mxu1  ;;  %v2736_v26 = vadd.f32 %v2731_v21, %v7511_v60 }
 0xa8d   : > { %v2739_v12 = vsel %vm1202_vm3, %v2736_v26, 0.0 }
 0xa8e   : > { %2740 = vadd.xlane.f32.xlu0 %v2739_v12 }
 0xa90   : > { %v6909_v60 = vpop.f32.mrb[36].mxu1 }
 0xa91   : > { %v2907_v33 = vpop.f32.mrb[37].mxu1  ;;  %v7735_v46 = vadd.f32 %v6909_v60, %v6576_v32 }
 0xa92   : > { %v7723_v36 = vadd.f32 %v6576_v32, %v2907_v33  ;;  %v6910_v38 = vpop.f32.mrb[38].mxu1 }
 0xa93   : > { %v2910_v39 = vpop.f32.mrb[39].mxu1  ;;  %v7739_v47 = vadd.f32 %v6910_v38, %v6576_v32 }
 0xa94   : > { %v7725_v40 = vadd.f32 %v6576_v32, %v2910_v39 }
 0xa95   : > { %8924 = vst [vmem:[#allocation20_spill] sm:$0xff] %v7739_v47 }
 0xa98   : > { %v6913_v42 = vpop.f32.mrb[40].mxu1 }
 0xa99   : > { %v2923_v17 = vpop.f32.mrb[41].mxu1  ;;  %v7767_v50 = vadd.f32 %v6913_v42, %v6576_v32 }
 0xa9a   : > { %v6914_v44 = vpop.f32.mrb[42].mxu1  ;;  %v7751_v48 = vadd.f32 %v6576_v32, %v2923_v17 }
 0xa9b   : > { %v2926_v45 = vpop.f32.mrb[43].mxu1  ;;  %8927 = vst [vmem:[#allocation23_spill] sm:$0xff] %v7767_v50  ;;  %v7771_v51 = vadd.f32 %v6914_v44, %v6576_v32 }
 0xa9c   : > { %8925 = vst [vmem:[#allocation21_spill] sm:$0xff] %v7751_v48  ;;  %v7757_v49 = vadd.f32 %v6576_v32, %v2926_v45 }
 0xa9d   : > { %8929 = vst [vmem:[#allocation24_spill] sm:$0xff] %v7771_v51 }
 0xa9e   : > { %8926 = vst [vmem:[#allocation22_spill] sm:$0xff] %v7757_v49 }
 0xaa4   : > { %3096 = vrot.lane.b32.xlu0 %v7723_v36, %s7233_s11 }
 0xaa8   : > { %3120 = vrot.lane.b32.xlu0 %v7723_v36, %s7232_s10 }
 0xaac   : > { %3144 = vrot.lane.b32.xlu0 %v7723_v36, %s7234_s15 }
 0xab0   : > { %3100 = vrot.lane.b32.xlu0 %v7735_v46, %s7233_s11 }
 0xab4   : > { %3124 = vrot.lane.b32.xlu0 %v7735_v46, %s7232_s10 }
 0xab8   : > { %3148 = vrot.lane.b32.xlu0 %v7735_v46, %s7234_s15 }
 0xabc   : > { %3104 = vrot.lane.b32.xlu0 %v7751_v48, %s7233_s11 }
 0xac0   : > { %3128 = vrot.lane.b32.xlu0 %v7751_v48, %s7232_s10 }
 0xac4   : > { %3152 = vrot.lane.b32.xlu0 %v7751_v48, %s7234_s15 }
 0xac8   : > { %3108 = vrot.lane.b32.xlu0 %v7767_v50, %s7233_s11 }
 0xacc   : > { %3132 = vrot.lane.b32.xlu0 %v7767_v50, %s7232_s10 }
 0xad0   : > { %3156 = vrot.lane.b32.xlu0 %v7767_v50, %s7234_s15 }
 0xb1b   : > { %v2741_v15 = vpop.xlane.xlu0 %2740 }
 0xb1c   : > { %v2743_v27 = vmul.f32 0.03125, %v2741_v15 }
 0xb1e   : > { %v2744_v16 = vsub.f32 %v2736_v26, %v2743_v27 }
 0xb1f   : > { %v7787_v55 = vpop.permute.xlu0 %3096 }
 0xb20   : > { %v2745_v28 = vmul.f32 %v2744_v16, %v2744_v16 }
 0xb22   : > { %v2746_v29 = vsel %vm1202_vm3, %v2745_v28, 0.0 }
 0xb23   : > { %2747 = vadd.xlane.f32.xlu1 %v2746_v29  ;;  %v7793_v41 = vpop.permute.xlu0 %3120 }
 0xb24   : > { %v3168_v0 = vcombine.low %v7723_v36, %v7793_v41  ;;  %v3169_v1 = vcombine.high %v7723_v36, %v7793_v41 }
 0xb26   : > { %v3176_v8 = vrot.slane %v3168_v0, %v7541_v37  ;;  %v3183_v14 = vrot.slane %v3169_v1, %v7541_v37 }
 0xb27   : > { %v7809_v6 = vpop.permute.xlu0 %3144 }
 0xb28   : > { %v3184_v9 = vcombine.low %v7787_v55, %v7809_v6  ;;  %v3185_v10 = vcombine.high %v7787_v55, %v7809_v6 }
 0xb2a   : > { %v3192_v20 = vrot.slane %v3184_v9, %v7541_v37  ;;  %v3199_v7 = vrot.slane %v3185_v10, %v7541_v37 }
 0xb2b   : > { %v7830_v62 = vpop.permute.xlu0 %3100 }
 0xb2c   : > { %v3200_v24 = vcombine.low %v3176_v8, %v3192_v20  ;;  %v3201_v25 = vcombine.high %v3176_v8, %v3192_v20  ;;  %v3216_v26 = vcombine.low %v3183_v14, %v3199_v7  ;;  %v3217_v12 = vcombine.high %v3183_v14, %v3199_v7 }
 0xb2e   : > { %v3208_v30 = vrot.slane %v3200_v24, %v7553_v43  ;;  %v3215_v31 = vrot.slane %v3201_v25, %v7553_v43  ;;  %v3224_v60 = vrot.slane %v3216_v26, %v7553_v43  ;;  %v3231_v32 = vrot.slane %v3217_v12, %v7553_v43 }
 0xb2f   : > { %v7840_v33 = vpop.permute.xlu0 %3124 }
 0xb30   : > { %8933 = vst [vmem:[#allocation27_spill] sm:$0xff] %v7840_v33  ;;  %v3712_v44 = vcombine.low %v3208_v30, %v3215_v31  ;;  %v6585_v45 = vcombine.high %v3208_v30, %v3215_v31  ;;  %v3304_v1 = vcombine.low %v7735_v46, %v7840_v33 }
 0xb32   : > { %v7879_v9 = vrot.slane %v3712_v44, %v7541_v37  ;;  %v7882_v10 = vrot.slane %v6585_v45, %v7541_v37  ;;  %v3312_v14 = vrot.slane %v3304_v1, %v7541_v37 }
 0xb34   : > { %3098 = vrot.lane.b32.xlu1 %v7725_v40, %s7233_s11  ;;  %v3744_v12 = vcombine.low %v7879_v9, %v7882_v10 }
 0xb36   : > { %v7914_v44 = vrot.slane %v3744_v12, %v7553_v43 }
 0xb38   : > { %3122 = vrot.lane.b32.xlu1 %v7725_v40, %s7232_s10 }
 0xb3c   : > { %3146 = vrot.lane.b32.xlu1 %v7725_v40, %s7234_s15 }
 0xb40   : > { %3102 = vrot.lane.b32.xlu1 %v7739_v47, %s7233_s11 }
 0xb44   : > { %3126 = vrot.lane.b32.xlu1 %v7739_v47, %s7232_s10 }
 0xb48   : > { %3150 = vrot.lane.b32.xlu1 %v7739_v47, %s7234_s15 }
 0xb4c   : > { %3106 = vrot.lane.b32.xlu1 %v7757_v49, %s7233_s11 }
 0xb50   : > { %3130 = vrot.lane.b32.xlu1 %v7757_v49, %s7232_s10 }
 0xb54   : > { %3154 = vrot.lane.b32.xlu1 %v7757_v49, %s7234_s15 }
 0xb58   : > { %3110 = vrot.lane.b32.xlu1 %v7771_v51, %s7233_s11 }
 0xb5c   : > { %3134 = vrot.lane.b32.xlu1 %v7771_v51, %s7232_s10 }
 0xb60   : > { %3158 = vrot.lane.b32.xlu1 %v7771_v51, %s7234_s15 }
 0xbb0   : > { %v2748_v54 = vpop.xlane.xlu1 %2747 }
 0xbb1   : > { %v2749_v35 = vmul.f32 0.03125, %v2748_v54  ;;  %v3728_v54 = vcombine.low %v3224_v60, %v3231_v32 }
 0xbb3   : > { %v2750_v23 = vadd.f32 1e-05, %v2749_v35  ;;  %v6586_v35 = vcombine.high %v3224_v60, %v3231_v32  ;;  %v7899_v25 = vrot.slane %v3728_v54, %v7541_v37 }
 0xbb4   : > { %v7790_v59 = vpop.permute.xlu1 %3098 }
 0xbb5   : > { %7162 = vrsqrt.f32 %v2750_v23  ;;  %v7902_v26 = vrot.slane %v6586_v35, %v7541_v37 }
 0xbb7   : > { %v3760_v45 = vcombine.low %v7899_v25, %v7902_v26 }
 0xbb8   : > { %v7799_v53 = vpop.permute.xlu1 %3122 }
 0xbb9   : > { %v3236_v3 = vcombine.low %v7725_v40, %v7799_v53  ;;  %v3237_v4 = vcombine.high %v7725_v40, %v7799_v53 }
 0xbbb   : > { %v3244_v11 = vrot.slane %v3236_v3, %v7541_v37  ;;  %v3251_v13 = vrot.slane %v3237_v4, %v7541_v37  ;;  %v3305_v3 = vcombine.high %v7735_v46, %v7840_v33  ;;  %v7872_v4 = vpop.permute.xlu0 %3148 }
 0xbbc   : > { %v7820_v18 = vpop.permute.xlu1 %3146  ;;  %8935 = vst [vmem:[#allocation29_spill] sm:$0xff] %v7872_v4  ;;  %v3321_v8 = vcombine.high %v7830_v62, %v7872_v4 }
 0xbbd   : > { %v3252_v19 = vcombine.low %v7790_v59, %v7820_v18  ;;  %v3253_v61 = vcombine.high %v7790_v59, %v7820_v18 }
 0xbbf   : > { %v7163_v56 = vpop.eup %7162  ;;  %v3260_v21 = vrot.slane %v3252_v19, %v7541_v37  ;;  %v3267_v22 = vrot.slane %v3253_v61, %v7541_v37  ;;  %v3319_v19 = vrot.slane %v3305_v3, %v7541_v37  ;;  %v7896_v24 = vpop.permute.xlu0 %3104 }
 0xbc0   : > { %v2752_v58 = vmul.f32 %v7163_v56, %v2744_v16  ;;  %v7834_v15 = vpop.permute.xlu1 %3102  ;;  %8937 = vst [vmem:[#allocation31_spill] sm:$0xff] %v7896_v24 }
 0xbc1   : > { %8932 = vst [vmem:[#allocation26_spill] sm:$0xff] %v7834_v15  ;;  %v3268_v27 = vcombine.low %v3244_v11, %v3260_v21  ;;  %v3269_v16 = vcombine.high %v3244_v11, %v3260_v21  ;;  %v3284_v28 = vcombine.low %v3251_v13, %v3267_v22  ;;  %v3285_v29 = vcombine.high %v3251_v13, %v3267_v22 }
 0xbc2   : > { %v2759_v34 = vmul.f32 %v6570_v57, %v2752_v58  ;;  %v3335_v22 = vrot.slane %v3321_v8, %v7541_v37 }
 0xbc3   : > { %v7843_v38 = vrot.slane %v3268_v27, %v7553_v43  ;;  %v7846_v39 = vrot.slane %v3269_v16, %v7553_v43  ;;  %v7849_v42 = vrot.slane %v3284_v28, %v7553_v43  ;;  %v7852_v17 = vrot.slane %v3285_v29, %v7553_v43  ;;  %v7930_v8 = vpop.permute.xlu0 %3128 }
 0xbc4   : > { %v7797_v52 = vadd.f32 %v6571_v63, %v2759_v34  ;;  %v7854_v23 = vpop.permute.xlu1 %3126  ;;  %v3352_v31 = vcombine.low %v3319_v19, %v3335_v22  ;;  %v3353_v60 = vcombine.high %v3319_v19, %v3335_v22  ;;  %8939 = vst [vmem:[#allocation33_spill] sm:$0xff] %v7930_v8 }
 0xbc5   : > { %8934 = vst [vmem:[#allocation28_spill] sm:$0xff] %v7854_v23  ;;  %v3780_v56 = vcombine.low %v7843_v38, %v7846_v39  ;;  %v6587_v57 = vcombine.high %v7843_v38, %v7846_v39  ;;  %v3796_v58 = vcombine.low %v7849_v42, %v7852_v17  ;;  %v6588_v63 = vcombine.high %v7849_v42, %v7852_v17 }
 0xbc6   : > { %8931 = vst [vmem:[#allocation25_spill] sm:$0xff] %v7797_v52  ;;  %v2772_v5 = vpack.c.bf16 %v7797_v52, %v7797_v52  ;;  %v3372_v34 = vcombine.low %v7739_v47, %v7854_v23  ;;  %v3373_v0 = vcombine.high %v7739_v47, %v7854_v23  ;;  %v7925_v3 = vrot.slane %v3352_v31, %v7553_v43 }
 0xbc7   : > { %v7907_v27 = vrot.slane %v3780_v56, %v7541_v37 }
 0xbc8   : > { %6900 = vmatmul.mubr.msk.bf16.vlgmr.msra.gmra.mrb[32].mxu0 %vm1202_vm3, %v2772_v5  ;;  %v3320_v5 = vcombine.low %v7830_v62, %v7872_v4  ;;  %v3380_v11 = vrot.slane %v3372_v34, %v7541_v37  ;;  %v3387_v13 = vrot.slane %v3373_v0, %v7541_v37  ;;  %v7888_v61 = vpop.permute.xlu1 %3150 }
 0xbc9   : > { %6923 = vmatprep.mubr.msk.bf16.mxu0 %vm7230_vm0, %v8875_v2  ;;  %8936 = vst [vmem:[#allocation30_spill] sm:$0xff] %v7888_v61  ;;  %v3388_v20 = vcombine.low %v7834_v15, %v7888_v61  ;;  %v3389_v7 = vcombine.high %v7834_v15, %v7888_v61 }
 0xbca   : > { %v3328_v21 = vrot.slane %v3320_v5, %v7541_v37  ;;  %v7928_v5 = vrot.slane %v3353_v60, %v7553_v43 }
 0xbcb   : > { %v3396_v16 = vrot.slane %v3388_v20, %v7541_v37  ;;  %v3403_v28 = vrot.slane %v3389_v7, %v7541_v37 }
 0xbcc   : > { %v3336_v29 = vcombine.low %v3312_v14, %v3328_v21  ;;  %v3337_v30 = vcombine.high %v3312_v14, %v3328_v21  ;;  %v7911_v32 = vpop.permute.xlu1 %3106 }
 0xbcd   : > { %8938 = vst [vmem:[#allocation32_spill] sm:$0xff] %v7911_v32  ;;  %v3404_v54 = vcombine.low %v3380_v11, %v3396_v16  ;;  %v3405_v35 = vcombine.high %v3380_v11, %v3396_v16  ;;  %v3420_v56 = vcombine.low %v3387_v13, %v3403_v28  ;;  %v3421_v34 = vcombine.high %v3387_v13, %v3403_v28 }
 0xbce   : > { %v7919_v0 = vrot.slane %v3336_v29, %v7553_v43  ;;  %v7922_v1 = vrot.slane %v3337_v30, %v7553_v43  ;;  %v7977_v30 = vrot.slane %v3760_v45, %v7553_v43  ;;  %v7983_v29 = vrot.slane %v6587_v57, %v7541_v37 }
 0xbcf   : > { %v7933_v14 = vrot.slane %v3404_v54, %v7553_v43  ;;  %v7936_v11 = vrot.slane %v3405_v35, %v7553_v43  ;;  %v7939_v13 = vrot.slane %v3420_v56, %v7553_v43  ;;  %v7942_v19 = vrot.slane %v3421_v34, %v7553_v43  ;;  %v7970_v56 = vpop.permute.xlu0 %3152 }
 0xbd0   : > { %v7952_v12 = vpop.permute.xlu1 %3130  ;;  %v3440_v54 = vcombine.low %v7751_v48, %v7930_v8  ;;  %v3441_v35 = vcombine.high %v7751_v48, %v7930_v8  ;;  %8941 = vst [vmem:[#allocation35_spill] sm:$0xff] %v7970_v56  ;;  %v3456_v34 = vcombine.low %v7896_v24, %v7970_v56  ;;  %v3457_v2 = vcombine.high %v7896_v24, %v7970_v56 }
 0xbd1   : > { %8940 = vst [vmem:[#allocation34_spill] sm:$0xff] %v7952_v12  ;;  %v3508_v31 = vcombine.low %v7757_v49, %v7952_v12  ;;  %v3509_v60 = vcombine.high %v7757_v49, %v7952_v12  ;;  %v3776_v57 = vcombine.low %v7914_v44, %v7977_v30 }
 0xbd2   : > { %v3448_v22 = vrot.slane %v3440_v54, %v7541_v37  ;;  %v3455_v21 = vrot.slane %v3441_v35, %v7541_v37  ;;  %v3464_v38 = vrot.slane %v3456_v34, %v7541_v37  ;;  %v3471_v39 = vrot.slane %v3457_v2, %v7541_v37 }
 0xbd3   : > { %v3516_v28 = vrot.slane %v3508_v31, %v7541_v37  ;;  %v3523_v16 = vrot.slane %v3509_v60, %v7541_v37  ;;  %v8003_v31 = vrot.slane %v3796_v58, %v7541_v37  ;;  %v8009_v60 = vrot.slane %v6588_v63, %v7541_v37 }
 0xbd4   : > { %v7989_v7 = vpop.permute.xlu1 %3154  ;;  %v3812_v54 = vcombine.low %v7907_v27, %v7983_v29  ;;  %v3472_v34 = vcombine.low %v3448_v22, %v3464_v38  ;;  %v3473_v52 = vcombine.high %v3448_v22, %v3464_v38  ;;  %v3488_v12 = vcombine.low %v3455_v21, %v3471_v39 }
 0xbd5   : > { %8942 = vst [vmem:[#allocation36_spill] sm:$0xff] %v7989_v7  ;;  %v3524_v45 = vcombine.low %v7911_v32, %v7989_v7  ;;  %v3525_v20 = vcombine.high %v7911_v32, %v7989_v7  ;;  %v8015_v7 = vpop.permute.xlu0 %3108  ;;  %v3489_v58 = vcombine.high %v3455_v21, %v3471_v39  ;;  %v3828_v42 = vcombine.low %v8003_v31, %v8009_v60 }
 0xbd6   : > { %8943 = vst [vmem:[#allocation37_spill] sm:$0xff] %v8015_v7  ;;  %v3820_v56 = vrot.slane %v3812_v54, %v7553_v43  ;;  %v8029_v22 = vrot.slane %v3488_v12, %v7553_v43 }
 0xbd7   : > { %v3532_v2 = vrot.slane %v3524_v45, %v7541_v37  ;;  %v3539_v35 = vrot.slane %v3525_v20, %v7541_v37  ;;  %v8023_v45 = vrot.slane %v3472_v34, %v7553_v43  ;;  %v8026_v20 = vrot.slane %v3473_v52, %v7553_v43 }
 0xbd8   : > { %v8020_v17 = vpop.permute.xlu1 %3110  ;;  %v8032_v21 = vrot.slane %v3489_v58, %v7553_v43  ;;  %v8947_v34 = vcombine.low %v7919_v0, %v7922_v1 }
 0xbd9   : > { %8944 = vst [vmem:[#allocation38_spill] sm:$0xff] %v8020_v17  ;;  %v3540_v63 = vcombine.low %v3516_v28, %v3532_v2  ;;  %v3541_v32 = vcombine.high %v3516_v28, %v3532_v2  ;;  %v3556_v8 = vcombine.low %v3523_v16, %v3539_v35  ;;  %v3557_v48 = vcombine.high %v3523_v16, %v3539_v35  ;;  %v8064_v58 = vpop.permute.xlu0 %3132 }
 0xbda   : > { %v3984_v52 = vcombine.low %v8023_v45, %v8026_v20  ;;  %8946 = vst [vmem:[#allocation40_spill] sm:$0xff] %v8064_v58  ;;  %v3777_v2 = vcombine.high %v7914_v44, %v7977_v30  ;;  %v3577_v35 = vcombine.high %v7767_v50, %v8064_v58  ;;  %v8948_v44 = vcombine.high %v7919_v0, %v7922_v1 }
 0xbdb   : > { %v8035_v38 = vrot.slane %v3540_v63, %v7553_v43  ;;  %v8038_v39 = vrot.slane %v3541_v32, %v7553_v43  ;;  %v8041_v16 = vrot.slane %v3556_v8, %v7553_v43  ;;  %v8044_v28 = vrot.slane %v3557_v48, %v7553_v43 }
 0xbdc   : > { %v8054_v32 = vpop.permute.xlu1 %3134  ;;  %v3836_v63 = vrot.slane %v3828_v42, %v7553_v43  ;;  %v3576_v48 = vcombine.low %v7767_v50, %v8064_v58  ;;  %v8081_v42 = vrot.slane %v8947_v34, %v7541_v37  ;;  %v8087_v30 = vrot.slane %v8948_v44, %v7541_v37 }
 0xbdd   : > { %8945 = vst [vmem:[#allocation39_spill] sm:$0xff] %v8054_v32  ;;  %v3644_v54 = vcombine.low %v7771_v51, %v8054_v32  ;;  %v3645_v8 = vcombine.high %v7771_v51, %v8054_v32  ;;  %v8093_v50 = vrot.slane %v3577_v35, %v7541_v37  ;;  %v8949_v34 = vcombine.low %v7925_v3, %v7928_v5 }
 0xbde   : > { %v3844_v12 = vcombine.low %v3820_v56, %v3836_v63  ;;  %v3845_v32 = vcombine.high %v3820_v56, %v3836_v63  ;;  %v3584_v58 = vrot.slane %v3576_v48, %v7541_v37  ;;  %v8950_v0 = vcombine.high %v7925_v3, %v7928_v5 }
 0xbdf   : > { %v3652_v51 = vrot.slane %v3644_v54, %v7541_v37  ;;  %v3659_v24 = vrot.slane %v3645_v8, %v7541_v37  ;;  %v8099_v61 = vrot.slane %v8949_v34, %v7541_v37  ;;  %v3880_v48 = vcombine.low %v8081_v42, %v8087_v30  ;;  %v8137_v34 = vpop.permute.xlu0 %3156 }
 0xbe0   : > { %v8105_v1 = vrot.slane %v8950_v0, %v7541_v37  ;;  %v8107_v56 = vpop.permute.xlu1 %3158  ;;  %v4256_v54 = vpack.c.bf16 %v3844_v12, %v3776_v57  ;;  %v4260_v8 = vpack.c.bf16 %v3845_v32, %v3777_v2  ;;  %v8952_v35 = vcombine.low %v7933_v14, %v7936_v11  ;;  %8956 = vst [vmem:[#allocation42_spill] sm:$0xff] %v8137_v34 }
 0xbe1   : > { %8951 = vst [vmem:[#allocation41_spill] sm:$0xff] %v8107_v56  ;;  %v8953_v3 = vcombine.high %v7933_v14, %v7936_v11  ;;  %v8954_v57 = vcombine.low %v7939_v13, %v7942_v19  ;;  %v8955_v2 = vcombine.high %v7939_v13, %v7942_v19  ;;  %v3888_v11 = vrot.slane %v3880_v48, %v7553_v43 }
 0xbe2   : > { %v8115_v63 = vrot.slane %v8952_v35, %v7541_v37  ;;  %v3896_v44 = vcombine.low %v8099_v61, %v8105_v1  ;;  %v5476_v0 = vsel %vm2094_vm4, %v4256_v54, 0  ;;  %v5531_v14 = vsel %vm2094_vm4, %v4260_v8, 0 }
 0xbe3   : > { %v8123_v5 = vrot.slane %v8953_v3, %v7541_v37  ;;  %v8129_v12 = vrot.slane %v8954_v57, %v7541_v37  ;;  %v8135_v32 = vrot.slane %v8955_v2, %v7541_v37  ;;  %v3660_v35 = vcombine.low %v8020_v17, %v8107_v56  ;;  %6916 = vmatpush3.bf16.xpose.msra.mxu0 %v5476_v0 }
 0xbe4   : > { %6928 = vmatpush3.bf16.xpose.msra.mxu1 %v5531_v14  ;;  %v3904_v3 = vrot.slane %v3896_v44, %v7553_v43  ;;  %v8957_v57 = vmov 0.0   ;;  %v3661_v54 = vcombine.high %v8020_v17, %v8107_v56  ;;  %v3592_v48 = vcombine.low %v8015_v7, %v8137_v34 }
 0xbe5   : > { %v3948_v13 = vcombine.low %v8115_v63, %v8123_v5  ;;  %v3964_v19 = vcombine.low %v8129_v12, %v8135_v32  ;;  %6917 = vmatprep.subr.bf16.mxu0 %v8957_v57  ;;  %6929 = vmatprep.subr.bf16.mxu1 %v8957_v57  ;;  %v3668_v8 = vrot.slane %v3660_v35, %v7541_v37 }
 0xbe6   : > { %v3912_v2 = vcombine.low %v3888_v11, %v3904_v3  ;;  %v3913_v14 = vcombine.high %v3888_v11, %v3904_v3  ;;  %v3675_v49 = vrot.slane %v3661_v54, %v7541_v37  ;;  %v3593_v15 = vcombine.high %v8015_v7, %v8137_v34 }
 0xbe7   : > { %v3956_v44 = vrot.slane %v3948_v13, %v7553_v43  ;;  %v3972_v0 = vrot.slane %v3964_v19, %v7553_v43  ;;  %v3676_v23 = vcombine.low %v3652_v51, %v3668_v8  ;;  %v3677_v4 = vcombine.high %v3652_v51, %v3668_v8 }
 0xbe8   : > { %v3600_v35 = vrot.slane %v3592_v48, %v7541_v37  ;;  %v8163_v17 = vrot.slane %v3984_v52, %v7541_v37  ;;  %v3692_v19 = vcombine.low %v3659_v24, %v3675_v49  ;;  %v3693_v11 = vcombine.high %v3659_v24, %v3675_v49 }
 0xbe9   : > { %v3980_v33 = vcombine.low %v3956_v44, %v3972_v0  ;;  %v3981_v56 = vcombine.high %v3956_v44, %v3972_v0  ;;  %v3684_v47 = vrot.slane %v3676_v23, %v7553_v43  ;;  %v3691_v13 = vrot.slane %v3677_v4, %v7553_v43 }
 0xbea   : > { %v3607_v51 = vrot.slane %v3593_v15, %v7541_v37  ;;  %v3608_v8 = vcombine.low %v3584_v58, %v3600_v35  ;;  %v3700_v34 = vrot.slane %v3692_v19, %v7553_v43  ;;  %v3707_v44 = vrot.slane %v3693_v11, %v7553_v43 }
 0xbeb   : > { %v4257_v3 = vpack.c.bf16 %v3980_v33, %v3912_v2  ;;  %v4261_v54 = vpack.c.bf16 %v3981_v56, %v3913_v14  ;;  %v4188_v0 = vcombine.low %v3684_v47, %v3691_v13  ;;  %v6599_v48 = vcombine.high %v3684_v47, %v3691_v13 }
 0xbec   : > { %v3609_v23 = vcombine.high %v3584_v58, %v3600_v35  ;;  %v3616_v4 = vrot.slane %v3608_v8, %v7553_v43  ;;  %v4204_v49 = vcombine.low %v3700_v34, %v3707_v44  ;;  %v6600_v33 = vcombine.high %v3700_v34, %v3707_v44 }
 0xbed   : > { %v5479_v52 = vsel %vm2094_vm4, %v4257_v3, 0  ;;  %v5534_v7 = vsel %vm2094_vm4, %v4261_v54, 0  ;;  %v3624_v15 = vcombine.low %v8093_v50, %v3607_v51  ;;  %v3625_v56 = vcombine.high %v8093_v50, %v3607_v51 }
 0xbee   : > { %6918 = vmatpush3.bf16.xpose.msra.mxu0 %v5479_v52  ;;  %6930 = vmatpush3.bf16.xpose.msra.mxu1 %v5534_v7  ;;  %v3623_v24 = vrot.slane %v3609_v23, %v7553_v43  ;;  %v8958_v47 = vcombine.high %v8023_v45, %v8026_v20  ;;  %v8959_v34 = vcombine.low %v8029_v22, %v8032_v21 }
 0xbef   : > { %6919 = vmatprep.subr.bf16.mxu0 %v8957_v57  ;;  %6931 = vmatprep.subr.bf16.mxu1 %v8957_v57  ;;  %v3632_v7 = vrot.slane %v3624_v15, %v7553_v43  ;;  %v8960_v50 = vcombine.high %v8029_v22, %v8032_v21  ;;  %v8961_v45 = vcombine.low %v8035_v38, %v8038_v39 }
 0xbf0   : > { %v8182_v58 = vrot.slane %v8958_v47, %v7541_v37  ;;  %v8189_v2 = vrot.slane %v8959_v34, %v7541_v37  ;;  %v3639_v35 = vrot.slane %v3625_v56, %v7553_v43  ;;  %v4120_v13 = vcombine.low %v3616_v4, %v3623_v24 }
 0xbf1   : > { %v8195_v14 = vrot.slane %v8960_v50, %v7541_v37  ;;  %v8201_v20 = vrot.slane %v8961_v45, %v7541_v37  ;;  %v6597_v19 = vcombine.high %v3616_v4, %v3623_v24  ;;  %v8962_v22 = vcombine.high %v8035_v38, %v8038_v39 }
 0xbf2   : > { %v4016_v11 = vcombine.low %v8163_v17, %v8182_v58  ;;  %v8963_v54 = vcombine.low %v8041_v16, %v8044_v28  ;;  %v8964_v8 = vcombine.high %v8041_v16, %v8044_v28  ;;  %v4136_v52 = vcombine.low %v3632_v7, %v3639_v35 }
 0xbf3   : > { %v4032_v3 = vcombine.low %v8189_v2, %v8195_v14  ;;  %v8212_v21 = vrot.slane %v8962_v22, %v7541_v37  ;;  %v6598_v23 = vcombine.high %v3632_v7, %v3639_v35  ;;  %v8228_v38 = vrot.slane %v4120_v13, %v7541_v37 }
 0xbf4   : > { %v8218_v51 = vrot.slane %v8963_v54, %v7541_v37  ;;  %v8224_v44 = vrot.slane %v8964_v8, %v7541_v37  ;;  %v4024_v4 = vrot.slane %v4016_v11, %v7553_v43  ;;  %v8236_v56 = vrot.slane %v6597_v19, %v7541_v37 }
 0xbf5   : > { %v4040_v39 = vrot.slane %v4032_v3, %v7553_v43  ;;  %v4084_v15 = vcombine.low %v8201_v20, %v8212_v21  ;;  %v8239_v16 = vrot.slane %v4136_v52, %v7541_v37  ;;  %v8242_v28 = vrot.slane %v6598_v23, %v7541_v37 }
 0xbf6   : > { %v4100_v24 = vcombine.low %v8218_v51, %v8224_v44  ;;  %v8245_v47 = vrot.slane %v4188_v0, %v7541_v37  ;;  %v8248_v7 = vrot.slane %v6599_v48, %v7541_v37  ;;  %v4152_v13 = vcombine.low %v8228_v38, %v8236_v56 }
 0xbf7   : > { %v4048_v34 = vcombine.low %v4024_v4, %v4040_v39  ;;  %v4092_v50 = vrot.slane %v4084_v15, %v7553_v43  ;;  %v4049_v35 = vcombine.high %v4024_v4, %v4040_v39  ;;  %v4168_v19 = vcombine.low %v8239_v16, %v8242_v28 }
 0xbf8   : > { %v4108_v45 = vrot.slane %v4100_v24, %v7553_v43  ;;  %v8257_v11 = vrot.slane %v4204_v49, %v7541_v37  ;;  %v8260_v0 = vrot.slane %v6600_v33, %v7541_v37  ;;  %v4220_v22 = vcombine.low %v8245_v47, %v8248_v7 }
 0xbf9   : > { %v3745_v54 = vcombine.high %v7879_v9, %v7882_v10  ;;  %v4160_v8 = vrot.slane %v4152_v13, %v7553_v43  ;;  %v4176_v52 = vrot.slane %v4168_v19, %v7553_v43  ;;  %v3761_v49 = vcombine.high %v7899_v25, %v7902_v26 }
 0xbfa   : > { %v4116_v48 = vcombine.low %v4092_v50, %v4108_v45  ;;  %v4117_v3 = vcombine.high %v4092_v50, %v4108_v45  ;;  %v4236_v23 = vcombine.low %v8257_v11, %v8260_v0  ;;  %v4228_v39 = vrot.slane %v4220_v22, %v7553_v43 }
 0xbfb   : > { %v3759_v15 = vrot.slane %v3745_v54, %v7553_v43  ;;  %v4184_v24 = vcombine.low %v4160_v8, %v4176_v52  ;;  %v4185_v9 = vcombine.high %v4160_v8, %v4176_v52  ;;  %v3775_v10 = vrot.slane %v3761_v49, %v7553_v43 }
 0xbfc   : > { %v4258_v33 = vpack.c.bf16 %v4116_v48, %v4048_v34  ;;  %v4262_v4 = vpack.c.bf16 %v4117_v3, %v4049_v35  ;;  %v4244_v50 = vrot.slane %v4236_v23, %v7553_v43  ;;  %v3813_v19 = vcombine.high %v7907_v27, %v7983_v29 }
 0xbfd   : > { %v3829_v25 = vcombine.high %v8003_v31, %v8009_v60  ;;  %v3778_v35 = vcombine.low %v3759_v15, %v3775_v10  ;;  %v3779_v22 = vcombine.high %v3759_v15, %v3775_v10  ;;  %v3881_v27 = vcombine.high %v8081_v42, %v8087_v30 }
 0xbfe   : > { %v5482_v45 = vsel %vm2094_vm4, %v4258_v33, 0  ;;  %v5537_v13 = vsel %vm2094_vm4, %v4262_v4, 0  ;;  %v4252_v26 = vcombine.low %v4228_v39, %v4244_v50  ;;  %v4253_v34 = vcombine.high %v4228_v39, %v4244_v50 }
 0xbff   : > { %6920 = vmatpush3.bf16.xpose.msra.mxu0 %v5482_v45  ;;  %6932 = vmatpush3.bf16.xpose.msra.mxu1 %v5537_v13  ;;  %v3827_v48 = vrot.slane %v3813_v19, %v7553_v43  ;;  %v3843_v3 = vrot.slane %v3829_v25, %v7553_v43  ;;  %v3897_v29 = vcombine.high %v8099_v61, %v8105_v1 }
 0xc00   : > { %6921 = vmatprep.subr.bf16.mxu0 %v8957_v57  ;;  %6933 = vmatprep.subr.bf16.mxu1 %v8957_v57  ;;  %v4259_v54 = vpack.c.bf16 %v4252_v26, %v4184_v24  ;;  %v4263_v8 = vpack.c.bf16 %v4253_v34, %v4185_v9  ;;  %v3949_v52 = vcombine.high %v8115_v63, %v8123_v5 }
 0xc01   : > { %v3846_v31 = vcombine.low %v3827_v48, %v3843_v3  ;;  %v3847_v60 = vcombine.high %v3827_v48, %v3843_v3  ;;  %v3965_v23 = vcombine.high %v8129_v12, %v8135_v32  ;;  %v3895_v4 = vrot.slane %v3881_v27, %v7553_v43 }
 0xc02   : > { %v5485_v49 = vsel %vm2094_vm4, %v4259_v54, 0  ;;  %v5540_v33 = vsel %vm2094_vm4, %v4263_v8, 0  ;;  %v3911_v39 = vrot.slane %v3897_v29, %v7553_v43  ;;  %v3963_v61 = vrot.slane %v3949_v52, %v7553_v43  ;;  %v8977_v52 = vld [vmem:[#allocation35_spill] sm:$0xff] }
 0xc03   : > { %v8298_v42 = vpack.c.bf16 %v3846_v31, %v3778_v35  ;;  %v8300_v30 = vpack.c.bf16 %v3847_v60, %v3779_v22  ;;  %v3979_v1 = vrot.slane %v3965_v23, %v7553_v43  ;;  %v4017_v50 = vcombine.high %v8163_v17, %v8182_v58  ;;  %v8976_v60 = vld [vmem:[#allocation32_spill] sm:$0xff]  ;;  %v8978_v23 = vld [vmem:[#allocation34_spill] sm:$0xff] }
 0xc04   : > { %v3914_v63 = vcombine.low %v3895_v4, %v3911_v39  ;;  %v3915_v5 = vcombine.high %v3895_v4, %v3911_v39  ;;  %v4033_v9 = vcombine.high %v8189_v2, %v8195_v14  ;;  %v4085_v10 = vcombine.high %v8201_v20, %v8212_v21  ;;  %v8981_v4 = vld [vmem:[#allocation24_spill] sm:$0xff]  ;;  %v8982_v39 = vld [vmem:[#allocation37_spill] sm:$0xff] }
 0xc05   : > { %v3982_v15 = vcombine.low %v3963_v61, %v3979_v1  ;;  %v3983_v12 = vcombine.high %v3963_v61, %v3979_v1  ;;  %v4101_v45 = vcombine.high %v8218_v51, %v8224_v44  ;;  %v4153_v13 = vcombine.high %v8228_v38, %v8236_v56  ;;  %v8983_v61 = vld [vmem:[#allocation38_spill] sm:$0xff] }
 0xc06   : > { %v4031_v19 = vrot.slane %v4017_v50, %v7553_v43  ;;  %v4169_v25 = vcombine.high %v8239_v16, %v8242_v28  ;;  %v4047_v26 = vrot.slane %v4033_v9, %v7553_v43  ;;  %v4099_v17 = vrot.slane %v4085_v10, %v7553_v43 }
 0xc07   : > { %6922 = vmatpush3.bf16.xpose.msra.mxu0 %v5485_v49  ;;  %6934 = vmatpush3.bf16.xpose.msra.mxu1 %v5540_v33  ;;  %v8306_v32 = vpack.c.bf16 %v3982_v15, %v3914_v63  ;;  %v8308_v24 = vpack.c.bf16 %v3983_v12, %v3915_v5  ;;  %v4115_v58 = vrot.slane %v4101_v45, %v7553_v43  ;;  %v8979_v49 = vld [vmem:[#allocation23_spill] sm:$0xff]  ;;  %v8980_v33 = vld [vmem:[#allocation36_spill] sm:$0xff] }
 0xc08   : > { %6939 = vmatprep.subr.bf16.mxu0 %v8957_v57  ;;  %6951 = vmatprep.subr.bf16.mxu1 %v8957_v57  ;;  %v4167_v2 = vrot.slane %v4153_v13, %v7553_v43  ;;  %v4183_v14 = vrot.slane %v4169_v25, %v7553_v43  ;;  %v4221_v20 = vcombine.high %v8245_v47, %v8248_v7 }
 0xc09   : > { %v4237_v21 = vcombine.high %v8257_v11, %v8260_v0  ;;  %v4050_v51 = vcombine.low %v4031_v19, %v4047_v26  ;;  %v4118_v44 = vcombine.low %v4099_v17, %v4115_v58  ;;  %v4051_v38 = vcombine.high %v4031_v19, %v4047_v26  ;;  %v6572_v11 = vld [vmem:[%s8965_s1] ss:$0 sm:$0xff]  ;;  %s8996_s1 = sld [smem:[#allocation16_spill]] }
 0xc0a   : > { %v4119_v56 = vcombine.high %v4099_v17, %v4115_v58  ;;  %v4186_v16 = vcombine.low %v4167_v2, %v4183_v14  ;;  %v4235_v28 = vrot.slane %v4221_v20, %v7553_v43  ;;  %v4187_v35 = vcombine.high %v4167_v2, %v4183_v14 }
 0xc0b   : > { %v4251_v34 = vrot.slane %v4237_v21, %v7553_v43  ;;  %v8334_v48 = vpack.c.bf16 %v4118_v44, %v4050_v51 }
 0xc0c   : > { %v8336_v3 = vpack.c.bf16 %v4119_v56, %v4051_v38 }
 0xc0d   : > { %v4254_v22 = vcombine.low %v4235_v28, %v4251_v34  ;;  %v4255_v47 = vcombine.high %v4235_v28, %v4251_v34  ;;  %v8412_v28 = vsel %vm2094_vm4, %v8298_v42, 0 }
 0xc0f   : > { %v8338_v7 = vpack.c.bf16 %v4254_v22, %v4186_v16  ;;  %v8340_v54 = vpack.c.bf16 %v4255_v47, %v4187_v35 }
 0xc9b   : > { %v2828_v0 = vpop.f32.mrb[32].mxu0 }
 0xc9c   : > { %v2829_v8 = vadd.f32 %v6572_v11, %v2828_v0  ;;  %v6901_v27 = vpop.f32.mrb[33].mxu0 }
 0xc9d   : > { %v2831_v29 = vpop.f32.mrb[34].mxu0  ;;  %v8420_v27 = vsel %vm2094_vm4, %v8306_v32, 0  ;;  %v8434_v32 = vsel %vm2094_vm4, %v8334_v48, 0 }
 0xc9e   : > { %2942 = vrot.lane.b32.xlu1 %v2829_v8, %s7232_s10  ;;  %2939 = vrot.lane.b32.xlu0 %v2829_v8, %s7233_s11  ;;  %v6902_v31 = vpop.f32.mrb[35].mxu0  ;;  %s8989_s10 = sld [smem:[#allocation12_spill]]  ;;  %s8990_s11 = smov 24  }
 0xca2   : > { %4274 = vrot.lane.b32.xlu1 %v7725_v40, %s7231_s2  ;;  %2945 = vrot.lane.b32.xlu0 %v2829_v8, %s7234_s15  ;;  %v8967_v40 = vld [vmem:[#allocation27_spill] sm:$0xff]  ;;  %s8991_s15 = sld [smem:[#allocation15_spill]] }
 0xca6   : > { %4288 = vrot.lane.b32.xlu1 %v7787_v55, %s7231_s2  ;;  %4272 = vrot.lane.b32.xlu0 %v7723_v36, %s7231_s2  ;;  %v8966_v36 = vld [vmem:[#allocation20_spill] sm:$0xff]  ;;  %v8968_v55 = vld [vmem:[#allocation26_spill] sm:$0xff] }
 0xcaa   : > { %4304 = vrot.lane.b32.xlu1 %v7793_v41, %s7231_s2  ;;  %4290 = vrot.lane.b32.xlu0 %v7790_v59, %s7231_s2  ;;  %v8969_v59 = vld [vmem:[#allocation29_spill] sm:$0xff]  ;;  %v8971_v41 = vld [vmem:[#allocation22_spill] sm:$0xff] }
 0xcae   : > { %4320 = vrot.lane.b32.xlu1 %v7809_v6, %s7231_s2  ;;  %4306 = vrot.lane.b32.xlu0 %v7799_v53, %s7231_s2  ;;  %v8972_v53 = vld [vmem:[#allocation30_spill] sm:$0xff]  ;;  %v8973_v6 = vld [vmem:[#allocation31_spill] sm:$0xff] }
 0xcb2   : > { %4276 = vrot.lane.b32.xlu1 %v7735_v46, %s7231_s2  ;;  %4322 = vrot.lane.b32.xlu0 %v7820_v18, %s7231_s2  ;;  %v8970_v46 = vld [vmem:[#allocation28_spill] sm:$0xff]  ;;  %v8974_v18 = vld [vmem:[#allocation21_spill] sm:$0xff] }
 0xcb6   : > { %4292 = vrot.lane.b32.xlu1 %v7830_v62, %s7231_s2  ;;  %4278 = vrot.lane.b32.xlu0 %v8966_v36, %s7231_s2  ;;  %v8975_v62 = vld [vmem:[#allocation33_spill] sm:$0xff] }
 0xcba   : > { %4308 = vrot.lane.b32.xlu1 %v8967_v40, %s7231_s2  ;;  %4294 = vrot.lane.b32.xlu0 %v8968_v55, %s7231_s2 }
 0xcbe   : > { %4324 = vrot.lane.b32.xlu1 %v8969_v59, %s7231_s2  ;;  %4310 = vrot.lane.b32.xlu0 %v8970_v46, %s7231_s2 }
 0xcc2   : > { %4282 = vrot.lane.b32.xlu1 %v8971_v41, %s7231_s2  ;;  %4326 = vrot.lane.b32.xlu0 %v8972_v53, %s7231_s2 }
 0xcc6   : > { %4296 = vrot.lane.b32.xlu1 %v8973_v6, %s7231_s2  ;;  %4280 = vrot.lane.b32.xlu0 %v8974_v18, %s7231_s2 }
 0xcca   : > { %4312 = vrot.lane.b32.xlu1 %v8975_v62, %s7231_s2  ;;  %4298 = vrot.lane.b32.xlu0 %v8976_v60, %s7231_s2 }
 0xcce   : > { %4328 = vrot.lane.b32.xlu1 %v8977_v52, %s7231_s2  ;;  %4314 = vrot.lane.b32.xlu0 %v8978_v23, %s7231_s2 }
 0xcd2   : > { %4284 = vrot.lane.b32.xlu1 %v8979_v49, %s7231_s2  ;;  %4330 = vrot.lane.b32.xlu0 %v8980_v33, %s7231_s2 }
 0xcd6   : > { %4286 = vrot.lane.b32.xlu0 %v8981_v4, %s7231_s2  ;;  %4300 = vrot.lane.b32.xlu1 %v8982_v39, %s7231_s2 }
 0xcda   : > { %4302 = vrot.lane.b32.xlu0 %v8983_v61, %s7231_s2 }
 0xd10   : > { %v2943_v1 = vpop.permute.xlu1 %2942  ;;  %v2940_v63 = vpop.permute.xlu0 %2939 }
 0xd11   : > { %v2948_v5 = vcombine.low %v2829_v8, %v2943_v1  ;;  %v2949_v15 = vcombine.high %v2829_v8, %v2943_v1  ;;  %v8416_v8 = vsel %vm2094_vm4, %v8300_v30, 0  ;;  %v8430_v30 = vsel %vm2094_vm4, %v8308_v24, 0 }
 0xd13   : > { %v2956_v45 = vrot.slane %v2948_v5, %v7541_v37  ;;  %v2963_v13 = vrot.slane %v2949_v15, %v7541_v37 }
 0xd14   : > { %v4275_v12 = vpop.permute.xlu1 %4274  ;;  %v2946_v50 = vpop.permute.xlu0 %2945 }
 0xd15   : > { %v2964_v9 = vcombine.low %v2940_v63, %v2946_v50  ;;  %v2965_v10 = vcombine.high %v2940_v63, %v2946_v50 }
 0xd17   : > { %v2972_v19 = vrot.slane %v2964_v9, %v7541_v37  ;;  %v2979_v25 = vrot.slane %v2965_v10, %v7541_v37 }
 0xd18   : > { %v4289_v26 = vpop.permute.xlu1 %4288  ;;  %v4273_v17 = vpop.permute.xlu0 %4272 }
 0xd19   : > { %v2980_v58 = vcombine.low %v2956_v45, %v2972_v19  ;;  %v2981_v2 = vcombine.high %v2956_v45, %v2972_v19  ;;  %v2996_v14 = vcombine.low %v2963_v13, %v2979_v25  ;;  %v2997_v20 = vcombine.high %v2963_v13, %v2979_v25 }
 0xd1b   : > { %v2988_v21 = vrot.slane %v2980_v58, %v7553_v43  ;;  %v2995_v51 = vrot.slane %v2981_v2, %v7553_v43  ;;  %v3004_v44 = vrot.slane %v2996_v14, %v7553_v43  ;;  %v3011_v38 = vrot.slane %v2997_v20, %v7553_v43 }
 0xd1c   : > { %v4305_v56 = vpop.permute.xlu1 %4304  ;;  %v4291_v16 = vpop.permute.xlu0 %4290 }
 0xd1d   : > { %v3016_v34 = vcombine.low %v2988_v21, %v2995_v51  ;;  %v6583_v35 = vcombine.high %v2988_v21, %v2995_v51  ;;  %v3032_v22 = vcombine.low %v3004_v44, %v3011_v38  ;;  %v6584_v47 = vcombine.high %v3004_v44, %v3011_v38 }
 0xd1e   : > { %v4368_v11 = vcombine.low %v4273_v17, %v4305_v56  ;;  %v4369_v0 = vcombine.high %v4273_v17, %v4305_v56 }
 0xd1f   : > { %v3023_v29 = vrot.slane %v3016_v34, %v7541_v37  ;;  %v3031_v31 = vrot.slane %v6583_v35, %v7541_v37  ;;  %v3039_v42 = vrot.slane %v3032_v22, %v7541_v37  ;;  %v3047_v36 = vrot.slane %v6584_v47, %v7541_v37 }
 0xd20   : > { %v4376_v40 = vrot.slane %v4368_v11, %v7541_v37  ;;  %v4383_v55 = vrot.slane %v4369_v0, %v7541_v37  ;;  %v4321_v59 = vpop.permute.xlu1 %4320  ;;  %v4307_v46 = vpop.permute.xlu0 %4306 }
 0xd21   : > { %v3048_v41 = vcombine.low %v3023_v29, %v3031_v31  ;;  %v3049_v53 = vcombine.high %v3023_v29, %v3031_v31  ;;  %v3064_v6 = vcombine.low %v3039_v42, %v3047_v36  ;;  %v3065_v18 = vcombine.high %v3039_v42, %v3047_v36 }
 0xd22   : > { %v4384_v62 = vcombine.low %v4289_v26, %v4321_v59  ;;  %v4385_v60 = vcombine.high %v4289_v26, %v4321_v59  ;;  %v4436_v52 = vcombine.low %v4275_v12, %v4307_v46  ;;  %v4437_v23 = vcombine.high %v4275_v12, %v4307_v46 }
 0xd23   : > { %v3056_v49 = vrot.slane %v3048_v41, %v7553_v43  ;;  %v3072_v33 = vrot.slane %v3064_v6, %v7553_v43  ;;  %v8439_v4 = vrot.slane %v3049_v53, %v7553_v43  ;;  %v8442_v24 = vrot.slane %v3065_v18, %v7553_v43 }
 0xd24   : > { %v4392_v48 = vrot.slane %v4384_v62, %v7541_v37  ;;  %v4399_v39 = vrot.slane %v4385_v60, %v7541_v37  ;;  %v4444_v61 = vrot.slane %v4436_v52, %v7541_v37  ;;  %v4451_v1 = vrot.slane %v4437_v23, %v7541_v37  ;;  %v4277_v63 = vpop.permute.xlu1 %4276  ;;  %v4323_v5 = vpop.permute.xlu0 %4322 }
 0xd25   : > { %v4452_v15 = vcombine.low %v4291_v16, %v4323_v5  ;;  %v4453_v12 = vcombine.high %v4291_v16, %v4323_v5  ;;  %v3080_v50 = vcombine.low %v3056_v49, %v3072_v33  ;;  %v3081_v9 = vcombine.high %v3056_v49, %v3072_v33 }
 0xd26   : > { %v4400_v10 = vcombine.low %v4376_v40, %v4392_v48  ;;  %v4401_v45 = vcombine.high %v4376_v40, %v4392_v48  ;;  %v4416_v13 = vcombine.low %v4383_v55, %v4399_v39  ;;  %v4417_v19 = vcombine.high %v4383_v55, %v4399_v39 }
 0xd27   : > { %v4460_v25 = vrot.slane %v4452_v15, %v7541_v37  ;;  %v4467_v26 = vrot.slane %v4453_v12, %v7541_v37  ;;  %v3084_v17 = vpack.c.bf16 %v3080_v50, %v3080_v50  ;;  %v3085_v58 = vpack.c.bf16 %v3081_v9, %v3081_v9 }
 0xd28   : > { %v4408_v2 = vrot.slane %v4400_v10, %v7553_v43  ;;  %v4415_v14 = vrot.slane %v4401_v45, %v7553_v43  ;;  %v4424_v20 = vrot.slane %v4416_v13, %v7553_v43  ;;  %v4431_v21 = vrot.slane %v4417_v19, %v7553_v43  ;;  %v4293_v51 = vpop.permute.xlu1 %4292  ;;  %v4279_v44 = vpop.permute.xlu0 %4278 }
 0xd29   : > { %v4468_v38 = vcombine.low %v4444_v61, %v4460_v25  ;;  %v4469_v56 = vcombine.high %v4444_v61, %v4460_v25  ;;  %v4484_v16 = vcombine.low %v4451_v1, %v4467_v26  ;;  %v4485_v34 = vcombine.high %v4451_v1, %v4467_v26  ;;  %6924 = vmatmul.mubr.msk.bf16.vlgmr.msra.gmra.mrb[36].mxu0 %vm2094_vm4, %v3084_v17 }
 0xd2a   : > { %v4912_v35 = vcombine.low %v4408_v2, %v4415_v14  ;;  %v6601_v22 = vcombine.high %v4408_v2, %v4415_v14  ;;  %v4928_v47 = vcombine.low %v4424_v20, %v4431_v21  ;;  %v6602_v11 = vcombine.high %v4424_v20, %v4431_v21  ;;  %6936 = vmatmul.mubr.msk.bf16.vlgmr.msra.gmra.mrb[44].mxu1 %vm2094_vm4, %v3085_v58 }
 0xd2b   : > { %v4476_v0 = vrot.slane %v4468_v38, %v7553_v43  ;;  %v4483_v29 = vrot.slane %v4469_v56, %v7553_v43  ;;  %v4492_v31 = vrot.slane %v4484_v16, %v7553_v43  ;;  %v4499_v42 = vrot.slane %v4485_v34, %v7553_v43  ;;  %6940 = vmatpush3.bf16.xpose.msra.mxu0 %v8412_v28 }
 0xd2c   : > { %v8462_v36 = vrot.slane %v4912_v35, %v7541_v37  ;;  %v8465_v40 = vrot.slane %v6601_v22, %v7541_v37  ;;  %v8468_v55 = vrot.slane %v4928_v47, %v7541_v37  ;;  %v8471_v59 = vrot.slane %v6602_v11, %v7541_v37  ;;  %6952 = vmatpush3.bf16.xpose.msra.mxu1 %v8416_v8  ;;  %v4309_v46 = vpop.permute.xlu1 %4308  ;;  %v4295_v41 = vpop.permute.xlu0 %4294 }
 0xd2d   : > { %v4980_v53 = vcombine.low %v4476_v0, %v4483_v29  ;;  %v6603_v6 = vcombine.high %v4476_v0, %v4483_v29  ;;  %v4996_v18 = vcombine.low %v4492_v31, %v4499_v42  ;;  %v6604_v28 = vcombine.high %v4492_v31, %v4499_v42  ;;  %6941 = vmatprep.subr.bf16.mxu0 %v8957_v57 }
 0xd2e   : > { %v4504_v62 = vcombine.low %v4277_v63, %v4309_v46  ;;  %v4505_v60 = vcombine.high %v4277_v63, %v4309_v46  ;;  %6953 = vmatprep.subr.bf16.mxu1 %v8957_v57  ;;  %v8478_v52 = vsel %vm2094_vm4, %v8336_v3, 0  ;;  %6947 = vmatprep.mubr.msk.bf16.mxu0 %vm7230_vm0, %v8957_v57  ;;  %v8484_v8 = vcombine.low %v8439_v4, %v8442_v24 }
 0xd2f   : > { %v8487_v23 = vrot.slane %v4980_v53, %v7541_v37  ;;  %v8490_v49 = vrot.slane %v6603_v6, %v7541_v37  ;;  %v8493_v33 = vrot.slane %v4996_v18, %v7541_v37  ;;  %v8496_v48 = vrot.slane %v6604_v28, %v7541_v37  ;;  %6959 = vmatprep.mubr.msk.bf16.mxu1 %vm7230_vm0, %v8957_v57 }
 0xd30   : > { %v4512_v3 = vrot.slane %v4504_v62, %v7541_v37  ;;  %v4519_v39 = vrot.slane %v4505_v60, %v7541_v37  ;;  %v4325_v61 = vpop.permute.xlu1 %4324  ;;  %v4311_v1 = vpop.permute.xlu0 %4310  ;;  %v3086_v63 = vpack.c.bf16 %v8484_v8, %v8484_v8  ;;  %v8506_v5 = vcombine.high %v8439_v4, %v8442_v24 }
 0xd31   : > { %v4520_v15 = vcombine.low %v4293_v51, %v4325_v61  ;;  %v4521_v12 = vcombine.high %v4293_v51, %v4325_v61  ;;  %v4572_v50 = vcombine.low %v4279_v44, %v4311_v1  ;;  %v4573_v9 = vcombine.high %v4279_v44, %v4311_v1 }
 0xd32   : > { %v3087_v10 = vpack.c.bf16 %v8506_v5, %v8506_v5  ;;  %v4944_v45 = vcombine.low %v8462_v36, %v8465_v40  ;;  %v4960_v13 = vcombine.low %v8468_v55, %v8471_v59  ;;  %v5012_v19 = vcombine.low %v8487_v23, %v8490_v49 }
 0xd33   : > { %v4528_v25 = vrot.slane %v4520_v15, %v7541_v37  ;;  %v4535_v4 = vrot.slane %v4521_v12, %v7541_v37  ;;  %v4580_v24 = vrot.slane %v4572_v50, %v7541_v37  ;;  %v4587_v26 = vrot.slane %v4573_v9, %v7541_v37  ;;  %6942 = vmatpush3.bf16.xpose.msra.mxu0 %v8420_v27 }
 0xd34   : > { %6954 = vmatpush3.bf16.xpose.msra.mxu1 %v8430_v30  ;;  %v8522_v17 = vpop.permute.xlu1 %4282  ;;  %v4327_v58 = vpop.permute.xlu0 %4326  ;;  %6943 = vmatprep.subr.bf16.mxu0 %v8957_v57  ;;  %v8527_v2 = vsel %vm2094_vm4, %v8338_v7, 0  ;;  %v8530_v14 = vrot.slane %v4944_v45, %v7553_v43  ;;  %v8533_v20 = vrot.slane %v4960_v13, %v7553_v43  ;;  %v8536_v21 = vrot.slane %v5012_v19, %v7553_v43 }
 0xd35   : > { %v4536_v27 = vcombine.low %v4512_v3, %v4528_v25  ;;  %v4537_v30 = vcombine.high %v4512_v3, %v4528_v25  ;;  %v4552_v51 = vcombine.low %v4519_v39, %v4535_v4  ;;  %v4553_v44 = vcombine.high %v4519_v39, %v4535_v4  ;;  %6955 = vmatprep.subr.bf16.mxu1 %v8957_v57 }
 0xd36   : > { %v4588_v38 = vcombine.low %v4295_v41, %v4327_v58  ;;  %v4589_v56 = vcombine.high %v4295_v41, %v4327_v58  ;;  %v4976_v7 = vcombine.low %v8530_v14, %v8533_v20  ;;  %v5028_v16 = vcombine.low %v8493_v33, %v8496_v48 }
 0xd37   : > { %v4544_v34 = vrot.slane %v4536_v27, %v7553_v43  ;;  %v4551_v35 = vrot.slane %v4537_v30, %v7553_v43  ;;  %v4560_v22 = vrot.slane %v4552_v51, %v7553_v43  ;;  %v4567_v47 = vrot.slane %v4553_v44, %v7553_v43 }
 0xd38   : > { %v4596_v11 = vrot.slane %v4588_v38, %v7541_v37  ;;  %v4603_v0 = vrot.slane %v4589_v56, %v7541_v37  ;;  %v4297_v29 = vpop.permute.xlu1 %4296  ;;  %v4281_v31 = vpop.permute.xlu0 %4280  ;;  %v5036_v42 = vrot.slane %v5028_v16, %v7553_v43  ;;  %v4977_v46 = vcombine.high %v8530_v14, %v8533_v20 }
 0xd39   : > { %v5048_v41 = vcombine.low %v4544_v34, %v4551_v35  ;;  %v6605_v53 = vcombine.high %v4544_v34, %v4551_v35  ;;  %v5064_v6 = vcombine.low %v4560_v22, %v4567_v47  ;;  %v6606_v18 = vcombine.high %v4560_v22, %v4567_v47 }
 0xd3a   : > { %v4604_v28 = vcombine.low %v4580_v24, %v4596_v11  ;;  %v4605_v62 = vcombine.high %v4580_v24, %v4596_v11  ;;  %v4620_v60 = vcombine.low %v4587_v26, %v4603_v0  ;;  %v4621_v3 = vcombine.high %v4587_v26, %v4603_v0 }
 0xd3b   : > { %v8553_v39 = vrot.slane %v5048_v41, %v7541_v37  ;;  %v8556_v61 = vrot.slane %v6605_v53, %v7541_v37  ;;  %v8559_v1 = vrot.slane %v5064_v6, %v7541_v37  ;;  %v8562_v15 = vrot.slane %v6606_v18, %v7541_v37  ;;  %6944 = vmatpush3.bf16.xpose.msra.mxu0 %v8434_v32 }
 0xd3c   : > { %v4612_v12 = vrot.slane %v4604_v28, %v7553_v43  ;;  %v4619_v50 = vrot.slane %v4605_v62, %v7553_v43  ;;  %v4628_v9 = vrot.slane %v4620_v60, %v7553_v43  ;;  %v4635_v45 = vrot.slane %v4621_v3, %v7553_v43  ;;  %6956 = vmatpush3.bf16.xpose.msra.mxu1 %v8478_v52  ;;  %v4313_v13 = vpop.permute.xlu1 %4312  ;;  %v4299_v19 = vpop.permute.xlu0 %4298 }
 0xd3d   : > { %v4640_v25 = vcombine.low %v4281_v31, %v4313_v13  ;;  %v4641_v4 = vcombine.high %v4281_v31, %v4313_v13  ;;  %6945 = vmatprep.subr.bf16.mxu0 %v8957_v57  ;;  %6957 = vmatprep.subr.bf16.mxu1 %v8957_v57  ;;  %v5650_v32 = vsel %vm2094_vm4, %v8340_v54, 0  ;;  %v5044_v24 = vcombine.low %v8536_v21, %v5036_v42 }
 0xd3e   : > { %v5116_v26 = vcombine.low %v4612_v12, %v4619_v50  ;;  %v6607_v58 = vcombine.high %v4612_v12, %v4619_v50  ;;  %v5132_v14 = vcombine.low %v4628_v9, %v4635_v45  ;;  %v6608_v20 = vcombine.high %v4628_v9, %v4635_v45 }
 0xd3f   : > { %v4648_v27 = vrot.slane %v4640_v25, %v7541_v37  ;;  %v4655_v52 = vrot.slane %v4641_v4, %v7541_v37  ;;  %v5456_v30 = vpack.c.bf16 %v5044_v24, %v4976_v7  ;;  %v5045_v51 = vcombine.high %v8536_v21, %v5036_v42 }
 0xd40   : > { %v8579_v44 = vrot.slane %v5116_v26, %v7541_v37  ;;  %v8582_v38 = vrot.slane %v6607_v58, %v7541_v37  ;;  %v8585_v54 = vrot.slane %v5132_v14, %v7541_v37  ;;  %v8588_v56 = vrot.slane %v6608_v20, %v7541_v37  ;;  %v4329_v16 = vpop.permute.xlu1 %4328  ;;  %v4315_v34 = vpop.permute.xlu0 %4314 }
 0xd41   : > { %v4656_v35 = vcombine.low %v4297_v29, %v4329_v16  ;;  %v4657_v22 = vcombine.high %v4297_v29, %v4329_v16  ;;  %v4708_v7 = vcombine.low %v8522_v17, %v4315_v34  ;;  %v4709_v21 = vcombine.high %v8522_v17, %v4315_v34 }
 0xd42   : > { %v5460_v47 = vpack.c.bf16 %v5045_v51, %v4977_v46  ;;  %v5080_v11 = vcombine.low %v8553_v39, %v8556_v61  ;;  %v5096_v0 = vcombine.low %v8559_v1, %v8562_v15  ;;  %v5148_v31 = vcombine.low %v8579_v44, %v8582_v38 }
 0xd43   : > { %v4664_v42 = vrot.slane %v4656_v35, %v7541_v37  ;;  %v4671_v41 = vrot.slane %v4657_v22, %v7541_v37  ;;  %v4716_v29 = vrot.slane %v4708_v7, %v7541_v37  ;;  %v4723_v53 = vrot.slane %v4709_v21, %v7541_v37  ;;  %6946 = vmatpush3.bf16.xpose.msra.mxu0 %v8527_v2 }
 0xd44   : > { %6958 = vmatpush3.bf16.xpose.msra.mxu1 %v5650_v32  ;;  %v4331_v17 = vpop.permute.xlu0 %4330  ;;  %6963 = vmatprep.subr.bf16.mxu0 %v8957_v57  ;;  %v5088_v46 = vrot.slane %v5080_v11, %v7553_v43  ;;  %v5104_v6 = vrot.slane %v5096_v0, %v7553_v43  ;;  %v5156_v18 = vrot.slane %v5148_v31, %v7553_v43 }
 0xd45   : > { %v4672_v28 = vcombine.low %v4648_v27, %v4664_v42  ;;  %v4673_v62 = vcombine.high %v4648_v27, %v4664_v42  ;;  %v4688_v60 = vcombine.low %v4655_v52, %v4671_v41  ;;  %v4689_v3 = vcombine.high %v4655_v52, %v4671_v41  ;;  %6975 = vmatprep.subr.bf16.mxu1 %v8957_v57 }
 0xd46   : > { %v4724_v12 = vcombine.low %v4299_v19, %v4331_v17  ;;  %v4725_v50 = vcombine.high %v4299_v19, %v4331_v17  ;;  %v5112_v9 = vcombine.low %v5088_v46, %v5104_v6  ;;  %v5164_v2 = vcombine.low %v8585_v54, %v8588_v56 }
 0xd47   : > { %v4680_v45 = vrot.slane %v4672_v28, %v7553_v43  ;;  %v4687_v13 = vrot.slane %v4673_v62, %v7553_v43  ;;  %v4696_v25 = vrot.slane %v4688_v60, %v7553_v43  ;;  %v4703_v4 = vrot.slane %v4689_v3, %v7553_v43 }
 0xd48   : > { %v4732_v32 = vrot.slane %v4724_v12, %v7541_v37  ;;  %v4739_v24 = vrot.slane %v4725_v50, %v7541_v37  ;;  %v5172_v26 = vrot.slane %v5164_v2, %v7553_v43  ;;  %v5113_v58 = vcombine.high %v5088_v46, %v5104_v6 }
 0xd49   : > { %v5184_v19 = vcombine.low %v4680_v45, %v4687_v13  ;;  %v6609_v14 = vcombine.high %v4680_v45, %v4687_v13  ;;  %v5200_v20 = vcombine.low %v4696_v25, %v4703_v4  ;;  %v6610_v27 = vcombine.high %v4696_v25, %v4703_v4 }
 0xd4a   : > { %v4740_v52 = vcombine.low %v4716_v29, %v4732_v32  ;;  %v4741_v51 = vcombine.high %v4716_v29, %v4732_v32  ;;  %v4756_v16 = vcombine.low %v4723_v53, %v4739_v24  ;;  %v4757_v34 = vcombine.high %v4723_v53, %v4739_v24  ;;  %6948 = vmatmul.mubr.msk.bf16.vlgmr.msra.gmra.mrb[40].mxu0 %vm2094_vm4, %v3086_v63 }
 0xd4b   : > { %v8622_v35 = vrot.slane %v5184_v19, %v7541_v37  ;;  %v8625_v22 = vrot.slane %v6609_v14, %v7541_v37  ;;  %v8628_v7 = vrot.slane %v5200_v20, %v7541_v37  ;;  %v8631_v21 = vrot.slane %v6610_v27, %v7541_v37  ;;  %6960 = vmatmul.mubr.msk.bf16.vlgmr.msra.gmra.mrb[48].mxu1 %vm2094_vm4, %v3087_v10 }
 0xd4c   : > { %v4748_v8 = vrot.slane %v4740_v52, %v7553_v43  ;;  %v4755_v63 = vrot.slane %v4741_v51, %v7553_v43  ;;  %v4764_v11 = vrot.slane %v4756_v16, %v7553_v43  ;;  %v4771_v0 = vrot.slane %v4757_v34, %v7553_v43  ;;  %6964 = vmatpush3.bf16.msra.mxu0 %v5456_v30 }
 0xd4d   : > { %6976 = vmatpush3.bf16.msra.mxu1 %v5460_v47  ;;  %6965 = vmatprep.subr.bf16.mxu0 %v8957_v57  ;;  %v5180_v31 = vcombine.low %v5156_v18, %v5172_v26  ;;  %v5181_v42 = vcombine.high %v5156_v18, %v5172_v26  ;;  %v5216_v41 = vcombine.low %v8622_v35, %v8625_v22 }
 0xd4e   : > { %v5252_v5 = vcombine.low %v4748_v8, %v4755_v63  ;;  %v6611_v29 = vcombine.high %v4748_v8, %v4755_v63  ;;  %v5268_v10 = vcombine.low %v4764_v11, %v4771_v0  ;;  %v6612_v53 = vcombine.high %v4764_v11, %v4771_v0  ;;  %6977 = vmatprep.subr.bf16.mxu1 %v8957_v57 }
 0xd4f   : > { %v5457_v17 = vpack.c.bf16 %v5180_v31, %v5112_v9  ;;  %v5461_v46 = vpack.c.bf16 %v5181_v42, %v5113_v58  ;;  %v5224_v6 = vrot.slane %v5216_v41, %v7553_v43  ;;  %v5232_v30 = vcombine.low %v8628_v7, %v8631_v21  ;;  %6971 = vmatprep.mubr.msk.bf16.mxu0 %vm7230_vm0, %v8957_v57 }
 0xd50   : > { %v5259_v47 = vrot.slane %v5252_v5, %v7541_v37  ;;  %v5267_v18 = vrot.slane %v6611_v29, %v7541_v37  ;;  %v5275_v28 = vrot.slane %v5268_v10, %v7541_v37  ;;  %v5283_v62 = vrot.slane %v6612_v53, %v7541_v37  ;;  %6983 = vmatprep.mubr.msk.bf16.mxu1 %vm7230_vm0, %v8957_v57 }
 0xd51   : > { %6966 = vmatpush3.bf16.msra.mxu0 %v5457_v17  ;;  %6978 = vmatpush3.bf16.msra.mxu1 %v5461_v46  ;;  %v5240_v60 = vrot.slane %v5232_v30, %v7553_v43  ;;  %v4945_v3 = vcombine.high %v8462_v36, %v8465_v40  ;;  %v4961_v12 = vcombine.high %v8468_v55, %v8471_v59 }
 0xd52   : > { %6967 = vmatprep.subr.bf16.mxu0 %v8957_v57  ;;  %6979 = vmatprep.subr.bf16.mxu1 %v8957_v57  ;;  %v5284_v50 = vcombine.low %v5259_v47, %v5267_v18  ;;  %v5300_v9 = vcombine.low %v5275_v28, %v5283_v62  ;;  %v5013_v2 = vcombine.high %v8487_v23, %v8490_v49 }
 0xd53   : > { %v5248_v45 = vcombine.low %v5224_v6, %v5240_v60  ;;  %v5249_v13 = vcombine.high %v5224_v6, %v5240_v60  ;;  %v4959_v25 = vrot.slane %v4945_v3, %v7553_v43  ;;  %v4975_v4 = vrot.slane %v4961_v12, %v7553_v43 }
 0xd54   : > { %v5292_v36 = vrot.slane %v5284_v50, %v7553_v43  ;;  %v5308_v40 = vrot.slane %v5300_v9, %v7553_v43  ;;  %v5027_v55 = vrot.slane %v5013_v2, %v7553_v43  ;;  %v5029_v59 = vcombine.high %v8493_v33, %v8496_v48 }
 0xd55   : > { %v4978_v32 = vcombine.low %v4959_v25, %v4975_v4  ;;  %v4979_v24 = vcombine.high %v4959_v25, %v4975_v4  ;;  %v5081_v23 = vcombine.high %v8553_v39, %v8556_v61  ;;  %v5097_v49 = vcombine.high %v8559_v1, %v8562_v15 }
 0xd56   : > { %v5316_v26 = vcombine.low %v5292_v36, %v5308_v40  ;;  %v5317_v58 = vcombine.high %v5292_v36, %v5308_v40  ;;  %v5043_v19 = vrot.slane %v5029_v59, %v7553_v43  ;;  %v5149_v14 = vcombine.high %v8579_v44, %v8582_v38 }
 0xd57   : > { %v5095_v20 = vrot.slane %v5081_v23, %v7553_v43  ;;  %v5111_v27 = vrot.slane %v5097_v49, %v7553_v43  ;;  %v5165_v33 = vcombine.high %v8585_v54, %v8588_v56  ;;  %v5217_v48 = vcombine.high %v8622_v35, %v8625_v22  ;;  %v8984_v23 = vld [vmem:[#allocation40_spill] sm:$0xff]  ;;  %v8985_v49 = vld [vmem:[#allocation39_spill] sm:$0xff] }
 0xd58   : > { %v5458_v39 = vpack.c.bf16 %v5316_v26, %v5248_v45  ;;  %v5462_v61 = vpack.c.bf16 %v5317_v58, %v5249_v13  ;;  %v5046_v1 = vcombine.low %v5027_v55, %v5043_v19  ;;  %v5047_v15 = vcombine.high %v5027_v55, %v5043_v19  ;;  %v4285_v26 = vpop.permute.xlu1 %4284  ;;  %v4287_v58 = vpop.permute.xlu0 %4286 }
 0xd59   : > { %v5114_v52 = vcombine.low %v5095_v20, %v5111_v27  ;;  %v5163_v51 = vrot.slane %v5149_v14, %v7553_v43  ;;  %v5179_v16 = vrot.slane %v5165_v33, %v7553_v43  ;;  %v5115_v44 = vcombine.high %v5095_v20, %v5111_v27 }
 0xd5a   : > { %6968 = vmatpush3.bf16.msra.mxu0 %v5458_v39  ;;  %6980 = vmatpush3.bf16.msra.mxu1 %v5462_v61  ;;  %v8687_v38 = vpack.c.bf16 %v5046_v1, %v4978_v32  ;;  %v8689_v34 = vpack.c.bf16 %v5047_v15, %v4979_v24  ;;  %v5231_v54 = vrot.slane %v5217_v48, %v7553_v43 }
 0xd5b   : > { %6969 = vmatprep.subr.bf16.mxu0 %v8957_v57  ;;  %6981 = vmatprep.subr.bf16.mxu1 %v8957_v57  ;;  %v5182_v56 = vcombine.low %v5163_v51, %v5179_v16  ;;  %v5183_v35 = vcombine.high %v5163_v51, %v5179_v16  ;;  %v5233_v22 = vcombine.high %v8628_v7, %v8631_v21  ;;  %v8986_v16 = vld [vmem:[#allocation42_spill] sm:$0xff] }
 0xd5c   : > { %v5285_v8 = vcombine.high %v5259_v47, %v5267_v18  ;;  %v5301_v63 = vcombine.high %v5275_v28, %v5283_v62  ;;  %v4301_v19 = vpop.permute.xlu1 %4300  ;;  %v4303_v14 = vpop.permute.xlu0 %4302 }
 0xd5d   : > { %v8696_v11 = vpack.c.bf16 %v5182_v56, %v5114_v52  ;;  %v8698_v0 = vpack.c.bf16 %v5183_v35, %v5115_v44  ;;  %v5247_v31 = vrot.slane %v5233_v22, %v7553_v43  ;;  %v8987_v44 = vld [vmem:[#allocation41_spill] sm:$0xff] }
 0xd5e   : > { %v5299_v42 = vrot.slane %v5285_v8, %v7553_v43  ;;  %v5315_v41 = vrot.slane %v5301_v63, %v7553_v43 }
 0xd5f   : > { %v5250_v5 = vcombine.low %v5231_v54, %v5247_v31  ;;  %v5251_v29 = vcombine.high %v5231_v54, %v5247_v31 }
 0xd60   : > { %v5318_v10 = vcombine.low %v5299_v42, %v5315_v41  ;;  %v5319_v53 = vcombine.high %v5299_v42, %v5315_v41 }
 0xd62   : > { %v8703_v17 = vpack.c.bf16 %v5318_v10, %v5250_v5  ;;  %v8705_v46 = vpack.c.bf16 %v5319_v53, %v5251_v29 }
 0xdfc   : > { %v5521_v7 = vpop.f32.mrb[36].mxu0 }
 0xdfd   : > { %v5692_v21 = vmul.f32 0.35355338, %v5521_v7  ;;  %v5576_v6 = vpop.f32.mrb[44].mxu1  ;;  %v6925_v30 = vpop.f32.mrb[37].mxu0 }
 0xdfe   : > { %v5693_v47 = vmul.f32 0.35355338, %v5576_v6  ;;  %v6937_v18 = vpop.f32.mrb[45].mxu1  ;;  %v5524_v28 = vpop.f32.mrb[38].mxu0 }
 0xdff   : > { %v5579_v62 = vpop.f32.mrb[46].mxu1  ;;  %v6926_v60 = vpop.f32.mrb[39].mxu0  ;;  %v5696_v3 = vsel %vm1104_vm1, %v5692_v21, -inf }
 0xe00   : > { %v6938_v12 = vpop.f32.mrb[47].mxu1  ;;  %v5699_v50 = vsel %vm1104_vm1, %v5693_v47, -inf  ;;  %5697 = vmax.xlane.f32.xlu1 %v5696_v3 }
 0xe01   : > { %5700 = vmax.xlane.f32.xlu0 %v5699_v50 }
 0xe1d   : > { %v5631_v9 = vpop.f32.mrb[40].mxu0 }
 0xe1e   : > { %v5694_v2 = vmul.f32 0.35355338, %v5631_v9  ;;  %v5686_v45 = vpop.f32.mrb[48].mxu1  ;;  %v6949_v13 = vpop.f32.mrb[41].mxu0 }
 0xe1f   : > { %v5695_v25 = vmul.f32 0.35355338, %v5686_v45  ;;  %v6961_v4 = vpop.f32.mrb[49].mxu1  ;;  %v5634_v36 = vpop.f32.mrb[42].mxu0 }
 0xe20   : > { %v5689_v40 = vpop.f32.mrb[50].mxu1  ;;  %v6950_v55 = vpop.f32.mrb[43].mxu0  ;;  %v5702_v59 = vsel %vm1104_vm1, %v5694_v2, -inf }
 0xe21   : > { %v6962_v32 = vpop.f32.mrb[51].mxu1  ;;  %v5705_v24 = vsel %vm1104_vm1, %v5695_v25, -inf  ;;  %5703 = vmax.xlane.f32.xlu0 %v5702_v59 }
 0xe22   : > { %5706 = vmax.xlane.f32.xlu1 %v5705_v24 }
 0xe33   : > { %4316 = vrot.lane.b32.xlu1 %v8984_v23, %s7231_s2 }
 0xe37   : > { %4318 = vrot.lane.b32.xlu0 %v8985_v49, %s7231_s2 }
 0xe8d   : > { %v5698_v20 = vpop.xlane.xlu1 %5697 }
 0xe8e   : > { %v5701_v27 = vpop.xlane.xlu0 %5700  ;;  %v5708_v33 = vsub.f32 %v5692_v21, %v5698_v20 }
 0xe8f   : > { %v5709_v48 = vsub.f32 %v5693_v47, %v5701_v27 }
 0xe90   : > { %v5712_v39 = vmul.f32 1.442695, %v5708_v33 }
 0xe91   : > { %v5714_v61 = vmul.f32 1.442695, %v5709_v48 }
 0xe92   : > { %7164 = vpow2.f32 %v5712_v39 }
 0xe93   : > { %7166 = vpow2.f32 %v5714_v61 }
 0xe9c   : > { %v8715_v1 = vpop.eup %7164 }
 0xe9d   : > { %v8717_v15 = vpop.eup %7166  ;;  %v5720_v52 = vsel %vm1104_vm1, %v8715_v1, 0.0 }
 0xe9e   : > { %5721 = vadd.xlane.f32.xlu1 %v5720_v52  ;;  %v5723_v51 = vsel %vm1104_vm1, %v8717_v15, 0.0 }
 0xe9f   : > { %5724 = vadd.xlane.f32.xlu0 %v5723_v51 }
 0xeae   : > { %v5704_v54 = vpop.xlane.xlu0 %5703 }
 0xeaf   : > { %4332 = vrot.lane.b32.xlu1 %v8986_v16, %s7231_s2  ;;  %v5707_v56 = vpop.xlane.xlu1 %5706  ;;  %v5710_v35 = vsub.f32 %v5694_v2, %v5704_v54 }
 0xeb0   : > { %v5711_v22 = vsub.f32 %v5695_v25, %v5707_v56 }
 0xeb1   : > { %v5716_v8 = vmul.f32 1.442695, %v5710_v35 }
 0xeb2   : > { %v5718_v63 = vmul.f32 1.442695, %v5711_v22  ;;  %v4319_v10 = vpop.permute.xlu0 %4318 }
 0xeb3   : > { %7168 = vpow2.f32 %v5716_v8  ;;  %v4317_v29 = vpop.permute.xlu1 %4316  ;;  %v4844_v30 = vcombine.low %v4287_v58, %v4319_v10  ;;  %v4845_v47 = vcombine.high %v4287_v58, %v4319_v10 }
 0xeb4   : > { %7170 = vpow2.f32 %v5718_v63  ;;  %v4776_v21 = vcombine.low %v4285_v26, %v4317_v29  ;;  %v4777_v6 = vcombine.high %v4285_v26, %v4317_v29 }
 0xeb5   : > { %4334 = vrot.lane.b32.xlu0 %v8987_v44, %s7231_s2  ;;  %v4852_v13 = vrot.slane %v4844_v30, %v7541_v37  ;;  %v4859_v25 = vrot.slane %v4845_v47, %v7541_v37  ;;  %s8988_s2 = sld [smem:[#allocation11_spill]] }
 0xeb6   : > { %v4784_v50 = vrot.slane %v4776_v21, %v7541_v37  ;;  %v4791_v9 = vrot.slane %v4777_v6, %v7541_v37 }
 0xebd   : > { %v8727_v31 = vpop.eup %7168 }
 0xebe   : > { %v8729_v42 = vpop.eup %7170  ;;  %v5726_v41 = vsel %vm1104_vm1, %v8727_v31, 0.0 }
 0xebf   : > { %v5729_v5 = vsel %vm1104_vm1, %v8729_v42, 0.0 }
 0xed3   : > { %5727 = vadd.xlane.f32.xlu1 %v5726_v41 }
 0xed4   : > { %5730 = vadd.xlane.f32.xlu0 %v5729_v5 }
 0xf2b   : > { %v5722_v53 = vpop.xlane.xlu1 %5721 }
 0xf2c   : > { %v5725_v7 = vpop.xlane.xlu0 %5724  ;;  %7172 = vrcp.f32 %v5722_v53 }
 0xf2d   : > { %7174 = vrcp.f32 %v5725_v7 }
 0xf2f   : > { %v4333_v18 = vpop.permute.xlu1 %4332 }
 0xf30   : > { %v4792_v28 = vcombine.low %v4301_v19, %v4333_v18  ;;  %v4793_v62 = vcombine.high %v4301_v19, %v4333_v18  ;;  %v4335_v60 = vpop.permute.xlu0 %4334 }
 0xf31   : > { %v4860_v3 = vcombine.low %v4303_v14, %v4335_v60  ;;  %v4861_v12 = vcombine.high %v4303_v14, %v4335_v60 }
 0xf32   : > { %v4800_v2 = vrot.slane %v4792_v28, %v7541_v37  ;;  %v4807_v45 = vrot.slane %v4793_v62, %v7541_v37 }
 0xf33   : > { %v4868_v4 = vrot.slane %v4860_v3, %v7541_v37  ;;  %v4875_v36 = vrot.slane %v4861_v12, %v7541_v37 }
 0xf34   : > { %v4808_v40 = vcombine.low %v4784_v50, %v4800_v2  ;;  %v4809_v55 = vcombine.high %v4784_v50, %v4800_v2  ;;  %v4824_v59 = vcombine.low %v4791_v9, %v4807_v45  ;;  %v4825_v32 = vcombine.high %v4791_v9, %v4807_v45 }
 0xf35   : > { %v4876_v24 = vcombine.low %v4852_v13, %v4868_v4  ;;  %v4877_v23 = vcombine.high %v4852_v13, %v4868_v4  ;;  %v4892_v49 = vcombine.low %v4859_v25, %v4875_v36  ;;  %v4893_v26 = vcombine.high %v4859_v25, %v4875_v36 }
 0xf36   : > { %v4816_v58 = vrot.slane %v4808_v40, %v7553_v43  ;;  %v4823_v19 = vrot.slane %v4809_v55, %v7553_v43  ;;  %v4832_v14 = vrot.slane %v4824_v59, %v7553_v43  ;;  %v4839_v20 = vrot.slane %v4825_v32, %v7553_v43  ;;  %v7173_v62 = vpop.eup %7172 }
 0xf37   : > { %v4884_v27 = vrot.slane %v4876_v24, %v7553_v43  ;;  %v4891_v33 = vrot.slane %v4877_v23, %v7553_v43  ;;  %v4900_v48 = vrot.slane %v4892_v49, %v7553_v43  ;;  %v4907_v16 = vrot.slane %v4893_v26, %v7553_v43  ;;  %v7175_v60 = vpop.eup %7174 }
 0xf38   : > { %v5320_v39 = vcombine.low %v4816_v58, %v4823_v19  ;;  %v6613_v61 = vcombine.high %v4816_v58, %v4823_v19  ;;  %v5336_v52 = vcombine.low %v4832_v14, %v4839_v20  ;;  %v6614_v51 = vcombine.high %v4832_v14, %v4839_v20 }
 0xf39   : > { %v5388_v44 = vcombine.low %v4884_v27, %v4891_v33  ;;  %v6615_v54 = vcombine.high %v4884_v27, %v4891_v33  ;;  %v5404_v5 = vcombine.low %v4900_v48, %v4907_v16  ;;  %v6616_v29 = vcombine.high %v4900_v48, %v4907_v16 }
 0xf3a   : > { %v5327_v56 = vrot.slane %v5320_v39, %v7541_v37  ;;  %v5335_v35 = vrot.slane %v6613_v61, %v7541_v37  ;;  %v5343_v22 = vrot.slane %v5336_v52, %v7541_v37  ;;  %v5351_v8 = vrot.slane %v6614_v51, %v7541_v37 }
 0xf3b   : > { %v5395_v63 = vrot.slane %v5388_v44, %v7541_v37  ;;  %v5403_v41 = vrot.slane %v6615_v54, %v7541_v37  ;;  %v5411_v53 = vrot.slane %v5404_v5, %v7541_v37  ;;  %v5419_v6 = vrot.slane %v6616_v29, %v7541_v37 }
 0xf3c   : > { %v5352_v10 = vcombine.low %v5327_v56, %v5335_v35  ;;  %v5368_v7 = vcombine.low %v5343_v22, %v5351_v8  ;;  %v5736_v45 = vmul.f32 %v7173_v62, %v8715_v1  ;;  %v5737_v13 = vmul.f32 %v7175_v60, %v8717_v15 }
 0xf3d   : > { %v5420_v21 = vcombine.low %v5395_v63, %v5403_v41  ;;  %v5436_v28 = vcombine.low %v5411_v53, %v5419_v6  ;;  %v5353_v55 = vcombine.high %v5327_v56, %v5335_v35  ;;  %v5369_v59 = vcombine.high %v5343_v22, %v5351_v8 }
 0xf3e   : > { %v5360_v30 = vrot.slane %v5352_v10, %v7553_v43  ;;  %v5376_v47 = vrot.slane %v5368_v7, %v7553_v43  ;;  %v5740_v36 = vpack.c.bf16 %v5736_v45, %v5736_v45  ;;  %v5741_v40 = vpack.c.bf16 %v5737_v13, %v5737_v13 }
 0xf3f   : > { %v5428_v18 = vrot.slane %v5420_v21, %v7553_v43  ;;  %v5444_v12 = vrot.slane %v5436_v28, %v7553_v43  ;;  %v5421_v32 = vcombine.high %v5395_v63, %v5403_v41  ;;  %v5437_v24 = vcombine.high %v5411_v53, %v5419_v6 }
 0xf40   : > { %v5384_v3 = vcombine.low %v5360_v30, %v5376_v47  ;;  %v5385_v50 = vcombine.high %v5360_v30, %v5376_v47  ;;  %v5367_v1 = vrot.slane %v5353_v55, %v7553_v43  ;;  %v5383_v15 = vrot.slane %v5369_v59, %v7553_v43 }
 0xf41   : > { %v5452_v9 = vcombine.low %v5428_v18, %v5444_v12  ;;  %v5453_v2 = vcombine.high %v5428_v18, %v5444_v12  ;;  %v5435_v23 = vrot.slane %v5421_v32, %v7553_v43  ;;  %v5451_v49 = vrot.slane %v5437_v24, %v7553_v43  ;;  %v7137_v32 = vld [vmem:[%s8988_s2 + $0x8] sm:$0xff]  }
 0xf42   : > { %v5387_v26 = vcombine.high %v5367_v1, %v5383_v15 }
 0xf43   : > { %v5459_v25 = vpack.c.bf16 %v5452_v9, %v5384_v3  ;;  %v5463_v4 = vpack.c.bf16 %v5453_v2, %v5385_v50  ;;  %v5455_v58 = vcombine.high %v5435_v23, %v5451_v49  ;;  %v7136_v3 = vld [vmem:[%s8988_s2] sm:$0xff]  }
 0xf45   : > { %6970 = vmatpush3.bf16.msra.mxu0 %v5459_v25  ;;  %6982 = vmatpush3.bf16.msra.mxu1 %v5463_v4 }
 0xf46   : > { %6987 = vmatprep.subr.bf16.mxu0 %v8957_v57  ;;  %6999 = vmatprep.subr.bf16.mxu1 %v8957_v57 }
 0xf48   : > { %6972 = vmatmul.mubr.msk.bf16.vlgmr.msra.gmra.mrb[44].mxu0 %vm1104_vm1, %v5740_v36  ;;  %6984 = vmatmul.mubr.msk.bf16.vlgmr.msra.gmra.mrb[52].mxu1 %vm1104_vm1, %v5741_v40 }
 0xf49   : > { %6988 = vmatpush3.bf16.msra.mxu0 %v8687_v38  ;;  %7000 = vmatpush3.bf16.msra.mxu1 %v8689_v34  ;;  %v5386_v38 = vcombine.low %v5367_v1, %v5383_v15  ;;  %v5454_v34 = vcombine.low %v5435_v23, %v5451_v49 }
 0xf4a   : > { %6989 = vmatprep.subr.bf16.mxu0 %v8957_v57  ;;  %7001 = vmatprep.subr.bf16.mxu1 %v8957_v57 }
 0xf4b   : > { %6995 = vmatprep.mubr.msk.bf16.mxu0 %vm7230_vm0, %v8957_v57  ;;  %7007 = vmatprep.mubr.msk.bf16.mxu1 %vm7230_vm0, %v8957_v57  ;;  %v5467_v19 = vpack.c.bf16 %v5454_v34, %v5386_v38 }
 0xf4d   : > { %6990 = vmatpush3.bf16.msra.mxu0 %v8696_v11  ;;  %7002 = vmatpush3.bf16.msra.mxu1 %v8698_v0  ;;  %v5471_v11 = vpack.c.bf16 %v5455_v58, %v5387_v26 }
 0xf4e   : > { %6991 = vmatprep.subr.bf16.mxu0 %v8957_v57  ;;  %7003 = vmatprep.subr.bf16.mxu1 %v8957_v57 }
 0xf51   : > { %6992 = vmatpush3.bf16.msra.mxu0 %v8703_v17  ;;  %7004 = vmatpush3.bf16.msra.mxu1 %v8705_v46 }
 0xf52   : > { %6993 = vmatprep.subr.bf16.mxu0 %v8957_v57  ;;  %7005 = vmatprep.subr.bf16.mxu1 %v8957_v57 }
 0xf55   : > { %6994 = vmatpush3.bf16.msra.mxu0 %v5467_v19  ;;  %7006 = vmatpush3.bf16.msra.mxu1 %v5471_v11 }
 0xf56   : > { %7011 = vmatprep.subr.bf16.mxu0 %v8957_v57  ;;  %7019 = vmatprep.subr.bf16.mxu1 %v8957_v57 }
 0xf60   : > { %v5728_v0 = vpop.xlane.xlu1 %5727 }
 0xf61   : > { %7176 = vrcp.f32 %v5728_v0  ;;  %v5731_v14 = vpop.xlane.xlu0 %5730 }
 0xf62   : > { %7178 = vrcp.f32 %v5731_v14 }
 0xf6b   : > { %v7177_v20 = vpop.eup %7176 }
 0xf6c   : > { %v7179_v17 = vpop.eup %7178  ;;  %v5738_v46 = vmul.f32 %v7177_v20, %v8727_v31 }
 0xf6d   : > { %v5739_v27 = vmul.f32 %v7179_v17, %v8729_v42 }
 0xf6e   : > { %v5742_v33 = vpack.c.bf16 %v5738_v46, %v5738_v46 }
 0xf6f   : > { %v5743_v48 = vpack.c.bf16 %v5739_v27, %v5739_v27 }
 0xf70   : > { %6996 = vmatmul.mubr.msk.bf16.vlgmr.msra.gmra.mrb[48].mxu0 %vm1104_vm1, %v5742_v33  ;;  %v6627_v33 = vld [vmem:[%s8989_s10] ss:$0 sm:$0xff]  ;;  %s8997_s10 = sld [smem:[#allocation18_spill]] }
 0xf71   : > { %7008 = vmatmul.mubr.msk.bf16.vlgmr.msra.gmra.mrb[56].mxu1 %vm1104_vm1, %v5743_v48  ;;  %7015 = vmatprep.mubr.msk.bf16.mxu0 %vm7230_vm0, %v8957_v57 }
 0xf72   : > { %7023 = vmatprep.mubr.msk.bf16.mxu1 %vm7230_vm0, %v8957_v57  ;;  %7012 = vmatpush3.bf16.msra.mxu0 %v7136_v3  ;;  %v6633_v3 = vld [vmem:[%s8996_s1] ss:$0 sm:$0xff] }
 0xf73   : > { %7013 = vmatprep.subr.bf16.mxu0 %v8957_v57 }
 0xf76   : > { %7014 = vmatpush3.bf16.msra.mxu0 %v7137_v32 }
 0xf77   : > { %7027 = vmatprep.subr.bf16.mxu0 %v8957_v57 }
0x101b   : > { %v5781_v39 = vpop.f32.mrb[44].mxu0  ;;  %v5824_v61 = vpop.f32.mrb[52].mxu1 }
0x101c   : > { %v6973_v52 = vpop.f32.mrb[45].mxu0  ;;  %v6985_v51 = vpop.f32.mrb[53].mxu1 }
0x101d   : > { %v5784_v16 = vpop.f32.mrb[46].mxu0  ;;  %v5827_v31 = vpop.f32.mrb[54].mxu1 }
0x101e   : > { %v6974_v44 = vpop.f32.mrb[47].mxu0  ;;  %v6986_v42 = vpop.f32.mrb[55].mxu1  ;;  %v8993_v16 = vld [vmem:[#allocation25_spill] sm:$0xff] }
0x1043   : > { %v5867_v54 = vpop.f32.mrb[48].mxu0 }
0x1044   : > { %v5916_v56 = vcombine.low %v5781_v39, %v5867_v54  ;;  %v5917_v35 = vcombine.high %v5781_v39, %v5867_v54  ;;  %v5910_v22 = vpop.f32.mrb[56].mxu1  ;;  %v6997_v8 = vpop.f32.mrb[49].mxu0 }
0x1045   : > { %v5932_v63 = vcombine.low %v5824_v61, %v5910_v22  ;;  %v5933_v41 = vcombine.high %v5824_v61, %v5910_v22  ;;  %v7009_v5 = vpop.f32.mrb[57].mxu1  ;;  %v5870_v29 = vpop.f32.mrb[50].mxu0  ;;  %v7138_v8 = vld [vmem:[%s8991_s15] sm:$0xff]  }
0x1046   : > { %v5924_v10 = vrot.slane %v5916_v56, %v7541_v37  ;;  %v5931_v53 = vrot.slane %v5917_v35, %v7541_v37  ;;  %v5913_v7 = vpop.f32.mrb[58].mxu1  ;;  %v6998_v21 = vpop.f32.mrb[51].mxu0  ;;  %7020 = vmatpush3.bf16.msra.mxu1 %v7138_v8 }
0x1047   : > { %v5940_v6 = vrot.slane %v5932_v63, %v7541_v37  ;;  %v5947_v30 = vrot.slane %v5933_v41, %v7541_v37  ;;  %v7010_v47 = vpop.f32.mrb[59].mxu1  ;;  %v7139_v63 = vld [vmem:[%s8991_s15 + $0x8] sm:$0xff]   ;;  %7021 = vmatprep.subr.bf16.mxu1 %v8957_v57 }
0x1049   : > { %v5948_v18 = vcombine.low %v5924_v10, %v5940_v6  ;;  %v5949_v28 = vcombine.high %v5924_v10, %v5940_v6  ;;  %v5964_v62 = vcombine.low %v5931_v53, %v5947_v30  ;;  %v5965_v60 = vcombine.high %v5931_v53, %v5947_v30  ;;  %v6632_v30 = vld [vmem:[%s8995_s7] ss:$0 sm:$0xff] }
0x104a   : > { %7022 = vmatpush3.bf16.msra.mxu1 %v7139_v63 }
0x104b   : > { %v5956_v12 = vrot.slane %v5948_v18, %v7553_v43  ;;  %v5963_v50 = vrot.slane %v5949_v28, %v7553_v43  ;;  %v5972_v9 = vrot.slane %v5964_v62, %v7553_v43  ;;  %v5979_v2 = vrot.slane %v5965_v60, %v7553_v43  ;;  %7039 = vmatprep.subr.bf16.mxu1 %v8957_v57 }
0x104d   : > { %v5984_v45 = vcombine.low %v5956_v12, %v5963_v50  ;;  %v6625_v13 = vcombine.high %v5956_v12, %v5963_v50  ;;  %v6000_v25 = vcombine.low %v5972_v9, %v5979_v2  ;;  %v6626_v4 = vcombine.high %v5972_v9, %v5979_v2 }
0x104f   : > { %v5991_v36 = vrot.slane %v5984_v45, %v7541_v37  ;;  %v5999_v40 = vrot.slane %v6625_v13, %v7541_v37  ;;  %v6007_v55 = vrot.slane %v6000_v25, %v7541_v37  ;;  %v6015_v59 = vrot.slane %v6626_v4, %v7541_v37  ;;  %v6637_v4 = vld [vmem:[%s8997_s10] ss:$0 sm:$0xff] }
0x1051   : > { %v6017_v24 = vcombine.high %v5991_v36, %v5999_v40  ;;  %v6033_v1 = vcombine.high %v6007_v55, %v6015_v59  ;;  %v6016_v15 = vcombine.low %v5991_v36, %v5999_v40  ;;  %v6032_v23 = vcombine.low %v6007_v55, %v6015_v59 }
0x1053   : > { %v6031_v49 = vrot.slane %v6017_v24, %v7553_v43  ;;  %v6047_v38 = vrot.slane %v6033_v1, %v7553_v43  ;;  %v6024_v34 = vrot.slane %v6016_v15, %v7553_v43  ;;  %v6040_v26 = vrot.slane %v6032_v23, %v7553_v43 }
0x1055   : > { %v6050_v58 = vcombine.low %v6031_v49, %v6047_v38  ;;  %v6049_v19 = vcombine.high %v6024_v34, %v6040_v26  ;;  %v6051_v37 = vcombine.high %v6031_v49, %v6047_v38  ;;  %v6048_v11 = vcombine.low %v6024_v34, %v6040_v26  ;;  %v7144_v26 = vld [vmem:[%s7413_s4] sm:$0xff]  }
0x1057   : > { %6057 = vrot.lane.b32.xlu1 %v6050_v58, %s7237_s18  ;;  %6053 = vrot.lane.b32.xlu0 %v6049_v19, %s7238_s28  ;;  %s8992_s18 = sld [smem:[#allocation17_spill]]  ;;  %s8994_s28 = sld [smem:[#allocation13_spill]]  ;;  %v7145_v58 = vld [vmem:[%s7413_s4 + $0x8] sm:$0xff]  }
0x105b   : > { %6061 = vrot.lane.b32.xlu1 %v6051_v37, %s8990_s11  ;;  %s8998_s11 = sld [smem:[#allocation19_spill]] }
0x105d   : > { %v7140_v41 = vld [vmem:[%s8992_s18] sm:$0xff]   ;;  %v7141_v5 = vld [vmem:[%s8992_s18 + $0x8] sm:$0xff]   ;;  %v7142_v62 = vld [vmem:[%s8992_s18 + $0x10] sm:$0xff]  }
0x105e   : > { %v6631_v21 = vld [vmem:[%s8994_s28] ss:$0 sm:$0xff]  ;;  %v7143_v60 = vld [vmem:[%s8992_s18 + $0x18] sm:$0xff]   ;;  %s8999_s28 = sshll.u32 %s9001_s23, 3 }
0x105f   : > { %s1085_s7 = scalar_lea.vmem %s7423_s20, %s8999_s28 }
0x10c9   : > { %v6058_v0 = vpop.permute.xlu1 %6057  ;;  %v6054_v14 = vpop.permute.xlu0 %6053 }
0x10ca   : > { %v6064_v20 = vsel %vm2094_vm4, %v6048_v11, %v6054_v14  ;;  %v6643_v14 = vld [vmem:[%s8998_s11] ss:$0 sm:$0xff] }
0x10cb   : > { %v6065_v46 = vsel %vm2665_vm6, %v6064_v20, %v6058_v0 }
0x10cd   : > { %v6062_v17 = vpop.permute.xlu1 %6061 }
0x10ce   : > { %v6066_v43 = vsel %vm2667_vm7, %v6065_v46, %v6062_v17  ;;  %v6644_v17 = vld [vmem:[%s7408_s27] ss:$0 sm:$0xff] }
0x10cf   : > { %v6072_v27 = vpack.c.bf16 %v6066_v43, %v6066_v43 }
0x10d1   : > { %7016 = vmatmul.mubr.msk.bf16.vlgmr.msra.gmra.mrb[52].mxu0 %vm1202_vm3, %v6072_v27 }
0x10d2   : > { %7035 = vmatprep.mubr.msk.bf16.mxu0 %vm7230_vm0, %v8957_v57  ;;  %7028 = vmatpush3.bf16.msra.mxu0 %v7140_v41 }
0x10d3   : > { %7029 = vmatprep.subr.bf16.mxu0 %v8957_v57 }
0x10d6   : > { %7030 = vmatpush3.bf16.msra.mxu0 %v7141_v5 }
0x10d7   : > { %7031 = vmatprep.subr.bf16.mxu0 %v8957_v57 }
0x10da   : > { %7032 = vmatpush3.bf16.msra.mxu0 %v7142_v62 }
0x10db   : > { %7033 = vmatprep.subr.bf16.mxu0 %v8957_v57 }
0x10de   : > { %7034 = vmatpush3.bf16.msra.mxu0 %v7143_v60 }
0x11a4   : > { %v6128_v48 = vpop.f32.mrb[52].mxu0 }
0x11a5   : > { %v6129_v39 = vadd.f32 %v6627_v33, %v6128_v48  ;;  %v7017_v61 = vpop.f32.mrb[53].mxu0  ;;  %v6645_v33 = vld [vmem:[%s7418_s30] ss:$0 sm:$0xff] }
0x11a6   : > { %v6131_v52 = vpop.f32.mrb[54].mxu0 }
0x11a7   : > { %v7018_v51 = vpop.f32.mrb[55].mxu0  ;;  %v6134_v31 = vadd.f32 %v6129_v39, %v8993_v16 }
0x11a9   : > { %v6137_v44 = vsel %vm1202_vm3, %v6134_v31, 0.0 }
0x11aa   : > { %6138 = vadd.xlane.f32.xlu0 %v6137_v44 }
0x1237   : > { %v6139_v42 = vpop.xlane.xlu0 %6138 }
0x1238   : > { %v6140_v54 = vmul.f32 0.03125, %v6139_v42 }
0x123a   : > { %v6141_v56 = vsub.f32 %v6134_v31, %v6140_v54 }
0x123c   : > { %v6142_v35 = vmul.f32 %v6141_v56, %v6141_v56 }
0x123e   : > { %v6143_v22 = vsel %vm1202_vm3, %v6142_v35, 0.0 }
0x123f   : > { %6144 = vadd.xlane.f32.xlu1 %v6143_v22 }
0x12cc   : > { %v6145_v29 = vpop.xlane.xlu1 %6144 }
0x12cd   : > { %v6146_v10 = vmul.f32 0.03125, %v6145_v29 }
0x12cf   : > { %v6147_v53 = vadd.f32 1e-05, %v6146_v10 }
0x12d1   : > { %7180 = vrsqrt.f32 %v6147_v53 }
0x12db   : > { %v7181_v7 = vpop.eup %7180 }
0x12dc   : > { %v6149_v6 = vmul.f32 %v7181_v7, %v6141_v56 }
0x12de   : > { %v6156_v47 = vmul.f32 %v6631_v21, %v6149_v6 }
0x12e0   : > { %v6163_v18 = vadd.f32 %v6632_v30, %v6156_v47 }
0x12e2   : > { %v6169_v28 = vpack.c.bf16 %v6163_v18, %v6163_v18 }
0x12e4   : > { %7024 = vmatmul.mubr.msk.bf16.vlgmr.msra.gmra.mrb[60].mxu1 %vm1202_vm3, %v6169_v28 }
0x12e5   : > { %7043 = vmatprep.mubr.msk.bf16.mxu1 %vm7230_vm0, %v8957_v57  ;;  %7040 = vmatpush3.bf16.msra.mxu1 %v7144_v26 }
0x12e6   : > { %7041 = vmatprep.subr.bf16.mxu1 %v8957_v57 }
0x12e9   : > { %7042 = vmatpush3.bf16.msra.mxu1 %v7145_v58 }
0x13b7   : > { %v6225_v12 = vpop.f32.mrb[60].mxu1 }
0x13b8   : > { %v6226_v50 = vadd.f32 %v6633_v3, %v6225_v12  ;;  %v7025_v9 = vpop.f32.mrb[61].mxu1 }
0x13b9   : > { %v6228_v2 = vpop.f32.mrb[62].mxu1 }
0x13ba   : > { %v6231_v45 = vmax.f32 %v6226_v50, 0.0  ;;  %v7026_v13 = vpop.f32.mrb[63].mxu1 }
0x13bc   : > { %v6241_v25 = vpack.c.bf16 %v6231_v45, %v6231_v45 }
0x13be   : > { %7036 = vmatmul.mubr.msk.bf16.vlgmr.msra.gmra.mrb[56].mxu0 %vm1104_vm1, %v6241_v25 }
0x1491   : > { %v6309_v36 = vpop.f32.mrb[56].mxu0 }
0x1492   : > { %v6310_v40 = vadd.f32 %v6637_v4, %v6309_v36  ;;  %v7037_v55 = vpop.f32.mrb[57].mxu0 }
0x1493   : > { %v6312_v59 = vpop.f32.mrb[58].mxu0 }
0x1494   : > { %v6315_v32 = vadd.f32 %v6310_v40, %v6163_v18  ;;  %v7038_v24 = vpop.f32.mrb[59].mxu0 }
0x1496   : > { %v6318_v1 = vsel %vm1202_vm3, %v6315_v32, 0.0 }
0x1497   : > { %6319 = vadd.xlane.f32.xlu0 %v6318_v1 }
0x1524   : > { %v6320_v15 = vpop.xlane.xlu0 %6319 }
0x1525   : > { %v6321_v23 = vmul.f32 0.03125, %v6320_v15 }
0x1527   : > { %v6322_v49 = vsub.f32 %v6315_v32, %v6321_v23 }
0x1529   : > { %v6323_v38 = vmul.f32 %v6322_v49, %v6322_v49 }
0x152b   : > { %v6324_v34 = vsel %vm1202_vm3, %v6323_v38, 0.0 }
0x152c   : > { %6325 = vadd.xlane.f32.xlu0 %v6324_v34 }
0x15b9   : > { %v6326_v19 = vpop.xlane.xlu0 %6325 }
0x15ba   : > { %v6327_v37 = vmul.f32 0.03125, %v6326_v19 }
0x15bc   : > { %v6328_v11 = vadd.f32 1e-05, %v6327_v37 }
0x15be   : > { %7182 = vrsqrt.f32 %v6328_v11 }
0x15c8   : > { %v7183_v0 = vpop.eup %7182 }
0x15c9   : > { %v6330_v20 = vmul.f32 %v7183_v0, %v6322_v49 }
0x15cb   : > { %v6337_v46 = vmul.f32 %v6643_v14, %v6330_v20 }
0x15cd   : > { %v6344_v43 = vadd.f32 %v6644_v17, %v6337_v46 }
0x15cf   : > { %v6350_v27 = vpack.c.bf16 %v6344_v43, %v6344_v43 }
0x15d1   : > { %7044 = vmatmul.mubr.msk.bf16.vlgmr.msra.gmra.mrb[64].mxu1 %vm1202_vm3, %v6350_v27 }
0x16a4   : > { %v6406_v48 = vpop.f32.mrb[64].mxu1 }
0x16a5   : > { %v6407_v39 = vadd.f32 %v6645_v33, %v6406_v48  ;;  %v7045_v57 = vpop.f32.mrb[65].mxu1 }
0x16a6   : > { %v6409_v61 = vpop.f32.mrb[66].mxu1 }
0x16a7   : > { %6412 = vst [vmem:[%s1085_s7] sm:$0xff] %v6407_v39  ;;  %v7046_v52 = vpop.f32.mrb[67].mxu1 }
0x16a8 PF: > { %s81_s22 = sadd.s32 1, %s7190_s22  }
0x16a9   : > { %p78_p4 = scmp.ge.s32.totalorder %s81_s22, 4  }
0x16ab   :  { %80 = sbr.rel (!%p78_p4) target bundleno = 59 (0x3b), region = 228 }

</bundles_post_ra>
